<compile_context>
chip_gen: v5e
topology: v5e:2x2
jax: 0.10.0
libtpu: 0.0.40
codegen_flags: <defaults>
</compile_context>

<pallas_src>
import jax
import jax.numpy as jnp
from jax.experimental import pallas as pl
from jax.experimental.pallas import tpu as pltpu

_IN_PAD = 896     # 784 padded up to 7 * 128
_H = 1280         # 1200 padded up to 10 * 128 (= 5 * 256: full MXU tiles)
_OUT_PAD = 128    # 10 padded up to 128 (lane-dense output store)


def _round_up(n, m):
    return ((n + m - 1) // m) * m


def _teacher_mlp_kernel(x_ref, w1_ref, b1_ref, w2_ref, b2_ref, w3_ref, b3_ref,
                        o_ref):
    # fc1 + (dropout = identity) + relu   (bf16 MXU, f32 accumulate/epilogue)
    h = jnp.dot(x_ref[...], w1_ref[...],
                preferred_element_type=jnp.float32) + b1_ref[...]
    h = jnp.maximum(h, 0.0).astype(jnp.bfloat16)
    # fc2 + (dropout = identity) + relu
    h = jnp.dot(h, w2_ref[...],
                preferred_element_type=jnp.float32) + b2_ref[...]
    h = jnp.maximum(h, 0.0).astype(jnp.bfloat16)
    # fc3 (logits, padded to 128 lanes; padded weight/bias columns are zero)
    o_ref[...] = (jnp.dot(h, w3_ref[...],
                          preferred_element_type=jnp.float32) + b3_ref[...]
                  ).astype(o_ref.dtype)


def _const_spec(shape):
    # Weight/bias block: same block for every grid step -> VMEM-resident.
    return pl.BlockSpec(shape, lambda i, _shape=shape: tuple(0 for _ in _shape))


def teacher_forward(x, params):
    """x: (B, 1, 28, 28) or (B, 784) float. Returns (B, 10) f32 logits."""
    w1, b1, w2, b2, w3, b3 = params   # bf16 weights (padded), f32 biases (padded)

    xb = x.reshape(-1, 784)
    B = xb.shape[0]

    # ---- batch tiling ------------------------------------------------------
    if B <= 256:
        # Small batch: one tile, rounded to the bf16 sublane pack (16 rows).
        TB = _round_up(max(B, 1), 16)
        B_pad = TB
    else:
        # Large batch: big tiles (amortize per-grid-step overhead) while
        # guaranteeing >= 2 tiles so both v7x TensorCores get work.
        B_pad = _round_up(B, 512)
        if B_pad >= 2048:
            TB = 1024
            B_pad = _round_up(B, TB)      # >= 2 tiles of 1024
        else:
            TB = B_pad // 2               # 256 / 512 / 768 -> exactly 2 tiles
    n_tiles = B_pad // TB

    # Pad features 784 -> 896 and batch B -> B_pad with zeros, in bf16.
    xp = jnp.pad(xb.astype(jnp.bfloat16),
                 ((0, B_pad - B), (0, _IN_PAD - 784)))

    # ---- advisory cost estimate (padded dims) ------------------------------
    weight_bytes = ((_IN_PAD * _H + _H * _H + _H * _OUT_PAD) * 2   # bf16 weights
                    + (_H + _H + _OUT_PAD) * 4)                    # f32 biases
    bytes_accessed = (
        B_pad * _IN_PAD * 2                        # x (bf16)
        + weight_bytes * min(n_tiles, 2)           # weights streamed per core
        + B_pad * _OUT_PAD * 4                     # output (f32)
    )
    cost = pl.CostEstimate(
        flops=2 * B_pad * (_IN_PAD * _H + _H * _H + _H * _OUT_PAD),
        transcendentals=0,
        bytes_accessed=bytes_accessed,
    )

    # Double-buffered weights (~11.3 MiB) + x/out buffers + f32 temps:
    # ~24 MiB at TB<=768, ~31 MiB at TB=1024 -> honest limits, < v7x's 64 MiB.
    vmem_limit = (40 << 20) if TB > 768 else (32 << 20)

    out = pl.pallas_call(
        _teacher_mlp_kernel,
        out_shape=jax.ShapeDtypeStruct((B_pad, _OUT_PAD), jnp.float32),
        grid=(n_tiles,),
        in_specs=[
            pl.BlockSpec((TB, _IN_PAD), lambda i: (i, 0)),   # x tile (streams)
            _const_spec((_IN_PAD, _H)),    # W1^T
            _const_spec((1, _H)),          # b1
            _const_spec((_H, _H)),         # W2^T
            _const_spec((1, _H)),          # b2
            _const_spec((_H, _OUT_PAD)),   # W3^T (zero-padded cols 10..127)
            _const_spec((1, _OUT_PAD)),    # b3  (zero-padded cols 10..127)
        ],
        out_specs=pl.BlockSpec((TB, _OUT_PAD), lambda i: (i, 0)),
        compiler_params=pltpu.CompilerParams(
            dimension_semantics=("parallel",),
            vmem_limit_bytes=vmem_limit,
        ),
        cost_estimate=cost,
    )(xp, w1, b1, w2, b2, w3, b3)

    return out[:B, :10]


def init_teacher_params(key):
    """Deterministic init mimicking nn.Linear default (U(-1/sqrt(fan_in), +)).

    Weights are stored transposed as (in, out), zero-padded to lane-dense
    shapes (896 / 1280 / 128), and cast to bf16; biases stay f32 (zero-padded).
    Zero padding keeps the forward pass exact: padded input columns multiply
    zero weight rows, padded hidden columns get zero weight + zero bias (ReLU
    of 0 is 0), and padded logit columns are sliced off.
    """
    ks = jax.random.split(key, 6)

    def linear(kw, kb, fan_in, fan_out, pad_in, pad_out):
        bound = 1.0 / jnp.sqrt(jnp.float32(fan_in))
        w = jax.random.uniform(kw, (fan_in, fan_out), jnp.float32,
                               minval=-bound, maxval=bound)
        b = jax.random.uniform(kb, (1, fan_out), jnp.float32,
                               minval=-bound, maxval=bound)
        w = jnp.pad(w, ((0, pad_in - fan_in), (0, pad_out - fan_out)))
        b = jnp.pad(b, ((0, 0), (0, pad_out - fan_out)))
        return w.astype(jnp.bfloat16), b.astype(jnp.float32)

    w1, b1 = linear(ks[0], ks[1], 784, 1200, _IN_PAD, _H)
    w2, b2 = linear(ks[2], ks[3], 1200, 1200, _H, _H)
    w3, b3 = linear(ks[4], ks[5], 1200, 10, _H, _OUT_PAD)
    return (w1, b1, w2, b2, w3, b3)


if __name__ == "__main__":
    key = jax.random.PRNGKey(0)
    k_x, k_p = jax.random.split(key)

    # Small MNIST-like batch: (B=2, C=1, H=28, W=28)
    x = jax.random.normal(k_x, (2, 1, 28, 28), dtype=jnp.float32)
    params = init_teacher_params(k_p)

    logits = teacher_forward(x, params)
    jax.block_until_ready(logits)

    assert logits.shape == (2, 10) and logits.dtype == jnp.float32
    assert bool(jnp.all(jnp.isfinite(logits)))
    print("KERNEL_OK")
</pallas_src>

<mosaic_0001>
module attributes {stable_mosaic.version = 11 : i64} {
  func.func @_teacher_mlp_kernel(%arg0: i32, %arg1: memref<16x896xbf16, #tpu.memory_space<vmem>>, %arg2: memref<896x1280xbf16, #tpu.memory_space<vmem>>, %arg3: memref<1x1280xf32, #tpu.memory_space<vmem>>, %arg4: memref<1280x1280xbf16, #tpu.memory_space<vmem>>, %arg5: memref<1x1280xf32, #tpu.memory_space<vmem>>, %arg6: memref<1280x128xbf16, #tpu.memory_space<vmem>>, %arg7: memref<1x128xf32, #tpu.memory_space<vmem>>, %arg8: memref<16x128xf32, #tpu.memory_space<vmem>>) attributes {dimension_semantics = [#tpu.dimension_semantics<parallel>], iteration_bounds = array<i64: 1>, scalar_prefetch = 0 : i64, scratch_operands = 0 : i64, tpu.core_type = #tpu.core_type<tc>, window_params = [{transform_indices = @transform_0, window_bounds = array<i64: 16, 896>}, {pipeline_mode = #tpu.pipeline_mode<synchronous>, transform_indices = @transform_1, window_bounds = array<i64: 896, 1280>}, {pipeline_mode = #tpu.pipeline_mode<synchronous>, transform_indices = @transform_2, window_bounds = array<i64: 1, 1280>}, {pipeline_mode = #tpu.pipeline_mode<synchronous>, transform_indices = @transform_3, window_bounds = array<i64: 1280, 1280>}, {pipeline_mode = #tpu.pipeline_mode<synchronous>, transform_indices = @transform_4, window_bounds = array<i64: 1, 1280>}, {pipeline_mode = #tpu.pipeline_mode<synchronous>, transform_indices = @transform_5, window_bounds = array<i64: 1280, 128>}, {pipeline_mode = #tpu.pipeline_mode<synchronous>, transform_indices = @transform_6, window_bounds = array<i64: 1, 128>}, {transform_indices = @transform_7, window_bounds = array<i64: 16, 128>}]} {
    %c0 = arith.constant 0 : index
    %c0_0 = arith.constant 0 : index
    %0 = vector.load %arg1[%c0, %c0_0] : memref<16x896xbf16, #tpu.memory_space<vmem>>, vector<16x896xbf16>
    %c0_1 = arith.constant 0 : index
    %c0_2 = arith.constant 0 : index
    %1 = vector.load %arg2[%c0_1, %c0_2] : memref<896x1280xbf16, #tpu.memory_space<vmem>>, vector<896x1280xbf16>
    %cst = arith.constant dense<0.000000e+00> : vector<16x1280xf32>
    %2 = tpu.matmul %0, %1, %cst {dimension_numbers = #tpu.dot_dimension_numbers<[1], [0], [0], [1], [0, 0, 1, 1], [], []>} : vector<16x896xbf16>, vector<896x1280xbf16>, vector<16x1280xf32> -> vector<16x1280xf32>
    %c0_3 = arith.constant 0 : index
    %c0_4 = arith.constant 0 : index
    %3 = vector.load %arg3[%c0_3, %c0_4] : memref<1x1280xf32, #tpu.memory_space<vmem>>, vector<1x1280xf32>
    %4 = vector.broadcast %3 : vector<1x1280xf32> to vector<16x1280xf32>
    %5 = arith.addf %2, %4 : vector<16x1280xf32>
    %cst_5 = arith.constant 0.000000e+00 : f32
    %6 = vector.broadcast %cst_5 : f32 to vector<16x1280xf32>
    %7 = arith.maximumf %5, %6 : vector<16x1280xf32>
    %8 = arith.truncf %7 : vector<16x1280xf32> to vector<16x1280xbf16>
    %c0_6 = arith.constant 0 : index
    %c0_7 = arith.constant 0 : index
    %9 = vector.load %arg4[%c0_6, %c0_7] : memref<1280x1280xbf16, #tpu.memory_space<vmem>>, vector<1280x1280xbf16>
    %cst_8 = arith.constant dense<0.000000e+00> : vector<16x1280xf32>
    %10 = tpu.matmul %8, %9, %cst_8 {dimension_numbers = #tpu.dot_dimension_numbers<[1], [0], [0], [1], [0, 0, 1, 1], [], []>} : vector<16x1280xbf16>, vector<1280x1280xbf16>, vector<16x1280xf32> -> vector<16x1280xf32>
    %c0_9 = arith.constant 0 : index
    %c0_10 = arith.constant 0 : index
    %11 = vector.load %arg5[%c0_9, %c0_10] : memref<1x1280xf32, #tpu.memory_space<vmem>>, vector<1x1280xf32>
    %12 = vector.broadcast %11 : vector<1x1280xf32> to vector<16x1280xf32>
    %13 = arith.addf %10, %12 : vector<16x1280xf32>
    %cst_11 = arith.constant 0.000000e+00 : f32
    %14 = vector.broadcast %cst_11 : f32 to vector<16x1280xf32>
    %15 = arith.maximumf %13, %14 : vector<16x1280xf32>
    %16 = arith.truncf %15 : vector<16x1280xf32> to vector<16x1280xbf16>
    %c0_12 = arith.constant 0 : index
    %c0_13 = arith.constant 0 : index
    %17 = vector.load %arg6[%c0_12, %c0_13] : memref<1280x128xbf16, #tpu.memory_space<vmem>>, vector<1280x128xbf16>
    %cst_14 = arith.constant dense<0.000000e+00> : vector<16x128xf32>
    %18 = tpu.matmul %16, %17, %cst_14 {dimension_numbers = #tpu.dot_dimension_numbers<[1], [0], [0], [1], [0, 0, 1, 1], [], []>} : vector<16x1280xbf16>, vector<1280x128xbf16>, vector<16x128xf32> -> vector<16x128xf32>
    %c0_15 = arith.constant 0 : index
    %c0_16 = arith.constant 0 : index
    %19 = vector.load %arg7[%c0_15, %c0_16] : memref<1x128xf32, #tpu.memory_space<vmem>>, vector<1x128xf32>
    %20 = vector.broadcast %19 : vector<1x128xf32> to vector<16x128xf32>
    %21 = arith.addf %18, %20 : vector<16x128xf32>
    %c0_17 = arith.constant 0 : index
    %c0_18 = arith.constant 0 : index
    %22 = vector.load %arg8[%c0_17, %c0_18] : memref<16x128xf32, #tpu.memory_space<vmem>>, vector<16x128xf32>
    tpu.vector_store %arg8[%c0_17, %c0_18], %21 {strides = array<i32>} : memref<16x128xf32, #tpu.memory_space<vmem>>, vector<16x128xf32>,
    return
  }
  func.func @transform_0(%arg0: i32) -> (i32, i32) {
    %c0_i32 = arith.constant 0 : i32
    %c0_i32_0 = arith.constant 0 : i32
    return %arg0, %c0_i32 : i32, i32
  }
  func.func @transform_1(%arg0: i32) -> (i32, i32) {
    %c0_i32 = arith.constant 0 : i32
    %c0_i32_0 = arith.constant 0 : i32
    %c0_i32_1 = arith.constant 0 : i32
    return %c0_i32, %c0_i32_0 : i32, i32
  }
  func.func @transform_2(%arg0: i32) -> (i32, i32) {
    %c0_i32 = arith.constant 0 : i32
    %c0_i32_0 = arith.constant 0 : i32
    %c0_i32_1 = arith.constant 0 : i32
    return %c0_i32, %c0_i32_0 : i32, i32
  }
  func.func @transform_3(%arg0: i32) -> (i32, i32) {
    %c0_i32 = arith.constant 0 : i32
    %c0_i32_0 = arith.constant 0 : i32
    %c0_i32_1 = arith.constant 0 : i32
    return %c0_i32, %c0_i32_0 : i32, i32
  }
  func.func @transform_4(%arg0: i32) -> (i32, i32) {
    %c0_i32 = arith.constant 0 : i32
    %c0_i32_0 = arith.constant 0 : i32
    %c0_i32_1 = arith.constant 0 : i32
    return %c0_i32, %c0_i32_0 : i32, i32
  }
  func.func @transform_5(%arg0: i32) -> (i32, i32) {
    %c0_i32 = arith.constant 0 : i32
    %c0_i32_0 = arith.constant 0 : i32
    %c0_i32_1 = arith.constant 0 : i32
    return %c0_i32, %c0_i32_0 : i32, i32
  }
  func.func @transform_6(%arg0: i32) -> (i32, i32) {
    %c0_i32 = arith.constant 0 : i32
    %c0_i32_0 = arith.constant 0 : i32
    %c0_i32_1 = arith.constant 0 : i32
    return %c0_i32, %c0_i32_0 : i32, i32
  }
  func.func @transform_7(%arg0: i32) -> (i32, i32) {
    %c0_i32 = arith.constant 0 : i32
    %c0_i32_0 = arith.constant 0 : i32
    return %arg0, %c0_i32 : i32, i32
  }
}

</mosaic_0001>

<bundles_post_ra>
// kernel: tpu_custom_call.1
= control target key start
LH: loop header
LB: loop body
LE: loop exit
PB: predicated region body
PF: predicated region fallthrough
CT: control target
= control target key end

     0   :  { %12 = vsyncpa [#allocation3], 0  ;;  %s20079_s0 = inlined_call_operand.hbm [shape: bf16[16,896], index: 0, kind: input, shape index: {}]   ;;  %s20080_s1 = inlined_call_operand.hbm [shape: bf16[896,1280], index: 1, kind: input, shape index: {}]   ;;  %s20081_s2 = inlined_call_operand.hbm [shape: f32[1,1280], index: 2, kind: input, shape index: {}]   ;;  %s20082_s3 = inlined_call_operand.hbm [shape: bf16[1280,1280], index: 3, kind: input, shape index: {}]   ;;  %s20083_s4 = inlined_call_operand.hbm [shape: f32[1,1280], index: 4, kind: input, shape index: {}]   ;;  %s20084_s5 = inlined_call_operand.hbm [shape: bf16[1280,128], index: 5, kind: input, shape index: {}]   ;;  %s20085_s6 = inlined_call_operand.hbm [shape: f32[1,128], index: 6, kind: input, shape index: {}]   ;;  %s20086_s7 = inlined_call_operand.hbm [shape: f32[16,128], index: 7, kind: output, shape index: {}]  }
   0x1   :  { %13 = vsyncpa [#allocation6], 0 }
   0x2   :  { %14 = vsyncpa [#allocation9], 0 }
   0x3   :  { %15 = vsyncpa [#allocation12], 0  ;;  %s34_s26 = sshll.u32 %s20080_s1, 4  ;;  %s35_s26 = int_to_ptr.hbm [resolvable:$true] %s34_s26 }
   0x4   :  { %16 = vsyncpa [#allocation4], 0  ;;  %s19089_s27 = smov [#allocation5]   ;;  %s58_s8 = sshll.u32 %s20082_s3, 4  ;;  %s59_s8 = int_to_ptr.hbm [resolvable:$true] %s58_s8 }
   0x5   :  { %s36_s28 = sshll.u32 %s19089_s27, 4  ;;  %s19090_s9 = smov 640   ;;  %s37_s28 = int_to_ptr.vmem [resolvable:$true] %s36_s28 }
   0x6   :  { %s19091_s10 = smov 40   ;;  %s19092_s11 = smov [#allocation8]  }
   0x7   :  { %42 = dma.hbm_to_vmem [thread:$0]  %s35_s26, 71680, %s37_s28, [#allocation6], %s19090_s9, %s19090_s9, %s19091_s10  }
   0x8   :  { %s60_s12 = sshll.u32 %s19092_s11, 4  ;;  %s82_s15 = sshll.u32 %s20084_s5, 4  ;;  %s61_s12 = int_to_ptr.vmem [resolvable:$true] %s60_s12  ;;  %s83_s15 = int_to_ptr.hbm [resolvable:$true] %s82_s15 }
   0x9   :  { %66 = dma.hbm_to_vmem [thread:$0]  %s59_s8, 102400, %s61_s12, [#allocation9], %s19090_s9, %s19090_s9, %s19091_s10  }
   0xa   :  { %s19093_s1 = smov [#allocation11]   ;;  %s21_s3 = sshll.u32 %s20079_s0, 4  ;;  %s22_s3 = int_to_ptr.hbm [resolvable:$true] %s21_s3 }
   0xb   :  { %s84_s16 = sshll.u32 %s19093_s1, 4  ;;  %s19094_s19 = smov 64   ;;  %s85_s16 = int_to_ptr.vmem [resolvable:$true] %s84_s16 }
   0xc   :  { %s19095_s20 = smov 4   ;;  %s19096_s21 = smov [#allocation2]  }
   0xd   :  { %90 = dma.hbm_to_vmem [thread:$0]  %s83_s15, 10240, %s85_s16, [#allocation12], %s19094_s19, %s19094_s19, %s19095_s20  }
   0xe   :  { %s23_s22 = sshll.u32 %s19096_s21, 4  ;;  %s19097_s23 = smov 448   ;;  %s24_s22 = int_to_ptr.vmem [resolvable:$true] %s23_s22 }
   0xf   :  { %s19098_s24 = smov 28   ;;  %s48_s26 = sshll.u32 %s20081_s2, 4  ;;  %s49_s26 = int_to_ptr.hbm [resolvable:$true] %s48_s26 }
  0x10   :  { %29 = dma.hbm_to_vmem [thread:$0]  %s22_s3, 896, %s24_s22, [#allocation3], %s19097_s23, %s19097_s23, %s19098_s24  }
  0x11   :  { %s19099_s27 = smov [#allocation7]   ;;  %s72_s30 = sshll.u32 %s20083_s4, 4  ;;  %s73_s30 = int_to_ptr.hbm [resolvable:$true] %s72_s30 }
  0x12   :  { %s50_s28 = sshll.u32 %s19099_s27, 4  ;;  %s19100_s8 = smov [#allocation10]   ;;  %s51_s28 = int_to_ptr.vmem [resolvable:$true] %s50_s28 }
  0x13   :  { %53 = dma.hbm_to_vmem [thread:$0]  %s49_s26, 160, %s51_s28, [#allocation6]  }
  0x14   :  { %s74_s9 = sshll.u32 %s19100_s8, 4  ;;  %s96_s12 = sshll.u32 %s20085_s6, 4  ;;  %s75_s9 = int_to_ptr.vmem [resolvable:$true] %s74_s9  ;;  %s97_s12 = int_to_ptr.hbm [resolvable:$true] %s96_s12 }
  0x15   :  { %77 = dma.hbm_to_vmem [thread:$0]  %s73_s30, 160, %s75_s9, [#allocation9]  }
  0x16   :  { %s19101_s2 = smov [#allocation13]  }
  0x17   :  { %s98_s13 = sshll.u32 %s19101_s2, 4  ;;  %s99_s13 = int_to_ptr.vmem [resolvable:$true] %s98_s13 }
  0x18   :  { %101 = dma.hbm_to_vmem [thread:$0]  %s97_s12, 16, %s99_s13, [#allocation12]  }
  0x19   :  { %19079 = dma.done.wait [#allocation3], 896  }
  0x1a   :  { %19080 = vsyncadd [#allocation3], 4294966400 }
  0x1b   :  { %19081 = dma.done.wait [#allocation6], 71840  }
  0x1c   :  { %19082 = vsyncadd [#allocation6], 4294895456 }
  0x1d   :  { %19083 = dma.done.wait [#allocation9], 102560  }
  0x1e   :  { %19084 = vsyncadd [#allocation9], 4294864736 }
  0x1f   :  { %19085 = dma.done.wait [#allocation12], 10256  }
  0x20   :  { %19086 = vsyncadd [#allocation12], 4294957040  ;;  %v11940_v0 = vld [vmem:[#allocation5 + $0x230] sm:$0xf]  ;;  %v17500_v1 = vld [vmem:[#allocation5 + $0x254] sm:$0xf0] }
  0x21   :  { %v12260_v2 = vld [vmem:[#allocation5 + $0x4b0] sm:$0xf]  ;;  %v11941_v3 = vor.u32 %v17500_v1, %v11940_v0  ;;  %v17580_v4 = vld [vmem:[#allocation5 + $0x4d4] sm:$0xf0]  ;;  %v11900_v11 = vld [vmem:[#allocation5 + $0x1e0] sm:$0xf] }
  0x22   :  { %v12580_v5 = vld [vmem:[#allocation5 + $0x730] sm:$0xf]  ;;  %v17660_v6 = vld [vmem:[#allocation5 + $0x754] sm:$0xf0]  ;;  %v12261_v7 = vor.u32 %v17580_v4, %v12260_v2  ;;  %v17490_v13 = vld [vmem:[#allocation5 + $0x204] sm:$0xf0] }
  0x23   :  { %v12581_v8 = vor.u32 %v17660_v6, %v12580_v5  ;;  %v12900_v9 = vld [vmem:[#allocation5 + $0x9b0] sm:$0xf]  ;;  %v17740_v10 = vld [vmem:[#allocation5 + $0x9d4] sm:$0xf0]  ;;  %3558 = vmatpush.bf16.msra.mxu0 %v11941_v3  ;;  %v12220_v14 = vld [vmem:[#allocation5 + $0x460] sm:$0xf]  ;;  %v11901_v16 = vor.u32 %v17490_v13, %v11900_v11 }
  0x24   :  { %v12901_v12 = vor.u32 %v17740_v10, %v12900_v9  ;;  %v17570_v15 = vld [vmem:[#allocation5 + $0x484] sm:$0xf0]  ;;  %3572 = vmatpush.bf16.msra.mxu1 %v12261_v7  ;;  %v12540_v18 = vld [vmem:[#allocation5 + $0x6e0] sm:$0xf]  ;;  %v11860_v23 = vld [vmem:[#allocation5 + $0x190] sm:$0xf] }
  0x25   :  { %3586 = vmatpush.bf16.msra.mxu2 %v12581_v8  ;;  %v12221_v17 = vor.u32 %v17570_v15, %v12220_v14  ;;  %v17650_v19 = vld [vmem:[#allocation5 + $0x704] sm:$0xf0]  ;;  %v12860_v20 = vld [vmem:[#allocation5 + $0x960] sm:$0xf]  ;;  %v17480_v24 = vld [vmem:[#allocation5 + $0x1b4] sm:$0xf0] }
  0x26   :  { %3600 = vmatpush.bf16.msra.mxu3 %v12901_v12  ;;  %v12541_v21 = vor.u32 %v17650_v19, %v12540_v18  ;;  %v17730_v22 = vld [vmem:[#allocation5 + $0x984] sm:$0xf0]  ;;  %v12180_v26 = vld [vmem:[#allocation5 + $0x410] sm:$0xf]  ;;  %v17560_v27 = vld [vmem:[#allocation5 + $0x434] sm:$0xf0]  ;;  %v11861_v29 = vor.u32 %v17480_v24, %v11860_v23 }
  0x27   :  { %v12861_v25 = vor.u32 %v17730_v22, %v12860_v20  ;;  %v12500_v28 = vld [vmem:[#allocation5 + $0x690] sm:$0xf]  ;;  %3559 = vmatpush.bf16.msra.mxu0 %v11901_v16  ;;  %v17640_v30 = vld [vmem:[#allocation5 + $0x6b4] sm:$0xf0]  ;;  %v12181_v33 = vor.u32 %v17560_v27, %v12180_v26  ;;  %v11820_v35 = vld [vmem:[#allocation5 + $0x140] sm:$0xf] }
  0x28   :  { %v12820_v31 = vld [vmem:[#allocation5 + $0x910] sm:$0xf]  ;;  %v17720_v32 = vld [vmem:[#allocation5 + $0x934] sm:$0xf0]  ;;  %3573 = vmatpush.bf16.msra.mxu1 %v12221_v17  ;;  %v12501_v34 = vor.u32 %v17640_v30, %v12500_v28  ;;  %v17470_v36 = vld [vmem:[#allocation5 + $0x164] sm:$0xf0] }
  0x29   :  { %3587 = vmatpush.bf16.msra.mxu2 %v12541_v21  ;;  %v12140_v37 = vld [vmem:[#allocation5 + $0x3c0] sm:$0xf]  ;;  %v12821_v38 = vor.u32 %v17720_v32, %v12820_v31  ;;  %v17550_v39 = vld [vmem:[#allocation5 + $0x3e4] sm:$0xf0]  ;;  %v11821_v44 = vor.u32 %v17470_v36, %v11820_v35  ;;  %v11780_v47 = vld [vmem:[#allocation5 + $0xf0] sm:$0xf] }
  0x2a   :  { %3601 = vmatpush.bf16.msra.mxu3 %v12861_v25  ;;  %v12460_v40 = vld [vmem:[#allocation5 + $0x640] sm:$0xf]  ;;  %v17630_v41 = vld [vmem:[#allocation5 + $0x664] sm:$0xf0]  ;;  %v12141_v45 = vor.u32 %v17550_v39, %v12140_v37  ;;  %v17460_v48 = vld [vmem:[#allocation5 + $0x114] sm:$0xf0] }
  0x2b   :  { %v12780_v42 = vld [vmem:[#allocation5 + $0x8c0] sm:$0xf]  ;;  %v17710_v43 = vld [vmem:[#allocation5 + $0x8e4] sm:$0xf0]  ;;  %3560 = vmatpush.bf16.msra.mxu0 %v11861_v29  ;;  %v12461_v46 = vor.u32 %v17630_v41, %v12460_v40  ;;  %v12100_v49 = vld [vmem:[#allocation5 + $0x370] sm:$0xf]  ;;  %v11781_v56 = vor.u32 %v17460_v48, %v11780_v47 }
  0x2c   :  { %3574 = vmatpush.bf16.msra.mxu1 %v12181_v33  ;;  %v12781_v50 = vor.u32 %v17710_v43, %v12780_v42  ;;  %v17540_v51 = vld [vmem:[#allocation5 + $0x394] sm:$0xf0]  ;;  %v12420_v52 = vld [vmem:[#allocation5 + $0x5f0] sm:$0xf]  ;;  %v11740_v59 = vld [vmem:[#allocation5 + $0xa0] sm:$0xf] }
  0x2d   :  { %3588 = vmatpush.bf16.msra.mxu2 %v12501_v34  ;;  %v17620_v53 = vld [vmem:[#allocation5 + $0x614] sm:$0xf0]  ;;  %v12740_v54 = vld [vmem:[#allocation5 + $0x870] sm:$0xf]  ;;  %v12101_v57 = vor.u32 %v17540_v51, %v12100_v49  ;;  %v17450_v60 = vld [vmem:[#allocation5 + $0xc4] sm:$0xf0] }
  0x2e   :  { %3602 = vmatpush.bf16.msra.mxu3 %v12821_v38  ;;  %v17700_v55 = vld [vmem:[#allocation5 + $0x894] sm:$0xf0]  ;;  %v12421_v58 = vor.u32 %v17620_v53, %v12420_v52  ;;  %v12060_v61 = vld [vmem:[#allocation5 + $0x320] sm:$0xf]  ;;  %v17530_v63 = vld [vmem:[#allocation5 + $0x344] sm:$0xf0]  ;;  %v11741_v4 = vor.u32 %v17450_v60, %v11740_v59 }
  0x2f   :  { %3561 = vmatpush.bf16.msra.mxu0 %v11821_v44  ;;  %v12741_v62 = vor.u32 %v17700_v55, %v12740_v54  ;;  %v12380_v0 = vld [vmem:[#allocation5 + $0x5a0] sm:$0xf]  ;;  %v17610_v1 = vld [vmem:[#allocation5 + $0x5c4] sm:$0xf0]  ;;  %v12061_v5 = vor.u32 %v17530_v63, %v12060_v61  ;;  %v11700_v7 = vld [vmem:[#allocation5 + $0x50] sm:$0xf] }
  0x30   :  { %3575 = vmatpush.bf16.msra.mxu1 %v12141_v45  ;;  %v12700_v2 = vld [vmem:[#allocation5 + $0x820] sm:$0xf]  ;;  %v17690_v3 = vld [vmem:[#allocation5 + $0x844] sm:$0xf0]  ;;  %v12381_v6 = vor.u32 %v17610_v1, %v12380_v0  ;;  %v17440_v8 = vld [vmem:[#allocation5 + $0x74] sm:$0xf0] }
  0x31   :  { %3589 = vmatpush.bf16.msra.mxu2 %v12461_v46  ;;  %v12020_v9 = vld [vmem:[#allocation5 + $0x2d0] sm:$0xf]  ;;  %v12701_v10 = vor.u32 %v17690_v3, %v12700_v2  ;;  %v17520_v11 = vld [vmem:[#allocation5 + $0x2f4] sm:$0xf0]  ;;  %v11701_v16 = vor.u32 %v17440_v8, %v11700_v7  ;;  %v11660_v17 = vld [vmem:[#allocation5] sm:$0xf] }
  0x32   :  { %3603 = vmatpush.bf16.msra.mxu3 %v12781_v50  ;;  %v12340_v12 = vld [vmem:[#allocation5 + $0x550] sm:$0xf]  ;;  %v17600_v13 = vld [vmem:[#allocation5 + $0x574] sm:$0xf0]  ;;  %v17430_v18 = vld [vmem:[#allocation5 + $0x24] sm:$0xf0]  ;;  %v12021_v19 = vor.u32 %v17520_v11, %v12020_v9 }
  0x33   :  { %3562 = vmatpush.bf16.msra.mxu0 %v11781_v56  ;;  %v12660_v14 = vld [vmem:[#allocation5 + $0x7d0] sm:$0xf]  ;;  %v17680_v15 = vld [vmem:[#allocation5 + $0x7f4] sm:$0xf0]  ;;  %v12341_v20 = vor.u32 %v17600_v13, %v12340_v12  ;;  %v11980_v21 = vld [vmem:[#allocation5 + $0x280] sm:$0xf]  ;;  %v11661_v31 = vor.u32 %v17430_v18, %v11660_v17 }
  0x34   :  { %3576 = vmatpush.bf16.msra.mxu1 %v12101_v57  ;;  %v17510_v22 = vld [vmem:[#allocation5 + $0x2a4] sm:$0xf0]  ;;  %v12300_v23 = vld [vmem:[#allocation5 + $0x500] sm:$0xf]  ;;  %v12661_v24 = vor.u32 %v17680_v15, %v12660_v14  ;;  %v13220_v28 = vld [vmem:[#allocation5 + $0xc30] sm:$0xf] }
  0x35   :  { %3590 = vmatpush.bf16.msra.mxu2 %v12421_v58  ;;  %v17590_v25 = vld [vmem:[#allocation5 + $0x524] sm:$0xf0]  ;;  %v12620_v26 = vld [vmem:[#allocation5 + $0x780] sm:$0xf]  ;;  %v17820_v29 = vld [vmem:[#allocation5 + $0xc54] sm:$0xf0]  ;;  %v11981_v35 = vor.u32 %v17510_v22, %v11980_v21 }
  0x36   :  { %3604 = vmatpush.bf16.msra.mxu3 %v12741_v62  ;;  %v17670_v27 = vld [vmem:[#allocation5 + $0x7a4] sm:$0xf0]  ;;  %v13540_v30 = vld [vmem:[#allocation5 + $0xeb0] sm:$0xf]  ;;  %v17900_v32 = vld [vmem:[#allocation5 + $0xed4] sm:$0xf0]  ;;  %v12301_v36 = vor.u32 %v17590_v25, %v12300_v23  ;;  %v13221_v40 = vor.u32 %v17820_v29, %v13220_v28 }
  0x37   :  { %3563 = vmatpush.bf16.msra.mxu0 %v11741_v4  ;;  %v13860_v33 = vld [vmem:[#allocation5 + $0x1130] sm:$0xf]  ;;  %v17980_v34 = vld [vmem:[#allocation5 + $0x1154] sm:$0xf0]  ;;  %v17495_v37 = vld [vmem:[#allocation5 + $0x234] sm:$0xf]  ;;  %v12621_v39 = vor.u32 %v17670_v27, %v12620_v26  ;;  %v13541_v43 = vor.u32 %v17900_v32, %v13540_v30 }
  0x38   :  { %3577 = vmatpush.bf16.msra.mxu1 %v12061_v5  ;;  %v11942_v38 = vld [vmem:[#allocation5 + $0x258] sm:$0xf0]  ;;  %v13180_v41 = vld [vmem:[#allocation5 + $0xbe0] sm:$0xf]  ;;  %v17810_v42 = vld [vmem:[#allocation5 + $0xc04] sm:$0xf0]  ;;  %v13861_v44 = vor.u32 %v17980_v34, %v13860_v33 }
  0x39   :  { %3591 = vmatpush.bf16.msra.mxu2 %v12381_v6  ;;  %v13500_v45 = vld [vmem:[#allocation5 + $0xe60] sm:$0xf]  ;;  %v17890_v46 = vld [vmem:[#allocation5 + $0xe84] sm:$0xf0]  ;;  %v11945_v48 = vor.u32 %v17495_v37, %v11942_v38  ;;  %v17485_v50 = vld [vmem:[#allocation5 + $0x1e4] sm:$0xf]  ;;  %v13181_v55 = vor.u32 %v17810_v42, %v13180_v41 }
  0x3a   :  { %3605 = vmatpush.bf16.msra.mxu3 %v12701_v10  ;;  %v13820_v47 = vld [vmem:[#allocation5 + $0x10e0] sm:$0xf]  ;;  %v17970_v49 = vld [vmem:[#allocation5 + $0x1104] sm:$0xf0]  ;;  %v11902_v51 = vld [vmem:[#allocation5 + $0x208] sm:$0xf0]  ;;  %v13501_v59 = vor.u32 %v17890_v46, %v13500_v45 }
  0x3b   :  { %3564 = vmatpush.bf16.msra.mxu0 %v11701_v16  ;;  %v11632_v52 = vld [vmem:[#allocation2] sm:$0xf]  ;;  %v17421_v53 = vld [vmem:[#allocation2 + $0x18] sm:$0xf0]  ;;  %v11640_v54 = vld [vmem:[#allocation2 + $0x8] sm:$0xf]  ;;  %v13821_v60 = vor.u32 %v17970_v49, %v13820_v47  ;;  %v11905_v1 = vor.u32 %v17485_v50, %v11902_v51 }
  0x3c   :  { %3578 = vmatpush.bf16.msra.mxu1 %v12021_v19  ;;  %v13140_v56 = vld [vmem:[#allocation5 + $0xb90] sm:$0xf]  ;;  %v19166_v57 = vor.u32 %v17421_v53, %v11632_v52  ;;  %v17422_v58 = vld [vmem:[#allocation2 + $0x20] sm:$0xf0]  ;;  %v17800_v61 = vld [vmem:[#allocation5 + $0xbb4] sm:$0xf0] }
  0x3d   :  { %3592 = vmatpush.bf16.msra.mxu2 %v12341_v20  ;;  %v13460_v62 = vld [vmem:[#allocation5 + $0xe10] sm:$0xf]  ;;  %v17880_v63 = vld [vmem:[#allocation5 + $0xe34] sm:$0xf0]  ;;  %v19168_v0 = vor.u32 %v17422_v58, %v11640_v54  ;;  %v17475_v4 = vld [vmem:[#allocation5 + $0x194] sm:$0xf]  ;;  %v13141_v8 = vor.u32 %v17800_v61, %v13140_v56 }
  0x3e   :  { %3606 = vmatpush.bf16.msra.mxu3 %v12661_v24  ;;  %v13780_v2 = vld [vmem:[#allocation5 + $0x1090] sm:$0xf]  ;;  %v17960_v3 = vld [vmem:[#allocation5 + $0x10b4] sm:$0xf0]  ;;  %v11862_v5 = vld [vmem:[#allocation5 + $0x1b8] sm:$0xf0]  ;;  %v13461_v12 = vor.u32 %v17880_v63, %v13460_v62 }
  0x3f   :  { %3565 = vmatpush.bf16.msra.mxu0 %v11661_v31  ;;  %v17418_v6 = vld [vmem:[#allocation2 + $0x4] sm:$0xf]  ;;  %v11634_v7 = vld [vmem:[#allocation2 + $0x1c] sm:$0xf0]  ;;  %v13100_v9 = vld [vmem:[#allocation5 + $0xb40] sm:$0xf]  ;;  %v13781_v13 = vor.u32 %v17960_v3, %v13780_v2  ;;  %v11865_v17 = vor.u32 %v17475_v4, %v11862_v5 }
  0x40   :  { %3579 = vmatpush.bf16.msra.mxu1 %v11981_v35  ;;  %v17790_v10 = vld [vmem:[#allocation5 + $0xb64] sm:$0xf0]  ;;  %v19172_v11 = vor.u32 %v17418_v6, %v11634_v7  ;;  %v13420_v14 = vld [vmem:[#allocation5 + $0xdc0] sm:$0xf]  ;;  %v17419_v19 = vld [vmem:[#allocation2 + $0xc] sm:$0xf] }
  0x41   :  { %3593 = vmatpush.bf16.msra.mxu2 %v12301_v36  ;;  %v17870_v15 = vld [vmem:[#allocation5 + $0xde4] sm:$0xf0]  ;;  %v13740_v16 = vld [vmem:[#allocation5 + $0x1040] sm:$0xf]  ;;  %v11642_v20 = vld [vmem:[#allocation2 + $0x24] sm:$0xf0]  ;;  %v13101_v24 = vor.u32 %v17790_v10, %v13100_v9 }
  0x42   :  { %3607 = vmatpush.bf16.msra.mxu3 %v12621_v39  ;;  %3566 = vmatmul.bf16.vlgmr.msra.gmra.mxu0 %v19166_v57  ;;  %v17950_v18 = vld [vmem:[#allocation5 + $0x1064] sm:$0xf0]  ;;  %v17465_v21 = vld [vmem:[#allocation5 + $0x144] sm:$0xf]  ;;  %v11822_v22 = vld [vmem:[#allocation5 + $0x168] sm:$0xf0]  ;;  %v19175_v23 = vor.u32 %v17419_v19, %v11642_v20  ;;  %v13421_v25 = vor.u32 %v17870_v15, %v13420_v14 }
  0x43   :  { %3614 = vmatpush.bf16.msrb.mxu0 %v13221_v40  ;;  %3580 = vmatmul.bf16.vlgmr.msra.gmra.mxu1 %v19172_v11  ;;  %v13741_v26 = vor.u32 %v17950_v18, %v13740_v16  ;;  %v13060_v27 = vld [vmem:[#allocation5 + $0xaf0] sm:$0xf]  ;;  %v17780_v28 = vld [vmem:[#allocation5 + $0xb14] sm:$0xf0]  ;;  %v11825_v30 = vor.u32 %v17465_v21, %v11822_v22  ;;  %v17455_v34 = vld [vmem:[#allocation5 + $0xf4] sm:$0xf] }
  0x44   :  { %3628 = vmatpush.bf16.msrb.mxu1 %v13541_v43  ;;  %3594 = vmatmul.bf16.vlgmr.msra.gmra.mxu2 %v19168_v0  ;;  %v13380_v29 = vld [vmem:[#allocation5 + $0xd70] sm:$0xf]  ;;  %v17860_v31 = vld [vmem:[#allocation5 + $0xd94] sm:$0xf0]  ;;  %v11782_v35 = vld [vmem:[#allocation5 + $0x118] sm:$0xf0]  ;;  %v13061_v36 = vor.u32 %v17780_v28, %v13060_v27 }
  0x45   :  { %3642 = vmatpush.bf16.msrb.mxu2 %v13861_v44  ;;  %v13700_v32 = vld [vmem:[#allocation5 + $0xff0] sm:$0xf]  ;;  %v17940_v33 = vld [vmem:[#allocation5 + $0x1014] sm:$0xf0]  ;;  %3608 = vmatmul.bf16.vlgmr.msra.gmra.mxu3 %v19175_v23  ;;  %v13381_v37 = vor.u32 %v17860_v31, %v13380_v29  ;;  %v13020_v39 = vld [vmem:[#allocation5 + $0xaa0] sm:$0xf]  ;;  %v11785_v42 = vor.u32 %v17455_v34, %v11782_v35 }
  0x46   :  { %3656 = vmatpush.bf16.msrb.mxu3 %v11945_v48  ;;  %v13701_v38 = vor.u32 %v17940_v33, %v13700_v32  ;;  %v17770_v40 = vld [vmem:[#allocation5 + $0xac4] sm:$0xf0]  ;;  %v13340_v41 = vld [vmem:[#allocation5 + $0xd20] sm:$0xf]  ;;  %v17445_v46 = vld [vmem:[#allocation5 + $0xa4] sm:$0xf] }
  0x47   :  { %3615 = vmatpush.bf16.msrb.mxu0 %v13181_v55  ;;  %v17850_v43 = vld [vmem:[#allocation5 + $0xd44] sm:$0xf0]  ;;  %v13660_v44 = vld [vmem:[#allocation5 + $0xfa0] sm:$0xf]  ;;  %v11742_v47 = vld [vmem:[#allocation5 + $0xc8] sm:$0xf0]  ;;  %v13021_v48 = vor.u32 %v17770_v40, %v13020_v39 }
  0x48   :  { %3629 = vmatpush.bf16.msrb.mxu1 %v13501_v59  ;;  %v17930_v45 = vld [vmem:[#allocation5 + $0xfc4] sm:$0xf0]  ;;  %v13341_v49 = vor.u32 %v17850_v43, %v13340_v41  ;;  %v12980_v51 = vld [vmem:[#allocation5 + $0xa50] sm:$0xf]  ;;  %v17760_v52 = vld [vmem:[#allocation5 + $0xa74] sm:$0xf0]  ;;  %v11745_v54 = vor.u32 %v17445_v46, %v11742_v47 }
  0x49   :  { %3643 = vmatpush.bf16.msrb.mxu2 %v13821_v60  ;;  %v13661_v50 = vor.u32 %v17930_v45, %v13660_v44  ;;  %v13300_v53 = vld [vmem:[#allocation5 + $0xcd0] sm:$0xf]  ;;  %v17840_v55 = vld [vmem:[#allocation5 + $0xcf4] sm:$0xf0]  ;;  %v17435_v59 = vld [vmem:[#allocation5 + $0x54] sm:$0xf]  ;;  %v12981_v62 = vor.u32 %v17760_v52, %v12980_v51 }
  0x4a   :  { %3657 = vmatpush.bf16.msrb.mxu3 %v11905_v1  ;;  %v13620_v56 = vld [vmem:[#allocation5 + $0xf50] sm:$0xf]  ;;  %v17920_v58 = vld [vmem:[#allocation5 + $0xf74] sm:$0xf0]  ;;  %v11702_v60 = vld [vmem:[#allocation5 + $0x78] sm:$0xf0]  ;;  %v13301_v3 = vor.u32 %v17840_v55, %v13300_v53 }
  0x4b   :  { %3616 = vmatpush.bf16.msrb.mxu0 %v13141_v8  ;;  %v12940_v61 = vld [vmem:[#allocation5 + $0xa00] sm:$0xf]  ;;  %v17750_v63 = vld [vmem:[#allocation5 + $0xa24] sm:$0xf0]  ;;  %v13621_v4 = vor.u32 %v17920_v58, %v13620_v56  ;;  %v17425_v7 = vld [vmem:[#allocation5 + $0x4] sm:$0xf]  ;;  %v11705_v8 = vor.u32 %v17435_v59, %v11702_v60 }
  0x4c   :  { %3630 = vmatpush.bf16.msrb.mxu1 %v13461_v12  ;;  %v13260_v1 = vld [vmem:[#allocation5 + $0xc80] sm:$0xf]  ;;  %v17830_v2 = vld [vmem:[#allocation5 + $0xca4] sm:$0xf0]  ;;  %v11662_v9 = vld [vmem:[#allocation5 + $0x28] sm:$0xf0]  ;;  %v12941_v16 = vor.u32 %v17750_v63, %v12940_v61 }
  0x4d   :  { %3644 = vmatpush.bf16.msrb.mxu2 %v13781_v13  ;;  %v13580_v5 = vld [vmem:[#allocation5 + $0xf00] sm:$0xf]  ;;  %v17910_v6 = vld [vmem:[#allocation5 + $0xf24] sm:$0xf0]  ;;  %v17575_v10 = vld [vmem:[#allocation5 + $0x4b4] sm:$0xf]  ;;  %v13261_v20 = vor.u32 %v17830_v2, %v13260_v1 }
  0x4e   :  { %3658 = vmatpush.bf16.msrb.mxu3 %v11865_v17  ;;  %v12262_v12 = vld [vmem:[#allocation5 + $0x4d8] sm:$0xf0]  ;;  %v17655_v13 = vld [vmem:[#allocation5 + $0x734] sm:$0xf]  ;;  %v13581_v21 = vor.u32 %v17910_v6, %v13580_v5  ;;  %v11648_v22 = vld [vmem:[#allocation2 + $0x10] sm:$0xf] }
  0x4f   :  { %3617 = vmatpush.bf16.msrb.mxu0 %v13101_v24  ;;  %v12582_v14 = vld [vmem:[#allocation5 + $0x758] sm:$0xf0]  ;;  %v17735_v15 = vld [vmem:[#allocation5 + $0x9b4] sm:$0xf]  ;;  %v12265_v27 = vor.u32 %v17575_v10, %v12262_v12  ;;  %v17565_v33 = vld [vmem:[#allocation5 + $0x464] sm:$0xf] }
  0x50   :  { %3631 = vmatpush.bf16.msrb.mxu1 %v13421_v25  ;;  %v12902_v17 = vld [vmem:[#allocation5 + $0x9d8] sm:$0xf0]  ;;  %v17815_v18 = vld [vmem:[#allocation5 + $0xc34] sm:$0xf]  ;;  %v11656_v25 = vld [vmem:[#allocation2 + $0x18] sm:$0xf]  ;;  %v12585_v31 = vor.u32 %v17655_v13, %v12582_v14 }
  0x51   :  { %3645 = vmatpush.bf16.msrb.mxu2 %v13741_v26  ;;  %v13222_v19 = vld [vmem:[#allocation5 + $0xc58] sm:$0xf0]  ;;  %v17423_v24 = vld [vmem:[#allocation2 + $0x28] sm:$0xf0]  ;;  %v11665_v26 = vor.u32 %v17425_v7, %v11662_v9  ;;  %v12905_v32 = vor.u32 %v17735_v15, %v12902_v17  ;;  %v12222_v34 = vld [vmem:[#allocation5 + $0x488] sm:$0xf0] }
  0x52   :  { %3659 = vmatpush.bf16.msrb.mxu3 %v11825_v30  ;;  %v17424_v28 = vld [vmem:[#allocation2 + $0x30] sm:$0xf0]  ;;  %v11650_v30 = vld [vmem:[#allocation2 + $0x2c] sm:$0xf0]  ;;  %v17645_v35 = vld [vmem:[#allocation5 + $0x6e4] sm:$0xf]  ;;  %v12225_v45 = vor.u32 %v17565_v33, %v12222_v34 }
  0x53   :  { %3618 = vmatpush.bf16.msrb.mxu0 %v13061_v36  ;;  %v17420_v29 = vld [vmem:[#allocation2 + $0x14] sm:$0xf]  ;;  %v13225_v36 = vor.u32 %v17815_v18, %v13222_v19  ;;  %v17725_v39 = vld [vmem:[#allocation5 + $0x964] sm:$0xf]  ;;  %v12862_v40 = vld [vmem:[#allocation5 + $0x988] sm:$0xf0]  ;;  %v19180_v41 = vor.u32 %v17424_v28, %v11656_v25 }
  0x54   :  { %3632 = vmatpush.bf16.msrb.mxu1 %v13381_v37  ;;  %v19178_v37 = vor.u32 %v17423_v24, %v11648_v22  ;;  %v17805_v43 = vld [vmem:[#allocation5 + $0xbe4] sm:$0xf]  ;;  %v13182_v44 = vld [vmem:[#allocation5 + $0xc08] sm:$0xf0]  ;;  %v12865_v47 = vor.u32 %v17725_v39, %v12862_v40  ;;  %v12502_v52 = vld [vmem:[#allocation5 + $0x6b8] sm:$0xf0] }
  0x55   :  { %3646 = vmatpush.bf16.msrb.mxu2 %v13701_v38  ;;  %v12542_v38 = vld [vmem:[#allocation5 + $0x708] sm:$0xf0]  ;;  %v13185_v51 = vor.u32 %v17805_v43, %v13182_v44  ;;  %v17715_v53 = vld [vmem:[#allocation5 + $0x914] sm:$0xf]  ;;  %v13142_v56 = vld [vmem:[#allocation5 + $0xbb8] sm:$0xf0] }
  0x56   :  { %3660 = vmatpush.bf16.msrb.mxu3 %v11785_v42  ;;  %v19182_v42 = vor.u32 %v17420_v29, %v11650_v30  ;;  %v12545_v46 = vor.u32 %v17645_v35, %v12542_v38  ;;  %v17795_v55 = vld [vmem:[#allocation5 + $0xb94] sm:$0xf]  ;;  %v17545_v61 = vld [vmem:[#allocation5 + $0x3c4] sm:$0xf]  ;;  %v12462_v2 = vld [vmem:[#allocation5 + $0x668] sm:$0xf0] }
  0x57   :  { %3619 = vmatpush.bf16.msrb.mxu0 %v13021_v48  ;;  %v17555_v48 = vld [vmem:[#allocation5 + $0x414] sm:$0xf]  ;;  %v17625_v63 = vld [vmem:[#allocation5 + $0x644] sm:$0xf]  ;;  %v13145_v1 = vor.u32 %v17795_v55, %v13142_v56  ;;  %v13102_v6 = vld [vmem:[#allocation5 + $0xb68] sm:$0xf0] }
  0x58   :  { %3633 = vmatpush.bf16.msrb.mxu1 %v13341_v49  ;;  %v12182_v49 = vld [vmem:[#allocation5 + $0x438] sm:$0xf0]  ;;  %v17785_v5 = vld [vmem:[#allocation5 + $0xb44] sm:$0xf]  ;;  %v17535_v10 = vld [vmem:[#allocation5 + $0x374] sm:$0xf] }
  0x59   :  { %3647 = vmatpush.bf16.msrb.mxu2 %v13661_v50  ;;  %v17635_v50 = vld [vmem:[#allocation5 + $0x694] sm:$0xf]  ;;  %v12185_v58 = vor.u32 %v17555_v48, %v12182_v49  ;;  %v12102_v12 = vld [vmem:[#allocation5 + $0x398] sm:$0xf0]  ;;  %v13105_v14 = vor.u32 %v17785_v5, %v13102_v6  ;;  %v17525_v24 = vld [vmem:[#allocation5 + $0x324] sm:$0xf] }
  0x5a   :  { %3661 = vmatpush.bf16.msrb.mxu3 %v11745_v54  ;;  %v12822_v54 = vld [vmem:[#allocation5 + $0x938] sm:$0xf0]  ;;  %v12505_v59 = vor.u32 %v17635_v50, %v12502_v52  ;;  %v17615_v13 = vld [vmem:[#allocation5 + $0x5f4] sm:$0xf]  ;;  %v12062_v25 = vld [vmem:[#allocation5 + $0x348] sm:$0xf0] }
  0x5b   :  { %3620 = vmatpush.bf16.msrb.mxu0 %v12981_v62  ;;  %v12825_v60 = vor.u32 %v17715_v53, %v12822_v54  ;;  %v12142_v62 = vld [vmem:[#allocation5 + $0x3e8] sm:$0xf0]  ;;  %v12422_v15 = vld [vmem:[#allocation5 + $0x618] sm:$0xf0]  ;;  %v17775_v18 = vld [vmem:[#allocation5 + $0xaf4] sm:$0xf]  ;;  %v12065_v33 = vor.u32 %v17525_v24, %v12062_v25 }
  0x5c   :  { %3634 = vmatpush.bf16.msrb.mxu1 %v13301_v3  ;;  %v17705_v3 = vld [vmem:[#allocation5 + $0x8c4] sm:$0xf]  ;;  %v12145_v7 = vor.u32 %v17545_v61, %v12142_v62  ;;  %v12742_v17 = vld [vmem:[#allocation5 + $0x898] sm:$0xf0]  ;;  %v12382_v28 = vld [vmem:[#allocation5 + $0x5c8] sm:$0xf0] }
  0x5d   :  { %3648 = vmatpush.bf16.msrb.mxu2 %v13621_v4  ;;  %v12782_v4 = vld [vmem:[#allocation5 + $0x8e8] sm:$0xf0]  ;;  %v13062_v19 = vld [vmem:[#allocation5 + $0xb18] sm:$0xf0]  ;;  %v17685_v29 = vld [vmem:[#allocation5 + $0x824] sm:$0xf] }
  0x5e   :  { %3662 = vmatpush.bf16.msrb.mxu3 %v11705_v8  ;;  %v12465_v8 = vor.u32 %v17625_v63, %v12462_v2  ;;  %v12785_v9 = vor.u32 %v17705_v3, %v12782_v4  ;;  %v12702_v30 = vld [vmem:[#allocation5 + $0x848] sm:$0xf0]  ;;  %v12022_v38 = vld [vmem:[#allocation5 + $0x2f8] sm:$0xf0]  ;;  %v17595_v39 = vld [vmem:[#allocation5 + $0x554] sm:$0xf] }
  0x5f   :  { %3621 = vmatpush.bf16.msrb.mxu0 %v12941_v16  ;;  %v17695_v16 = vld [vmem:[#allocation5 + $0x874] sm:$0xf]  ;;  %v12705_v35 = vor.u32 %v17685_v29, %v12702_v30  ;;  %v12342_v43 = vld [vmem:[#allocation5 + $0x578] sm:$0xf0]  ;;  %v17505_v49 = vld [vmem:[#allocation5 + $0x284] sm:$0xf] }
  0x60   :  { %3635 = vmatpush.bf16.msrb.mxu1 %v13261_v20  ;;  %v12105_v20 = vor.u32 %v17535_v10, %v12102_v12  ;;  %v12745_v22 = vor.u32 %v17695_v16, %v12742_v17  ;;  %v17675_v44 = vld [vmem:[#allocation5 + $0x7d4] sm:$0xf]  ;;  %v11982_v50 = vld [vmem:[#allocation5 + $0x2a8] sm:$0xf0]  ;;  %v17585_v53 = vld [vmem:[#allocation5 + $0x504] sm:$0xf] }
  0x61   :  { %3649 = vmatpush.bf16.msrb.mxu2 %v13581_v21  ;;  %v12425_v21 = vor.u32 %v17615_v13, %v12422_v15  ;;  %v12302_v54 = vld [vmem:[#allocation5 + $0x528] sm:$0xf0]  ;;  %v17665_v55 = vld [vmem:[#allocation5 + $0x784] sm:$0xf]  ;;  %v17895_v61 = vld [vmem:[#allocation5 + $0xeb4] sm:$0xf] }
  0x62   :  { %3663 = vmatpush.bf16.msrb.mxu3 %v11665_v26  ;;  %3622 = vmatmul.bf16.vlgmr.msrb.gmra.mxu0 %v19178_v37  ;;  %v17605_v26 = vld [vmem:[#allocation5 + $0x5a4] sm:$0xf]  ;;  %v13542_v62 = vld [vmem:[#allocation5 + $0xed8] sm:$0xf0]  ;;  %v17975_v63 = vld [vmem:[#allocation5 + $0x1134] sm:$0xf]  ;;  %v12305_v5 = vor.u32 %v17585_v53, %v12302_v54 }
  0x63   :  { %3670 = vmatpush.bf16.msra.mxu0 %v12265_v27  ;;  %3636 = vmatmul.bf16.vlgmr.msrb.gmra.mxu1 %v19182_v42  ;;  %v13065_v27 = vor.u32 %v17775_v18, %v13062_v19  ;;  %v12385_v34 = vor.u32 %v17605_v26, %v12382_v28  ;;  %v13862_v2 = vld [vmem:[#allocation5 + $0x1158] sm:$0xf0]  ;;  %v11948_v3 = vld [vmem:[#allocation5 + $0x238] sm:$0xf]  ;;  %v17501_v4 = vld [vmem:[#allocation5 + $0x25c] sm:$0xf0]  ;;  %v13545_v10 = vor.u32 %v17895_v61, %v13542_v62 }
  0x64   :  { %3684 = vmatpush.bf16.msra.mxu1 %v12585_v31  ;;  %3650 = vmatmul.bf16.vlgmr.msrb.gmra.mxu2 %v19180_v41  ;;  %v17765_v31 = vld [vmem:[#allocation5 + $0xaa4] sm:$0xf]  ;;  %v13865_v12 = vor.u32 %v17975_v63, %v13862_v2  ;;  %v11949_v13 = vor.u32 %v17501_v4, %v11948_v3  ;;  %v13502_v15 = vld [vmem:[#allocation5 + $0xe88] sm:$0xf0]  ;;  %v11908_v19 = vld [vmem:[#allocation5 + $0x1e8] sm:$0xf] }
  0x65   :  { %3698 = vmatpush.bf16.msra.mxu2 %v12905_v32  ;;  %3664 = vmatmul.bf16.vlgmr.msrb.gmra.mxu3 %v19166_v57  ;;  %v13022_v32 = vld [vmem:[#allocation5 + $0xac8] sm:$0xf0]  ;;  %v17965_v16 = vld [vmem:[#allocation5 + $0x10e4] sm:$0xf]  ;;  %v13462_v28 = vld [vmem:[#allocation5 + $0xe38] sm:$0xf0] }
  0x66   :  { %3712 = vmatpush.bf16.msra.mxu3 %v13225_v36  ;;  %v17515_v36 = vld [vmem:[#allocation5 + $0x2d4] sm:$0xf]  ;;  %v13025_v40 = vor.u32 %v17765_v31, %v13022_v32  ;;  %v13822_v18 = vld [vmem:[#allocation5 + $0x1108] sm:$0xf0]  ;;  %v13782_v31 = vld [vmem:[#allocation5 + $0x10b8] sm:$0xf0] }
  0x67   :  { %3671 = vmatpush.bf16.msra.mxu0 %v12225_v45  ;;  %v12662_v45 = vld [vmem:[#allocation5 + $0x7f8] sm:$0xf0]  ;;  %v12025_v48 = vor.u32 %v17515_v36, %v12022_v38  ;;  %v13825_v25 = vor.u32 %v17965_v16, %v13822_v18  ;;  %v17955_v29 = vld [vmem:[#allocation5 + $0x1094] sm:$0xf]  ;;  %v11868_v32 = vld [vmem:[#allocation5 + $0x198] sm:$0xf] }
  0x68   :  { %3685 = vmatpush.bf16.msra.mxu1 %v12545_v46  ;;  %v17755_v46 = vld [vmem:[#allocation5 + $0xa54] sm:$0xf]  ;;  %v12665_v52 = vor.u32 %v17675_v44, %v12662_v45  ;;  %v13785_v38 = vor.u32 %v17955_v29, %v13782_v31  ;;  %v17945_v44 = vld [vmem:[#allocation5 + $0x1044] sm:$0xf]  ;;  %v17461_v61 = vld [vmem:[#allocation5 + $0x11c] sm:$0xf0] }
  0x69   :  { %3699 = vmatpush.bf16.msra.mxu2 %v12865_v47  ;;  %v12982_v47 = vld [vmem:[#allocation5 + $0xa78] sm:$0xf0]  ;;  %v17855_v54 = vld [vmem:[#allocation5 + $0xd74] sm:$0xf]  ;;  %v12108_v62 = vld [vmem:[#allocation5 + $0x378] sm:$0xf] }
  0x6a   :  { %3713 = vmatpush.bf16.msra.mxu3 %v13185_v51  ;;  %v12345_v51 = vor.u32 %v17595_v39, %v12342_v43  ;;  %v12985_v56 = vor.u32 %v17755_v46, %v12982_v47  ;;  %v13422_v43 = vld [vmem:[#allocation5 + $0xde8] sm:$0xf0]  ;;  %v11828_v47 = vld [vmem:[#allocation5 + $0x148] sm:$0xf]  ;;  %v17541_v63 = vld [vmem:[#allocation5 + $0x39c] sm:$0xf0] }
  0x6b   :  { %3672 = vmatpush.bf16.msra.mxu0 %v12185_v58  ;;  %v12622_v58 = vld [vmem:[#allocation5 + $0x7a8] sm:$0xf0]  ;;  %v17845_v4 = vld [vmem:[#allocation5 + $0xd24] sm:$0xf]  ;;  %v13302_v18 = vld [vmem:[#allocation5 + $0xcf8] sm:$0xf0] }
  0x6c   :  { %3686 = vmatpush.bf16.msra.mxu1 %v12505_v59  ;;  %v17745_v59 = vld [vmem:[#allocation5 + $0xa04] sm:$0xf]  ;;  %v12625_v6 = vor.u32 %v17665_v55, %v12622_v58  ;;  %v13742_v46 = vld [vmem:[#allocation5 + $0x1068] sm:$0xf0]  ;;  %v13382_v55 = vld [vmem:[#allocation5 + $0xd98] sm:$0xf0] }
  0x6d   :  { %3700 = vmatpush.bf16.msra.mxu2 %v12825_v60  ;;  %v12942_v60 = vld [vmem:[#allocation5 + $0xa28] sm:$0xf0]  ;;  %s19102_s4 = smov [#allocation14]   ;;  %s11614_s1 = sshll.u32 %s20086_s7, 4  ;;  %s11615_s1 = int_to_ptr.hbm [resolvable:$true] %s11614_s1 }
  0x6e   :  { %3714 = vmatpush.bf16.msra.mxu3 %v13145_v1  ;;  %v11985_v1 = vor.u32 %v17505_v49, %v11982_v50  ;;  %v12148_v49 = vld [vmem:[#allocation5 + $0x3c8] sm:$0xf]  ;;  %v17551_v50 = vld [vmem:[#allocation5 + $0x3ec] sm:$0xf0]  ;;  %v13262_v29 = vld [vmem:[#allocation5 + $0xca8] sm:$0xf0] }
  0x6f   :  { %3673 = vmatpush.bf16.msra.mxu0 %v12145_v7  ;;  %v12268_v7 = vld [vmem:[#allocation5 + $0x4b8] sm:$0xf]  ;;  %v12149_v58 = vor.u32 %v17551_v50, %v12148_v49  ;;  %s11612_s6 = sshll.u32 %s19102_s4, 4  ;;  %s19103_s16 = smov 128   ;;  %s11613_s6 = int_to_ptr.vmem [resolvable:$true] %s11612_s6 }
  0x70   :  { %3687 = vmatpush.bf16.msra.mxu1 %v12465_v8  ;;  %v17581_v8 = vld [vmem:[#allocation5 + $0x4dc] sm:$0xf0]  ;;  %s19104_s17 = smov 8  }
  0x71   :  { %3701 = vmatpush.bf16.msra.mxu2 %v12785_v9  ;;  %v12945_v9 = vor.u32 %v17745_v59, %v12942_v60  ;;  %v12269_v17 = vor.u32 %v17581_v8, %v12268_v7  ;;  %v13702_v59 = vld [vmem:[#allocation5 + $0x1018] sm:$0xf0]  ;;  %v11788_v60 = vld [vmem:[#allocation5 + $0xf8] sm:$0xf]  ;;  %v12109_v7 = vor.u32 %v17541_v63, %v12108_v62  ;;  %v13662_v8 = vld [vmem:[#allocation5 + $0xfc8] sm:$0xf0] }
  0x72   :  { %3715 = vmatpush.bf16.msra.mxu3 %v13105_v14  ;;  %v17885_v14 = vld [vmem:[#allocation5 + $0xe64] sm:$0xf]  ;;  %v11789_v3 = vor.u32 %v17461_v61, %v11788_v60  ;;  %v12868_v60 = vld [vmem:[#allocation5 + $0x968] sm:$0xf]  ;;  %v17731_v62 = vld [vmem:[#allocation5 + $0x98c] sm:$0xf0] }
  0x73   :  { %3674 = vmatpush.bf16.msra.mxu0 %v12105_v20  ;;  %v17491_v20 = vld [vmem:[#allocation5 + $0x20c] sm:$0xf0]  ;;  %v13505_v24 = vor.u32 %v17885_v14, %v13502_v15  ;;  %v13188_v63 = vld [vmem:[#allocation5 + $0xbe8] sm:$0xf] }
  0x74   :  { %3688 = vmatpush.bf16.msra.mxu1 %v12425_v21  ;;  %v12228_v21 = vld [vmem:[#allocation5 + $0x468] sm:$0xf]  ;;  %v11909_v26 = vor.u32 %v17491_v20, %v11908_v19  ;;  %v17915_v19 = vld [vmem:[#allocation5 + $0xf54] sm:$0xf] }
  0x75   :  { %3702 = vmatpush.bf16.msra.mxu2 %v12745_v22  ;;  %v17571_v22 = vld [vmem:[#allocation5 + $0x48c] sm:$0xf0] }
  0x76   :  { %3716 = vmatpush.bf16.msra.mxu3 %v13065_v27  ;;  %v17875_v27 = vld [vmem:[#allocation5 + $0xe14] sm:$0xf]  ;;  %v12229_v30 = vor.u32 %v17571_v22, %v12228_v21  ;;  %v13622_v21 = vld [vmem:[#allocation5 + $0xf78] sm:$0xf0]  ;;  %v11708_v22 = vld [vmem:[#allocation5 + $0x58] sm:$0xf] }
  0x77   :  { %3675 = vmatpush.bf16.msra.mxu0 %v12065_v33  ;;  %v17481_v33 = vld [vmem:[#allocation5 + $0x1bc] sm:$0xf0]  ;;  %v13465_v36 = vor.u32 %v17875_v27, %v13462_v28  ;;  %v17825_v28 = vld [vmem:[#allocation5 + $0xc84] sm:$0xf] }
  0x78   :  { %3689 = vmatpush.bf16.msra.mxu1 %v12385_v34  ;;  %v12188_v34 = vld [vmem:[#allocation5 + $0x418] sm:$0xf]  ;;  %v11869_v39 = vor.u32 %v17481_v33, %v11868_v32  ;;  %v17905_v32 = vld [vmem:[#allocation5 + $0xf04] sm:$0xf]  ;;  %v13582_v33 = vld [vmem:[#allocation5 + $0xf28] sm:$0xf0] }
  0x79   :  { %3703 = vmatpush.bf16.msra.mxu2 %v12705_v35  ;;  %v17561_v35 = vld [vmem:[#allocation5 + $0x43c] sm:$0xf0]  ;;  %v13585_v49 = vor.u32 %v17905_v32, %v13582_v33  ;;  %v12428_v33 = vld [vmem:[#allocation5 + $0x5f8] sm:$0xf] }
  0x7a   :  { %3717 = vmatpush.bf16.msra.mxu3 %v13025_v40  ;;  %v17865_v40 = vld [vmem:[#allocation5 + $0xdc4] sm:$0xf]  ;;  %v12189_v45 = vor.u32 %v17561_v35, %v12188_v34  ;;  %v11668_v34 = vld [vmem:[#allocation5 + $0x8] sm:$0xf] }
  0x7b   :  { %3676 = vmatpush.bf16.msra.mxu0 %v12025_v48  ;;  %v17471_v48 = vld [vmem:[#allocation5 + $0x16c] sm:$0xf0] }
  0x7c   :  { %3690 = vmatpush.bf16.msra.mxu1 %v12345_v51  ;;  %v13425_v51 = vor.u32 %v17865_v40, %v13422_v43  ;;  %v11829_v53 = vor.u32 %v17471_v48, %v11828_v47  ;;  %v12588_v40 = vld [vmem:[#allocation5 + $0x738] sm:$0xf]  ;;  %v17661_v43 = vld [vmem:[#allocation5 + $0x75c] sm:$0xf0] }
  0x7d   :  { %3704 = vmatpush.bf16.msra.mxu2 %v12665_v52  ;;  %v13745_v52 = vor.u32 %v17945_v44, %v13742_v46  ;;  %v12908_v44 = vld [vmem:[#allocation5 + $0x9b8] sm:$0xf]  ;;  %v17741_v46 = vld [vmem:[#allocation5 + $0x9dc] sm:$0xf0] }
  0x7e   :  { %3718 = vmatpush.bf16.msra.mxu3 %v12985_v56  ;;  %v17935_v56 = vld [vmem:[#allocation5 + $0xff4] sm:$0xf]  ;;  %v13228_v47 = vld [vmem:[#allocation5 + $0xc38] sm:$0xf]  ;;  %v17821_v48 = vld [vmem:[#allocation5 + $0xc5c] sm:$0xf0] }
  0x7f   :  { %3677 = vmatpush.bf16.msra.mxu0 %v11985_v1  ;;  %v13385_v1 = vor.u32 %v17855_v54, %v13382_v55  ;;  %v13705_v2 = vor.u32 %v17935_v56, %v13702_v59  ;;  %v12589_v54 = vor.u32 %v17661_v43, %v12588_v40  ;;  %v12909_v55 = vor.u32 %v17741_v46, %v12908_v44  ;;  %v17651_v59 = vld [vmem:[#allocation5 + $0x70c] sm:$0xf0]  ;;  %v17781_v40 = vld [vmem:[#allocation5 + $0xb1c] sm:$0xf0]  ;;  %v13388_v43 = vld [vmem:[#allocation5 + $0xd78] sm:$0xf] }
  0x80   :  { %3691 = vmatpush.bf16.msra.mxu1 %v12305_v5  ;;  %v13342_v5 = vld [vmem:[#allocation5 + $0xd48] sm:$0xf0]  ;;  %v13229_v56 = vor.u32 %v17821_v48, %v13228_v47  ;;  %v17861_v44 = vld [vmem:[#allocation5 + $0xd9c] sm:$0xf0]  ;;  %v12388_v48 = vld [vmem:[#allocation5 + $0x5a8] sm:$0xf] }
  0x81   :  { %3705 = vmatpush.bf16.msra.mxu2 %v12625_v6  ;;  %v17925_v6 = vld [vmem:[#allocation5 + $0xfa4] sm:$0xf]  ;;  %v13345_v14 = vor.u32 %v17845_v4, %v13342_v5  ;;  %v12869_v5 = vor.u32 %v17731_v62, %v12868_v60  ;;  %v17601_v62 = vld [vmem:[#allocation5 + $0x57c] sm:$0xf0] }
  0x82   :  { %3719 = vmatpush.bf16.msra.mxu3 %v12945_v9  ;;  %3678 = vmatmul.bf16.vlgmr.msra.gmra.mxu0 %v19172_v11  ;;  %v11748_v9 = vld [vmem:[#allocation5 + $0xa8] sm:$0xf]  ;;  %v13665_v15 = vor.u32 %v17925_v6, %v13662_v8  ;;  %v17641_v8 = vld [vmem:[#allocation5 + $0x6bc] sm:$0xf0] }
  0x83   :  { %3726 = vmatpush.bf16.msrb.mxu0 %v13545_v10  ;;  %3692 = vmatmul.bf16.vlgmr.msra.gmra.mxu1 %v19168_v0  ;;  %v17451_v10 = vld [vmem:[#allocation5 + $0xcc] sm:$0xf0] }
  0x84   :  { %3740 = vmatpush.bf16.msrb.mxu1 %v13865_v12  ;;  %3706 = vmatmul.bf16.vlgmr.msra.gmra.mxu2 %v19175_v23  ;;  %v12068_v12 = vld [vmem:[#allocation5 + $0x328] sm:$0xf]  ;;  %v11749_v16 = vor.u32 %v17451_v10, %v11748_v9  ;;  %v12828_v9 = vld [vmem:[#allocation5 + $0x918] sm:$0xf] }
  0x85   :  { %3754 = vmatpush.bf16.msrb.mxu2 %v11949_v13  ;;  %3720 = vmatmul.bf16.vlgmr.msra.gmra.mxu3 %v19178_v37  ;;  %v17531_v13 = vld [vmem:[#allocation5 + $0x34c] sm:$0xf0] }
  0x86   :  { %3768 = vmatpush.bf16.msrb.mxu3 %v12269_v17  ;;  %v17835_v17 = vld [vmem:[#allocation5 + $0xcd4] sm:$0xf]  ;;  %v12069_v20 = vor.u32 %v17531_v13, %v12068_v12  ;;  %v17721_v12 = vld [vmem:[#allocation5 + $0x93c] sm:$0xf0]  ;;  %v13148_v13 = vld [vmem:[#allocation5 + $0xb98] sm:$0xf] }
  0x87   :  { %3727 = vmatpush.bf16.msrb.mxu0 %v13505_v24  ;;  %v17441_v24 = vld [vmem:[#allocation5 + $0x7c] sm:$0xf0]  ;;  %v13305_v27 = vor.u32 %v17835_v17, %v13302_v18  ;;  %v12829_v18 = vor.u32 %v17721_v12, %v12828_v9  ;;  %v17591_v9 = vld [vmem:[#allocation5 + $0x52c] sm:$0xf0] }
  0x88   :  { %3741 = vmatpush.bf16.msrb.mxu1 %v13825_v25  ;;  %v12028_v25 = vld [vmem:[#allocation5 + $0x2d8] sm:$0xf]  ;;  %v11709_v31 = vor.u32 %v17441_v24, %v11708_v22  ;;  %v12788_v22 = vld [vmem:[#allocation5 + $0x8c8] sm:$0xf] }
  0x89   :  { %3755 = vmatpush.bf16.msrb.mxu2 %v11909_v26  ;;  %v17521_v26 = vld [vmem:[#allocation5 + $0x2fc] sm:$0xf0] }
  0x8a   :  { %3769 = vmatpush.bf16.msrb.mxu3 %v12229_v30  ;;  %v13625_v30 = vor.u32 %v17915_v19, %v13622_v21  ;;  %v12029_v35 = vor.u32 %v17521_v26, %v12028_v25  ;;  %v17631_v21 = vld [vmem:[#allocation5 + $0x66c] sm:$0xf0]  ;;  %v13108_v26 = vld [vmem:[#allocation5 + $0xb48] sm:$0xf] }
  0x8b   :  { %3728 = vmatpush.bf16.msrb.mxu0 %v13465_v36  ;;  %v17431_v36 = vld [vmem:[#allocation5 + $0x2c] sm:$0xf0] }
  0x8c   :  { %3742 = vmatpush.bf16.msrb.mxu1 %v13785_v38  ;;  %v11988_v38 = vld [vmem:[#allocation5 + $0x288] sm:$0xf]  ;;  %v11669_v50 = vor.u32 %v17431_v36, %v11668_v34  ;;  %v17711_v25 = vld [vmem:[#allocation5 + $0x8ec] sm:$0xf0]  ;;  %v17621_v34 = vld [vmem:[#allocation5 + $0x61c] sm:$0xf0] }
  0x8d   :  { %3756 = vmatpush.bf16.msrb.mxu2 %v11869_v39  ;;  %v17511_v39 = vld [vmem:[#allocation5 + $0x2ac] sm:$0xf0] }
  0x8e   :  { %3770 = vmatpush.bf16.msrb.mxu3 %v12189_v45  ;;  %v13265_v45 = vor.u32 %v17825_v28, %v13262_v29  ;;  %v13428_v28 = vld [vmem:[#allocation5 + $0xdc8] sm:$0xf]  ;;  %v17871_v29 = vld [vmem:[#allocation5 + $0xdec] sm:$0xf0] }
  0x8f   :  { %3729 = vmatpush.bf16.msrb.mxu0 %v13425_v51  ;;  %v13548_v51 = vld [vmem:[#allocation5 + $0xeb8] sm:$0xf]  ;;  %v13429_v36 = vor.u32 %v17871_v29, %v13428_v28 }
  0x90   :  { %3743 = vmatpush.bf16.msrb.mxu1 %v13745_v52  ;;  %v17901_v52 = vld [vmem:[#allocation5 + $0xedc] sm:$0xf0] }
  0x91   :  { %3757 = vmatpush.bf16.msrb.mxu2 %v11829_v53  ;;  %v11989_v53 = vor.u32 %v17511_v39, %v11988_v38  ;;  %v13549_v61 = vor.u32 %v17901_v52, %v13548_v51  ;;  %v17701_v38 = vld [vmem:[#allocation5 + $0x89c] sm:$0xf0]  ;;  %v13068_v39 = vld [vmem:[#allocation5 + $0xaf8] sm:$0xf]  ;;  %v13389_v51 = vor.u32 %v17861_v44, %v13388_v43  ;;  %v17691_v52 = vld [vmem:[#allocation5 + $0x84c] sm:$0xf0] }
  0x92   :  { %3771 = vmatpush.bf16.msrb.mxu3 %v12149_v58  ;;  %v12548_v58 = vld [vmem:[#allocation5 + $0x6e8] sm:$0xf]  ;;  %v13069_v47 = vor.u32 %v17781_v40, %v13068_v39  ;;  %v17486_v39 = vld [vmem:[#allocation5 + $0x1ec] sm:$0xf]  ;;  %v11910_v43 = vld [vmem:[#allocation5 + $0x210] sm:$0xf0] }
  0x93   :  { %3730 = vmatpush.bf16.msrb.mxu0 %v13385_v1  ;;  %v17811_v1 = vld [vmem:[#allocation5 + $0xc0c] sm:$0xf0]  ;;  %v12549_v4 = vor.u32 %v17651_v59, %v12548_v58  ;;  %v17566_v44 = vld [vmem:[#allocation5 + $0x46c] sm:$0xf] }
  0x94   :  { %3744 = vmatpush.bf16.msrb.mxu1 %v13705_v2  ;;  %v13508_v2 = vld [vmem:[#allocation5 + $0xe68] sm:$0xf]  ;;  %v13189_v6 = vor.u32 %v17811_v1, %v13188_v63  ;;  %v12668_v63 = vld [vmem:[#allocation5 + $0x7d8] sm:$0xf] }
  0x95   :  { %3758 = vmatpush.bf16.msrb.mxu2 %v11789_v3  ;;  %v17891_v3 = vld [vmem:[#allocation5 + $0xe8c] sm:$0xf0] }
  0x96   :  { %3772 = vmatpush.bf16.msrb.mxu3 %v12109_v7  ;;  %v12508_v7 = vld [vmem:[#allocation5 + $0x698] sm:$0xf]  ;;  %v13509_v10 = vor.u32 %v17891_v3, %v13508_v2  ;;  %v17681_v2 = vld [vmem:[#allocation5 + $0x7fc] sm:$0xf0] }
  0x97   :  { %3731 = vmatpush.bf16.msrb.mxu0 %v13345_v14  ;;  %v17801_v14 = vld [vmem:[#allocation5 + $0xbbc] sm:$0xf0]  ;;  %v12509_v17 = vor.u32 %v17641_v8, %v12508_v7  ;;  %v12988_v3 = vld [vmem:[#allocation5 + $0xa58] sm:$0xf]  ;;  %v12308_v8 = vld [vmem:[#allocation5 + $0x508] sm:$0xf] }
  0x98   :  { %3745 = vmatpush.bf16.msrb.mxu1 %v13665_v15  ;;  %v13468_v15 = vld [vmem:[#allocation5 + $0xe18] sm:$0xf]  ;;  %v13149_v19 = vor.u32 %v17801_v14, %v13148_v13  ;;  %v12628_v13 = vld [vmem:[#allocation5 + $0x788] sm:$0xf]  ;;  %v17671_v14 = vld [vmem:[#allocation5 + $0x7ac] sm:$0xf0] }
  0x99   :  { %3759 = vmatpush.bf16.msrb.mxu2 %v11749_v16  ;;  %v17881_v16 = vld [vmem:[#allocation5 + $0xe3c] sm:$0xf0]  ;;  %v12629_v28 = vor.u32 %v17671_v14, %v12628_v13 }
  0x9a   :  { %3773 = vmatpush.bf16.msrb.mxu3 %v12069_v20  ;;  %v12468_v20 = vld [vmem:[#allocation5 + $0x648] sm:$0xf]  ;;  %v13469_v24 = vor.u32 %v17881_v16, %v13468_v15 }
  0x9b   :  { %3732 = vmatpush.bf16.msrb.mxu0 %v13305_v27  ;;  %v17791_v27 = vld [vmem:[#allocation5 + $0xb6c] sm:$0xf0]  ;;  %v12948_v15 = vld [vmem:[#allocation5 + $0xa08] sm:$0xf] }
  0x9c   :  { %3746 = vmatpush.bf16.msrb.mxu1 %v13625_v30  ;;  %v12469_v30 = vor.u32 %v17631_v21, %v12468_v20  ;;  %v13109_v32 = vor.u32 %v17791_v27, %v13108_v26  ;;  %v13868_v20 = vld [vmem:[#allocation5 + $0x1138] sm:$0xf]  ;;  %v17981_v21 = vld [vmem:[#allocation5 + $0x115c] sm:$0xf0]  ;;  %v17576_v26 = vld [vmem:[#allocation5 + $0x4bc] sm:$0xf] }
  0x9d   :  { %3760 = vmatpush.bf16.msrb.mxu2 %v11709_v31  ;;  %v12789_v31 = vor.u32 %v17711_v25, %v12788_v22  ;;  %v17496_v22 = vld [vmem:[#allocation5 + $0x23c] sm:$0xf]  ;;  %v11950_v25 = vld [vmem:[#allocation5 + $0x260] sm:$0xf0] }
  0x9e   :  { %3774 = vmatpush.bf16.msrb.mxu3 %v12029_v35  ;;  %v12748_v35 = vld [vmem:[#allocation5 + $0x878] sm:$0xf]  ;;  %v12270_v27 = vld [vmem:[#allocation5 + $0x4e0] sm:$0xf0] }
  0x9f   :  { %3733 = vmatpush.bf16.msrb.mxu0 %v13265_v45  ;;  %v12429_v45 = vor.u32 %v17621_v34, %v12428_v33  ;;  %v12749_v46 = vor.u32 %v17701_v38, %v12748_v35  ;;  %v13869_v33 = vor.u32 %v17981_v21, %v13868_v20  ;;  %v11953_v34 = vor.u32 %v17496_v22, %v11950_v25  ;;  %v17971_v38 = vld [vmem:[#allocation5 + $0x110c] sm:$0xf0]  ;;  %v17456_v20 = vld [vmem:[#allocation5 + $0xfc] sm:$0xf]  ;;  %v11790_v22 = vld [vmem:[#allocation5 + $0x120] sm:$0xf0] }
  0xa0   :  { %3747 = vmatpush.bf16.msrb.mxu1 %v13585_v49  ;;  %v17611_v49 = vld [vmem:[#allocation5 + $0x5cc] sm:$0xf0]  ;;  %v12273_v35 = vor.u32 %v17576_v26, %v12270_v27  ;;  %v12110_v25 = vld [vmem:[#allocation5 + $0x3a0] sm:$0xf0]  ;;  %v17616_v26 = vld [vmem:[#allocation5 + $0x5fc] sm:$0xf] }
  0xa1   :  { %3761 = vmatpush.bf16.msrb.mxu2 %v11669_v50  ;;  %v12708_v50 = vld [vmem:[#allocation5 + $0x828] sm:$0xf]  ;;  %v12389_v58 = vor.u32 %v17611_v49, %v12388_v48  ;;  %v13788_v49 = vld [vmem:[#allocation5 + $0x1098] sm:$0xf]  ;;  %v12430_v27 = vld [vmem:[#allocation5 + $0x620] sm:$0xf0] }
  0xa2   :  { %3775 = vmatpush.bf16.msrb.mxu3 %v11989_v53  ;;  %3734 = vmatmul.bf16.vlgmr.msrb.gmra.mxu0 %v19182_v42  ;;  %v13028_v53 = vld [vmem:[#allocation5 + $0xaa8] sm:$0xf]  ;;  %v12709_v59 = vor.u32 %v17691_v52, %v12708_v50  ;;  %v11913_v50 = vor.u32 %v17486_v39, %v11910_v43  ;;  %v17961_v52 = vld [vmem:[#allocation5 + $0x10bc] sm:$0xf0]  ;;  %v17526_v39 = vld [vmem:[#allocation5 + $0x32c] sm:$0xf] }
  0xa3   :  { %3782 = vmatpush.bf16.msra.mxu0 %v12589_v54  ;;  %3748 = vmatmul.bf16.vlgmr.msrb.gmra.mxu1 %v19180_v41  ;;  %v17771_v54 = vld [vmem:[#allocation5 + $0xacc] sm:$0xf0] }
  0xa4   :  { %3796 = vmatpush.bf16.msra.mxu1 %v12909_v55  ;;  %3762 = vmatmul.bf16.vlgmr.msrb.gmra.mxu2 %v19166_v57  ;;  %v13348_v55 = vld [vmem:[#allocation5 + $0xd28] sm:$0xf]  ;;  %v13029_v60 = vor.u32 %v17771_v54, %v13028_v53  ;;  %v17476_v53 = vld [vmem:[#allocation5 + $0x19c] sm:$0xf]  ;;  %v19196_v54 = vld [vmem:[#allocation7] sm:$0xff] }
  0xa5   :  { %3810 = vmatpush.bf16.msra.mxu2 %v13229_v56  ;;  %3776 = vmatmul.bf16.vlgmr.msrb.gmra.mxu3 %v19172_v11  ;;  %v17851_v56 = vld [vmem:[#allocation5 + $0xd4c] sm:$0xf0] }
  0xa6   :  { %3824 = vmatpush.bf16.msra.mxu3 %v13549_v61  ;;  %v12348_v61 = vld [vmem:[#allocation5 + $0x558] sm:$0xf]  ;;  %v13349_v1 = vor.u32 %v17851_v56, %v13348_v55  ;;  %v11870_v56 = vld [vmem:[#allocation5 + $0x1c0] sm:$0xf0] }
  0xa7   :  { %3783 = vmatpush.bf16.msra.mxu0 %v12549_v4  ;;  %v17761_v4 = vld [vmem:[#allocation5 + $0xa7c] sm:$0xf0]  ;;  %v12349_v7 = vor.u32 %v17601_v62, %v12348_v61  ;;  %v12510_v61 = vld [vmem:[#allocation5 + $0x6c0] sm:$0xf0]  ;;  %v13789_v62 = vor.u32 %v17961_v52, %v13788_v49  ;;  %v17436_v52 = vld [vmem:[#allocation5 + $0x5c] sm:$0xf] }
  0xa8   :  { %3797 = vmatpush.bf16.msra.mxu1 %v12869_v5  ;;  %v13308_v5 = vld [vmem:[#allocation5 + $0xcd8] sm:$0xf]  ;;  %v12989_v12 = vor.u32 %v17761_v4, %v12988_v3  ;;  %v13748_v3 = vld [vmem:[#allocation5 + $0x1048] sm:$0xf]  ;;  %v17951_v4 = vld [vmem:[#allocation5 + $0x106c] sm:$0xf0] }
  0xa9   :  { %3811 = vmatpush.bf16.msra.mxu2 %v13189_v6  ;;  %v17841_v6 = vld [vmem:[#allocation5 + $0xcfc] sm:$0xf0]  ;;  %v13749_v14 = vor.u32 %v17951_v4, %v13748_v3  ;;  %v17426_v4 = vld [vmem:[#allocation5 + $0xc] sm:$0xf] }
  0xaa   :  { %3825 = vmatpush.bf16.msra.mxu3 %v13509_v10  ;;  %v12669_v10 = vor.u32 %v17681_v2, %v12668_v63  ;;  %v13309_v16 = vor.u32 %v17841_v6, %v13308_v5  ;;  %v20090_v63 = vperm.slane %v19196_v54, 0  ;;  %v17466_v5 = vld [vmem:[#allocation5 + $0x14c] sm:$0xf] }
  0xab   :  { %3784 = vmatpush.bf16.msra.mxu0 %v12509_v17  ;;  %v17751_v17 = vld [vmem:[#allocation5 + $0xa2c] sm:$0xf0] }
  0xac   :  { %3798 = vmatpush.bf16.msra.mxu1 %v12829_v18  ;;  %v13268_v18 = vld [vmem:[#allocation5 + $0xc88] sm:$0xf]  ;;  %v12949_v29 = vor.u32 %v17751_v17, %v12948_v15 }
  0xad   :  { %3812 = vmatpush.bf16.msra.mxu2 %v13149_v19  ;;  %v17831_v19 = vld [vmem:[#allocation5 + $0xcac] sm:$0xf0] }
  0xae   :  { %3826 = vmatpush.bf16.msra.mxu3 %v13469_v24  ;;  %v12309_v24 = vor.u32 %v17591_v9, %v12308_v8  ;;  %v17546_v8 = vld [vmem:[#allocation5 + $0x3cc] sm:$0xf]  ;;  %v12150_v9 = vld [vmem:[#allocation5 + $0x3f0] sm:$0xf0] }
  0xaf   :  { %3785 = vmatpush.bf16.msra.mxu0 %v12469_v30  ;;  %v17656_v30 = vld [vmem:[#allocation5 + $0x73c] sm:$0xf]  ;;  %v12153_v17 = vor.u32 %v17546_v8, %v12150_v9  ;;  %v11990_v8 = vld [vmem:[#allocation5 + $0x2b0] sm:$0xf0]  ;;  %v17586_v9 = vld [vmem:[#allocation5 + $0x50c] sm:$0xf] }
  0xb0   :  { %3799 = vmatpush.bf16.msra.mxu1 %v12789_v31  ;;  %v12590_v31 = vld [vmem:[#allocation5 + $0x760] sm:$0xf0] }
  0xb1   :  { %3813 = vmatpush.bf16.msra.mxu2 %v13109_v32  ;;  %v13269_v32 = vor.u32 %v17831_v19, %v13268_v18  ;;  %v12593_v40 = vor.u32 %v17656_v30, %v12590_v31  ;;  %v13708_v18 = vld [vmem:[#allocation5 + $0xff8] sm:$0xf]  ;;  %v17941_v19 = vld [vmem:[#allocation5 + $0x101c] sm:$0xf0]  ;;  %v11793_v31 = vor.u32 %v17456_v20, %v11790_v22  ;;  %v13550_v20 = vld [vmem:[#allocation5 + $0xee0] sm:$0xf0] }
  0xb2   :  { %3827 = vmatpush.bf16.msra.mxu3 %v13429_v36  ;;  %v13828_v36 = vld [vmem:[#allocation5 + $0x10e8] sm:$0xf] }
  0xb3   :  { %3786 = vmatpush.bf16.msra.mxu0 %v12429_v45  ;;  %v12230_v45 = vld [vmem:[#allocation5 + $0x490] sm:$0xf0]  ;;  %v13829_v48 = vor.u32 %v17971_v38, %v13828_v36  ;;  %v12433_v36 = vor.u32 %v17616_v26, %v12430_v27 }
  0xb4   :  { %3800 = vmatpush.bf16.msra.mxu1 %v12749_v46  ;;  %v17646_v46 = vld [vmem:[#allocation5 + $0x6ec] sm:$0xf]  ;;  %v11750_v38 = vld [vmem:[#allocation5 + $0xd0] sm:$0xf0] }
  0xb5   :  { %3814 = vmatpush.bf16.msra.mxu2 %v13069_v47  ;;  %v12550_v47 = vld [vmem:[#allocation5 + $0x710] sm:$0xf0] }
  0xb6   :  { %3828 = vmatpush.bf16.msra.mxu3 %v13389_v51  ;;  %v12233_v51 = vor.u32 %v17566_v44, %v12230_v45  ;;  %v12553_v55 = vor.u32 %v17646_v46, %v12550_v47  ;;  %v17606_v44 = vld [vmem:[#allocation5 + $0x5ac] sm:$0xf]  ;;  %v12390_v45 = vld [vmem:[#allocation5 + $0x5d0] sm:$0xf0] }
  0xb7   :  { %3787 = vmatpush.bf16.msra.mxu0 %v12389_v58  ;;  %v17556_v58 = vld [vmem:[#allocation5 + $0x41c] sm:$0xf] }
  0xb8   :  { %3801 = vmatpush.bf16.msra.mxu1 %v12709_v59  ;;  %v12190_v59 = vld [vmem:[#allocation5 + $0x440] sm:$0xf0] }
  0xb9   :  { %3815 = vmatpush.bf16.msra.mxu2 %v13029_v60  ;;  %v17636_v60 = vld [vmem:[#allocation5 + $0x69c] sm:$0xf]  ;;  %v12193_v2 = vor.u32 %v17556_v58, %v12190_v59  ;;  %v12030_v58 = vld [vmem:[#allocation5 + $0x300] sm:$0xf0] }
  0xba   :  { %3829 = vmatpush.bf16.msra.mxu3 %v13349_v1  ;;  %v11873_v1 = vor.u32 %v17476_v53, %v11870_v56  ;;  %v12513_v6 = vor.u32 %v17636_v60, %v12510_v61  ;;  %v12393_v53 = vor.u32 %v17606_v44, %v12390_v45  ;;  %v17516_v56 = vld [vmem:[#allocation5 + $0x2dc] sm:$0xf]  ;;  %v12350_v60 = vld [vmem:[#allocation5 + $0x580] sm:$0xf0] }
  0xbb   :  { %3788 = vmatpush.bf16.msra.mxu0 %v12349_v7  ;;  %v11830_v7 = vld [vmem:[#allocation5 + $0x170] sm:$0xf0]  ;;  %v17596_v59 = vld [vmem:[#allocation5 + $0x55c] sm:$0xf]  ;;  %v12033_v3 = vor.u32 %v17516_v56, %v12030_v58  ;;  %v13790_v56 = vld [vmem:[#allocation5 + $0x10c0] sm:$0xf0] }
  0xbc   :  { %3802 = vmatpush.bf16.msra.mxu1 %v12669_v10  ;;  %v17626_v10 = vld [vmem:[#allocation5 + $0x64c] sm:$0xf] }
  0xbd   :  { %3816 = vmatpush.bf16.msra.mxu2 %v12989_v12  ;;  %v12470_v12 = vld [vmem:[#allocation5 + $0x670] sm:$0xf0] }
  0xbe   :  { %3830 = vmatpush.bf16.msra.mxu3 %v13309_v16  ;;  %v11833_v16 = vor.u32 %v17466_v5, %v11830_v7  ;;  %v12473_v21 = vor.u32 %v17626_v10, %v12470_v12  ;;  %v11670_v5 = vld [vmem:[#allocation5 + $0x30] sm:$0xf0]  ;;  %v12353_v7 = vor.u32 %v17596_v59, %v12350_v60 }
  0xbf   :  { %3789 = vmatpush.bf16.msra.mxu0 %v12309_v24  ;;  %v3567_v13 = vpop.f32.mrf.mxu0  ;;  %v17536_v24 = vld [vmem:[#allocation5 + $0x37c] sm:$0xf]  ;;  %v12310_v10 = vld [vmem:[#allocation5 + $0x530] sm:$0xf0] }
  0xc0   :  { %3803 = vmatpush.bf16.msra.mxu1 %v12629_v28  ;;  %v3568_v15 = vadd.f32 %v3567_v13, %v20090_v63  ;;  %v3581_v28 = vpop.f32.mrf.mxu1  ;;  %v17736_v13 = vld [vmem:[#allocation5 + $0x9bc] sm:$0xf]  ;;  %v12313_v26 = vor.u32 %v17586_v9, %v12310_v10  ;;  %v13750_v9 = vld [vmem:[#allocation5 + $0x1070] sm:$0xf0]  ;;  %v17813_v63 = vld [vmem:[#allocation5 + $0xc1c] sm:$0xf0] }
  0xc1   :  { %3817 = vmatpush.bf16.msra.mxu2 %v12949_v29  ;;  %v13709_v29 = vor.u32 %v17941_v19, %v13708_v18  ;;  %v13230_v18 = vld [vmem:[#allocation5 + $0xc60] sm:$0xf0]  ;;  %v17896_v19 = vld [vmem:[#allocation5 + $0xebc] sm:$0xf] }
  0xc2   :  { %3831 = vmatpush.bf16.msra.mxu3 %v13269_v32  ;;  %3790 = vmatmul.bf16.vlgmr.msra.gmra.mxu0 %v19168_v0  ;;  %v3582_v30 = vadd.f32 %v3581_v28, %v3568_v15  ;;  %v12113_v32 = vor.u32 %v17536_v24, %v12110_v25  ;;  %v17816_v15 = vld [vmem:[#allocation5 + $0xc3c] sm:$0xf]  ;;  %v13870_v25 = vld [vmem:[#allocation5 + $0x1160] sm:$0xf0] }
  0xc3   :  { %3838 = vmatpush.bf16.msrb.mxu0 %v13869_v33  ;;  %3804 = vmatmul.bf16.vlgmr.msra.gmra.mxu1 %v19175_v23  ;;  %v13668_v33 = vld [vmem:[#allocation5 + $0xfa8] sm:$0xf]  ;;  %v17976_v24 = vld [vmem:[#allocation5 + $0x113c] sm:$0xf]  ;;  %v13233_v28 = vor.u32 %v17816_v15, %v13230_v18  ;;  %v12750_v18 = vld [vmem:[#allocation5 + $0x8a0] sm:$0xf0] }
  0xc4   :  { %3852 = vmatpush.bf16.msrb.mxu1 %v11953_v34  ;;  %3818 = vmatmul.bf16.vlgmr.msra.gmra.mxu2 %v19178_v37  ;;  %v17931_v34 = vld [vmem:[#allocation5 + $0xfcc] sm:$0xf0] }
  0xc5   :  { %3866 = vmatpush.bf16.msrb.mxu2 %v12273_v35  ;;  %3832 = vmatmul.bf16.vlgmr.msra.gmra.mxu3 %v19182_v42  ;;  %v17446_v35 = vld [vmem:[#allocation5 + $0xac] sm:$0xf]  ;;  %v13669_v47 = vor.u32 %v17931_v34, %v13668_v33  ;;  %v13873_v34 = vor.u32 %v17976_v24, %v13870_v25  ;;  %v17856_v24 = vld [vmem:[#allocation5 + $0xd7c] sm:$0xf]  ;;  %v13390_v25 = vld [vmem:[#allocation5 + $0xda0] sm:$0xf0] }
  0xc6   :  { %3880 = vmatpush.bf16.msrb.mxu3 %v12593_v40  ;;  %v12070_v40 = vld [vmem:[#allocation5 + $0x350] sm:$0xf0]  ;;  %v17806_v33 = vld [vmem:[#allocation5 + $0xbec] sm:$0xf] }
  0xc7   :  { %3839 = vmatpush.bf16.msrb.mxu0 %v13829_v48  ;;  %v3595_v43 = vpop.f32.mrf.mxu2  ;;  %v11753_v48 = vor.u32 %v17446_v35, %v11750_v38  ;;  %v12073_v49 = vor.u32 %v17526_v39, %v12070_v40  ;;  %v13190_v35 = vld [vmem:[#allocation5 + $0xc10] sm:$0xf0]  ;;  %v17966_v39 = vld [vmem:[#allocation5 + $0x10ec] sm:$0xf] }
  0xc8   :  { %3853 = vmatpush.bf16.msrb.mxu1 %v11913_v50  ;;  %v3596_v46 = vadd.f32 %v3595_v43, %v3582_v30  ;;  %v13628_v50 = vld [vmem:[#allocation5 + $0xf58] sm:$0xf]  ;;  %v3609_v12 = vpop.f32.mrf.mxu3  ;;  %v19207_v30 = vpop.f32.mrf.mxu0  ;;  %v13510_v38 = vld [vmem:[#allocation5 + $0xe90] sm:$0xf0]  ;;  %v13193_v45 = vor.u32 %v17806_v33, %v13190_v35  ;;  %v17766_v33 = vld [vmem:[#allocation5 + $0xaac] sm:$0xf] }
  0xc9   :  { %3867 = vmatpush.bf16.msrb.mxu2 %v12233_v51  ;;  %v17921_v51 = vld [vmem:[#allocation5 + $0xf7c] sm:$0xf0]  ;;  %v13830_v40 = vld [vmem:[#allocation5 + $0x1110] sm:$0xf0]  ;;  %v19209_v43 = vpop.f32.mrf.mxu1 }
  0xca   :  { %3881 = vmatpush.bf16.msrb.mxu3 %v12553_v55  ;;  %v11710_v55 = vld [vmem:[#allocation5 + $0x80] sm:$0xf0]  ;;  %v13629_v61 = vor.u32 %v17921_v51, %v13628_v50  ;;  %v13833_v50 = vor.u32 %v17966_v39, %v13830_v40  ;;  %v13350_v39 = vld [vmem:[#allocation5 + $0xd50] sm:$0xf0] }
  0xcb   :  { %3840 = vmatpush.bf16.msrb.mxu0 %v13789_v62  ;;  %v13588_v62 = vld [vmem:[#allocation5 + $0xf08] sm:$0xf]  ;;  %v13150_v51 = vld [vmem:[#allocation5 + $0xbc0] sm:$0xf0] }
  0xcc   :  { %3854 = vmatpush.bf16.msrb.mxu1 %v11873_v1  ;;  %v17911_v1 = vld [vmem:[#allocation5 + $0xf2c] sm:$0xf0] }
  0xcd   :  { %3868 = vmatpush.bf16.msrb.mxu2 %v12193_v2  ;;  %v11713_v2 = vor.u32 %v17436_v52, %v11710_v55  ;;  %v17876_v52 = vld [vmem:[#allocation5 + $0xe1c] sm:$0xf] }
  0xce   :  { %3882 = vmatpush.bf16.msrb.mxu3 %v12513_v6  ;;  %v17506_v6 = vld [vmem:[#allocation5 + $0x28c] sm:$0xf]  ;;  %v17956_v55 = vld [vmem:[#allocation5 + $0x109c] sm:$0xf] }
  0xcf   :  { %3841 = vmatpush.bf16.msrb.mxu0 %v13749_v14  ;;  %v12910_v14 = vld [vmem:[#allocation5 + $0x9e0] sm:$0xf0]  ;;  %v11993_v22 = vor.u32 %v17506_v6, %v11990_v8  ;;  %v19214_v59 = vpop.f32.mrf.mxu2  ;;  %v13430_v6 = vld [vmem:[#allocation5 + $0xdf0] sm:$0xf0]  ;;  %v17946_v8 = vld [vmem:[#allocation5 + $0x104c] sm:$0xf] }
  0xd0   :  { %3855 = vmatpush.bf16.msrb.mxu1 %v11833_v16  ;;  %v19205_v16 = vadd.f32 %v3609_v12, %v3596_v46  ;;  %v12913_v27 = vor.u32 %v17736_v13, %v12910_v14 }
  0xd1   :  { %3869 = vmatpush.bf16.msrb.mxu2 %v12153_v17  ;;  %v13589_v17 = vor.u32 %v17911_v1, %v13588_v62  ;;  %v17706_v62 = vld [vmem:[#allocation5 + $0x8cc] sm:$0xf]  ;;  %v12790_v1 = vld [vmem:[#allocation5 + $0x8f0] sm:$0xf0] }
  0xd2   :  { %3883 = vmatpush.bf16.msrb.mxu3 %v12473_v21  ;;  %v11673_v21 = vor.u32 %v17426_v4, %v11670_v5  ;;  %v13110_v4 = vld [vmem:[#allocation5 + $0xb70] sm:$0xf0]  ;;  %v17866_v5 = vld [vmem:[#allocation5 + $0xdcc] sm:$0xf]  ;;  %v12793_v12 = vor.u32 %v17706_v62, %v12790_v1 }
  0xd3   :  { %3842 = vmatpush.bf16.msrb.mxu0 %v13709_v29  ;;  %v13553_v29 = vor.u32 %v17896_v19, %v13550_v20  ;;  %v13433_v14 = vor.u32 %v17866_v5, %v13430_v6  ;;  %v17776_v19 = vld [vmem:[#allocation5 + $0xafc] sm:$0xf]  ;;  %v13753_v20 = vor.u32 %v17946_v8, %v13750_v9  ;;  %v17666_v1 = vld [vmem:[#allocation5 + $0x78c] sm:$0xf]  ;;  %v12950_v6 = vld [vmem:[#allocation5 + $0xa30] sm:$0xf0] }
  0xd4   :  { %3856 = vmatpush.bf16.msrb.mxu1 %v11793_v31  ;;  %v17726_v31 = vld [vmem:[#allocation5 + $0x96c] sm:$0xf]  ;;  %v13270_v9 = vld [vmem:[#allocation5 + $0xcb0] sm:$0xf0] }
  0xd5   :  { %3870 = vmatpush.bf16.msrb.mxu2 %v12113_v32  ;;  %v12870_v32 = vld [vmem:[#allocation5 + $0x990] sm:$0xf0]  ;;  %v17746_v5 = vld [vmem:[#allocation5 + $0xa0c] sm:$0xf] }
  0xd6   :  { %3884 = vmatpush.bf16.msrb.mxu3 %v12433_v36  ;;  %v17886_v36 = vld [vmem:[#allocation5 + $0xe6c] sm:$0xf]  ;;  %v12873_v44 = vor.u32 %v17726_v31, %v12870_v32  ;;  %v12710_v32 = vld [vmem:[#allocation5 + $0x850] sm:$0xf0] }
  0xd7   :  { %3843 = vmatpush.bf16.msrb.mxu0 %v13669_v47  ;;  %v13513_v46 = vor.u32 %v17886_v36, %v13510_v38  ;;  %v17716_v47 = vld [vmem:[#allocation5 + $0x91c] sm:$0xf]  ;;  %v17686_v31 = vld [vmem:[#allocation5 + $0x82c] sm:$0xf]  ;;  %v13030_v36 = vld [vmem:[#allocation5 + $0xad0] sm:$0xf0] }
  0xd8   :  { %3857 = vmatpush.bf16.msrb.mxu1 %v11753_v48  ;;  %v12830_v48 = vld [vmem:[#allocation5 + $0x940] sm:$0xf0]  ;;  %v17846_v38 = vld [vmem:[#allocation5 + $0xd2c] sm:$0xf] }
  0xd9   :  { %3871 = vmatpush.bf16.msrb.mxu2 %v12073_v49  ;;  %v17796_v49 = vld [vmem:[#allocation5 + $0xb9c] sm:$0xf]  ;;  %v12833_v58 = vor.u32 %v17716_v47, %v12830_v48  ;;  %v13033_v47 = vor.u32 %v17766_v33, %v13030_v36  ;;  %v13353_v48 = vor.u32 %v17846_v38, %v13350_v39  ;;  %v12236_v33 = vld [vmem:[#allocation5 + $0x470] sm:$0xf]  ;;  %v17652_v38 = vld [vmem:[#allocation5 + $0x714] sm:$0xf0] }
  0xda   :  { %3885 = vmatpush.bf16.msrb.mxu3 %v12393_v53  ;;  %v13470_v53 = vld [vmem:[#allocation5 + $0xe40] sm:$0xf0]  ;;  %v13153_v60 = vor.u32 %v17796_v49, %v13150_v51  ;;  %v17676_v49 = vld [vmem:[#allocation5 + $0x7dc] sm:$0xf]  ;;  %v12556_v36 = vld [vmem:[#allocation5 + $0x6f0] sm:$0xf] }
  0xdb   :  { %3844 = vmatpush.bf16.msrb.mxu0 %v13629_v61  ;;  %v13473_v61 = vor.u32 %v17876_v52, %v13470_v53  ;;  %v17756_v51 = vld [vmem:[#allocation5 + $0xa5c] sm:$0xf]  ;;  %v19220_v52 = vpop.f32.mrf.mxu3 }
  0xdc   :  { %3858 = vmatpush.bf16.msrb.mxu1 %v11713_v2  ;;  %v17786_v2 = vld [vmem:[#allocation5 + $0xb4c] sm:$0xf] }
  0xdd   :  { %3872 = vmatpush.bf16.msrb.mxu2 %v12033_v3  ;;  %v13793_v3 = vor.u32 %v17956_v55, %v13790_v56  ;;  %v13113_v13 = vor.u32 %v17786_v2, %v13110_v4  ;;  %v12990_v55 = vld [vmem:[#allocation5 + $0xa80] sm:$0xf0]  ;;  %v17836_v56 = vld [vmem:[#allocation5 + $0xcdc] sm:$0xf]  ;;  %v12630_v2 = vld [vmem:[#allocation5 + $0x7b0] sm:$0xf0] }
  0xde   :  { %3886 = vmatpush.bf16.msrb.mxu3 %v12353_v7 }
  0xdf   :  { %3845 = vmatpush.bf16.msrb.mxu0 %v13589_v17  ;;  %v3623_v7 = vpop.f32.mrf.mxu0  ;;  %v17696_v17 = vld [vmem:[#allocation5 + $0x87c] sm:$0xf] }
  0xe0   :  { %3859 = vmatpush.bf16.msrb.mxu1 %v11673_v21  ;;  %v3624_v10 = vadd.f32 %v3623_v7, %v19205_v16  ;;  %v3637_v15 = vpop.f32.mrf.mxu1  ;;  %v17826_v7 = vld [vmem:[#allocation5 + $0xc8c] sm:$0xf] }
  0xe1   :  { %3873 = vmatpush.bf16.msrb.mxu2 %v11993_v22  ;;  %v13070_v22 = vld [vmem:[#allocation5 + $0xb20] sm:$0xf0] }
  0xe2   :  { %3887 = vmatpush.bf16.msrb.mxu3 %v12313_v26  ;;  %3846 = vmatmul.bf16.vlgmr.msrb.gmra.mxu0 %v19180_v41  ;;  %v3638_v21 = vadd.f32 %v3637_v15, %v3624_v10  ;;  %v17936_v26 = vld [vmem:[#allocation5 + $0xffc] sm:$0xf]  ;;  %v13073_v16 = vor.u32 %v17776_v19, %v13070_v22  ;;  %v17906_v10 = vld [vmem:[#allocation5 + $0xf0c] sm:$0xf]  ;;  %v12276_v15 = vld [vmem:[#allocation5 + $0x4c0] sm:$0xf]  ;;  %v13273_v22 = vor.u32 %v17826_v7, %v13270_v9 }
  0xe3   :  { %3894 = vmatpush.bf16.msra.mxu0 %v12913_v27  ;;  %3860 = vmatmul.bf16.vlgmr.msrb.gmra.mxu1 %v19166_v57  ;;  %v13710_v27 = vld [vmem:[#allocation5 + $0x1020] sm:$0xf0]  ;;  %v12596_v19 = vld [vmem:[#allocation5 + $0x740] sm:$0xf]  ;;  %v17472_v7 = vld [vmem:[#allocation5 + $0x174] sm:$0xf0] }
  0xe4   :  { %3908 = vmatpush.bf16.msra.mxu1 %v13233_v28  ;;  %3874 = vmatmul.bf16.vlgmr.msrb.gmra.mxu2 %v19172_v11  ;;  %v12753_v28 = vor.u32 %v17696_v17, %v12750_v18  ;;  %v12633_v17 = vor.u32 %v17666_v1, %v12630_v2  ;;  %v17582_v18 = vld [vmem:[#allocation5 + $0x4e4] sm:$0xf0] }
  0xe5   :  { %3922 = vmatpush.bf16.msra.mxu2 %v13553_v29  ;;  %3888 = vmatmul.bf16.vlgmr.msrb.gmra.mxu3 %v19168_v0  ;;  %v13393_v29 = vor.u32 %v17856_v24, %v13390_v25  ;;  %v12916_v24 = vld [vmem:[#allocation5 + $0x9c0] sm:$0xf]  ;;  %v17742_v25 = vld [vmem:[#allocation5 + $0x9e4] sm:$0xf0] }
  0xe6   :  { %3936 = vmatpush.bf16.msra.mxu3 %v13873_v34  ;;  %v13713_v34 = vor.u32 %v17936_v26, %v13710_v27  ;;  %v17722_v1 = vld [vmem:[#allocation5 + $0x944] sm:$0xf0] }
  0xe7   :  { %3895 = vmatpush.bf16.msra.mxu0 %v12873_v44  ;;  %v3651_v35 = vpop.f32.mrf.mxu2  ;;  %v17926_v44 = vld [vmem:[#allocation5 + $0xfac] sm:$0xf]  ;;  %v19222_v39 = vpop.f32.mrf.mxu0 }
  0xe8   :  { %3909 = vmatpush.bf16.msra.mxu1 %v13193_v45  ;;  %v19218_v40 = vadd.f32 %v3651_v35, %v3638_v21  ;;  %v13670_v45 = vld [vmem:[#allocation5 + $0xfd0] sm:$0xf0]  ;;  %v12953_v21 = vor.u32 %v17746_v5, %v12950_v6  ;;  %v17572_v35 = vld [vmem:[#allocation5 + $0x494] sm:$0xf0]  ;;  %v11836_v6 = vld [vmem:[#allocation5 + $0x150] sm:$0xf] }
  0xe9   :  { %3923 = vmatpush.bf16.msra.mxu2 %v13513_v46  ;;  %v12713_v46 = vor.u32 %v17686_v31, %v12710_v32  ;;  %v13673_v53 = vor.u32 %v17926_v44, %v13670_v45  ;;  %v11916_v31 = vld [vmem:[#allocation5 + $0x1f0] sm:$0xf]  ;;  %v17492_v32 = vld [vmem:[#allocation5 + $0x214] sm:$0xf0] }
  0xea   :  { %3937 = vmatpush.bf16.msra.mxu3 %v13833_v50  ;;  %v12670_v50 = vld [vmem:[#allocation5 + $0x800] sm:$0xf0]  ;;  %v12876_v44 = vld [vmem:[#allocation5 + $0x970] sm:$0xf]  ;;  %v17732_v45 = vld [vmem:[#allocation5 + $0x994] sm:$0xf0] }
  0xeb   :  { %3896 = vmatpush.bf16.msra.mxu0 %v12833_v58  ;;  %v13310_v58 = vld [vmem:[#allocation5 + $0xd00] sm:$0xf0]  ;;  %v12673_v62 = vor.u32 %v17676_v49, %v12670_v50  ;;  %v12237_v49 = vor.u32 %v17572_v35, %v12236_v33  ;;  %v12557_v50 = vor.u32 %v17652_v38, %v12556_v36  ;;  %v17702_v35 = vld [vmem:[#allocation5 + $0x8a4] sm:$0xf0] }
  0xec   :  { %3910 = vmatpush.bf16.msra.mxu1 %v13153_v60  ;;  %v17916_v60 = vld [vmem:[#allocation5 + $0xf5c] sm:$0xf]  ;;  %v13313_v4 = vor.u32 %v17836_v56, %v13310_v58  ;;  %v12877_v56 = vor.u32 %v17732_v45, %v12876_v44  ;;  %v17562_v58 = vld [vmem:[#allocation5 + $0x444] sm:$0xf0]  ;;  %v11756_v45 = vld [vmem:[#allocation5 + $0xb0] sm:$0xf] }
  0xed   :  { %3924 = vmatpush.bf16.msra.mxu2 %v13473_v61  ;;  %v13630_v61 = vld [vmem:[#allocation5 + $0xf80] sm:$0xf0] }
  0xee   :  { %3938 = vmatpush.bf16.msra.mxu3 %v13793_v3  ;;  %v12993_v3 = vor.u32 %v17756_v51, %v12990_v55  ;;  %v13633_v8 = vor.u32 %v17916_v60, %v13630_v61  ;;  %v11876_v51 = vld [vmem:[#allocation5 + $0x1a0] sm:$0xf]  ;;  %v17642_v61 = vld [vmem:[#allocation5 + $0x6c4] sm:$0xf0] }
  0xef   :  { %3897 = vmatpush.bf16.msra.mxu0 %v12793_v12  ;;  %v13590_v12 = vld [vmem:[#allocation5 + $0xf30] sm:$0xf0]  ;;  %v12196_v55 = vld [vmem:[#allocation5 + $0x420] sm:$0xf]  ;;  %v19233_v9 = vpop.f32.mrf.mxu2 }
  0xf0   :  { %3911 = vmatpush.bf16.msra.mxu1 %v13113_v13  ;;  %v11956_v13 = vld [vmem:[#allocation5 + $0x240] sm:$0xf]  ;;  %v13593_v26 = vor.u32 %v17906_v10, %v13590_v12  ;;  %v17552_v12 = vld [vmem:[#allocation5 + $0x3f4] sm:$0xf0] }
  0xf1   :  { %3925 = vmatpush.bf16.msra.mxu2 %v13433_v14  ;;  %v17502_v14 = vld [vmem:[#allocation5 + $0x264] sm:$0xf0]  ;;  %v12516_v60 = vld [vmem:[#allocation5 + $0x6a0] sm:$0xf] }
  0xf2   :  { %3939 = vmatpush.bf16.msra.mxu3 %v13753_v20  ;;  %v17662_v20 = vld [vmem:[#allocation5 + $0x764] sm:$0xf0]  ;;  %v11957_v27 = vor.u32 %v17502_v14, %v11956_v13  ;;  %v12517_v5 = vor.u32 %v17642_v61, %v12516_v60  ;;  %v12476_v13 = vld [vmem:[#allocation5 + $0x650] sm:$0xf]  ;;  %v17632_v14 = vld [vmem:[#allocation5 + $0x674] sm:$0xf0] }
  0xf3   :  { %3898 = vmatpush.bf16.msra.mxu0 %v12753_v28  ;;  %v3665_v28 = vpop.f32.mrf.mxu3  ;;  %v17692_v60 = vld [vmem:[#allocation5 + $0x854] sm:$0xf0] }
  0xf4   :  { %3912 = vmatpush.bf16.msra.mxu1 %v13073_v16  ;;  %v12277_v16 = vor.u32 %v17582_v18, %v12276_v15  ;;  %v17712_v18 = vld [vmem:[#allocation5 + $0x8f4] sm:$0xf0] }
  0xf5   :  { %3926 = vmatpush.bf16.msra.mxu2 %v13393_v29  ;;  %v12597_v29 = vor.u32 %v17662_v20, %v12596_v19  ;;  %v11837_v20 = vor.u32 %v17472_v7, %v11836_v6  ;;  %v12036_v6 = vld [vmem:[#allocation5 + $0x2e0] sm:$0xf] }
  0xf6   :  { %3940 = vmatpush.bf16.msra.mxu3 %v13713_v34  ;;  %v12917_v34 = vor.u32 %v17742_v25, %v12916_v24  ;;  %v12477_v24 = vor.u32 %v17632_v14, %v12476_v13  ;;  %v11796_v25 = vld [vmem:[#allocation5 + $0x100] sm:$0xf]  ;;  %v17602_v13 = vld [vmem:[#allocation5 + $0x584] sm:$0xf0] }
  0xf7   :  { %3899 = vmatpush.bf16.msra.mxu0 %v12713_v46  ;;  %v11917_v46 = vor.u32 %v17492_v32, %v11916_v31  ;;  %v12436_v31 = vld [vmem:[#allocation5 + $0x600] sm:$0xf]  ;;  %v17622_v32 = vld [vmem:[#allocation5 + $0x624] sm:$0xf0] }
  0xf8   :  { %3913 = vmatpush.bf16.msra.mxu1 %v13033_v47  ;;  %v20089_v47 = vperm.slane %v19196_v54, 1  ;;  %v12437_v44 = vor.u32 %v17622_v32, %v12436_v31  ;;  %v12676_v14 = vld [vmem:[#allocation5 + $0x7e0] sm:$0xf]  ;;  %v17822_v32 = vld [vmem:[#allocation5 + $0xc64] sm:$0xf0] }
  0xf9   :  { %3927 = vmatpush.bf16.msra.mxu2 %v13353_v48  ;;  %v19225_v48 = vpop.f32.mrf.mxu1  ;;  %v13236_v31 = vld [vmem:[#allocation5 + $0xc40] sm:$0xf] }
  0xfa   :  { %3941 = vmatpush.bf16.msra.mxu3 %v13673_v53  ;;  %v17482_v53 = vld [vmem:[#allocation5 + $0x1c4] sm:$0xf0] }
  0xfb   :  { %3900 = vmatpush.bf16.msra.mxu0 %v12673_v62  ;;  %v12836_v62 = vld [vmem:[#allocation5 + $0x920] sm:$0xf]  ;;  %v11877_v2 = vor.u32 %v17482_v53, %v11876_v51  ;;  %v19235_v15 = vpop.f32.mrf.mxu3  ;;  %v17532_v51 = vld [vmem:[#allocation5 + $0x354] sm:$0xf0]  ;;  %v12396_v53 = vld [vmem:[#allocation5 + $0x5b0] sm:$0xf] }
  0xfc   :  { %3914 = vmatpush.bf16.msra.mxu1 %v12993_v3  ;;  %v3666_v3 = vadd.f32 %v3665_v28, %v20089_v47  ;;  %v12837_v10 = vor.u32 %v17722_v1, %v12836_v62  ;;  %v12884_v47 = vld [vmem:[#allocation5 + $0x978] sm:$0xf] }
  0xfd   :  { %3928 = vmatpush.bf16.msra.mxu2 %v13313_v4  ;;  %v12197_v4 = vor.u32 %v17562_v58, %v12196_v55  ;;  %v17612_v55 = vld [vmem:[#allocation5 + $0x5d4] sm:$0xf0]  ;;  %v12716_v58 = vld [vmem:[#allocation5 + $0x830] sm:$0xf] }
  0xfe   :  { %3942 = vmatpush.bf16.msra.mxu3 %v13633_v8  ;;  %v12156_v8 = vld [vmem:[#allocation5 + $0x3d0] sm:$0xf] }
  0xff   :  { %3901 = vmatpush.bf16.msra.mxu0 %v12633_v17  ;;  %v12796_v17 = vld [vmem:[#allocation5 + $0x8d0] sm:$0xf]  ;;  %v3679_v19 = vpop.f32.mrf.mxu0 }
 0x100   :  { %3915 = vmatpush.bf16.msra.mxu1 %v12953_v21  ;;  %v3680_v21 = vadd.f32 %v3679_v19, %v3666_v3  ;;  %v12397_v3 = vor.u32 %v17612_v55, %v12396_v53  ;;  %v11676_v19 = vld [vmem:[#allocation5 + $0x10] sm:$0xf] }
 0x101   :  { %3929 = vmatpush.bf16.msra.mxu2 %v13273_v22  ;;  %v12157_v22 = vor.u32 %v17552_v12, %v12156_v8  ;;  %v3693_v28 = vpop.f32.mrf.mxu1  ;;  %v12717_v8 = vor.u32 %v17692_v60, %v12716_v58  ;;  %v12356_v12 = vld [vmem:[#allocation5 + $0x560] sm:$0xf]  ;;  %v13196_v58 = vld [vmem:[#allocation5 + $0xbf0] sm:$0xf]  ;;  %v17812_v60 = vld [vmem:[#allocation5 + $0xc14] sm:$0xf0] }
 0x102   :  { %3943 = vmatpush.bf16.msra.mxu3 %v13593_v26  ;;  %3902 = vmatmul.bf16.vlgmr.msra.gmra.mxu0 %v19175_v23  ;;  %v17462_v26 = vld [vmem:[#allocation5 + $0x124] sm:$0xf0]  ;;  %v3694_v33 = vadd.f32 %v3693_v28, %v3680_v21  ;;  %v17592_v28 = vld [vmem:[#allocation5 + $0x534] sm:$0xf0] }
 0x103   :  { %3950 = vmatpush.bf16.msrb.mxu0 %v11957_v27  ;;  %3916 = vmatmul.bf16.vlgmr.msra.gmra.mxu1 %v19178_v37  ;;  %v12116_v27 = vld [vmem:[#allocation5 + $0x380] sm:$0xf]  ;;  %v11797_v36 = vor.u32 %v17462_v26, %v11796_v25  ;;  %v17512_v25 = vld [vmem:[#allocation5 + $0x2b4] sm:$0xf0]  ;;  %v12316_v26 = vld [vmem:[#allocation5 + $0x510] sm:$0xf] }
 0x104   :  { %3964 = vmatpush.bf16.msrb.mxu1 %v12277_v16  ;;  %3930 = vmatmul.bf16.vlgmr.msra.gmra.mxu2 %v19182_v42  ;;  %v12797_v16 = vor.u32 %v17712_v18, %v12796_v17  ;;  %v17682_v17 = vld [vmem:[#allocation5 + $0x804] sm:$0xf0] }
 0x105   :  { %3978 = vmatpush.bf16.msrb.mxu2 %v12597_v29  ;;  %3944 = vmatmul.bf16.vlgmr.msra.gmra.mxu3 %v19180_v41  ;;  %v17542_v29 = vld [vmem:[#allocation5 + $0x3a4] sm:$0xf0] }
 0x106   :  { %3992 = vmatpush.bf16.msrb.mxu3 %v12917_v34  ;;  %v12756_v34 = vld [vmem:[#allocation5 + $0x880] sm:$0xf]  ;;  %v12117_v38 = vor.u32 %v17542_v29, %v12116_v27  ;;  %v12677_v27 = vor.u32 %v17682_v17, %v12676_v14  ;;  %v17672_v29 = vld [vmem:[#allocation5 + $0x7b4] sm:$0xf0]  ;;  %v17802_v14 = vld [vmem:[#allocation5 + $0xbc4] sm:$0xf0] }
 0x107   :  { %3951 = vmatpush.bf16.msrb.mxu0 %v11917_v46  ;;  %v17452_v46 = vld [vmem:[#allocation5 + $0xd4] sm:$0xf0]  ;;  %v13476_v17 = vld [vmem:[#allocation5 + $0xe20] sm:$0xf] }
 0x108   :  { %3965 = vmatpush.bf16.msrb.mxu1 %v12237_v49  ;;  %v12076_v49 = vld [vmem:[#allocation5 + $0x330] sm:$0xf]  ;;  %v11757_v62 = vor.u32 %v17452_v46, %v11756_v45  ;;  %v3721_v1 = vpop.f32.mrf.mxu3  ;;  %v12317_v45 = vor.u32 %v17592_v28, %v12316_v26  ;;  %v17497_v46 = vld [vmem:[#allocation5 + $0x244] sm:$0xf] }
 0x109   :  { %3979 = vmatpush.bf16.msrb.mxu2 %v12557_v50  ;;  %v12757_v50 = vor.u32 %v17702_v35, %v12756_v34  ;;  %v17902_v35 = vld [vmem:[#allocation5 + $0xee4] sm:$0xf0]  ;;  %v13116_v28 = vld [vmem:[#allocation5 + $0xb50] sm:$0xf] }
 0x10a   :  { %3993 = vmatpush.bf16.msrb.mxu3 %v12877_v56  ;;  %v3707_v56 = vpop.f32.mrf.mxu2 }
 0x10b   :  { %3952 = vmatpush.bf16.msrb.mxu0 %v11877_v2  ;;  %v3708_v61 = vadd.f32 %v3707_v56, %v3694_v33  ;;  %v12077_v2 = vor.u32 %v17532_v51, %v12076_v49  ;;  %v13556_v33 = vld [vmem:[#allocation5 + $0xec0] sm:$0xf]  ;;  %v11958_v49 = vld [vmem:[#allocation5 + $0x268] sm:$0xf0]  ;;  %v13237_v51 = vor.u32 %v17822_v32, %v13236_v31  ;;  %v19239_v56 = vpop.f32.mrf.mxu0  ;;  %v17872_v32 = vld [vmem:[#allocation5 + $0xdf4] sm:$0xf0] }
 0x10c   :  { %3966 = vmatpush.bf16.msrb.mxu1 %v12197_v4  ;;  %v11716_v4 = vld [vmem:[#allocation5 + $0x60] sm:$0xf]  ;;  %v13557_v53 = vor.u32 %v17902_v35, %v13556_v33  ;;  %v13756_v33 = vld [vmem:[#allocation5 + $0x1050] sm:$0xf] }
 0x10d   :  { %3980 = vmatpush.bf16.msrb.mxu2 %v12517_v5  ;;  %v17442_v5 = vld [vmem:[#allocation5 + $0x84] sm:$0xf0]  ;;  %v19237_v7 = vadd.f32 %v3721_v1, %v3708_v61  ;;  %v13516_v61 = vld [vmem:[#allocation5 + $0xe70] sm:$0xf]  ;;  %v17892_v1 = vld [vmem:[#allocation5 + $0xe94] sm:$0xf0] }
 0x10e   :  { %3994 = vmatpush.bf16.msrb.mxu3 %v12837_v10  ;;  %v17522_v10 = vld [vmem:[#allocation5 + $0x304] sm:$0xf0]  ;;  %v11717_v18 = vor.u32 %v17442_v5, %v11716_v4  ;;  %v17487_v4 = vld [vmem:[#allocation5 + $0x1f4] sm:$0xf]  ;;  %v11918_v5 = vld [vmem:[#allocation5 + $0x218] sm:$0xf0] }
 0x10f   :  { %3953 = vmatpush.bf16.msrb.mxu0 %v11837_v20  ;;  %v17432_v20 = vld [vmem:[#allocation5 + $0x34] sm:$0xf0]  ;;  %v12037_v21 = vor.u32 %v17522_v10, %v12036_v6  ;;  %v19241_v6 = vpop.f32.mrf.mxu1  ;;  %v13517_v10 = vor.u32 %v17892_v1, %v13516_v61  ;;  %v13716_v1 = vld [vmem:[#allocation5 + $0x1000] sm:$0xf] }
 0x110   :  { %3967 = vmatpush.bf16.msrb.mxu1 %v12157_v22  ;;  %v12357_v22 = vor.u32 %v17602_v13, %v12356_v12  ;;  %v11677_v34 = vor.u32 %v17432_v20, %v11676_v19  ;;  %v13156_v13 = vld [vmem:[#allocation5 + $0xba0] sm:$0xf]  ;;  %v17882_v19 = vld [vmem:[#allocation5 + $0xe44] sm:$0xf0] }
 0x111   :  { %3981 = vmatpush.bf16.msrb.mxu2 %v12477_v24  ;;  %v11996_v24 = vld [vmem:[#allocation5 + $0x290] sm:$0xf]  ;;  %v13796_v20 = vld [vmem:[#allocation5 + $0x10a0] sm:$0xf]  ;;  %v13477_v26 = vor.u32 %v17882_v19, %v13476_v17 }
 0x112   :  { %3995 = vmatpush.bf16.msrb.mxu3 %v12797_v16  ;;  %v12636_v16 = vld [vmem:[#allocation5 + $0x790] sm:$0xf] }
 0x113   :  { %3954 = vmatpush.bf16.msrb.mxu0 %v11797_v36  ;;  %v13876_v36 = vld [vmem:[#allocation5 + $0x1140] sm:$0xf]  ;;  %v13676_v19 = vld [vmem:[#allocation5 + $0xfb0] sm:$0xf] }
 0x114   :  { %3968 = vmatpush.bf16.msrb.mxu1 %v12117_v38  ;;  %v17982_v38 = vld [vmem:[#allocation5 + $0x1164] sm:$0xf0] }
 0x115   :  { %3982 = vmatpush.bf16.msrb.mxu2 %v12437_v44  ;;  %v11997_v44 = vor.u32 %v17512_v25, %v11996_v24  ;;  %v13877_v55 = vor.u32 %v17982_v38, %v13876_v36  ;;  %v11878_v24 = vld [vmem:[#allocation5 + $0x1c8] sm:$0xf0]  ;;  %v13157_v25 = vor.u32 %v17802_v14, %v13156_v13  ;;  %v17467_v36 = vld [vmem:[#allocation5 + $0x154] sm:$0xf]  ;;  %v11838_v38 = vld [vmem:[#allocation5 + $0x178] sm:$0xf0] }
 0x116   :  { %3996 = vmatpush.bf16.msrb.mxu3 %v12757_v50  ;;  %v12637_v50 = vor.u32 %v17672_v29, %v12636_v16  ;;  %v17792_v16 = vld [vmem:[#allocation5 + $0xb74] sm:$0xf0]  ;;  %v13436_v29 = vld [vmem:[#allocation5 + $0xdd0] sm:$0xf] }
 0x117   :  { %3955 = vmatpush.bf16.msrb.mxu0 %v11757_v62  ;;  %v11961_v62 = vor.u32 %v17497_v46, %v11958_v49  ;;  %v13437_v46 = vor.u32 %v17872_v32, %v13436_v29  ;;  %v17772_v13 = vld [vmem:[#allocation5 + $0xad4] sm:$0xf0]  ;;  %v13356_v14 = vld [vmem:[#allocation5 + $0xd30] sm:$0xf]  ;;  %v13316_v29 = vld [vmem:[#allocation5 + $0xce0] sm:$0xf] }
 0x118   :  { %3969 = vmatpush.bf16.msrb.mxu1 %v12077_v2  ;;  %v13836_v2 = vld [vmem:[#allocation5 + $0x10f0] sm:$0xf] }
 0x119   :  { %3983 = vmatpush.bf16.msrb.mxu2 %v12397_v3  ;;  %v17972_v3 = vld [vmem:[#allocation5 + $0x1114] sm:$0xf0] }
 0x11a   :  { %3997 = vmatpush.bf16.msrb.mxu3 %v12717_v8  ;;  %v13197_v8 = vor.u32 %v17812_v60, %v13196_v58  ;;  %v13837_v12 = vor.u32 %v17972_v3, %v13836_v2  ;;  %v13396_v58 = vld [vmem:[#allocation5 + $0xd80] sm:$0xf]  ;;  %v11841_v60 = vor.u32 %v17467_v36, %v11838_v38  ;;  %v17942_v2 = vld [vmem:[#allocation5 + $0x1024] sm:$0xf0]  ;;  %v19252_v3 = vpop.f32.mrf.mxu3  ;;  %v17437_v38 = vld [vmem:[#allocation5 + $0x64] sm:$0xf] }
 0x11b   :  { %3956 = vmatpush.bf16.msrb.mxu0 %v11717_v18  ;;  %v11921_v18 = vor.u32 %v17487_v4, %v11918_v5  ;;  %v11798_v4 = vld [vmem:[#allocation5 + $0x128] sm:$0xf0] }
 0x11c   :  { %3970 = vmatpush.bf16.msrb.mxu1 %v12037_v21  ;;  %v17962_v21 = vld [vmem:[#allocation5 + $0x10c4] sm:$0xf0] }
 0x11d   :  { %3984 = vmatpush.bf16.msrb.mxu2 %v12357_v22  ;;  %v17477_v22 = vld [vmem:[#allocation5 + $0x1a4] sm:$0xf] }
 0x11e   :  { %3998 = vmatpush.bf16.msrb.mxu3 %v12677_v27  ;;  %v13797_v27 = vor.u32 %v17962_v21, %v13796_v20  ;;  %v11881_v31 = vor.u32 %v17477_v22, %v11878_v24  ;;  %v17932_v20 = vld [vmem:[#allocation5 + $0xfd4] sm:$0xf0]  ;;  %v17447_v21 = vld [vmem:[#allocation5 + $0xb4] sm:$0xf]  ;;  %v11758_v22 = vld [vmem:[#allocation5 + $0xd8] sm:$0xf0] }
 0x11f   :  { %3957 = vmatpush.bf16.msrb.mxu0 %v11677_v34  ;;  %v17952_v34 = vld [vmem:[#allocation5 + $0x1074] sm:$0xf0]  ;;  %v3735_v35 = vpop.f32.mrf.mxu0  ;;  %v11761_v32 = vor.u32 %v17447_v21, %v11758_v22  ;;  %v17817_v21 = vld [vmem:[#allocation5 + $0xc44] sm:$0xf]  ;;  %v13238_v22 = vld [vmem:[#allocation5 + $0xc68] sm:$0xf0] }
 0x120   :  { %3971 = vmatpush.bf16.msrb.mxu1 %v11997_v44  ;;  %v3736_v44 = vadd.f32 %v3735_v35, %v19237_v7  ;;  %v13757_v49 = vor.u32 %v17952_v34, %v13756_v33  ;;  %v17457_v7 = vld [vmem:[#allocation5 + $0x104] sm:$0xf]  ;;  %v17842_v33 = vld [vmem:[#allocation5 + $0xd04] sm:$0xf0]  ;;  %v13636_v34 = vld [vmem:[#allocation5 + $0xf60] sm:$0xf] }
 0x121   :  { %3985 = vmatpush.bf16.msrb.mxu2 %v12317_v45  ;;  %v13117_v45 = vor.u32 %v17792_v16, %v13116_v28  ;;  %v11801_v17 = vor.u32 %v17457_v7, %v11798_v4  ;;  %v12996_v28 = vld [vmem:[#allocation5 + $0xa60] sm:$0xf]  ;;  %v17762_v16 = vld [vmem:[#allocation5 + $0xa84] sm:$0xf0]  ;;  %v17912_v7 = vld [vmem:[#allocation5 + $0xf34] sm:$0xf0] }
 0x122   :  { %3999 = vmatpush.bf16.msrb.mxu3 %v12637_v50  ;;  %3958 = vmatmul.bf16.vlgmr.msrb.gmra.mxu0 %v19166_v57  ;;  %v19248_v50 = vpop.f32.mrf.mxu2  ;;  %v17922_v35 = vld [vmem:[#allocation5 + $0xf84] sm:$0xf0]  ;;  %v17427_v4 = vld [vmem:[#allocation5 + $0x14] sm:$0xf] }
 0x123   :  { %4006 = vmatpush.bf16.msra.mxu0 %v13237_v51  ;;  %3972 = vmatmul.bf16.vlgmr.msrb.gmra.mxu1 %v19172_v11  ;;  %v3749_v51 = vpop.f32.mrf.mxu1 }
 0x124   :  { %4020 = vmatpush.bf16.msra.mxu1 %v13557_v53  ;;  %3986 = vmatmul.bf16.vlgmr.msrb.gmra.mxu2 %v19168_v0  ;;  %v13076_v53 = vld [vmem:[#allocation5 + $0xb00] sm:$0xf]  ;;  %v19250_v61 = vadd.f32 %v3749_v51, %v3736_v44  ;;  %v11718_v44 = vld [vmem:[#allocation5 + $0x88] sm:$0xf0]  ;;  %v17752_v51 = vld [vmem:[#allocation5 + $0xa34] sm:$0xf0] }
 0x125   :  { %4034 = vmatpush.bf16.msra.mxu2 %v13877_v55  ;;  %4000 = vmatmul.bf16.vlgmr.msrb.gmra.mxu3 %v19175_v23  ;;  %v17782_v55 = vld [vmem:[#allocation5 + $0xb24] sm:$0xf0] }
 0x126   :  { %4048 = vmatpush.bf16.msra.mxu3 %v11961_v62  ;;  %v17862_v62 = vld [vmem:[#allocation5 + $0xda4] sm:$0xf0]  ;;  %v13077_v5 = vor.u32 %v17782_v55, %v13076_v53  ;;  %v13317_v55 = vor.u32 %v17842_v33, %v13316_v29  ;;  %v12238_v29 = vld [vmem:[#allocation5 + $0x498] sm:$0xf0] }
 0x127   :  { %4007 = vmatpush.bf16.msra.mxu0 %v13197_v8  ;;  %v13397_v8 = vor.u32 %v17862_v62, %v13396_v58  ;;  %v13637_v58 = vor.u32 %v17922_v35, %v13636_v34  ;;  %v17832_v62 = vld [vmem:[#allocation5 + $0xcb4] sm:$0xf0]  ;;  %v12558_v33 = vld [vmem:[#allocation5 + $0x718] sm:$0xf0]  ;;  %v17727_v34 = vld [vmem:[#allocation5 + $0x974] sm:$0xf] }
 0x128   :  { %4021 = vmatpush.bf16.msra.mxu1 %v13517_v10  ;;  %v13717_v10 = vor.u32 %v17942_v2, %v13716_v1  ;;  %v13596_v1 = vld [vmem:[#allocation5 + $0xf10] sm:$0xf]  ;;  %v11721_v2 = vor.u32 %v17437_v38, %v11718_v44  ;;  %v12878_v35 = vld [vmem:[#allocation5 + $0x998] sm:$0xf0]  ;;  %v17807_v38 = vld [vmem:[#allocation5 + $0xbf4] sm:$0xf] }
 0x129   :  { %4035 = vmatpush.bf16.msra.mxu2 %v13837_v12  ;;  %v13036_v12 = vld [vmem:[#allocation5 + $0xab0] sm:$0xf]  ;;  %v13198_v44 = vld [vmem:[#allocation5 + $0xc18] sm:$0xf0] }
 0x12a   :  { %4049 = vmatpush.bf16.msra.mxu3 %v11921_v18  ;;  %v17852_v18 = vld [vmem:[#allocation5 + $0xd54] sm:$0xf0]  ;;  %v13037_v24 = vor.u32 %v17772_v13, %v13036_v12  ;;  %v17657_v12 = vld [vmem:[#allocation5 + $0x744] sm:$0xf] }
 0x12b   :  { %4008 = vmatpush.bf16.msra.mxu0 %v13157_v25  ;;  %v20088_v25 = vperm.slane %v19196_v54, 2 }
 0x12c   :  { %4022 = vmatpush.bf16.msra.mxu1 %v13477_v26  ;;  %v13357_v26 = vor.u32 %v17852_v18, %v13356_v14  ;;  %v12598_v14 = vld [vmem:[#allocation5 + $0x768] sm:$0xf0] }
 0x12d   :  { %4036 = vmatpush.bf16.msra.mxu2 %v13797_v27  ;;  %v13677_v27 = vor.u32 %v17932_v20, %v13676_v19  ;;  %v12918_v18 = vld [vmem:[#allocation5 + $0x9e8] sm:$0xf0]  ;;  %v13597_v20 = vor.u32 %v17912_v7, %v13596_v1 }
 0x12e   :  { %4050 = vmatpush.bf16.msra.mxu3 %v11881_v31  ;;  %v3763_v31 = vpop.f32.mrf.mxu2  ;;  %v12518_v1 = vld [vmem:[#allocation5 + $0x6c8] sm:$0xf0] }
 0x12f   :  { %4009 = vmatpush.bf16.msra.mxu0 %v13117_v45  ;;  %v3764_v36 = vadd.f32 %v3763_v31, %v20088_v25  ;;  %v3777_v45 = vpop.f32.mrf.mxu3  ;;  %v17647_v31 = vld [vmem:[#allocation5 + $0x6f4] sm:$0xf]  ;;  %v12838_v7 = vld [vmem:[#allocation5 + $0x948] sm:$0xf0]  ;;  %v17653_v25 = vld [vmem:[#allocation5 + $0x71c] sm:$0xf0] }
 0x130   :  { %4023 = vmatpush.bf16.msra.mxu1 %v13437_v46  ;;  %v12997_v46 = vor.u32 %v17762_v16, %v12996_v28  ;;  %v17567_v16 = vld [vmem:[#allocation5 + $0x474] sm:$0xf] }
 0x131   :  { %4037 = vmatpush.bf16.msra.mxu2 %v13757_v49  ;;  %v12956_v49 = vld [vmem:[#allocation5 + $0xa10] sm:$0xf]  ;;  %v19257_v53 = vadd.f32 %v3777_v45, %v3764_v36  ;;  %v19259_v36 = vpop.f32.mrf.mxu0  ;;  %v12241_v45 = vor.u32 %v17567_v16, %v12238_v29 }
 0x132   :  { %4051 = vmatpush.bf16.msra.mxu3 %v11841_v60  ;;  %v13276_v60 = vld [vmem:[#allocation5 + $0xc90] sm:$0xf]  ;;  %v12957_v13 = vor.u32 %v17752_v51, %v12956_v49  ;;  %v12561_v49 = vor.u32 %v17647_v31, %v12558_v33  ;;  %v12881_v51 = vor.u32 %v17727_v34, %v12878_v35  ;;  %v17537_v33 = vld [vmem:[#allocation5 + $0x384] sm:$0xf]  ;;  %v12118_v34 = vld [vmem:[#allocation5 + $0x3a8] sm:$0xf0] }
 0x133   :  { %4010 = vmatpush.bf16.msra.mxu0 %v13077_v5  ;;  %v11678_v5 = vld [vmem:[#allocation5 + $0x38] sm:$0xf0]  ;;  %v13277_v19 = vor.u32 %v17832_v62, %v13276_v60  ;;  %v17637_v60 = vld [vmem:[#allocation5 + $0x6a4] sm:$0xf]  ;;  %v13201_v62 = vor.u32 %v17807_v38, %v13198_v44 }
 0x134   :  { %4024 = vmatpush.bf16.msra.mxu1 %v13397_v8  ;;  %v17577_v8 = vld [vmem:[#allocation5 + $0x4c4] sm:$0xf] }
 0x135   :  { %4038 = vmatpush.bf16.msra.mxu2 %v13717_v10  ;;  %v12278_v10 = vld [vmem:[#allocation5 + $0x4e8] sm:$0xf0]  ;;  %v17617_v35 = vld [vmem:[#allocation5 + $0x604] sm:$0xf] }
 0x136   :  { %4052 = vmatpush.bf16.msra.mxu3 %v11801_v17  ;;  %v17737_v17 = vld [vmem:[#allocation5 + $0x9c4] sm:$0xf] }
 0x137   :  { %4011 = vmatpush.bf16.msra.mxu0 %v13037_v24  ;;  %v11681_v24 = vor.u32 %v17427_v4, %v11678_v5  ;;  %v12921_v28 = vor.u32 %v17737_v17, %v12918_v18  ;;  %v17797_v4 = vld [vmem:[#allocation5 + $0xba4] sm:$0xf]  ;;  %v13158_v5 = vld [vmem:[#allocation5 + $0xbc8] sm:$0xf0]  ;;  %v12158_v17 = vld [vmem:[#allocation5 + $0x3f8] sm:$0xf0] }
 0x138   :  { %4025 = vmatpush.bf16.msra.mxu1 %v13357_v26  ;;  %v12281_v26 = vor.u32 %v17577_v8, %v12278_v10  ;;  %v19266_v10 = vpop.f32.mrf.mxu2  ;;  %v17627_v18 = vld [vmem:[#allocation5 + $0x654] sm:$0xf] }
 0x139   :  { %4039 = vmatpush.bf16.msra.mxu2 %v13677_v27  ;;  %v12601_v27 = vor.u32 %v17657_v12, %v12598_v14  ;;  %v12521_v12 = vor.u32 %v17637_v60, %v12518_v1  ;;  %v17547_v14 = vld [vmem:[#allocation5 + $0x3d4] sm:$0xf]  ;;  %v13078_v60 = vld [vmem:[#allocation5 + $0xb28] sm:$0xf0] }
 0x13a   :  { %4053 = vmatpush.bf16.msra.mxu3 %v11761_v32  ;;  %v13241_v32 = vor.u32 %v17817_v21, %v13238_v22  ;;  %v17707_v21 = vld [vmem:[#allocation5 + $0x8d4] sm:$0xf]  ;;  %v12798_v22 = vld [vmem:[#allocation5 + $0x8f8] sm:$0xf0]  ;;  %v12161_v16 = vor.u32 %v17547_v14, %v12158_v17 }
 0x13b   :  { %4012 = vmatpush.bf16.msra.mxu0 %v12997_v46  ;;  %v19261_v46 = vpop.f32.mrf.mxu1  ;;  %v17767_v17 = vld [vmem:[#allocation5 + $0xab4] sm:$0xf] }
 0x13c   :  { %4026 = vmatpush.bf16.msra.mxu1 %v13317_v55  ;;  %v17557_v55 = vld [vmem:[#allocation5 + $0x424] sm:$0xf] }
 0x13d   :  { %4040 = vmatpush.bf16.msra.mxu2 %v13637_v58  ;;  %v12198_v58 = vld [vmem:[#allocation5 + $0x448] sm:$0xf0] }
 0x13e   :  { %4054 = vmatpush.bf16.msra.mxu3 %v11721_v2  ;;  %v17717_v2 = vld [vmem:[#allocation5 + $0x924] sm:$0xf]  ;;  %v12201_v8 = vor.u32 %v17557_v55, %v12198_v58 }
 0x13f   :  { %4013 = vmatpush.bf16.msra.mxu0 %v12957_v13  ;;  %v12841_v13 = vor.u32 %v17717_v2, %v12838_v7  ;;  %v17777_v58 = vld [vmem:[#allocation5 + $0xb04] sm:$0xf]  ;;  %v17527_v2 = vld [vmem:[#allocation5 + $0x334] sm:$0xf]  ;;  %v12078_v7 = vld [vmem:[#allocation5 + $0x358] sm:$0xf0] }
 0x140   :  { %4027 = vmatpush.bf16.msra.mxu1 %v13277_v19  ;;  %v13161_v19 = vor.u32 %v17797_v4, %v13158_v5  ;;  %v17607_v4 = vld [vmem:[#allocation5 + $0x5b4] sm:$0xf]  ;;  %v13081_v5 = vor.u32 %v17777_v58, %v13078_v60  ;;  %v12318_v60 = vld [vmem:[#allocation5 + $0x538] sm:$0xf0] }
 0x141   :  { %4041 = vmatpush.bf16.msra.mxu2 %v13597_v20  ;;  %v12478_v20 = vld [vmem:[#allocation5 + $0x678] sm:$0xf0]  ;;  %v17587_v58 = vld [vmem:[#allocation5 + $0x514] sm:$0xf] }
 0x142   :  { %4055 = vmatpush.bf16.msra.mxu3 %v11681_v24  ;;  %4014 = vmatmul.bf16.vlgmr.msra.gmra.mxu0 %v19178_v37  ;;  %v19269_v24 = vpop.f32.mrf.mxu3  ;;  %v12481_v31 = vor.u32 %v17627_v18, %v12478_v20  ;;  %v13038_v18 = vld [vmem:[#allocation5 + $0xad8] sm:$0xf0]  ;;  %v12081_v20 = vor.u32 %v17527_v2, %v12078_v7  ;;  %v17747_v2 = vld [vmem:[#allocation5 + $0xa14] sm:$0xf] }
 0x143   :  { %4062 = vmatpush.bf16.msrb.mxu0 %v12281_v26  ;;  %4028 = vmatmul.bf16.vlgmr.msra.gmra.mxu1 %v19182_v42  ;;  %v17787_v26 = vld [vmem:[#allocation5 + $0xb54] sm:$0xf]  ;;  %v3805_v38 = vpop.f32.mrf.mxu1  ;;  %v12958_v7 = vld [vmem:[#allocation5 + $0xa38] sm:$0xf0] }
 0x144   :  { %4076 = vmatpush.bf16.msrb.mxu1 %v12601_v27  ;;  %4042 = vmatmul.bf16.vlgmr.msra.gmra.mxu2 %v19180_v41  ;;  %v13118_v27 = vld [vmem:[#allocation5 + $0xb78] sm:$0xf0] }
 0x145   :  { %4090 = vmatpush.bf16.msrb.mxu2 %v12921_v28  ;;  %4056 = vmatmul.bf16.vlgmr.msra.gmra.mxu3 %v19166_v57  ;;  %v3791_v28 = vpop.f32.mrf.mxu0  ;;  %v13121_v44 = vor.u32 %v17787_v26, %v13118_v27  ;;  %v17517_v27 = vld [vmem:[#allocation5 + $0x2e4] sm:$0xf] }
 0x146   :  { %4104 = vmatpush.bf16.msrb.mxu3 %v13241_v32  ;;  %v3792_v29 = vadd.f32 %v3791_v28, %v19257_v53  ;;  %v12801_v32 = vor.u32 %v17707_v21, %v12798_v22  ;;  %v12038_v28 = vld [vmem:[#allocation5 + $0x308] sm:$0xf0] }
 0x147   :  { %4063 = vmatpush.bf16.msrb.mxu0 %v12241_v45  ;;  %v12438_v45 = vld [vmem:[#allocation5 + $0x628] sm:$0xf0]  ;;  %v3819_v14 = vpop.f32.mrf.mxu2 }
 0x148   :  { %4077 = vmatpush.bf16.msrb.mxu1 %v12561_v49  ;;  %v17697_v49 = vld [vmem:[#allocation5 + $0x884] sm:$0xf]  ;;  %v3806_v55 = vadd.f32 %v3805_v38, %v3792_v29  ;;  %v12441_v53 = vor.u32 %v17617_v35, %v12438_v45  ;;  %v12998_v38 = vld [vmem:[#allocation5 + $0xa88] sm:$0xf0]  ;;  %v17507_v45 = vld [vmem:[#allocation5 + $0x294] sm:$0xf] }
 0x149   :  { %4091 = vmatpush.bf16.msrb.mxu2 %v12881_v51  ;;  %v12758_v51 = vld [vmem:[#allocation5 + $0x8a8] sm:$0xf0]  ;;  %v17757_v35 = vld [vmem:[#allocation5 + $0xa64] sm:$0xf] }
 0x14a   :  { %4105 = vmatpush.bf16.msrb.mxu3 %v13201_v62  ;;  %v12121_v62 = vor.u32 %v17537_v33, %v12118_v34  ;;  %v12761_v1 = vor.u32 %v17697_v49, %v12758_v51  ;;  %v3833_v21 = vpop.f32.mrf.mxu3  ;;  %v17677_v33 = vld [vmem:[#allocation5 + $0x7e4] sm:$0xf]  ;;  %v12678_v34 = vld [vmem:[#allocation5 + $0x808] sm:$0xf0]  ;;  %v11998_v49 = vld [vmem:[#allocation5 + $0x2b8] sm:$0xf0] }
 0x14b   :  { %4064 = vmatpush.bf16.msrb.mxu0 %v12201_v8  ;;  %v12398_v8 = vld [vmem:[#allocation5 + $0x5d8] sm:$0xf0] }
 0x14c   :  { %4078 = vmatpush.bf16.msrb.mxu1 %v12521_v12  ;;  %v17687_v12 = vld [vmem:[#allocation5 + $0x834] sm:$0xf]  ;;  %v12401_v22 = vor.u32 %v17607_v4, %v12398_v8  ;;  %v17897_v4 = vld [vmem:[#allocation5 + $0xec4] sm:$0xf] }
 0x14d   :  { %4092 = vmatpush.bf16.msrb.mxu2 %v12841_v13  ;;  %v12718_v13 = vld [vmem:[#allocation5 + $0x858] sm:$0xf0]  ;;  %v17977_v8 = vld [vmem:[#allocation5 + $0x1144] sm:$0xf] }
 0x14e   :  { %4106 = vmatpush.bf16.msrb.mxu3 %v13161_v19  ;;  %v3820_v19 = vadd.f32 %v3819_v14, %v3806_v55  ;;  %v12721_v26 = vor.u32 %v17687_v12, %v12718_v13  ;;  %v12681_v55 = vor.u32 %v17677_v33, %v12678_v34  ;;  %v12001_v12 = vor.u32 %v17507_v45, %v11998_v49  ;;  %v13878_v13 = vld [vmem:[#allocation5 + $0x1168] sm:$0xf0]  ;;  %v11964_v14 = vld [vmem:[#allocation5 + $0x248] sm:$0xf]  ;;  %v17967_v33 = vld [vmem:[#allocation5 + $0x10f4] sm:$0xf] }
 0x14f   :  { %4065 = vmatpush.bf16.msrb.mxu0 %v12161_v16  ;;  %v17597_v16 = vld [vmem:[#allocation5 + $0x564] sm:$0xf]  ;;  %v12244_v45 = vld [vmem:[#allocation5 + $0x478] sm:$0xf]  ;;  %v17573_v49 = vld [vmem:[#allocation5 + $0x49c] sm:$0xf0] }
 0x150   :  { %4079 = vmatpush.bf16.msrb.mxu1 %v12481_v31  ;;  %v19272_v29 = vadd.f32 %v3833_v21, %v3820_v19  ;;  %v13041_v31 = vor.u32 %v17767_v17, %v13038_v18  ;;  %v17503_v17 = vld [vmem:[#allocation5 + $0x26c] sm:$0xf0]  ;;  %v12321_v18 = vor.u32 %v17587_v58, %v12318_v60  ;;  %v17877_v60 = vld [vmem:[#allocation5 + $0xe24] sm:$0xf] }
 0x151   :  { %4093 = vmatpush.bf16.msrb.mxu2 %v12801_v32  ;;  %v12358_v32 = vld [vmem:[#allocation5 + $0x588] sm:$0xf0]  ;;  %v17583_v21 = vld [vmem:[#allocation5 + $0x4ec] sm:$0xf0] }
 0x152   :  { %4107 = vmatpush.bf16.msrb.mxu3 %v13121_v44  ;;  %v12041_v44 = vor.u32 %v17517_v27, %v12038_v28  ;;  %v12361_v51 = vor.u32 %v17597_v16, %v12358_v32  ;;  %v13881_v27 = vor.u32 %v17977_v8, %v13878_v13  ;;  %v11965_v28 = vor.u32 %v17503_v17, %v11964_v14  ;;  %v19274_v16 = vpop.f32.mrf.mxu0  ;;  %v13518_v32 = vld [vmem:[#allocation5 + $0xe98] sm:$0xf0]  ;;  %v12204_v8 = vld [vmem:[#allocation5 + $0x428] sm:$0xf] }
 0x153   :  { %4066 = vmatpush.bf16.msrb.mxu0 %v12121_v62  ;;  %v17667_v62 = vld [vmem:[#allocation5 + $0x794] sm:$0xf] }
 0x154   :  { %4080 = vmatpush.bf16.msrb.mxu1 %v12441_v53  ;;  %v13001_v53 = vor.u32 %v17757_v35, %v12998_v38  ;;  %v13838_v35 = vld [vmem:[#allocation5 + $0x1118] sm:$0xf0]  ;;  %v11924_v38 = vld [vmem:[#allocation5 + $0x1f8] sm:$0xf] }
 0x155   :  { %4094 = vmatpush.bf16.msrb.mxu2 %v12761_v1  ;;  %v12638_v1 = vld [vmem:[#allocation5 + $0x7b8] sm:$0xf0] }
 0x156   :  { %4108 = vmatpush.bf16.msrb.mxu3 %v13081_v5  ;;  %v13558_v5 = vld [vmem:[#allocation5 + $0xee8] sm:$0xf0]  ;;  %v12641_v19 = vor.u32 %v17667_v62, %v12638_v1  ;;  %v12245_v1 = vor.u32 %v17573_v49, %v12244_v45  ;;  %v19290_v45 = vpop.f32.mrf.mxu3 }
 0x157   :  { %4067 = vmatpush.bf16.msrb.mxu0 %v12081_v20  ;;  %v12284_v20 = vld [vmem:[#allocation5 + $0x4c8] sm:$0xf]  ;;  %v13478_v62 = vld [vmem:[#allocation5 + $0xe48] sm:$0xf0]  ;;  %20100 = vst [vmem:[#allocation22_spill] sm:$0xff] %v19290_v45 }
 0x158   :  { %4081 = vmatpush.bf16.msrb.mxu1 %v12401_v22  ;;  %v12961_v22 = vor.u32 %v17747_v2, %v12958_v7  ;;  %v12285_v34 = vor.u32 %v17583_v21, %v12284_v20  ;;  %v13798_v2 = vld [vmem:[#allocation5 + $0x10c8] sm:$0xf0]  ;;  %v11884_v7 = vld [vmem:[#allocation5 + $0x1a8] sm:$0xf]  ;;  %v13481_v13 = vor.u32 %v17877_v60, %v13478_v62  ;;  %v17947_v20 = vld [vmem:[#allocation5 + $0x1054] sm:$0xf] }
 0x159   :  { %4095 = vmatpush.bf16.msrb.mxu2 %v12721_v26  ;;  %v13561_v26 = vor.u32 %v17897_v4, %v13558_v5  ;;  %v17483_v4 = vld [vmem:[#allocation5 + $0x1cc] sm:$0xf0]  ;;  %v19276_v5 = vpop.f32.mrf.mxu1  ;;  %v17937_v60 = vld [vmem:[#allocation5 + $0x1004] sm:$0xf] }
 0x15a   :  { %4109 = vmatpush.bf16.msrb.mxu3 %v13041_v31  ;;  %v17887_v31 = vld [vmem:[#allocation5 + $0xe74] sm:$0xf]  ;;  %v11885_v17 = vor.u32 %v17483_v4, %v11884_v7  ;;  %v12124_v4 = vld [vmem:[#allocation5 + $0x388] sm:$0xf]  ;;  %v12246_v45 = vld [vmem:[#allocation5 + $0x4a0] sm:$0xf0] }
 0x15b   :  { %4068 = vmatpush.bf16.msrb.mxu0 %v12041_v44  ;;  %v17493_v44 = vld [vmem:[#allocation5 + $0x21c] sm:$0xf0] }
 0x15c   :  { %4082 = vmatpush.bf16.msrb.mxu1 %v12361_v51  ;;  %v13521_v51 = vor.u32 %v17887_v31, %v13518_v32  ;;  %v11925_v58 = vor.u32 %v17493_v44, %v11924_v38  ;;  %v12164_v32 = vld [vmem:[#allocation5 + $0x3d8] sm:$0xf] }
 0x15d   :  { %4096 = vmatpush.bf16.msrb.mxu2 %v12681_v55  ;;  %v13841_v55 = vor.u32 %v17967_v33, %v13838_v35  ;;  %v17553_v33 = vld [vmem:[#allocation5 + $0x3fc] sm:$0xf0] }
 0x15e   :  { %4110 = vmatpush.bf16.msrb.mxu3 %v13001_v53  ;;  %v17957_v53 = vld [vmem:[#allocation5 + $0x10a4] sm:$0xf]  ;;  %v12165_v62 = vor.u32 %v17553_v33, %v12164_v32  ;;  %v17533_v32 = vld [vmem:[#allocation5 + $0x35c] sm:$0xf0] }
 0x15f   :  { %4069 = vmatpush.bf16.msrb.mxu0 %v12001_v12  ;;  %v17563_v12 = vld [vmem:[#allocation5 + $0x44c] sm:$0xf0]  ;;  %v13801_v14 = vor.u32 %v17957_v53, %v13798_v2  ;;  %v3847_v31 = vpop.f32.mrf.mxu0  ;;  %v13718_v53 = vld [vmem:[#allocation5 + $0x1028] sm:$0xf0] }
 0x160   :  { %4083 = vmatpush.bf16.msrb.mxu1 %v12321_v18  ;;  %v17867_v18 = vld [vmem:[#allocation5 + $0xdd4] sm:$0xf]  ;;  %v12205_v21 = vor.u32 %v17563_v12, %v12204_v8  ;;  %v19288_v38 = vadd.f32 %v3847_v31, %v19272_v29  ;;  %v17463_v2 = vld [vmem:[#allocation5 + $0x12c] sm:$0xf0]  ;;  %v12084_v31 = vld [vmem:[#allocation5 + $0x338] sm:$0xf] }
 0x161   :  { %4097 = vmatpush.bf16.msrb.mxu2 %v12641_v19  ;;  %v13438_v19 = vld [vmem:[#allocation5 + $0xdf8] sm:$0xf0]  ;;  %v3861_v7 = vpop.f32.mrf.mxu1  ;;  %v17543_v8 = vld [vmem:[#allocation5 + $0x3ac] sm:$0xf0] }
 0x162   :  { %4111 = vmatpush.bf16.msrb.mxu3 %v12961_v22  ;;  %4070 = vmatmul.bf16.vlgmr.msrb.gmra.mxu0 %v19172_v11  ;;  %v13758_v22 = vld [vmem:[#allocation5 + $0x1078] sm:$0xf0]  ;;  %20099 = vst [vmem:[#allocation21_spill] sm:$0xff] %v19288_v38  ;;  %v13441_v44 = vor.u32 %v17867_v18, %v13438_v19  ;;  %v17927_v19 = vld [vmem:[#allocation5 + $0xfb4] sm:$0xf] }
 0x163   :  { %4118 = vmatpush.bf16.msra.mxu0 %v13561_v26  ;;  %4084 = vmatmul.bf16.vlgmr.msrb.gmra.mxu1 %v19168_v0  ;;  %v11844_v26 = vld [vmem:[#allocation5 + $0x158] sm:$0xf]  ;;  %v13761_v49 = vor.u32 %v17947_v20, %v13758_v22  ;;  %v13358_v18 = vld [vmem:[#allocation5 + $0xd58] sm:$0xf0]  ;;  %v12125_v20 = vor.u32 %v17543_v8, %v12124_v4  ;;  %v17443_v4 = vld [vmem:[#allocation5 + $0x8c] sm:$0xf0] }
 0x164   :  { %4132 = vmatpush.bf16.msra.mxu1 %v13881_v27  ;;  %4098 = vmatmul.bf16.vlgmr.msrb.gmra.mxu2 %v19175_v23  ;;  %v17473_v27 = vld [vmem:[#allocation5 + $0x17c] sm:$0xf0]  ;;  %v11764_v22 = vld [vmem:[#allocation5 + $0xb8] sm:$0xf]  ;;  %v12044_v8 = vld [vmem:[#allocation5 + $0x2e8] sm:$0xf] }
 0x165   :  { %4146 = vmatpush.bf16.msra.mxu2 %v11965_v28  ;;  %4112 = vmatmul.bf16.vlgmr.msrb.gmra.mxu3 %v19178_v37  ;;  %v19282_v28 = vpop.f32.mrf.mxu2 }
 0x166   :  { %4160 = vmatpush.bf16.msra.mxu3 %v12285_v34  ;;  %20098 = vst [vmem:[#allocation20_spill] sm:$0xff] %v19282_v28  ;;  %v19284_v34 = vld [vmem:[#allocation7] sm:$0xff] }
 0x167   :  { %4119 = vmatpush.bf16.msra.mxu0 %v13521_v51  ;;  %v20087_v35 = vperm.slane %v19284_v34, 3  ;;  %v11845_v51 = vor.u32 %v17473_v27, %v11844_v26  ;;  %v17453_v26 = vld [vmem:[#allocation5 + $0xdc] sm:$0xf0]  ;;  %v19296_v38 = vpop.f32.mrf.mxu0  ;;  %v17729_v28 = vld [vmem:[#allocation5 + $0x984] sm:$0xf] }
 0x168   :  { %4133 = vmatpush.bf16.msra.mxu1 %v13841_v55  ;;  %v17857_v55 = vld [vmem:[#allocation5 + $0xd84] sm:$0xf]  ;;  %20101 = vst [vmem:[#allocation23_spill] sm:$0xff] %v19296_v38  ;;  %v17488_v38 = vld [vmem:[#allocation5 + $0x1fc] sm:$0xf] }
 0x169   :  { %4147 = vmatpush.bf16.msra.mxu2 %v11925_v58  ;;  %v13398_v58 = vld [vmem:[#allocation5 + $0xda8] sm:$0xf0]  ;;  %v3862_v29 = vadd.f32 %v3861_v7, %v20087_v35  ;;  %v17523_v35 = vld [vmem:[#allocation5 + $0x30c] sm:$0xf0] }
 0x16a   :  { %4161 = vmatpush.bf16.msra.mxu3 %v12245_v1  ;;  %v11804_v1 = vld [vmem:[#allocation5 + $0x108] sm:$0xf]  ;;  %v13401_v12 = vor.u32 %v17857_v55, %v13398_v58  ;;  %v17837_v55 = vld [vmem:[#allocation5 + $0xce4] sm:$0xf]  ;;  %v13318_v58 = vld [vmem:[#allocation5 + $0xd08] sm:$0xf0] }
 0x16b   :  { %4120 = vmatpush.bf16.msra.mxu0 %v13481_v13  ;;  %v13721_v13 = vor.u32 %v17937_v60, %v13718_v53  ;;  %v17917_v60 = vld [vmem:[#allocation5 + $0xf64] sm:$0xf] }
 0x16c   :  { %4134 = vmatpush.bf16.msra.mxu1 %v13801_v14  ;;  %v11805_v14 = vor.u32 %v17463_v2, %v11804_v1  ;;  %v13638_v1 = vld [vmem:[#allocation5 + $0xf88] sm:$0xf0]  ;;  %v11724_v2 = vld [vmem:[#allocation5 + $0x68] sm:$0xf] }
 0x16d   :  { %4148 = vmatpush.bf16.msra.mxu2 %v11885_v17  ;;  %v17847_v17 = vld [vmem:[#allocation5 + $0xd34] sm:$0xf]  ;;  %v3875_v27 = vpop.f32.mrf.mxu2 }
 0x16e   :  { %4162 = vmatpush.bf16.msra.mxu3 %v12205_v21  ;;  %v13678_v21 = vld [vmem:[#allocation5 + $0xfd8] sm:$0xf0]  ;;  %v3876_v33 = vadd.f32 %v3875_v27, %v3862_v29  ;;  %v13361_v7 = vor.u32 %v17847_v17, %v13358_v18  ;;  %v13321_v29 = vor.u32 %v17837_v55, %v13318_v58  ;;  %v17907_v18 = vld [vmem:[#allocation5 + $0xf14] sm:$0xf]  ;;  %v17513_v27 = vld [vmem:[#allocation5 + $0x2bc] sm:$0xf0] }
 0x16f   :  { %4121 = vmatpush.bf16.msra.mxu0 %v13441_v44  ;;  %v3889_v44 = vpop.f32.mrf.mxu3  ;;  %v13278_v17 = vld [vmem:[#allocation5 + $0xcb8] sm:$0xf0]  ;;  %v13244_v55 = vld [vmem:[#allocation5 + $0xc48] sm:$0xf]  ;;  %v17823_v58 = vld [vmem:[#allocation5 + $0xc6c] sm:$0xf0] }
 0x170   :  { %4135 = vmatpush.bf16.msra.mxu1 %v13761_v49  ;;  %v13681_v49 = vor.u32 %v17927_v19, %v13678_v21  ;;  %v19294_v53 = vadd.f32 %v3889_v44, %v3876_v33  ;;  %v13598_v19 = vld [vmem:[#allocation5 + $0xf38] sm:$0xf0]  ;;  %v11684_v21 = vld [vmem:[#allocation5 + $0x18] sm:$0xf]  ;;  %v12924_v33 = vld [vmem:[#allocation5 + $0x9c8] sm:$0xf] }
 0x171   :  { %4149 = vmatpush.bf16.msra.mxu2 %v11845_v51  ;;  %v11765_v51 = vor.u32 %v17453_v26, %v11764_v22  ;;  %v12045_v22 = vor.u32 %v17523_v35, %v12044_v8  ;;  %v12004_v26 = vld [vmem:[#allocation5 + $0x298] sm:$0xf]  ;;  %v17743_v44 = vld [vmem:[#allocation5 + $0x9ec] sm:$0xf0] }
 0x172   :  { %4163 = vmatpush.bf16.msra.mxu3 %v12165_v62  ;;  %v12085_v62 = vor.u32 %v17533_v32, %v12084_v31  ;;  %v12604_v31 = vld [vmem:[#allocation5 + $0x748] sm:$0xf]  ;;  %v17663_v32 = vld [vmem:[#allocation5 + $0x76c] sm:$0xf0]  ;;  %v12564_v8 = vld [vmem:[#allocation5 + $0x6f8] sm:$0xf] }
 0x173   :  { %4122 = vmatpush.bf16.msra.mxu0 %v13401_v12  ;;  %v17827_v12 = vld [vmem:[#allocation5 + $0xc94] sm:$0xf]  ;;  %v12605_v35 = vor.u32 %v17663_v32, %v12604_v31  ;;  %v17723_v32 = vld [vmem:[#allocation5 + $0x94c] sm:$0xf0] }
 0x174   :  { %4136 = vmatpush.bf16.msra.mxu1 %v13721_v13  ;;  %v13641_v13 = vor.u32 %v17917_v60, %v13638_v1  ;;  %v13564_v60 = vld [vmem:[#allocation5 + $0xec8] sm:$0xf]  ;;  %v17903_v1 = vld [vmem:[#allocation5 + $0xeec] sm:$0xf0] }
 0x175   :  { %4150 = vmatpush.bf16.msra.mxu2 %v11805_v14  ;;  %v11725_v14 = vor.u32 %v17443_v4, %v11724_v2  ;;  %v12925_v2 = vor.u32 %v17743_v44, %v12924_v33  ;;  %v13245_v4 = vor.u32 %v17823_v58, %v13244_v55  ;;  %v13164_v33 = vld [vmem:[#allocation5 + $0xba8] sm:$0xf]  ;;  %v17883_v55 = vld [vmem:[#allocation5 + $0xe4c] sm:$0xf0] }
 0x176   :  { %4164 = vmatpush.bf16.msra.mxu3 %v12125_v20  ;;  %v17433_v20 = vld [vmem:[#allocation5 + $0x3c] sm:$0xf0]  ;;  %v13484_v44 = vld [vmem:[#allocation5 + $0xe28] sm:$0xf] }
 0x177   :  { %4123 = vmatpush.bf16.msra.mxu0 %v13361_v7  ;;  %v13281_v7 = vor.u32 %v17827_v12, %v13278_v17  ;;  %v17733_v12 = vld [vmem:[#allocation5 + $0x99c] sm:$0xf0]  ;;  %v13204_v17 = vld [vmem:[#allocation5 + $0xbf8] sm:$0xf] }
 0x178   :  { %4137 = vmatpush.bf16.msra.mxu1 %v13681_v49  ;;  %v13601_v49 = vor.u32 %v17907_v18, %v13598_v19  ;;  %v19298_v18 = vpop.f32.mrf.mxu1  ;;  %v12565_v19 = vor.u32 %v17653_v25, %v12564_v8 }
 0x179   :  { %4151 = vmatpush.bf16.msra.mxu2 %v11765_v51  ;;  %v11685_v51 = vor.u32 %v17433_v20, %v11684_v21  ;;  %v12885_v21 = vor.u32 %v17733_v12, %v12884_v47  ;;  %v12524_v20 = vld [vmem:[#allocation5 + $0x6a8] sm:$0xf]  ;;  %v19303_v47 = vpop.f32.mrf.mxu2  ;;  %v17873_v12 = vld [vmem:[#allocation5 + $0xdfc] sm:$0xf0] }
 0x17a   :  { %4165 = vmatpush.bf16.msra.mxu3 %v12085_v62  ;;  %v12005_v62 = vor.u32 %v17513_v27, %v12004_v26  ;;  %v17643_v26 = vld [vmem:[#allocation5 + $0x6cc] sm:$0xf0]  ;;  %v12844_v27 = vld [vmem:[#allocation5 + $0x928] sm:$0xf] }
 0x17b   :  { %4124 = vmatpush.bf16.msra.mxu0 %v13321_v29  ;;  %v13565_v29 = vor.u32 %v17903_v1, %v13564_v60  ;;  %v12525_v25 = vor.u32 %v17643_v26, %v12524_v20  ;;  %v12804_v60 = vld [vmem:[#allocation5 + $0x8d8] sm:$0xf]  ;;  %v13485_v1 = vor.u32 %v17883_v55, %v13484_v44  ;;  %v17623_v20 = vld [vmem:[#allocation5 + $0x62c] sm:$0xf0]  ;;  %v12764_v26 = vld [vmem:[#allocation5 + $0x888] sm:$0xf] }
 0x17c   :  { %4138 = vmatpush.bf16.msra.mxu1 %v13641_v13  ;;  %v13524_v13 = vld [vmem:[#allocation5 + $0xe78] sm:$0xf]  ;;  %v13404_v44 = vld [vmem:[#allocation5 + $0xd88] sm:$0xf]  ;;  %v17863_v55 = vld [vmem:[#allocation5 + $0xdac] sm:$0xf0] }
 0x17d   :  { %4152 = vmatpush.bf16.msra.mxu2 %v11725_v14  ;;  %v17893_v14 = vld [vmem:[#allocation5 + $0xe9c] sm:$0xf0] }
 0x17e   :  { %4166 = vmatpush.bf16.msra.mxu3 %v12045_v22  ;;  %v13205_v22 = vor.u32 %v17813_v63, %v13204_v17  ;;  %v13525_v31 = vor.u32 %v17893_v14, %v13524_v13  ;;  %v12845_v63 = vor.u32 %v17723_v32, %v12844_v27  ;;  %v17703_v32 = vld [vmem:[#allocation5 + $0x8ac] sm:$0xf0] }
 0x17f   :  { %4125 = vmatpush.bf16.msra.mxu0 %v13281_v7  ;;  %v17803_v7 = vld [vmem:[#allocation5 + $0xbcc] sm:$0xf0]  ;;  %v3903_v8 = vpop.f32.mrf.mxu0 }
 0x180   :  { %4139 = vmatpush.bf16.msra.mxu1 %v13601_v49  ;;  %v13165_v58 = vor.u32 %v17803_v7, %v13164_v33  ;;  %v12484_v49 = vld [vmem:[#allocation5 + $0x658] sm:$0xf]  ;;  %v3904_v17 = vadd.f32 %v3903_v8, %v19294_v53  ;;  %v13084_v33 = vld [vmem:[#allocation5 + $0xb08] sm:$0xf]  ;;  %v17783_v7 = vld [vmem:[#allocation5 + $0xb2c] sm:$0xf0]  ;;  %v12765_v53 = vor.u32 %v17703_v32, %v12764_v26 }
 0x181   :  { %4153 = vmatpush.bf16.msra.mxu2 %v11685_v51  ;;  %v17633_v51 = vld [vmem:[#allocation5 + $0x67c] sm:$0xf0]  ;;  %v12684_v26 = vld [vmem:[#allocation5 + $0x7e8] sm:$0xf]  ;;  %v17683_v32 = vld [vmem:[#allocation5 + $0x80c] sm:$0xf0] }
 0x182   :  { %4167 = vmatpush.bf16.msra.mxu3 %v12005_v62  ;;  %4126 = vmatmul.bf16.vlgmr.msra.gmra.mxu0 %v19182_v42  ;;  %v19306_v62 = vpop.f32.mrf.mxu3  ;;  %v12485_v13 = vor.u32 %v17633_v51, %v12484_v49  ;;  %v17613_v49 = vld [vmem:[#allocation5 + $0x5dc] sm:$0xf0]  ;;  %v12724_v51 = vld [vmem:[#allocation5 + $0x838] sm:$0xf] }
 0x183   :  { %4174 = vmatpush.bf16.msrb.mxu0 %v12605_v35  ;;  %4140 = vmatmul.bf16.vlgmr.msra.gmra.mxu1 %v19180_v41  ;;  %20102 = vst [vmem:[#allocation24_spill] sm:$0xff] %v19306_v62  ;;  %v17713_v35 = vld [vmem:[#allocation5 + $0x8fc] sm:$0xf0] }
 0x184   :  { %4188 = vmatpush.bf16.msrb.mxu1 %v12925_v2  ;;  %4154 = vmatmul.bf16.vlgmr.msra.gmra.mxu2 %v19166_v57  ;;  %v13124_v2 = vld [vmem:[#allocation5 + $0xb58] sm:$0xf]  ;;  %v12805_v14 = vor.u32 %v17713_v35, %v12804_v60  ;;  %v13405_v60 = vor.u32 %v17863_v55, %v13404_v44  ;;  %v17843_v44 = vld [vmem:[#allocation5 + $0xd0c] sm:$0xf0] }
 0x185   :  { %4202 = vmatpush.bf16.msrb.mxu2 %v13245_v4  ;;  %4168 = vmatmul.bf16.vlgmr.msra.gmra.mxu3 %v19172_v11  ;;  %v17793_v4 = vld [vmem:[#allocation5 + $0xb7c] sm:$0xf0] }
 0x186   :  { %4216 = vmatpush.bf16.msrb.mxu3 %v13565_v29  ;;  %v13444_v29 = vld [vmem:[#allocation5 + $0xdd8] sm:$0xf] }
 0x187   :  { %4175 = vmatpush.bf16.msrb.mxu0 %v12565_v19  ;;  %v13125_v19 = vor.u32 %v17793_v4, %v13124_v2  ;;  %v13445_v27 = vor.u32 %v17873_v12, %v13444_v29  ;;  %v3931_v35 = vpop.f32.mrf.mxu2  ;;  %v13044_v2 = vld [vmem:[#allocation5 + $0xab8] sm:$0xf]  ;;  %v17773_v4 = vld [vmem:[#allocation5 + $0xadc] sm:$0xf0]  ;;  %v19311_v62 = vpop.f32.mrf.mxu0 }
 0x188   :  { %4189 = vmatpush.bf16.msrb.mxu1 %v12885_v21  ;;  %v3917_v21 = vpop.f32.mrf.mxu1  ;;  %v13364_v29 = vld [vmem:[#allocation5 + $0xd38] sm:$0xf]  ;;  %v17853_v12 = vld [vmem:[#allocation5 + $0xd5c] sm:$0xf0]  ;;  %20104 = vst [vmem:[#allocation26_spill] sm:$0xff] %v19311_v62 }
 0x189   :  { %4203 = vmatpush.bf16.msrb.mxu2 %v13205_v22  ;;  %v12444_v22 = vld [vmem:[#allocation5 + $0x608] sm:$0xf] }
 0x18a   :  { %4217 = vmatpush.bf16.msrb.mxu3 %v13525_v31  ;;  %v3918_v31 = vadd.f32 %v3917_v21, %v3904_v17  ;;  %v3945_v17 = vpop.f32.mrf.mxu3  ;;  %v13045_v21 = vor.u32 %v17773_v4, %v13044_v2  ;;  %v13284_v2 = vld [vmem:[#allocation5 + $0xc98] sm:$0xf]  ;;  %v17833_v4 = vld [vmem:[#allocation5 + $0xcbc] sm:$0xf0] }
 0x18b   :  { %4176 = vmatpush.bf16.msrb.mxu0 %v12525_v25  ;;  %v12445_v25 = vor.u32 %v17623_v20, %v12444_v22  ;;  %v12364_v22 = vld [vmem:[#allocation5 + $0x568] sm:$0xf]  ;;  %v17603_v20 = vld [vmem:[#allocation5 + $0x58c] sm:$0xf0] }
 0x18c   :  { %4190 = vmatpush.bf16.msrb.mxu1 %v12845_v63  ;;  %v13085_v63 = vor.u32 %v17783_v7, %v13084_v33  ;;  %v3932_v8 = vadd.f32 %v3931_v35, %v3918_v31  ;;  %v13004_v33 = vld [vmem:[#allocation5 + $0xa68] sm:$0xf]  ;;  %v17763_v7 = vld [vmem:[#allocation5 + $0xa8c] sm:$0xf0]  ;;  %v12365_v55 = vor.u32 %v17603_v20, %v12364_v22  ;;  %v12964_v35 = vld [vmem:[#allocation5 + $0xa18] sm:$0xf] }
 0x18d   :  { %4204 = vmatpush.bf16.msrb.mxu2 %v13165_v58  ;;  %v12404_v58 = vld [vmem:[#allocation5 + $0x5b8] sm:$0xf]  ;;  %v13324_v31 = vld [vmem:[#allocation5 + $0xce8] sm:$0xf]  ;;  %v17578_v22 = vld [vmem:[#allocation5 + $0x4cc] sm:$0xf] }
 0x18e   :  { %4218 = vmatpush.bf16.msrb.mxu3 %v13485_v1  ;;  %v17693_v1 = vld [vmem:[#allocation5 + $0x85c] sm:$0xf0]  ;;  %v12286_v20 = vld [vmem:[#allocation5 + $0x4f0] sm:$0xf0] }
 0x18f   :  { %4177 = vmatpush.bf16.msrb.mxu0 %v12485_v13  ;;  %v12405_v13 = vor.u32 %v17613_v49, %v12404_v58  ;;  %v17593_v58 = vld [vmem:[#allocation5 + $0x53c] sm:$0xf0]  ;;  %v12644_v49 = vld [vmem:[#allocation5 + $0x798] sm:$0xf] }
 0x190   :  { %4191 = vmatpush.bf16.msrb.mxu1 %v12805_v14  ;;  %v19309_v14 = vadd.f32 %v3945_v17, %v3932_v8  ;;  %v13884_v8 = vld [vmem:[#allocation5 + $0x1148] sm:$0xf] }
 0x191   :  { %4205 = vmatpush.bf16.msrb.mxu2 %v13125_v19  ;;  %v12725_v19 = vor.u32 %v17693_v1, %v12724_v51  ;;  %v17673_v51 = vld [vmem:[#allocation5 + $0x7bc] sm:$0xf0]  ;;  %v13325_v1 = vor.u32 %v17843_v44, %v13324_v31  ;;  %v12289_v31 = vor.u32 %v17578_v22, %v12286_v20  ;;  %v13844_v44 = vld [vmem:[#allocation5 + $0x10f8] sm:$0xf]  ;;  %v12526_v22 = vld [vmem:[#allocation5 + $0x6d0] sm:$0xf0] }
 0x192   :  { %4219 = vmatpush.bf16.msrb.mxu3 %v13445_v27  ;;  %20103 = vst [vmem:[#allocation25_spill] sm:$0xff] %v19309_v14  ;;  %v13365_v27 = vor.u32 %v17853_v12, %v13364_v29  ;;  %v17983_v29 = vld [vmem:[#allocation5 + $0x116c] sm:$0xf0]  ;;  %v17498_v12 = vld [vmem:[#allocation5 + $0x24c] sm:$0xf] }
 0x193   :  { %4178 = vmatpush.bf16.msrb.mxu0 %v12445_v25  ;;  %v12324_v25 = vld [vmem:[#allocation5 + $0x518] sm:$0xf]  ;;  %v17973_v14 = vld [vmem:[#allocation5 + $0x111c] sm:$0xf0] }
 0x194   :  { %4192 = vmatpush.bf16.msrb.mxu1 %v12765_v53  ;;  %v12685_v53 = vor.u32 %v17683_v32, %v12684_v26  ;;  %v12325_v17 = vor.u32 %v17593_v58, %v12324_v25  ;;  %v17658_v26 = vld [vmem:[#allocation5 + $0x74c] sm:$0xf]  ;;  %v12606_v32 = vld [vmem:[#allocation5 + $0x770] sm:$0xf0]  ;;  %v11926_v25 = vld [vmem:[#allocation5 + $0x220] sm:$0xf0] }
 0x195   :  { %4206 = vmatpush.bf16.msrb.mxu2 %v13085_v63  ;;  %v13005_v63 = vor.u32 %v17763_v7, %v13004_v33  ;;  %v13885_v33 = vor.u32 %v17983_v29, %v13884_v8  ;;  %v17568_v58 = vld [vmem:[#allocation5 + $0x47c] sm:$0xf]  ;;  %v11886_v29 = vld [vmem:[#allocation5 + $0x1d0] sm:$0xf0] }
 0x196   :  { %4220 = vmatpush.bf16.msrb.mxu3 %v13405_v60  ;;  %v17753_v60 = vld [vmem:[#allocation5 + $0xa3c] sm:$0xf0] }
 0x197   :  { %4179 = vmatpush.bf16.msrb.mxu0 %v12405_v13  ;;  %v11966_v13 = vld [vmem:[#allocation5 + $0x270] sm:$0xf0] }
 0x198   :  { %4193 = vmatpush.bf16.msrb.mxu1 %v12725_v19  ;;  %v12645_v19 = vor.u32 %v17673_v51, %v12644_v49  ;;  %v11969_v7 = vor.u32 %v17498_v12, %v11966_v13  ;;  %v13845_v49 = vor.u32 %v17973_v14, %v13844_v44  ;;  %v19313_v51 = vpop.f32.mrf.mxu1  ;;  %v17558_v12 = vld [vmem:[#allocation5 + $0x42c] sm:$0xf]  ;;  %v17628_v44 = vld [vmem:[#allocation5 + $0x65c] sm:$0xf] }
 0x199   :  { %4207 = vmatpush.bf16.msrb.mxu2 %v13045_v21  ;;  %v12965_v21 = vor.u32 %v17753_v60, %v12964_v35  ;;  %20105 = vst [vmem:[#allocation27_spill] sm:$0xff] %v19313_v51  ;;  %v11929_v35 = vor.u32 %v17488_v38, %v11926_v25  ;;  %v13804_v60 = vld [vmem:[#allocation5 + $0x10a8] sm:$0xf]  ;;  %v17638_v13 = vld [vmem:[#allocation5 + $0x6ac] sm:$0xf]  ;;  %v20091_v38 = vperm.slane %v19284_v34, 4 }
 0x19a   :  { %4221 = vmatpush.bf16.msrb.mxu3 %v13365_v27  ;;  %v13285_v27 = vor.u32 %v17833_v4, %v13284_v2  ;;  %v17963_v2 = vld [vmem:[#allocation5 + $0x10cc] sm:$0xf0]  ;;  %v17478_v4 = vld [vmem:[#allocation5 + $0x1ac] sm:$0xf]  ;;  %v13526_v51 = vld [vmem:[#allocation5 + $0xea0] sm:$0xf0] }
 0x19b   :  { %4180 = vmatpush.bf16.msrb.mxu0 %v12365_v55  ;;  %v12609_v55 = vor.u32 %v17658_v26, %v12606_v32  ;;  %v13805_v14 = vor.u32 %v17963_v2, %v13804_v60  ;;  %v17468_v26 = vld [vmem:[#allocation5 + $0x15c] sm:$0xf]  ;;  %v19320_v32 = vpop.f32.mrf.mxu2  ;;  %v17943_v60 = vld [vmem:[#allocation5 + $0x102c] sm:$0xf0]  ;;  %v17458_v2 = vld [vmem:[#allocation5 + $0x10c] sm:$0xf] }
 0x19c   :  { %4194 = vmatpush.bf16.msrb.mxu1 %v12685_v53  ;;  %v17648_v53 = vld [vmem:[#allocation5 + $0x6fc] sm:$0xf]  ;;  %20106 = vst [vmem:[#allocation28_spill] sm:$0xff] %v19320_v32  ;;  %v12886_v32 = vld [vmem:[#allocation5 + $0x9a0] sm:$0xf0] }
 0x19d   :  { %4208 = vmatpush.bf16.msrb.mxu2 %v13005_v63  ;;  %v12566_v63 = vld [vmem:[#allocation5 + $0x720] sm:$0xf0] }
 0x19e   :  { %4222 = vmatpush.bf16.msrb.mxu3 %v13325_v1  ;;  %v12249_v1 = vor.u32 %v17568_v58, %v12246_v45  ;;  %v12569_v8 = vor.u32 %v17648_v53, %v12566_v63  ;;  %v11889_v45 = vor.u32 %v17478_v4, %v11886_v29  ;;  %v19322_v58 = vpop.f32.mrf.mxu3  ;;  %v11806_v29 = vld [vmem:[#allocation5 + $0x130] sm:$0xf0] }
 0x19f   :  { %4181 = vmatpush.bf16.msrb.mxu0 %v12325_v17  ;;  %v12206_v17 = vld [vmem:[#allocation5 + $0x450] sm:$0xf0]  ;;  %v3959_v25 = vpop.f32.mrf.mxu0  ;;  %20107 = vst [vmem:[#allocation29_spill] sm:$0xff] %v19322_v58 }
 0x1a0   :  { %4195 = vmatpush.bf16.msrb.mxu1 %v12645_v19  ;;  %v12209_v20 = vor.u32 %v17558_v12, %v12206_v17  ;;  %v13764_v19 = vld [vmem:[#allocation5 + $0x1058] sm:$0xf]  ;;  %v3960_v63 = vadd.f32 %v3959_v25, %v20091_v38  ;;  %v3973_v4 = vpop.f32.mrf.mxu1  ;;  %v17538_v12 = vld [vmem:[#allocation5 + $0x38c] sm:$0xf]  ;;  %v12126_v17 = vld [vmem:[#allocation5 + $0x3b0] sm:$0xf0] }
 0x1a1   :  { %4209 = vmatpush.bf16.msrb.mxu2 %v12965_v21  ;;  %v17953_v21 = vld [vmem:[#allocation5 + $0x107c] sm:$0xf0]  ;;  %v17608_v25 = vld [vmem:[#allocation5 + $0x5bc] sm:$0xf]  ;;  %v12406_v38 = vld [vmem:[#allocation5 + $0x5e0] sm:$0xf0] }
 0x1a2   :  { %4223 = vmatpush.bf16.msrb.mxu3 %v13285_v27  ;;  %4182 = vmatmul.bf16.vlgmr.msrb.gmra.mxu0 %v19168_v0  ;;  %v12529_v27 = vor.u32 %v17638_v13, %v12526_v22  ;;  %v13765_v53 = vor.u32 %v17953_v21, %v13764_v19  ;;  %v3974_v13 = vadd.f32 %v3973_v4, %v3960_v63  ;;  %v17618_v22 = vld [vmem:[#allocation5 + $0x60c] sm:$0xf]  ;;  %v13684_v21 = vld [vmem:[#allocation5 + $0xfb8] sm:$0xf]  ;;  %v12366_v58 = vld [vmem:[#allocation5 + $0x590] sm:$0xf0] }
 0x1a3   :  { %4230 = vmatpush.bf16.msra.mxu0 %v13885_v33  ;;  %4196 = vmatmul.bf16.vlgmr.msrb.gmra.mxu1 %v19175_v23  ;;  %v11846_v33 = vld [vmem:[#allocation5 + $0x180] sm:$0xf0] }
 0x1a4   :  { %4244 = vmatpush.bf16.msra.mxu1 %v11969_v7  ;;  %4210 = vmatmul.bf16.vlgmr.msrb.gmra.mxu2 %v19178_v37  ;;  %v17548_v7 = vld [vmem:[#allocation5 + $0x3dc] sm:$0xf] }
 0x1a5   :  { %4258 = vmatpush.bf16.msra.mxu2 %v12289_v31  ;;  %4224 = vmatmul.bf16.vlgmr.msrb.gmra.mxu3 %v19182_v42  ;;  %v12166_v31 = vld [vmem:[#allocation5 + $0x400] sm:$0xf0] }
 0x1a6   :  { %4272 = vmatpush.bf16.msra.mxu3 %v12609_v55  ;;  %v12486_v55 = vld [vmem:[#allocation5 + $0x680] sm:$0xf0] }
 0x1a7   :  { %4231 = vmatpush.bf16.msra.mxu0 %v13845_v49  ;;  %v11849_v49 = vor.u32 %v17468_v26, %v11846_v33  ;;  %v17933_v26 = vld [vmem:[#allocation5 + $0xfdc] sm:$0xf0]  ;;  %v17448_v33 = vld [vmem:[#allocation5 + $0xbc] sm:$0xf] }
 0x1a8   :  { %4245 = vmatpush.bf16.msra.mxu1 %v11929_v35  ;;  %v12169_v35 = vor.u32 %v17548_v7, %v12166_v31  ;;  %v11766_v31 = vld [vmem:[#allocation5 + $0xe0] sm:$0xf0]  ;;  %v13685_v4 = vor.u32 %v17933_v26, %v13684_v21  ;;  %v17913_v21 = vld [vmem:[#allocation5 + $0xf3c] sm:$0xf0]  ;;  %v17428_v26 = vld [vmem:[#allocation5 + $0x1c] sm:$0xf] }
 0x1a9   :  { %4259 = vmatpush.bf16.msra.mxu2 %v12249_v1  ;;  %v13724_v1 = vld [vmem:[#allocation5 + $0x1008] sm:$0xf] }
 0x1aa   :  { %4273 = vmatpush.bf16.msra.mxu3 %v12569_v8  ;;  %v12489_v8 = vor.u32 %v17628_v44, %v12486_v55  ;;  %v13725_v19 = vor.u32 %v17943_v60, %v13724_v1  ;;  %v12086_v44 = vld [vmem:[#allocation5 + $0x360] sm:$0xf0]  ;;  %v3987_v55 = vpop.f32.mrf.mxu2  ;;  %v13644_v1 = vld [vmem:[#allocation5 + $0xf68] sm:$0xf]  ;;  %v17923_v60 = vld [vmem:[#allocation5 + $0xf8c] sm:$0xf0] }
 0x1ab   :  { %4232 = vmatpush.bf16.msra.mxu0 %v13805_v14  ;;  %v12446_v14 = vld [vmem:[#allocation5 + $0x630] sm:$0xf0]  ;;  %v3988_v63 = vadd.f32 %v3987_v55, %v3974_v13  ;;  %v13645_v13 = vor.u32 %v17923_v60, %v13644_v1  ;;  %v17738_v55 = vld [vmem:[#allocation5 + $0x9cc] sm:$0xf] }
 0x1ac   :  { %4246 = vmatpush.bf16.msra.mxu1 %v11889_v45  ;;  %v11809_v45 = vor.u32 %v17458_v2, %v11806_v29  ;;  %v12449_v7 = vor.u32 %v17618_v22, %v12446_v14  ;;  %v17438_v2 = vld [vmem:[#allocation5 + $0x6c] sm:$0xf]  ;;  %v12046_v22 = vld [vmem:[#allocation5 + $0x310] sm:$0xf0] }
 0x1ad   :  { %4260 = vmatpush.bf16.msra.mxu2 %v12209_v20  ;;  %v12129_v20 = vor.u32 %v17538_v12, %v12126_v17  ;;  %v11726_v12 = vld [vmem:[#allocation5 + $0x90] sm:$0xf0]  ;;  %v17518_v17 = vld [vmem:[#allocation5 + $0x2ec] sm:$0xf] }
 0x1ae   :  { %4274 = vmatpush.bf16.msra.mxu3 %v12529_v27  ;;  %v17528_v27 = vld [vmem:[#allocation5 + $0x33c] sm:$0xf]  ;;  %v17598_v14 = vld [vmem:[#allocation5 + $0x56c] sm:$0xf]  ;;  %v13566_v60 = vld [vmem:[#allocation5 + $0xef0] sm:$0xf0] }
 0x1af   :  { %4233 = vmatpush.bf16.msra.mxu0 %v13765_v53  ;;  %v4001_v53 = vpop.f32.mrf.mxu3  ;;  %v17898_v1 = vld [vmem:[#allocation5 + $0xecc] sm:$0xf] }
 0x1b0   :  { %4247 = vmatpush.bf16.msra.mxu1 %v11849_v49  ;;  %v11769_v49 = vor.u32 %v17448_v33, %v11766_v31  ;;  %v19326_v29 = vadd.f32 %v4001_v53, %v3988_v63  ;;  %v11686_v33 = vld [vmem:[#allocation5 + $0x40] sm:$0xf0]  ;;  %v17508_v31 = vld [vmem:[#allocation5 + $0x29c] sm:$0xf]  ;;  %v17818_v63 = vld [vmem:[#allocation5 + $0xc4c] sm:$0xf] }
 0x1b1   :  { %4261 = vmatpush.bf16.msra.mxu2 %v12169_v35  ;;  %v12089_v35 = vor.u32 %v17528_v27, %v12086_v44  ;;  %v12369_v27 = vor.u32 %v17598_v14, %v12366_v58  ;;  %v12326_v44 = vld [vmem:[#allocation5 + $0x540] sm:$0xf0]  ;;  %v13246_v53 = vld [vmem:[#allocation5 + $0xc70] sm:$0xf0]  ;;  %v17728_v14 = vld [vmem:[#allocation5 + $0x97c] sm:$0xf] }
 0x1b2   :  { %4275 = vmatpush.bf16.msra.mxu3 %v12489_v8  ;;  %20108 = vst [vmem:[#allocation30_spill] sm:$0xff] %v19326_v29  ;;  %v12409_v8 = vor.u32 %v17608_v25, %v12406_v38  ;;  %v17588_v38 = vld [vmem:[#allocation5 + $0x51c] sm:$0xf]  ;;  %v12926_v25 = vld [vmem:[#allocation5 + $0x9f0] sm:$0xf0] }
 0x1b3   :  { %4234 = vmatpush.bf16.msra.mxu0 %v13725_v19  ;;  %v13604_v19 = vld [vmem:[#allocation5 + $0xf18] sm:$0xf]  ;;  %v12929_v58 = vor.u32 %v17738_v55, %v12926_v25  ;;  %v17808_v29 = vld [vmem:[#allocation5 + $0xbfc] sm:$0xf]  ;;  %v13166_v55 = vld [vmem:[#allocation5 + $0xbd0] sm:$0xf0] }
 0x1b4   :  { %4248 = vmatpush.bf16.msra.mxu1 %v11809_v45  ;;  %v11729_v45 = vor.u32 %v17438_v2, %v11726_v12  ;;  %v17978_v2 = vld [vmem:[#allocation5 + $0x114c] sm:$0xf]  ;;  %v13886_v12 = vld [vmem:[#allocation5 + $0x1170] sm:$0xf0] }
 0x1b5   :  { %4262 = vmatpush.bf16.msra.mxu2 %v12129_v20  ;;  %v12049_v20 = vor.u32 %v17518_v17, %v12046_v22  ;;  %v13249_v17 = vor.u32 %v17818_v63, %v13246_v53  ;;  %v13569_v22 = vor.u32 %v17898_v1, %v13566_v60  ;;  %v17878_v25 = vld [vmem:[#allocation5 + $0xe2c] sm:$0xf]  ;;  %v13486_v63 = vld [vmem:[#allocation5 + $0xe50] sm:$0xf0]  ;;  %v17708_v1 = vld [vmem:[#allocation5 + $0x8dc] sm:$0xf] }
 0x1b6   :  { %4276 = vmatpush.bf16.msra.mxu3 %v12449_v7  ;;  %v12006_v7 = vld [vmem:[#allocation5 + $0x2c0] sm:$0xf0]  ;;  %v13806_v53 = vld [vmem:[#allocation5 + $0x10d0] sm:$0xf0] }
 0x1b7   :  { %4235 = vmatpush.bf16.msra.mxu0 %v13685_v4  ;;  %v13605_v4 = vor.u32 %v17913_v21, %v13604_v19  ;;  %v13206_v19 = vld [vmem:[#allocation5 + $0xc20] sm:$0xf0]  ;;  %v17888_v21 = vld [vmem:[#allocation5 + $0xe7c] sm:$0xf] }
 0x1b8   :  { %4249 = vmatpush.bf16.msra.mxu1 %v11769_v49  ;;  %v11689_v49 = vor.u32 %v17428_v26, %v11686_v33  ;;  %v12889_v26 = vor.u32 %v17728_v14, %v12886_v32  ;;  %v13209_v33 = vor.u32 %v17808_v29, %v13206_v19  ;;  %v13489_v29 = vor.u32 %v17878_v25, %v13486_v63  ;;  %v12806_v60 = vld [vmem:[#allocation5 + $0x900] sm:$0xf0]  ;;  %v17698_v19 = vld [vmem:[#allocation5 + $0x88c] sm:$0xf]  ;;  %v17688_v25 = vld [vmem:[#allocation5 + $0x83c] sm:$0xf] }
 0x1b9   :  { %4263 = vmatpush.bf16.msra.mxu2 %v12089_v35  ;;  %v12009_v35 = vor.u32 %v17508_v31, %v12006_v7  ;;  %v13529_v31 = vor.u32 %v17888_v21, %v13526_v51  ;;  %v12846_v7 = vld [vmem:[#allocation5 + $0x950] sm:$0xf0]  ;;  %v12726_v63 = vld [vmem:[#allocation5 + $0x860] sm:$0xf0] }
 0x1ba   :  { %4277 = vmatpush.bf16.msra.mxu3 %v12409_v8  ;;  %v12329_v8 = vor.u32 %v17588_v38, %v12326_v44  ;;  %v17798_v38 = vld [vmem:[#allocation5 + $0xbac] sm:$0xf]  ;;  %v12766_v21 = vld [vmem:[#allocation5 + $0x8b0] sm:$0xf0] }
 0x1bb   :  { %4236 = vmatpush.bf16.msra.mxu0 %v13645_v13  ;;  %v13889_v13 = vor.u32 %v17978_v2, %v13886_v12  ;;  %v13169_v51 = vor.u32 %v17798_v38, %v13166_v55  ;;  %v13126_v2 = vld [vmem:[#allocation5 + $0xb80] sm:$0xf0]  ;;  %v17868_v12 = vld [vmem:[#allocation5 + $0xddc] sm:$0xf]  ;;  %v12769_v38 = vor.u32 %v17698_v19, %v12766_v21  ;;  %v17918_v19 = vld [vmem:[#allocation5 + $0xf6c] sm:$0xf] }
 0x1bc   :  { %4250 = vmatpush.bf16.msra.mxu1 %v11729_v45  ;;  %v17968_v45 = vld [vmem:[#allocation5 + $0x10fc] sm:$0xf]  ;;  %v13646_v21 = vld [vmem:[#allocation5 + $0xf90] sm:$0xf0] }
 0x1bd   :  { %4264 = vmatpush.bf16.msra.mxu2 %v12049_v20  ;;  %v13846_v20 = vld [vmem:[#allocation5 + $0x1120] sm:$0xf0] }
 0x1be   :  { %4278 = vmatpush.bf16.msra.mxu3 %v12369_v27  ;;  %v17718_v27 = vld [vmem:[#allocation5 + $0x92c] sm:$0xf]  ;;  %v13849_v44 = vor.u32 %v17968_v45, %v13846_v20 }
 0x1bf   :  { %4237 = vmatpush.bf16.msra.mxu0 %v13605_v4  ;;  %v17958_v4 = vld [vmem:[#allocation5 + $0x10ac] sm:$0xf]  ;;  %v12849_v32 = vor.u32 %v17718_v27, %v12846_v7  ;;  %v13726_v7 = vld [vmem:[#allocation5 + $0x1030] sm:$0xf0] }
 0x1c0   :  { %4251 = vmatpush.bf16.msra.mxu1 %v11689_v49  ;;  %v17788_v49 = vld [vmem:[#allocation5 + $0xb5c] sm:$0xf]  ;;  %v17778_v45 = vld [vmem:[#allocation5 + $0xb0c] sm:$0xf] }
 0x1c1   :  { %4265 = vmatpush.bf16.msra.mxu2 %v12009_v35  ;;  %v13809_v35 = vor.u32 %v17958_v4, %v13806_v53  ;;  %v13129_v14 = vor.u32 %v17788_v49, %v13126_v2  ;;  %v17938_v27 = vld [vmem:[#allocation5 + $0x100c] sm:$0xf]  ;;  %v17768_v4 = vld [vmem:[#allocation5 + $0xabc] sm:$0xf]  ;;  %v12729_v49 = vor.u32 %v17688_v25, %v12726_v63  ;;  %v13606_v63 = vld [vmem:[#allocation5 + $0xf40] sm:$0xf0] }
 0x1c2   :  { %4279 = vmatpush.bf16.msra.mxu3 %v12329_v8  ;;  %4238 = vmatmul.bf16.vlgmr.msra.gmra.mxu0 %v19180_v41  ;;  %v13446_v8 = vld [vmem:[#allocation5 + $0xe00] sm:$0xf0]  ;;  %v13729_v53 = vor.u32 %v17938_v27, %v13726_v7  ;;  %v17748_v27 = vld [vmem:[#allocation5 + $0xa1c] sm:$0xf] }
 0x1c3   :  { %4286 = vmatpush.bf16.msrb.mxu0 %v12929_v58  ;;  %4252 = vmatmul.bf16.vlgmr.msra.gmra.mxu1 %v19166_v57  ;;  %v17948_v58 = vld [vmem:[#allocation5 + $0x105c] sm:$0xf]  ;;  %v12966_v7 = vld [vmem:[#allocation5 + $0xa40] sm:$0xf0] }
 0x1c4   :  { %4300 = vmatpush.bf16.msrb.mxu1 %v13249_v17  ;;  %4266 = vmatmul.bf16.vlgmr.msra.gmra.mxu2 %v19172_v11  ;;  %v13766_v17 = vld [vmem:[#allocation5 + $0x1080] sm:$0xf0]  ;;  %v17908_v25 = vld [vmem:[#allocation5 + $0xf1c] sm:$0xf] }
 0x1c5   :  { %4314 = vmatpush.bf16.msrb.mxu2 %v13569_v22  ;;  %4280 = vmatmul.bf16.vlgmr.msra.gmra.mxu3 %v19168_v0  ;;  %v12809_v22 = vor.u32 %v17708_v1, %v12806_v60  ;;  %v13769_v20 = vor.u32 %v17948_v58, %v13766_v17  ;;  %v17928_v1 = vld [vmem:[#allocation5 + $0xfbc] sm:$0xf]  ;;  %v13686_v60 = vld [vmem:[#allocation5 + $0xfe0] sm:$0xf0]  ;;  %v17758_v58 = vld [vmem:[#allocation5 + $0xa6c] sm:$0xf] }
 0x1c6   :  { %4328 = vmatpush.bf16.msrb.mxu3 %v13889_v13  ;;  %v13449_v13 = vor.u32 %v17868_v12, %v13446_v8  ;;  %v17678_v12 = vld [vmem:[#allocation5 + $0x7ec] sm:$0xf]  ;;  %v12686_v8 = vld [vmem:[#allocation5 + $0x810] sm:$0xf0]  ;;  %v13689_v17 = vor.u32 %v17928_v1, %v13686_v60  ;;  %v12612_v1 = vld [vmem:[#allocation5 + $0x750] sm:$0xf] }
 0x1c7   :  { %4287 = vmatpush.bf16.msrb.mxu0 %v12889_v26  ;;  %v13086_v26 = vld [vmem:[#allocation5 + $0xb30] sm:$0xf0]  ;;  %v17664_v60 = vld [vmem:[#allocation5 + $0x774] sm:$0xf0] }
 0x1c8   :  { %4301 = vmatpush.bf16.msrb.mxu1 %v13209_v33  ;;  %v17858_v33 = vld [vmem:[#allocation5 + $0xd8c] sm:$0xf] }
 0x1c9   :  { %4315 = vmatpush.bf16.msrb.mxu2 %v13529_v31  ;;  %v13406_v31 = vld [vmem:[#allocation5 + $0xdb0] sm:$0xf0] }
 0x1ca   :  { %4329 = vmatpush.bf16.msrb.mxu3 %v13849_v44  ;;  %v13089_v44 = vor.u32 %v17778_v45, %v13086_v26  ;;  %v13409_v55 = vor.u32 %v17858_v33, %v13406_v31  ;;  %v12689_v45 = vor.u32 %v17678_v12, %v12686_v8  ;;  %v12646_v26 = vld [vmem:[#allocation5 + $0x7c0] sm:$0xf0]  ;;  %v17744_v12 = vld [vmem:[#allocation5 + $0x9f4] sm:$0xf0]  ;;  %v13609_v8 = vor.u32 %v17908_v25, %v13606_v63  ;;  %v12212_v25 = vld [vmem:[#allocation5 + $0x430] sm:$0xf] }
 0x1cb   :  { %4288 = vmatpush.bf16.msrb.mxu0 %v12849_v32  ;;  %v13046_v32 = vld [vmem:[#allocation5 + $0xae0] sm:$0xf0] }
 0x1cc   :  { %4302 = vmatpush.bf16.msrb.mxu1 %v13169_v51  ;;  %v17848_v51 = vld [vmem:[#allocation5 + $0xd3c] sm:$0xf] }
 0x1cd   :  { %4316 = vmatpush.bf16.msrb.mxu2 %v13489_v29  ;;  %v13366_v29 = vld [vmem:[#allocation5 + $0xd60] sm:$0xf0] }
 0x1ce   :  { %4330 = vmatpush.bf16.msrb.mxu3 %v13809_v35  ;;  %v13049_v35 = vor.u32 %v17768_v4, %v13046_v32  ;;  %v13369_v2 = vor.u32 %v17848_v51, %v13366_v29  ;;  %v11972_v4 = vld [vmem:[#allocation5 + $0x250] sm:$0xf]  ;;  %v17584_v29 = vld [vmem:[#allocation5 + $0x4f4] sm:$0xf0] }
 0x1cf   :  { %4289 = vmatpush.bf16.msrb.mxu0 %v12809_v22  ;;  %v13006_v22 = vld [vmem:[#allocation5 + $0xa90] sm:$0xf0]  ;;  %v12292_v32 = vld [vmem:[#allocation5 + $0x4d0] sm:$0xf] }
 0x1d0   :  { %4303 = vmatpush.bf16.msrb.mxu1 %v13129_v14  ;;  %v17838_v14 = vld [vmem:[#allocation5 + $0xcec] sm:$0xf]  ;;  %v13009_v33 = vor.u32 %v17758_v58, %v13006_v22  ;;  %v12613_v22 = vor.u32 %v17664_v60, %v12612_v1 }
 0x1d1   :  { %4317 = vmatpush.bf16.msrb.mxu2 %v13449_v13  ;;  %v13326_v13 = vld [vmem:[#allocation5 + $0xd10] sm:$0xf0] }
 0x1d2   :  { %4331 = vmatpush.bf16.msrb.mxu3 %v13769_v20  ;;  %v17668_v20 = vld [vmem:[#allocation5 + $0x79c] sm:$0xf]  ;;  %v13329_v31 = vor.u32 %v17838_v14, %v13326_v13  ;;  %v11932_v14 = vld [vmem:[#allocation5 + $0x200] sm:$0xf]  ;;  %v17494_v13 = vld [vmem:[#allocation5 + $0x224] sm:$0xf0] }
 0x1d3   :  { %4290 = vmatpush.bf16.msrb.mxu0 %v12769_v38  ;;  %v17828_v38 = vld [vmem:[#allocation5 + $0xc9c] sm:$0xf]  ;;  %v12649_v51 = vor.u32 %v17668_v20, %v12646_v26  ;;  %v12572_v20 = vld [vmem:[#allocation5 + $0x700] sm:$0xf]  ;;  %v17654_v26 = vld [vmem:[#allocation5 + $0x724] sm:$0xf0] }
 0x1d4   :  { %4304 = vmatpush.bf16.msrb.mxu1 %v13089_v44  ;;  %v13649_v44 = vor.u32 %v17918_v19, %v13646_v21  ;;  %v12252_v19 = vld [vmem:[#allocation5 + $0x480] sm:$0xf] }
 0x1d5   :  { %4318 = vmatpush.bf16.msrb.mxu2 %v13409_v55  ;;  %v13286_v55 = vld [vmem:[#allocation5 + $0xcc0] sm:$0xf0] }
 0x1d6   :  { %4332 = vmatpush.bf16.msrb.mxu3 %v13729_v53  ;;  %v17504_v53 = vld [vmem:[#allocation5 + $0x274] sm:$0xf0] }
 0x1d7   :  { %4291 = vmatpush.bf16.msrb.mxu0 %v12729_v49  ;;  %v12969_v49 = vor.u32 %v17748_v27, %v12966_v7  ;;  %v11973_v58 = vor.u32 %v17504_v53, %v11972_v4  ;;  %v11933_v27 = vor.u32 %v17494_v13, %v11932_v14  ;;  %v17564_v4 = vld [vmem:[#allocation5 + $0x454] sm:$0xf0]  ;;  %v12532_v53 = vld [vmem:[#allocation5 + $0x6b0] sm:$0xf]  ;;  %v12812_v14 = vld [vmem:[#allocation5 + $0x8e0] sm:$0xf] }
 0x1d8   :  { %4305 = vmatpush.bf16.msrb.mxu1 %v13049_v35  ;;  %v13289_v35 = vor.u32 %v17828_v38, %v13286_v55  ;;  %v12573_v38 = vor.u32 %v17654_v26, %v12572_v20  ;;  %v17484_v55 = vld [vmem:[#allocation5 + $0x1d4] sm:$0xf0]  ;;  %v12213_v60 = vor.u32 %v17564_v4, %v12212_v25  ;;  %v17714_v13 = vld [vmem:[#allocation5 + $0x904] sm:$0xf0]  ;;  %v11812_v20 = vld [vmem:[#allocation5 + $0x110] sm:$0xf] }
 0x1d9   :  { %4319 = vmatpush.bf16.msrb.mxu2 %v13369_v2  ;;  %v12932_v2 = vld [vmem:[#allocation5 + $0x9d0] sm:$0xf]  ;;  %v17464_v26 = vld [vmem:[#allocation5 + $0x134] sm:$0xf0] }
 0x1da   :  { %4333 = vmatpush.bf16.msrb.mxu3 %v13689_v17  ;;  %v12293_v17 = vor.u32 %v17584_v29, %v12292_v32  ;;  %v12933_v21 = vor.u32 %v17744_v12, %v12932_v2  ;;  %v17644_v32 = vld [vmem:[#allocation5 + $0x6d4] sm:$0xf0]  ;;  %v17474_v2 = vld [vmem:[#allocation5 + $0x184] sm:$0xf0]  ;;  %v12172_v12 = vld [vmem:[#allocation5 + $0x3e0] sm:$0xf]  ;;  %v11813_v25 = vor.u32 %v17464_v26, %v11812_v20 }
 0x1db   :  { %4292 = vmatpush.bf16.msrb.mxu0 %v12689_v45  ;;  %v17574_v45 = vld [vmem:[#allocation5 + $0x4a4] sm:$0xf0]  ;;  %v17724_v29 = vld [vmem:[#allocation5 + $0x954] sm:$0xf0]  ;;  %v12692_v20 = vld [vmem:[#allocation5 + $0x7f0] sm:$0xf] }
 0x1dc   :  { %4306 = vmatpush.bf16.msrb.mxu1 %v13009_v33  ;;  %v12892_v33 = vld [vmem:[#allocation5 + $0x980] sm:$0xf]  ;;  %v12253_v7 = vor.u32 %v17574_v45, %v12252_v19  ;;  %v17684_v26 = vld [vmem:[#allocation5 + $0x814] sm:$0xf0] }
 0x1dd   :  { %4320 = vmatpush.bf16.msrb.mxu2 %v13329_v31  ;;  %v17734_v31 = vld [vmem:[#allocation5 + $0x9a4] sm:$0xf0] }
 0x1de   :  { %4334 = vmatpush.bf16.msrb.mxu3 %v13649_v44  ;;  %v11892_v44 = vld [vmem:[#allocation5 + $0x1b0] sm:$0xf]  ;;  %v12893_v63 = vor.u32 %v17734_v31, %v12892_v33  ;;  %v12813_v31 = vor.u32 %v17714_v13, %v12812_v14 }
 0x1df   :  { %4293 = vmatpush.bf16.msrb.mxu0 %v12649_v51  ;;  %v12852_v51 = vld [vmem:[#allocation5 + $0x930] sm:$0xf]  ;;  %v11893_v1 = vor.u32 %v17484_v55, %v11892_v44  ;;  %v17704_v55 = vld [vmem:[#allocation5 + $0x8b4] sm:$0xf0] }
 0x1e0   :  { %4307 = vmatpush.bf16.msrb.mxu1 %v12969_v49  ;;  %v12533_v49 = vor.u32 %v17644_v32, %v12532_v53  ;;  %v12132_v33 = vld [vmem:[#allocation5 + $0x390] sm:$0xf]  ;;  %v11772_v53 = vld [vmem:[#allocation5 + $0xc0] sm:$0xf]  ;;  %v17454_v32 = vld [vmem:[#allocation5 + $0xe4] sm:$0xf0] }
 0x1e1   :  { %4321 = vmatpush.bf16.msrb.mxu2 %v13289_v35  ;;  %v11852_v35 = vld [vmem:[#allocation5 + $0x160] sm:$0xf]  ;;  %v12772_v44 = vld [vmem:[#allocation5 + $0x890] sm:$0xf] }
 0x1e2   :  { %4335 = vmatpush.bf16.msrb.mxu3 %v13609_v8  ;;  %4294 = vmatmul.bf16.vlgmr.msrb.gmra.mxu0 %v19175_v23  ;;  %v12853_v8 = vor.u32 %v17724_v29, %v12852_v51  ;;  %v11853_v19 = vor.u32 %v17474_v2, %v11852_v35  ;;  %v12092_v51 = vld [vmem:[#allocation5 + $0x340] sm:$0xf]  ;;  %v12773_v29 = vor.u32 %v17704_v55, %v12772_v44  ;;  %v17694_v2 = vld [vmem:[#allocation5 + $0x864] sm:$0xf0]  ;;  %v12052_v14 = vld [vmem:[#allocation5 + $0x2f0] sm:$0xf] }
 0x1e3   :  { %4342 = vmatpush.bf16.msra.mxu0 %v11973_v58  ;;  %4308 = vmatmul.bf16.vlgmr.msrb.gmra.mxu1 %v19178_v37  ;;  %v17554_v58 = vld [vmem:[#allocation5 + $0x404] sm:$0xf0]  ;;  %v12732_v35 = vld [vmem:[#allocation5 + $0x840] sm:$0xf] }
 0x1e4   :  { %4356 = vmatpush.bf16.msra.mxu1 %v12293_v17  ;;  %4322 = vmatmul.bf16.vlgmr.msrb.gmra.mxu2 %v19182_v42  ;;  %v12492_v17 = vld [vmem:[#allocation5 + $0x660] sm:$0xf]  ;;  %v12733_v13 = vor.u32 %v17694_v2, %v12732_v35  ;;  %v17514_v55 = vld [vmem:[#allocation5 + $0x2c4] sm:$0xf0]  ;;  %v13892_v35 = vld [vmem:[#allocation5 + $0x1150] sm:$0xf] }
 0x1e5   :  { %4370 = vmatpush.bf16.msra.mxu2 %v12613_v22  ;;  %4336 = vmatmul.bf16.vlgmr.msrb.gmra.mxu3 %v19180_v41  ;;  %v17634_v22 = vld [vmem:[#allocation5 + $0x684] sm:$0xf0]  ;;  %v12012_v44 = vld [vmem:[#allocation5 + $0x2a0] sm:$0xf]  ;;  %v17984_v2 = vld [vmem:[#allocation5 + $0x1174] sm:$0xf0] }
 0x1e6   :  { %4384 = vmatpush.bf16.msra.mxu3 %v12933_v21  ;;  %v12173_v21 = vor.u32 %v17554_v58, %v12172_v12  ;;  %v12493_v45 = vor.u32 %v17634_v22, %v12492_v17  ;;  %v11773_v12 = vor.u32 %v17454_v32, %v11772_v53  ;;  %v11732_v17 = vld [vmem:[#allocation5 + $0x70] sm:$0xf]  ;;  %v17444_v22 = vld [vmem:[#allocation5 + $0x94] sm:$0xf0]  ;;  %v12652_v53 = vld [vmem:[#allocation5 + $0x7a0] sm:$0xf] }
 0x1e7   :  { %4343 = vmatpush.bf16.msra.mxu0 %v11933_v27  ;;  %v17544_v27 = vld [vmem:[#allocation5 + $0x3b4] sm:$0xf0]  ;;  %v17674_v32 = vld [vmem:[#allocation5 + $0x7c4] sm:$0xf0] }
 0x1e8   :  { %4357 = vmatpush.bf16.msra.mxu1 %v12253_v7  ;;  %v12452_v7 = vld [vmem:[#allocation5 + $0x610] sm:$0xf] }
 0x1e9   :  { %4371 = vmatpush.bf16.msra.mxu2 %v12573_v38  ;;  %v17624_v38 = vld [vmem:[#allocation5 + $0x634] sm:$0xf0] }
 0x1ea   :  { %4385 = vmatpush.bf16.msra.mxu3 %v12893_v63  ;;  %v12133_v63 = vor.u32 %v17544_v27, %v12132_v33  ;;  %v12453_v4 = vor.u32 %v17624_v38, %v12452_v7  ;;  %v11733_v33 = vor.u32 %v17444_v22, %v11732_v17  ;;  %v17434_v27 = vld [vmem:[#allocation5 + $0x44] sm:$0xf0]  ;;  %v11974_v17 = vld [vmem:[#allocation5 + $0x278] sm:$0xf0]  ;;  %v12653_v22 = vor.u32 %v17674_v32, %v12652_v53  ;;  %v13492_v53 = vld [vmem:[#allocation5 + $0xe30] sm:$0xf] }
 0x1eb   :  { %4344 = vmatpush.bf16.msra.mxu0 %v11893_v1  ;;  %v17534_v1 = vld [vmem:[#allocation5 + $0x364] sm:$0xf0] }
 0x1ec   :  { %4358 = vmatpush.bf16.msra.mxu1 %v12213_v60  ;;  %v12412_v60 = vld [vmem:[#allocation5 + $0x5c0] sm:$0xf] }
 0x1ed   :  { %4372 = vmatpush.bf16.msra.mxu2 %v12533_v49  ;;  %v17614_v49 = vld [vmem:[#allocation5 + $0x5e4] sm:$0xf0] }
 0x1ee   :  { %4386 = vmatpush.bf16.msra.mxu3 %v12853_v8  ;;  %v12093_v8 = vor.u32 %v17534_v1, %v12092_v51  ;;  %v12413_v58 = vor.u32 %v17614_v49, %v12412_v60  ;;  %v13252_v51 = vld [vmem:[#allocation5 + $0xc50] sm:$0xf]  ;;  %v17904_v49 = vld [vmem:[#allocation5 + $0xef4] sm:$0xf0] }
 0x1ef   :  { %4345 = vmatpush.bf16.msra.mxu0 %v11853_v19  ;;  %v17524_v19 = vld [vmem:[#allocation5 + $0x314] sm:$0xf0]  ;;  %v13572_v1 = vld [vmem:[#allocation5 + $0xed0] sm:$0xf] }
 0x1f0   :  { %4359 = vmatpush.bf16.msra.mxu1 %v12173_v21  ;;  %v12372_v21 = vld [vmem:[#allocation5 + $0x570] sm:$0xf]  ;;  %v12053_v7 = vor.u32 %v17524_v19, %v12052_v14  ;;  %v13893_v19 = vor.u32 %v17984_v2, %v13892_v35 }
 0x1f1   :  { %4373 = vmatpush.bf16.msra.mxu2 %v12493_v45  ;;  %v17604_v45 = vld [vmem:[#allocation5 + $0x594] sm:$0xf0] }
 0x1f2   :  { %4387 = vmatpush.bf16.msra.mxu3 %v12813_v31  ;;  %v11692_v31 = vld [vmem:[#allocation5 + $0x20] sm:$0xf]  ;;  %v12373_v38 = vor.u32 %v17604_v45, %v12372_v21  ;;  %v17814_v45 = vld [vmem:[#allocation5 + $0xc24] sm:$0xf0] }
 0x1f3   :  { %4346 = vmatpush.bf16.msra.mxu0 %v11813_v25  ;;  %v12332_v25 = vld [vmem:[#allocation5 + $0x520] sm:$0xf]  ;;  %v11693_v60 = vor.u32 %v17434_v27, %v11692_v31  ;;  %v17974_v27 = vld [vmem:[#allocation5 + $0x1124] sm:$0xf0] }
 0x1f4   :  { %4360 = vmatpush.bf16.msra.mxu1 %v12133_v63  ;;  %v12693_v63 = vor.u32 %v17684_v26, %v12692_v20  ;;  %v13212_v21 = vld [vmem:[#allocation5 + $0xc00] sm:$0xf] }
 0x1f5   :  { %4374 = vmatpush.bf16.msra.mxu2 %v12453_v4  ;;  %v17594_v4 = vld [vmem:[#allocation5 + $0x544] sm:$0xf0]  ;;  %v13532_v20 = vld [vmem:[#allocation5 + $0xe80] sm:$0xf] }
 0x1f6   :  { %4388 = vmatpush.bf16.msra.mxu3 %v12773_v29  ;;  %v17824_v29 = vld [vmem:[#allocation5 + $0xc74] sm:$0xf0]  ;;  %v13852_v31 = vld [vmem:[#allocation5 + $0x1100] sm:$0xf] }
 0x1f7   :  { %4347 = vmatpush.bf16.msra.mxu0 %v11773_v12  ;;  %v12013_v12 = vor.u32 %v17514_v55, %v12012_v44  ;;  %v13253_v14 = vor.u32 %v17824_v29, %v13252_v51  ;;  %v13213_v44 = vor.u32 %v17814_v45, %v13212_v21  ;;  %v17884_v51 = vld [vmem:[#allocation5 + $0xe54] sm:$0xf0]  ;;  %v13812_v29 = vld [vmem:[#allocation5 + $0x10b0] sm:$0xf]  ;;  %v17469_v21 = vld [vmem:[#allocation5 + $0x164] sm:$0xf] }
 0x1f8   :  { %4361 = vmatpush.bf16.msra.mxu1 %v12093_v8  ;;  %v12333_v8 = vor.u32 %v17594_v4, %v12332_v25  ;;  %v13853_v25 = vor.u32 %v17974_v27, %v13852_v31  ;;  %v17804_v4 = vld [vmem:[#allocation5 + $0xbd4] sm:$0xf0]  ;;  %v13493_v2 = vor.u32 %v17884_v51, %v13492_v53  ;;  %v11854_v45 = vld [vmem:[#allocation5 + $0x188] sm:$0xf0]  ;;  %v13092_v31 = vld [vmem:[#allocation5 + $0xb10] sm:$0xf] }
 0x1f9   :  { %4375 = vmatpush.bf16.msra.mxu2 %v12413_v58  ;;  %v17499_v58 = vld [vmem:[#allocation5 + $0x254] sm:$0xf]  ;;  %v17784_v27 = vld [vmem:[#allocation5 + $0xb34] sm:$0xf0] }
 0x1fa   :  { %4389 = vmatpush.bf16.msra.mxu3 %v12733_v13  ;;  %v13573_v13 = vor.u32 %v17904_v49, %v13572_v1  ;;  %v11977_v26 = vor.u32 %v17499_v58, %v11974_v17  ;;  %v17964_v1 = vld [vmem:[#allocation5 + $0x10d4] sm:$0xf0]  ;;  %v11894_v49 = vld [vmem:[#allocation5 + $0x1d8] sm:$0xf0]  ;;  %v17794_v58 = vld [vmem:[#allocation5 + $0xb84] sm:$0xf0]  ;;  %v13093_v53 = vor.u32 %v17784_v27, %v13092_v31 }
 0x1fb   :  { %4348 = vmatpush.bf16.msra.mxu0 %v11733_v33  ;;  %v17894_v33 = vld [vmem:[#allocation5 + $0xea4] sm:$0xf0]  ;;  %v13452_v17 = vld [vmem:[#allocation5 + $0xde0] sm:$0xf]  ;;  %v13652_v31 = vld [vmem:[#allocation5 + $0xf70] sm:$0xf] }
 0x1fc   :  { %4362 = vmatpush.bf16.msra.mxu1 %v12053_v7  ;;  %v17489_v7 = vld [vmem:[#allocation5 + $0x204] sm:$0xf]  ;;  %v13533_v55 = vor.u32 %v17894_v33, %v13532_v20  ;;  %v17924_v27 = vld [vmem:[#allocation5 + $0xf94] sm:$0xf0] }
 0x1fd   :  { %4376 = vmatpush.bf16.msra.mxu2 %v12373_v38  ;;  %v11934_v38 = vld [vmem:[#allocation5 + $0x228] sm:$0xf0] }
 0x1fe   :  { %4390 = vmatpush.bf16.msra.mxu3 %v12693_v63  ;;  %v13172_v63 = vld [vmem:[#allocation5 + $0xbb0] sm:$0xf]  ;;  %v11937_v32 = vor.u32 %v17489_v7, %v11934_v38  ;;  %v11857_v38 = vor.u32 %v17469_v21, %v11854_v45  ;;  %v17764_v45 = vld [vmem:[#allocation5 + $0xa94] sm:$0xf0] }
 0x1ff   :  { %4349 = vmatpush.bf16.msra.mxu0 %v11693_v60  ;;  %v17479_v60 = vld [vmem:[#allocation5 + $0x1b4] sm:$0xf]  ;;  %v13173_v35 = vor.u32 %v17804_v4, %v13172_v63  ;;  %v13412_v7 = vld [vmem:[#allocation5 + $0xd90] sm:$0xf]  ;;  %v11814_v4 = vld [vmem:[#allocation5 + $0x138] sm:$0xf0] }
 0x200   :  { %4363 = vmatpush.bf16.msra.mxu1 %v12013_v12  ;;  %v13813_v12 = vor.u32 %v17964_v1, %v13812_v29  ;;  %v17459_v63 = vld [vmem:[#allocation5 + $0x114] sm:$0xf]  ;;  %v13052_v29 = vld [vmem:[#allocation5 + $0xac0] sm:$0xf]  ;;  %v17774_v1 = vld [vmem:[#allocation5 + $0xae4] sm:$0xf0] }
 0x201   :  { %4377 = vmatpush.bf16.msra.mxu2 %v12333_v8  ;;  %v13132_v8 = vld [vmem:[#allocation5 + $0xb60] sm:$0xf]  ;;  %v13012_v21 = vld [vmem:[#allocation5 + $0xa70] sm:$0xf] }
 0x202   :  { %4391 = vmatpush.bf16.msra.mxu3 %v12653_v22  ;;  %4350 = vmatmul.bf16.vlgmr.msra.gmra.mxu0 %v19166_v57  ;;  %v11897_v22 = vor.u32 %v17479_v60, %v11894_v49  ;;  %v13133_v20 = vor.u32 %v17794_v58, %v13132_v8  ;;  %v13372_v60 = vld [vmem:[#allocation5 + $0xd40] sm:$0xf]  ;;  %v19340_v49 = vpop.f32.mrf.mxu0  ;;  %v17934_v8 = vld [vmem:[#allocation5 + $0xfe4] sm:$0xf0]  ;;  %v17449_v58 = vld [vmem:[#allocation5 + $0xc4] sm:$0xf] }
 0x203   :  { %4398 = vmatpush.bf16.msrb.mxu0 %v13253_v14  ;;  %4364 = vmatmul.bf16.vlgmr.msra.gmra.mxu1 %v19172_v11  ;;  %v17874_v14 = vld [vmem:[#allocation5 + $0xe04] sm:$0xf0] }
 0x204   :  { %4412 = vmatpush.bf16.msrb.mxu1 %v13573_v13  ;;  %4378 = vmatmul.bf16.vlgmr.msra.gmra.mxu2 %v19168_v0  ;;  %v13772_v13 = vld [vmem:[#allocation5 + $0x1060] sm:$0xf] }
 0x205   :  { %4426 = vmatpush.bf16.msrb.mxu2 %v13893_v19  ;;  %4392 = vmatmul.bf16.vlgmr.msra.gmra.mxu3 %v19175_v23  ;;  %v17954_v19 = vld [vmem:[#allocation5 + $0x1084] sm:$0xf0] }
 0x206   :  { %4440 = vmatpush.bf16.msrb.mxu3 %v11977_v26  ;;  %v13453_v26 = vor.u32 %v17874_v14, %v13452_v17  ;;  %v13773_v33 = vor.u32 %v17954_v19, %v13772_v13  ;;  %v11774_v17 = vld [vmem:[#allocation5 + $0xe8] sm:$0xf0]  ;;  %v13053_v14 = vor.u32 %v17774_v1, %v13052_v29  ;;  %v13612_v29 = vld [vmem:[#allocation5 + $0xf20] sm:$0xf] }
 0x207   :  { %4399 = vmatpush.bf16.msrb.mxu0 %v13213_v44  ;;  %v17864_v44 = vld [vmem:[#allocation5 + $0xdb4] sm:$0xf0] }
 0x208   :  { %4413 = vmatpush.bf16.msrb.mxu1 %v13533_v55  ;;  %v13732_v55 = vld [vmem:[#allocation5 + $0x1010] sm:$0xf] }
 0x209   :  { %4427 = vmatpush.bf16.msrb.mxu2 %v13853_v25  ;;  %v17944_v25 = vld [vmem:[#allocation5 + $0x1034] sm:$0xf0] }
 0x20a   :  { %4441 = vmatpush.bf16.msrb.mxu3 %v11937_v32  ;;  %v13413_v32 = vor.u32 %v17864_v44, %v13412_v7  ;;  %v13733_v51 = vor.u32 %v17944_v25, %v13732_v55  ;;  %v17439_v7 = vld [vmem:[#allocation5 + $0x74] sm:$0xf]  ;;  %v19344_v44 = vpop.f32.mrf.mxu2  ;;  %v13013_v55 = vor.u32 %v17764_v45, %v13012_v21  ;;  %v12972_v25 = vld [vmem:[#allocation5 + $0xa20] sm:$0xf]  ;;  %v12934_v45 = vld [vmem:[#allocation5 + $0x9f8] sm:$0xf0] }
 0x20b   :  { %4400 = vmatpush.bf16.msrb.mxu0 %v13173_v35  ;;  %v11817_v35 = vor.u32 %v17459_v63, %v11814_v4  ;;  %20110 = vst [vmem:[#allocation32_spill] sm:$0xff] %v19344_v44  ;;  %v17754_v63 = vld [vmem:[#allocation5 + $0xa44] sm:$0xf0]  ;;  %v17739_v21 = vld [vmem:[#allocation5 + $0x9d4] sm:$0xf] }
 0x20c   :  { %4414 = vmatpush.bf16.msrb.mxu1 %v13493_v2  ;;  %v17854_v2 = vld [vmem:[#allocation5 + $0xd64] sm:$0xf0]  ;;  %v12937_v62 = vor.u32 %v17739_v21, %v12934_v45  ;;  %v17569_v44 = vld [vmem:[#allocation5 + $0x484] sm:$0xf]  ;;  %v12854_v21 = vld [vmem:[#allocation5 + $0x958] sm:$0xf0] }
 0x20d   :  { %4428 = vmatpush.bf16.msrb.mxu2 %v13813_v12  ;;  %v13692_v12 = vld [vmem:[#allocation5 + $0xfc0] sm:$0xf]  ;;  %v13373_v13 = vor.u32 %v17854_v2, %v13372_v60  ;;  %v17914_v60 = vld [vmem:[#allocation5 + $0xf44] sm:$0xf0]  ;;  %v11694_v2 = vld [vmem:[#allocation5 + $0x48] sm:$0xf0] }
 0x20e   :  { %4442 = vmatpush.bf16.msrb.mxu3 %v11897_v22  ;;  %v19342_v22 = vpop.f32.mrf.mxu1  ;;  %v13693_v19 = vor.u32 %v17934_v8, %v13692_v12  ;;  %v19346_v12 = vpop.f32.mrf.mxu3  ;;  %v17579_v8 = vld [vmem:[#allocation5 + $0x4d4] sm:$0xf] }
 0x20f   :  { %4401 = vmatpush.bf16.msrb.mxu0 %v13133_v20  ;;  %20109 = vst [vmem:[#allocation31_spill] sm:$0xff] %v19342_v22  ;;  %v13332_v20 = vld [vmem:[#allocation5 + $0xcf0] sm:$0xf]  ;;  %v17969_v22 = vld [vmem:[#allocation5 + $0x1104] sm:$0xf] }
 0x210   :  { %4415 = vmatpush.bf16.msrb.mxu1 %v13453_v26  ;;  %v11777_v26 = vor.u32 %v17449_v58, %v11774_v17  ;;  %20111 = vst [vmem:[#allocation33_spill] sm:$0xff] %v19346_v12  ;;  %v12294_v58 = vld [vmem:[#allocation5 + $0x4f8] sm:$0xf0]  ;;  %v17659_v17 = vld [vmem:[#allocation5 + $0x754] sm:$0xf] }
 0x211   :  { %4429 = vmatpush.bf16.msrb.mxu2 %v13773_v33  ;;  %v17844_v33 = vld [vmem:[#allocation5 + $0xd14] sm:$0xf0] }
 0x212   :  { %4443 = vmatpush.bf16.msrb.mxu3 %v11857_v38  ;;  %v11734_v38 = vld [vmem:[#allocation5 + $0x98] sm:$0xf0]  ;;  %v13333_v4 = vor.u32 %v17844_v33, %v13332_v20  ;;  %v17819_v33 = vld [vmem:[#allocation5 + $0xc54] sm:$0xf] }
 0x213   :  { %4402 = vmatpush.bf16.msrb.mxu0 %v13093_v53  ;;  %v13653_v53 = vor.u32 %v17924_v27, %v13652_v31  ;;  %v11737_v1 = vor.u32 %v17439_v7, %v11734_v38  ;;  %v13254_v31 = vld [vmem:[#allocation5 + $0xc78] sm:$0xf0]  ;;  %v12297_v38 = vor.u32 %v17579_v8, %v12294_v58  ;;  %v17639_v58 = vld [vmem:[#allocation5 + $0x6b4] sm:$0xf] }
 0x214   :  { %4416 = vmatpush.bf16.msrb.mxu1 %v13413_v32  ;;  %v13292_v32 = vld [vmem:[#allocation5 + $0xca0] sm:$0xf]  ;;  %v12214_v8 = vld [vmem:[#allocation5 + $0x458] sm:$0xf0] }
 0x215   :  { %4430 = vmatpush.bf16.msrb.mxu2 %v13733_v51  ;;  %v17834_v51 = vld [vmem:[#allocation5 + $0xcc4] sm:$0xf0] }
 0x216   :  { %4444 = vmatpush.bf16.msrb.mxu3 %v11817_v35  ;;  %v17429_v35 = vld [vmem:[#allocation5 + $0x24] sm:$0xf]  ;;  %v13293_v20 = vor.u32 %v17834_v51, %v13292_v32  ;;  %v19350_v27 = vpop.f32.mrf.mxu1  ;;  %v13214_v32 = vld [vmem:[#allocation5 + $0xc28] sm:$0xf0]  ;;  %v19352_v51 = vpop.f32.mrf.mxu2 }
 0x217   :  { %4403 = vmatpush.bf16.msrb.mxu0 %v13053_v14  ;;  %v19348_v14 = vpop.f32.mrf.mxu0  ;;  %20113 = vst [vmem:[#allocation35_spill] sm:$0xff] %v19350_v27  ;;  %v11697_v7 = vor.u32 %v17429_v35, %v11694_v2  ;;  %v17559_v2 = vld [vmem:[#allocation5 + $0x434] sm:$0xf] }
 0x218   :  { %4417 = vmatpush.bf16.msrb.mxu1 %v13373_v13  ;;  %20112 = vst [vmem:[#allocation34_spill] sm:$0xff] %v19348_v14  ;;  %v12973_v13 = vor.u32 %v17754_v63, %v12972_v25  ;;  %v12254_v14 = vld [vmem:[#allocation5 + $0x4a8] sm:$0xf0]  ;;  %v13257_v25 = vor.u32 %v17819_v33, %v13254_v31  ;;  %v17629_v33 = vld [vmem:[#allocation5 + $0x664] sm:$0xf] }
 0x219   :  { %4431 = vmatpush.bf16.msrb.mxu2 %v13693_v19  ;;  %v12614_v19 = vld [vmem:[#allocation5 + $0x778] sm:$0xf0]  ;;  %v12574_v63 = vld [vmem:[#allocation5 + $0x728] sm:$0xf0]  ;;  %20114 = vst [vmem:[#allocation36_spill] sm:$0xff] %v19352_v51 }
 0x21a   :  { %4445 = vmatpush.bf16.msrb.mxu3 %v11777_v26  ;;  %v13613_v26 = vor.u32 %v17914_v60, %v13612_v29  ;;  %v12617_v12 = vor.u32 %v17659_v17, %v12614_v19  ;;  %v12257_v29 = vor.u32 %v17569_v44, %v12254_v14  ;;  %v17719_v19 = vld [vmem:[#allocation5 + $0x934] sm:$0xf]  ;;  %v13174_v14 = vld [vmem:[#allocation5 + $0xbd8] sm:$0xf0]  ;;  %v13054_v51 = vld [vmem:[#allocation5 + $0xae8] sm:$0xf0] }
 0x21b   :  { %4404 = vmatpush.bf16.msrb.mxu0 %v13013_v55  ;;  %v17649_v55 = vld [vmem:[#allocation5 + $0x704] sm:$0xf]  ;;  %v17799_v44 = vld [vmem:[#allocation5 + $0xbb4] sm:$0xf]  ;;  %v12857_v45 = vor.u32 %v17719_v19, %v12854_v21 }
 0x21c   :  { %4418 = vmatpush.bf16.msrb.mxu1 %v13333_v4  ;;  %v12894_v4 = vld [vmem:[#allocation5 + $0x9a8] sm:$0xf0]  ;;  %v12577_v60 = vor.u32 %v17649_v55, %v12574_v63  ;;  %v17709_v55 = vld [vmem:[#allocation5 + $0x8e4] sm:$0xf]  ;;  %v17779_v21 = vld [vmem:[#allocation5 + $0xb14] sm:$0xf] }
 0x21d   :  { %4432 = vmatpush.bf16.msrb.mxu2 %v13653_v53  ;;  %v17809_v53 = vld [vmem:[#allocation5 + $0xc04] sm:$0xf]  ;;  %v12897_v35 = vor.u32 %v17729_v28, %v12894_v4  ;;  %v12217_v28 = vor.u32 %v17559_v2, %v12214_v8  ;;  %v13134_v4 = vld [vmem:[#allocation5 + $0xb88] sm:$0xf0] }
 0x21e   :  { %4446 = vmatpush.bf16.msrb.mxu3 %v11737_v1  ;;  %v19354_v1 = vpop.f32.mrf.mxu3  ;;  %v13217_v17 = vor.u32 %v17809_v53, %v13214_v32  ;;  %v19362_v31 = vpop.f32.mrf.mxu1  ;;  %v17789_v63 = vld [vmem:[#allocation5 + $0xb64] sm:$0xf] }
 0x21f   :  { %4405 = vmatpush.bf16.msrb.mxu0 %v12973_v13  ;;  %v12534_v13 = vld [vmem:[#allocation5 + $0x6d8] sm:$0xf0]  ;;  %20116 = vst [vmem:[#allocation38_spill] sm:$0xff] %v19362_v31  ;;  %v19364_v2 = vpop.f32.mrf.mxu2  ;;  %v13137_v8 = vor.u32 %v17789_v63, %v13134_v4  ;;  %v12734_v63 = vld [vmem:[#allocation5 + $0x868] sm:$0xf0] }
 0x220   :  { %4419 = vmatpush.bf16.msrb.mxu1 %v13293_v20  ;;  %v17549_v20 = vld [vmem:[#allocation5 + $0x3e4] sm:$0xf]  ;;  %20117 = vst [vmem:[#allocation39_spill] sm:$0xff] %v19364_v2  ;;  %v12974_v31 = vld [vmem:[#allocation5 + $0xa48] sm:$0xf0] }
 0x221   :  { %4433 = vmatpush.bf16.msrb.mxu2 %v13613_v26  ;;  %v12174_v26 = vld [vmem:[#allocation5 + $0x408] sm:$0xf0]  ;;  %v17769_v4 = vld [vmem:[#allocation5 + $0xac4] sm:$0xf] }
 0x222   :  { %4447 = vmatpush.bf16.msrb.mxu3 %v11697_v7  ;;  %4406 = vmatmul.bf16.vlgmr.msrb.gmra.mxu0 %v19178_v37  ;;  %v13177_v7 = vor.u32 %v17799_v44, %v13174_v14  ;;  %v12177_v53 = vor.u32 %v17549_v20, %v12174_v26  ;;  %v13094_v44 = vld [vmem:[#allocation5 + $0xb38] sm:$0xf0]  ;;  %v17529_v20 = vld [vmem:[#allocation5 + $0x344] sm:$0xf]  ;;  %v12094_v26 = vld [vmem:[#allocation5 + $0x368] sm:$0xf0] }
 0x223   :  { %4454 = vmatpush.bf16.msra.mxu0 %v12297_v38  ;;  %4420 = vmatmul.bf16.vlgmr.msrb.gmra.mxu1 %v19182_v42  ;;  %v12494_v38 = vld [vmem:[#allocation5 + $0x688] sm:$0xf0]  ;;  %v12097_v2 = vor.u32 %v17529_v20, %v12094_v26 }
 0x224   :  { %4468 = vmatpush.bf16.msra.mxu1 %v12617_v12  ;;  %4434 = vmatmul.bf16.vlgmr.msrb.gmra.mxu2 %v19180_v41  ;;  %v19359_v12 = vpop.f32.mrf.mxu0  ;;  %v12014_v20 = vld [vmem:[#allocation5 + $0x2c8] sm:$0xf0] }
 0x225   :  { %4482 = vmatpush.bf16.msra.mxu2 %v12937_v62  ;;  %20115 = vst [vmem:[#allocation37_spill] sm:$0xff] %v19359_v12  ;;  %4448 = vmatmul.bf16.vlgmr.msrb.gmra.mxu3 %v19166_v57  ;;  %v12537_v62 = vor.u32 %v17639_v58, %v12534_v13  ;;  %v12497_v57 = vor.u32 %v17629_v33, %v12494_v38  ;;  %v12454_v58 = vld [vmem:[#allocation5 + $0x638] sm:$0xf0]  ;;  %v17609_v33 = vld [vmem:[#allocation5 + $0x5c4] sm:$0xf] }
 0x226   :  { %4496 = vmatpush.bf16.msra.mxu3 %v13257_v25  ;;  %v12814_v25 = vld [vmem:[#allocation5 + $0x908] sm:$0xf0]  ;;  %v12774_v13 = vld [vmem:[#allocation5 + $0x8b8] sm:$0xf0]  ;;  %v19366_v19 = vpop.f32.mrf.mxu3  ;;  %v13097_v38 = vor.u32 %v17779_v21, %v13094_v44  ;;  %v17759_v21 = vld [vmem:[#allocation5 + $0xa74] sm:$0xf] }
 0x227   :  { %4455 = vmatpush.bf16.msra.mxu0 %v12257_v29  ;;  %v12817_v32 = vor.u32 %v17709_v55, %v12814_v25  ;;  %v17539_v29 = vld [vmem:[#allocation5 + $0x394] sm:$0xf]  ;;  %v12414_v55 = vld [vmem:[#allocation5 + $0x5e8] sm:$0xf0]  ;;  %v17689_v25 = vld [vmem:[#allocation5 + $0x844] sm:$0xf] }
 0x228   :  { %4469 = vmatpush.bf16.msra.mxu1 %v12577_v60  ;;  %v12134_v60 = vld [vmem:[#allocation5 + $0x3b8] sm:$0xf0] }
 0x229   :  { %4483 = vmatpush.bf16.msra.mxu2 %v12897_v35  ;;  %v17619_v35 = vld [vmem:[#allocation5 + $0x614] sm:$0xf]  ;;  %v13014_v44 = vld [vmem:[#allocation5 + $0xa98] sm:$0xf0] }
 0x22a   :  { %4497 = vmatpush.bf16.msra.mxu3 %v13217_v17  ;;  %v17699_v17 = vld [vmem:[#allocation5 + $0x894] sm:$0xf] }
 0x22b   :  { %4456 = vmatpush.bf16.msra.mxu0 %v12217_v28  ;;  %v12137_v28 = vor.u32 %v17539_v29, %v12134_v60  ;;  %v12054_v29 = vld [vmem:[#allocation5 + $0x318] sm:$0xf0]  ;;  %v17599_v60 = vld [vmem:[#allocation5 + $0x574] sm:$0xf] }
 0x22c   :  { %4470 = vmatpush.bf16.msra.mxu1 %v12537_v62  ;;  %v19368_v14 = vpop.f32.mrf.mxu0  ;;  %v12457_v62 = vor.u32 %v17619_v35, %v12454_v58  ;;  %v19372_v35 = vpop.f32.mrf.mxu2  ;;  %v13057_v58 = vor.u32 %v17769_v4, %v13054_v51  ;;  %v13017_v51 = vor.u32 %v17759_v21, %v13014_v44  ;;  %v17749_v4 = vld [vmem:[#allocation5 + $0xa24] sm:$0xf] }
 0x22d   :  { %4484 = vmatpush.bf16.msra.mxu2 %v12857_v45  ;;  %20118 = vst [vmem:[#allocation40_spill] sm:$0xff] %v19368_v14  ;;  %v12777_v45 = vor.u32 %v17699_v17, %v12774_v13  ;;  %v17679_v17 = vld [vmem:[#allocation5 + $0x7f4] sm:$0xf]  ;;  %v12694_v13 = vld [vmem:[#allocation5 + $0x818] sm:$0xf0]  ;;  %v12977_v21 = vor.u32 %v17749_v4, %v12974_v31 }
 0x22e   :  { %4498 = vmatpush.bf16.msra.mxu3 %v13177_v7  ;;  %v19370_v7 = vpop.f32.mrf.mxu1  ;;  %20120 = vst [vmem:[#allocation42_spill] sm:$0xff] %v19372_v35  ;;  %v12697_v26 = vor.u32 %v17679_v17, %v12694_v13  ;;  %v13534_v14 = vld [vmem:[#allocation5 + $0xea8] sm:$0xf0] }
 0x22f   :  { %4457 = vmatpush.bf16.msra.mxu0 %v12177_v53  ;;  %20119 = vst [vmem:[#allocation41_spill] sm:$0xff] %v19370_v7  ;;  %v12417_v53 = vor.u32 %v17609_v33, %v12414_v55  ;;  %v17589_v33 = vld [vmem:[#allocation5 + $0x524] sm:$0xf]  ;;  %v12334_v55 = vld [vmem:[#allocation5 + $0x548] sm:$0xf0] }
 0x230   :  { %4471 = vmatpush.bf16.msra.mxu1 %v12497_v57  ;;  %v12737_v57 = vor.u32 %v17689_v25, %v12734_v63  ;;  %v17669_v25 = vld [vmem:[#allocation5 + $0x7a4] sm:$0xf]  ;;  %v12654_v63 = vld [vmem:[#allocation5 + $0x7c8] sm:$0xf0]  ;;  %v12337_v17 = vor.u32 %v17589_v33, %v12334_v55  ;;  %v18130_v33 = vld [vmem:[#allocation8 + $0x484] sm:$0xf0] }
 0x231   :  { %4485 = vmatpush.bf16.msra.mxu2 %v12817_v32  ;;  %v17519_v32 = vld [vmem:[#allocation5 + $0x2f4] sm:$0xf]  ;;  %v12657_v13 = vor.u32 %v17669_v25, %v12654_v63  ;;  %v20124_v55 = vperm.slane %v19196_v54, 0  ;;  %v20125_v25 = vperm.slane %v19196_v54, 1 }
 0x232   :  { %4499 = vmatpush.bf16.msra.mxu3 %v13137_v8  ;;  %v12374_v8 = vld [vmem:[#allocation5 + $0x598] sm:$0xf0]  ;;  %v12057_v27 = vor.u32 %v17519_v32, %v12054_v29  ;;  %v17979_v29 = vld [vmem:[#allocation5 + $0x1154] sm:$0xf] }
 0x233   :  { %4458 = vmatpush.bf16.msra.mxu0 %v12137_v28  ;;  %v17509_v28 = vld [vmem:[#allocation5 + $0x2a4] sm:$0xf]  ;;  %v13574_v32 = vld [vmem:[#allocation5 + $0xef8] sm:$0xf0]  ;;  %v3570_v31 = vadd.f32 %v19207_v30, %v20124_v55 }
 0x234   :  { %4472 = vmatpush.bf16.msra.mxu1 %v12457_v62  ;;  %v19374_v62 = vpop.f32.mrf.mxu3 }
 0x235   :  { %4486 = vmatpush.bf16.msra.mxu2 %v12777_v45  ;;  %20121 = vst [vmem:[#allocation43_spill] sm:$0xff] %v19374_v62  ;;  %v12377_v45 = vor.u32 %v17599_v60, %v12374_v8  ;;  %v14180_v60 = vld [vmem:[#allocation8 + $0x230] sm:$0xf]  ;;  %v18060_v8 = vld [vmem:[#allocation8 + $0x254] sm:$0xf0] }
 0x236   :  { %4500 = vmatpush.bf16.msra.mxu3 %v13097_v38  ;;  %v19376_v38 = vpop.f32.mrf.mxu0  ;;  %v19378_v12 = vpop.f32.mrf.mxu1  ;;  %v14500_v62 = vld [vmem:[#allocation8 + $0x4b0] sm:$0xf]  ;;  %v14181_v7 = vor.u32 %v18060_v8, %v14180_v60  ;;  %v18040_v8 = vld [vmem:[#allocation8 + $0x1b4] sm:$0xf0] }
 0x237   :  { %4459 = vmatpush.bf16.msra.mxu0 %v12097_v2  ;;  %20122 = vst [vmem:[#allocation44_spill] sm:$0xff] %v19376_v38  ;;  %v17899_v2 = vld [vmem:[#allocation5 + $0xed4] sm:$0xf]  ;;  %v17889_v38 = vld [vmem:[#allocation5 + $0xe84] sm:$0xf] }
 0x238   :  { %4473 = vmatpush.bf16.msra.mxu1 %v12417_v53  ;;  %20123 = vst [vmem:[#allocation45_spill] sm:$0xff] %v19378_v12  ;;  %v12017_v53 = vor.u32 %v17509_v28, %v12014_v20  ;;  %v13577_v44 = vor.u32 %v17899_v2, %v13574_v32  ;;  %v19380_v12 = vpop.f32.mrf.mxu2  ;;  %v13854_v28 = vld [vmem:[#allocation5 + $0x1128] sm:$0xf0]  ;;  %v13537_v63 = vor.u32 %v17889_v38, %v13534_v14  ;;  %v17879_v32 = vld [vmem:[#allocation5 + $0xe34] sm:$0xf] }
 0x239   :  { %4487 = vmatpush.bf16.msra.mxu2 %v12737_v57  ;;  %v13894_v57 = vld [vmem:[#allocation5 + $0x1178] sm:$0xf0]  ;;  %v14140_v20 = vld [vmem:[#allocation8 + $0x1e0] sm:$0xf] }
 0x23a   :  { %4501 = vmatpush.bf16.msra.mxu3 %v13057_v58  ;;  %v18140_v58 = vld [vmem:[#allocation8 + $0x4d4] sm:$0xf0]  ;;  %v13897_v35 = vor.u32 %v17979_v29, %v13894_v57  ;;  %v13494_v29 = vld [vmem:[#allocation5 + $0xe58] sm:$0xf0] }
 0x23b   :  { %4460 = vmatpush.bf16.msra.mxu0 %v12057_v27  ;;  %v14501_v27 = vor.u32 %v18140_v58, %v14500_v62  ;;  %v13857_v62 = vor.u32 %v17969_v22, %v13854_v28  ;;  %v13814_v60 = vld [vmem:[#allocation5 + $0x10d8] sm:$0xf0]  ;;  %v3584_v22 = vadd.f32 %v19209_v43, %v3570_v31  ;;  %v17869_v58 = vld [vmem:[#allocation5 + $0xde4] sm:$0xf]  ;;  %v13774_v43 = vld [vmem:[#allocation5 + $0x1088] sm:$0xf0] }
 0x23c   :  { %4474 = vmatpush.bf16.msra.mxu1 %v12377_v45  ;;  %v18050_v45 = vld [vmem:[#allocation8 + $0x204] sm:$0xf0]  ;;  %v19388_v4 = vpop.f32.mrf.mxu3  ;;  %v14420_v14 = vld [vmem:[#allocation8 + $0x410] sm:$0xf]  ;;  %v14380_v28 = vld [vmem:[#allocation8 + $0x3c0] sm:$0xf] }
 0x23d   :  { %4488 = vmatpush.bf16.msra.mxu2 %v12697_v26  ;;  %v14460_v26 = vld [vmem:[#allocation8 + $0x460] sm:$0xf]  ;;  %v14141_v2 = vor.u32 %v18050_v45, %v14140_v20  ;;  %v18110_v20 = vld [vmem:[#allocation8 + $0x3e4] sm:$0xf0]  ;;  %v3598_v45 = vadd.f32 %v19214_v59, %v3584_v22  ;;  %v18100_v59 = vld [vmem:[#allocation8 + $0x394] sm:$0xf0] }
 0x23e   :  { %4502 = vmatpush.bf16.msra.mxu3 %v13017_v51  ;;  %v3668_v51 = vadd.f32 %v19235_v15, %v20125_v25  ;;  %v19390_v57 = vpop.f32.mrf.mxu0  ;;  %v14461_v30 = vor.u32 %v18130_v33, %v14460_v26  ;;  %v14100_v15 = vld [vmem:[#allocation8 + $0x190] sm:$0xf]  ;;  %v19397_v38 = vpop.f32.mrf.mxu1  ;;  %v17859_v25 = vld [vmem:[#allocation5 + $0xd94] sm:$0xf]  ;;  %v13374_v22 = vld [vmem:[#allocation5 + $0xd68] sm:$0xf0] }
 0x23f   :  { %4461 = vmatpush.bf16.msra.mxu0 %v12017_v53  ;;  %v17959_v53 = vld [vmem:[#allocation5 + $0x10b4] sm:$0xf] }
 0x240   :  { %4475 = vmatpush.bf16.msra.mxu1 %v12337_v17  ;;  %v13497_v17 = vor.u32 %v17879_v32, %v13494_v29  ;;  %v14020_v32 = vld [vmem:[#allocation8 + $0xf0] sm:$0xf]  ;;  %v18020_v29 = vld [vmem:[#allocation8 + $0x114] sm:$0xf0] }
 0x241   :  { %4489 = vmatpush.bf16.msra.mxu2 %v12657_v13  ;;  %v14101_v13 = vor.u32 %v18040_v8, %v14100_v15 }
 0x242   :  { %4503 = vmatpush.bf16.msra.mxu3 %v12977_v21  ;;  %4462 = vmatmul.bf16.vlgmr.msra.gmra.mxu0 %v19172_v11  ;;  %v13454_v11 = vld [vmem:[#allocation5 + $0xe08] sm:$0xf0]  ;;  %v17949_v21 = vld [vmem:[#allocation5 + $0x1064] sm:$0xf] }
 0x243   :  { %4510 = vmatpush.bf16.msrb.mxu0 %v13577_v44  ;;  %4476 = vmatmul.bf16.vlgmr.msra.gmra.mxu1 %v19168_v0  ;;  %v13457_v26 = vor.u32 %v17869_v58, %v13454_v11  ;;  %v13777_v55 = vor.u32 %v17949_v21, %v13774_v43  ;;  %v13980_v58 = vld [vmem:[#allocation8 + $0xa0] sm:$0xf]  ;;  %v18090_v21 = vld [vmem:[#allocation8 + $0x344] sm:$0xf0] }
 0x244   :  { %4524 = vmatpush.bf16.msrb.mxu1 %v13897_v35  ;;  %4490 = vmatmul.bf16.vlgmr.msra.gmra.mxu2 %v19175_v23  ;;  %v3682_v35 = vadd.f32 %v19239_v56, %v3668_v51  ;;  %v13817_v23 = vor.u32 %v17959_v53, %v13814_v60  ;;  %v18030_v56 = vld [vmem:[#allocation8 + $0x164] sm:$0xf0]  ;;  %v19404_v33 = vpop.f32.mrf.mxu3  ;;  %v13414_v51 = vld [vmem:[#allocation5 + $0xdb8] sm:$0xf0]  ;;  %v14300_v11 = vld [vmem:[#allocation8 + $0x320] sm:$0xf] }
 0x245   :  { %9392 = vmatpush.bf16.msrb.mxu2 %v14181_v7  ;;  %4504 = vmatmul.bf16.vlgmr.msra.gmra.mxu3 %v19178_v37  ;;  %v18120_v7 = vld [vmem:[#allocation8 + $0x434] sm:$0xf0]  ;;  %v19400_v37 = vpop.f32.mrf.mxu2  ;;  %v14340_v53 = vld [vmem:[#allocation8 + $0x370] sm:$0xf]  ;;  %v13417_v15 = vor.u32 %v17859_v25, %v13414_v51 }
 0x246   :  { %9406 = vmatpush.bf16.msrb.mxu3 %v14501_v27  ;;  %v14421_v44 = vor.u32 %v18120_v7, %v14420_v14  ;;  %v14060_v27 = vld [vmem:[#allocation8 + $0x140] sm:$0xf]  ;;  %v3696_v0 = vadd.f32 %v19241_v6, %v3682_v35  ;;  %v3612_v6 = vadd.f32 %v19220_v52, %v3598_v45  ;;  %v19408_v60 = vpop.f32.mrf.mxu0  ;;  %v14021_v14 = vor.u32 %v18020_v29, %v14020_v32  ;;  %v17849_v7 = vld [vmem:[#allocation5 + $0xd44] sm:$0xf]  ;;  %v17919_v45 = vld [vmem:[#allocation5 + $0xf74] sm:$0xf] }
 0x247   :  { %4511 = vmatpush.bf16.msrb.mxu0 %v13537_v63  ;;  %v14061_v31 = vor.u32 %v18030_v56, %v14060_v27  ;;  %v17939_v63 = vld [vmem:[#allocation5 + $0x1014] sm:$0xf]  ;;  %v17929_v35 = vld [vmem:[#allocation5 + $0xfc4] sm:$0xf]  ;;  %v13694_v52 = vld [vmem:[#allocation5 + $0xfe8] sm:$0xf0]  ;;  %v13377_v27 = vor.u32 %v17849_v7, %v13374_v22 }
 0x248   :  { %4525 = vmatpush.bf16.msrb.mxu1 %v13857_v62  ;;  %v14381_v62 = vor.u32 %v18110_v20, %v14380_v28  ;;  %v13697_v56 = vor.u32 %v17929_v35, %v13694_v52  ;;  %v13334_v20 = vld [vmem:[#allocation5 + $0xd18] sm:$0xf0]  ;;  %v13900_v7 = vld [vmem:[#allocation8] sm:$0xf]  ;;  %v17990_v35 = vld [vmem:[#allocation8 + $0x24] sm:$0xf0] }
 0x249   :  { %9393 = vmatpush.bf16.msrb.mxu2 %v14141_v2  ;;  %v13734_v2 = vld [vmem:[#allocation5 + $0x1038] sm:$0xf0]  ;;  %v18220_v52 = vld [vmem:[#allocation8 + $0x754] sm:$0xf0] }
 0x24a   :  { %9407 = vmatpush.bf16.msrb.mxu3 %v14461_v30  ;;  %v3710_v30 = vadd.f32 %v19248_v50, %v3696_v0  ;;  %v13737_v8 = vor.u32 %v17939_v63, %v13734_v2  ;;  %v18010_v50 = vld [vmem:[#allocation8 + $0xc4] sm:$0xf0]  ;;  %v13940_v25 = vld [vmem:[#allocation8 + $0x50] sm:$0xf]  ;;  %v4538_v2 = vmax.f32 %v19218_v40, 0.0 }
 0x24b   :  { %4512 = vmatpush.bf16.msrb.mxu0 %v13497_v17  ;;  %v3626_v17 = vadd.f32 %v19222_v39, %v3612_v6  ;;  %v13981_v28 = vor.u32 %v18010_v50, %v13980_v58  ;;  %v17839_v39 = vld [vmem:[#allocation5 + $0xcf4] sm:$0xf]  ;;  %v14260_v63 = vld [vmem:[#allocation8 + $0x2d0] sm:$0xf]  ;;  %v18300_v50 = vld [vmem:[#allocation8 + $0x9d4] sm:$0xf0] }
 0x24c   :  { %4526 = vmatpush.bf16.msrb.mxu1 %v13817_v23  ;;  %v19411_v23 = vpop.f32.mrf.mxu1  ;;  %v19418_v51 = vpop.f32.mrf.mxu3 }
 0x24d   :  { %9394 = vmatpush.bf16.msrb.mxu2 %v14101_v13  ;;  %v14341_v13 = vor.u32 %v18100_v59, %v14340_v53  ;;  %v19414_v43 = vpop.f32.mrf.mxu2  ;;  %v3640_v0 = vadd.f32 %v19225_v48, %v3626_v17  ;;  %v13337_v53 = vor.u32 %v17839_v39, %v13334_v20  ;;  %v17829_v48 = vld [vmem:[#allocation5 + $0xca4] sm:$0xf]  ;;  %v13294_v59 = vld [vmem:[#allocation5 + $0xcc8] sm:$0xf0] }
 0x24e   :  { %9408 = vmatpush.bf16.msrb.mxu3 %v14421_v44  ;;  %v3724_v44 = vadd.f32 %v19252_v3, %v3710_v30  ;;  %v18000_v3 = vld [vmem:[#allocation8 + $0x74] sm:$0xf0]  ;;  %v19422_v29 = vpop.f32.mrf.mxu0  ;;  %v14220_v17 = vld [vmem:[#allocation8 + $0x280] sm:$0xf]  ;;  %v13297_v58 = vor.u32 %v17829_v48, %v13294_v59  ;;  %v18370_v59 = vld [vmem:[#allocation8 + $0xc04] sm:$0xf0] }
 0x24f   :  { %4513 = vmatpush.bf16.msrb.mxu0 %v13457_v26  ;;  %v3654_v32 = vadd.f32 %v19233_v9, %v3640_v0  ;;  %v18460_v39 = vld [vmem:[#allocation8 + $0xed4] sm:$0xf0]  ;;  %v15420_v48 = vld [vmem:[#allocation8 + $0xbe0] sm:$0xf] }
 0x250   :  { %4527 = vmatpush.bf16.msrb.mxu1 %v13777_v55  ;;  %v3738_v26 = vadd.f32 %v19259_v36, %v3724_v44  ;;  %v14301_v55 = vor.u32 %v18090_v21, %v14300_v11  ;;  %v20126_v36 = vperm.slane %v19196_v54, 2  ;;  %v14820_v54 = vld [vmem:[#allocation8 + $0x730] sm:$0xf]  ;;  %v18380_v21 = vld [vmem:[#allocation8 + $0xc54] sm:$0xf0] }
 0x251   :  { %9395 = vmatpush.bf16.msrb.mxu2 %v14061_v31  ;;  %v13654_v31 = vld [vmem:[#allocation5 + $0xf98] sm:$0xf0]  ;;  %v4548_v44 = vmax.f32 %v3654_v32, 0.0 }
 0x252   :  { %9409 = vmatpush.bf16.msrb.mxu3 %v14381_v62  ;;  %v18080_v62 = vld [vmem:[#allocation8 + $0x2f4] sm:$0xf0]  ;;  %v3766_v6 = vadd.f32 %v19266_v10, %v20126_v36  ;;  %v13657_v30 = vor.u32 %v17919_v45, %v13654_v31  ;;  %v19428_v40 = vadd.f32 %v19261_v46, %v3738_v26  ;;  %v15140_v10 = vld [vmem:[#allocation8 + $0x9b0] sm:$0xf]  ;;  %v14821_v31 = vor.u32 %v18220_v52, %v14820_v54 }
 0x253   :  { %4514 = vmatpush.bf16.msrb.mxu0 %v13417_v15  ;;  %v13941_v15 = vor.u32 %v18000_v3, %v13940_v25  ;;  %v14261_v22 = vor.u32 %v18080_v62, %v14260_v63  ;;  %v15460_v11 = vld [vmem:[#allocation8 + $0xc30] sm:$0xf]  ;;  %v19434_v45 = vld [vmem:[#allocation7] sm:$0xff]  ;;  %v15141_v25 = vor.u32 %v18300_v50, %v15140_v10  ;;  %v18210_v63 = vld [vmem:[#allocation8 + $0x704] sm:$0xf0]  ;;  %v19439_v36 = vpack.c.bf16 %v4548_v44, %v4538_v2 }
 0x254   :  { %4528 = vmatpush.bf16.msrb.mxu1 %v13737_v8  ;;  %v17909_v8 = vld [vmem:[#allocation5 + $0xf24] sm:$0xf]  ;;  %v19430_v9 = vpop.f32.mrf.mxu1  ;;  %v4549_v20 = vmax.f32 %v19428_v40, 0.0  ;;  %v707_v0 = vperm.slane %v19434_v45, 5  ;;  %v15461_v3 = vor.u32 %v18380_v21, %v15460_v11  ;;  %v15100_v62 = vld [vmem:[#allocation8 + $0x960] sm:$0xf]  ;;  %v15421_v54 = vor.u32 %v18370_v59, %v15420_v48 }
 0x255   :  { %9396 = vmatpush.bf16.msrb.mxu2 %v14021_v14  ;;  %v13614_v14 = vld [vmem:[#allocation5 + $0xf48] sm:$0xf0]  ;;  %v19437_v26 = vpop.f32.mrf.mxu2  ;;  %v4539_v40 = vmax.f32 %v19250_v61, 0.0  ;;  %v14740_v52 = vld [vmem:[#allocation8 + $0x690] sm:$0xf] }
 0x256   :  { %9410 = vmatpush.bf16.msrb.mxu3 %v14341_v13  ;;  %v18070_v13 = vld [vmem:[#allocation8 + $0x2a4] sm:$0xf0]  ;;  %v13617_v46 = vor.u32 %v17909_v8, %v13614_v14  ;;  %v19445_v8 = vpop.f32.mrf.mxu3  ;;  %v15740_v14 = vld [vmem:[#allocation8 + $0xe60] sm:$0xf]  ;;  %v4058_v2 = vadd.f32 %v19354_v1, %v707_v0  ;;  %v18200_v10 = vld [vmem:[#allocation8 + $0x6b4] sm:$0xf0] }
 0x257   :  { %4515 = vmatpush.bf16.msrb.mxu0 %v13377_v27  ;;  %v3780_v27 = vadd.f32 %v19269_v24, %v3766_v6  ;;  %v14780_v24 = vld [vmem:[#allocation8 + $0x6e0] sm:$0xf]  ;;  %v15060_v61 = vld [vmem:[#allocation8 + $0x910] sm:$0xf]  ;;  %v18280_v1 = vld [vmem:[#allocation8 + $0x934] sm:$0xf0] }
 0x258   :  { %4529 = vmatpush.bf16.msrb.mxu1 %v13697_v56  ;;  %v13901_v56 = vor.u32 %v17990_v35, %v13900_v7  ;;  %v18450_v7 = vld [vmem:[#allocation8 + $0xe84] sm:$0xf0]  ;;  %v15380_v50 = vld [vmem:[#allocation8 + $0xb90] sm:$0xf]  ;;  %v18360_v11 = vld [vmem:[#allocation8 + $0xbb4] sm:$0xf0] }
 0x259   :  { %9397 = vmatpush.bf16.msrb.mxu2 %v13981_v28  ;;  %v15780_v28 = vld [vmem:[#allocation8 + $0xeb0] sm:$0xf]  ;;  %v3794_v6 = vadd.f32 %v19274_v16, %v3780_v27  ;;  %v14781_v16 = vor.u32 %v18210_v63, %v14780_v24  ;;  %v18440_v27 = vld [vmem:[#allocation8 + $0xe34] sm:$0xf0]  ;;  %v18270_v24 = vld [vmem:[#allocation8 + $0x8e4] sm:$0xf0] }
 0x25a   :  { %9411 = vmatpush.bf16.msrb.mxu3 %v14301_v55  ;;  %v14221_v55 = vor.u32 %v18070_v13, %v14220_v17  ;;  %v15781_v32 = vor.u32 %v18460_v39, %v15780_v28  ;;  %v19452_v17 = vpop.f32.mrf.mxu0  ;;  %v15700_v44 = vld [vmem:[#allocation8 + $0xe10] sm:$0xf]  ;;  %v20130_v28 = vld [vmem:[#allocation40_spill] sm:$0xff]  ;;  %v18430_v59 = vld [vmem:[#allocation8 + $0xde4] sm:$0xf0] }
 0x25b   :  { %4516 = vmatpush.bf16.msrb.mxu0 %v13337_v53  ;;  %v18290_v53 = vld [vmem:[#allocation8 + $0x984] sm:$0xf0]  ;;  %v4072_v39 = vadd.f32 %v20130_v28, %v4058_v2  ;;  %v15340_v63 = vld [vmem:[#allocation8 + $0xb40] sm:$0xf] }
 0x25c   :  { %4530 = vmatpush.bf16.msrb.mxu1 %v13657_v30  ;;  %v20127_v30 = vperm.slane %v19284_v34, 3  ;;  %v15101_v13 = vor.u32 %v18290_v53, %v15100_v62  ;;  %v18350_v62 = vld [vmem:[#allocation8 + $0xb64] sm:$0xf0]  ;;  %v15660_v48 = vld [vmem:[#allocation8 + $0xdc0] sm:$0xf] }
 0x25d   :  { %9398 = vmatpush.bf16.msrb.mxu2 %v13941_v15 }
 0x25e   :  { %9412 = vmatpush.bf16.msrb.mxu3 %v14261_v22  ;;  %v3864_v15 = vadd.f32 %v19298_v18, %v20127_v30  ;;  %v20128_v22 = vperm.slane %v19284_v34, 4  ;;  %v4060_v18 = vadd.f32 %v19366_v19, %v707_v0  ;;  %v19457_v34 = vpop.f32.mrf.mxu1  ;;  %v3808_v19 = vadd.f32 %v19276_v5, %v3794_v6  ;;  %v20133_v6 = vld [vmem:[#allocation24_spill] sm:$0xff] }
 0x25f   :  { %4517 = vmatpush.bf16.msrb.mxu0 %v13297_v58  ;;  %v19455_v58 = vpack.c.bf16 %v4549_v20, %v4539_v40  ;;  %v20131_v20 = vld [vmem:[#allocation44_spill] sm:$0xff]  ;;  %v15061_v5 = vor.u32 %v18280_v1, %v15060_v61  ;;  %v20137_v61 = vld [vmem:[#allocation26_spill] sm:$0xff] }
 0x260   :  { %4531 = vmatpush.bf16.msrb.mxu1 %v13617_v46  ;;  %v3962_v35 = vadd.f32 %v19340_v49, %v20128_v22  ;;  %v15741_v49 = vor.u32 %v18450_v7, %v15740_v14  ;;  %v3878_v21 = vadd.f32 %v19303_v47, %v3864_v15  ;;  %v20129_v46 = vld [vmem:[#allocation31_spill] sm:$0xff]  ;;  %v4074_v0 = vadd.f32 %v20131_v20, %v4060_v18  ;;  %v20134_v15 = vld [vmem:[#allocation32_spill] sm:$0xff]  ;;  %v20135_v7 = vld [vmem:[#allocation41_spill] sm:$0xff] }
 0x261   :  { %9399 = vmatpush.bf16.msrb.mxu2 %v13901_v56  ;;  %v15381_v47 = vor.u32 %v18360_v11, %v15380_v50  ;;  %v4086_v40 = vadd.f32 %v20135_v7, %v4072_v39  ;;  %v15661_v11 = vor.u32 %v18430_v59, %v15660_v48  ;;  %v20139_v39 = vld [vmem:[#allocation33_spill] sm:$0xff]  ;;  %v20140_v20 = vld [vmem:[#allocation42_spill] sm:$0xff] }
 0x262   :  { %9413 = vmatpush.bf16.msrb.mxu3 %v14221_v55  ;;  %4518 = vmatmul.bf16.vlgmr.msrb.gmra.mxu0 %v19182_v42  ;;  %v3976_v56 = vadd.f32 %v20129_v46, %v3962_v35  ;;  %v14741_v42 = vor.u32 %v18200_v10, %v14740_v52  ;;  %v14700_v55 = vld [vmem:[#allocation8 + $0x640] sm:$0xf]  ;;  %v3892_v30 = vadd.f32 %v20133_v6, %v3878_v21  ;;  %v20136_v35 = vld [vmem:[#allocation45_spill] sm:$0xff]  ;;  %v18180_v52 = vld [vmem:[#allocation8 + $0x614] sm:$0xf0]  ;;  %v19478_v1 = vpop.f32.mrf.mxu0 }
 0x263   :  { %9420 = vmatpush.bf16.msra.mxu0 %v14821_v31  ;;  %4532 = vmatmul.bf16.vlgmr.msrb.gmra.mxu1 %v19180_v41  ;;  %v18190_v41 = vld [vmem:[#allocation8 + $0x664] sm:$0xf0]  ;;  %v15020_v31 = vld [vmem:[#allocation8 + $0x8c0] sm:$0xf]  ;;  %v4088_v2 = vadd.f32 %v20136_v35, %v4074_v0  ;;  %v14980_v10 = vld [vmem:[#allocation8 + $0x870] sm:$0xf]  ;;  %v4100_v0 = vadd.f32 %v20140_v20, %v4086_v40 }
 0x264   :  { %9434 = vmatpush.bf16.msra.mxu1 %v15141_v25  ;;  %9400 = vmatmul.bf16.vlgmr.msrb.gmra.mxu2 %v19439_v36  ;;  %v19468_v25 = vpop.f32.mrf.mxu2  ;;  %v3990_v14 = vadd.f32 %v20134_v15, %v3976_v56  ;;  %v14701_v22 = vor.u32 %v18190_v41, %v14700_v55  ;;  %v15021_v18 = vor.u32 %v18270_v24, %v15020_v31  ;;  %v15300_v21 = vld [vmem:[#allocation8 + $0xaf0] sm:$0xf]  ;;  %v18420_v46 = vld [vmem:[#allocation8 + $0xd94] sm:$0xf0]  ;;  %v14620_v31 = vld [vmem:[#allocation8 + $0x5a0] sm:$0xf] }
 0x265   :  { %9448 = vmatpush.bf16.msra.mxu2 %v15461_v3  ;;  %9414 = vmatmul.bf16.vlgmr.msrb.gmra.mxu3 %v19455_v58  ;;  %v15701_v3 = vor.u32 %v18440_v27, %v15700_v44  ;;  %v18340_v44 = vld [vmem:[#allocation8 + $0xb14] sm:$0xf0]  ;;  %v15620_v27 = vld [vmem:[#allocation8 + $0xd70] sm:$0xf]  ;;  %v14940_v24 = vld [vmem:[#allocation8 + $0x820] sm:$0xf] }
 0x266   :  { %9462 = vmatpush.bf16.msra.mxu3 %v15781_v32  ;;  %v20132_v32 = vld [vmem:[#allocation20_spill] sm:$0xff]  ;;  %v19480_v50 = vpop.f32.mrf.mxu1  ;;  %v20138_v56 = vld [vmem:[#allocation22_spill] sm:$0xff]  ;;  %v15301_v41 = vor.u32 %v18340_v44, %v15300_v21  ;;  %v15621_v59 = vor.u32 %v18420_v46, %v15620_v27  ;;  %v18250_v6 = vld [vmem:[#allocation8 + $0x844] sm:$0xf0] }
 0x267   :  { %9421 = vmatpush.bf16.msra.mxu0 %v14781_v16  ;;  %v3822_v53 = vadd.f32 %v20132_v32, %v3808_v19  ;;  %v19475_v16 = vpop.f32.mrf.mxu3  ;;  %v18260_v19 = vld [vmem:[#allocation8 + $0x894] sm:$0xf0]  ;;  %v20142_v32 = vld [vmem:[#allocation37_spill] sm:$0xff]  ;;  %v20144_v7 = vld [vmem:[#allocation30_spill] sm:$0xff] }
 0x268   :  { %9435 = vmatpush.bf16.msra.mxu1 %v15101_v13  ;;  %v15341_v13 = vor.u32 %v18350_v62, %v15340_v63  ;;  %v14981_v55 = vor.u32 %v18260_v19, %v14980_v10  ;;  %v20141_v63 = vld [vmem:[#allocation27_spill] sm:$0xff]  ;;  %v18330_v15 = vld [vmem:[#allocation8 + $0xac4] sm:$0xf0]  ;;  %v20145_v40 = vld [vmem:[#allocation34_spill] sm:$0xff] }
 0x269   :  { %9449 = vmatpush.bf16.msra.mxu2 %v15421_v54  ;;  %v14660_v54 = vld [vmem:[#allocation8 + $0x5f0] sm:$0xf]  ;;  %v3836_v28 = vadd.f32 %v20138_v56, %v3822_v53  ;;  %v15580_v35 = vld [vmem:[#allocation8 + $0xd20] sm:$0xf]  ;;  %v18160_v21 = vld [vmem:[#allocation8 + $0x574] sm:$0xf0] }
 0x26a   :  { %9463 = vmatpush.bf16.msra.mxu3 %v15741_v49  ;;  %v3906_v49 = vadd.f32 %v20137_v61, %v3892_v30  ;;  %v15260_v30 = vld [vmem:[#allocation8 + $0xaa0] sm:$0xf]  ;;  %v14580_v19 = vld [vmem:[#allocation8 + $0x550] sm:$0xf]  ;;  %v18320_v20 = vld [vmem:[#allocation8 + $0xa74] sm:$0xf0] }
 0x26b   :  { %9422 = vmatpush.bf16.msra.mxu0 %v14741_v42  ;;  %v4004_v42 = vadd.f32 %v20139_v39, %v3990_v14  ;;  %v20143_v14 = vld [vmem:[#allocation23_spill] sm:$0xff]  ;;  %v14900_v44 = vld [vmem:[#allocation8 + $0x7d0] sm:$0xf] }
 0x26c   :  { %9436 = vmatpush.bf16.msra.mxu1 %v15061_v5  ;;  %v14661_v5 = vor.u32 %v18180_v52, %v14660_v54  ;;  %v3920_v62 = vadd.f32 %v20141_v63, %v3906_v49  ;;  %v19488_v53 = vpop.f32.mrf.mxu2  ;;  %v20147_v54 = vld [vmem:[#allocation43_spill] sm:$0xff]  ;;  %v14941_v49 = vor.u32 %v18250_v6, %v14940_v24  ;;  %v20148_v27 = vld [vmem:[#allocation38_spill] sm:$0xff]  ;;  %v20151_v24 = vld [vmem:[#allocation29_spill] sm:$0xff] }
 0x26d   :  { %9450 = vmatpush.bf16.msra.mxu2 %v15381_v47  ;;  %v4102_v47 = vadd.f32 %v19380_v12, %v4088_v2  ;;  %v4018_v48 = vadd.f32 %v20142_v32, %v4004_v42  ;;  %v19491_v12 = vadd.f32 %v20143_v14, %v3836_v28  ;;  %v18410_v2 = vld [vmem:[#allocation8 + $0xd44] sm:$0xf0]  ;;  %v4114_v52 = vadd.f32 %v20147_v54, %v4100_v0  ;;  %v18240_v39 = vld [vmem:[#allocation8 + $0x7f4] sm:$0xf0]  ;;  %v15220_v42 = vld [vmem:[#allocation8 + $0xa50] sm:$0xf] }
 0x26e   :  { %9464 = vmatpush.bf16.msra.mxu3 %v15701_v3  ;;  %v18170_v3 = vld [vmem:[#allocation8 + $0x5c4] sm:$0xf0]  ;;  %v15581_v28 = vor.u32 %v18410_v2, %v15580_v35  ;;  %v19510_v6 = vpop.f32.mrf.mxu1  ;;  %v15180_v2 = vld [vmem:[#allocation8 + $0xa00] sm:$0xf] }
 0x26f   :  { %9423 = vmatpush.bf16.msra.mxu0 %v14701_v22  ;;  %v4016_v22 = vadd.f32 %v20145_v40, %v20144_v7  ;;  %v14621_v10 = vor.u32 %v18170_v3, %v14620_v31  ;;  %v4116_v61 = vadd.f32 %v19388_v4, %v4102_v47  ;;  %v4032_v46 = vadd.f32 %v20148_v27, %v4018_v48  ;;  %v19499_v56 = vpop.f32.mrf.mxu3  ;;  %v20149_v0 = vld [vmem:[#allocation21_spill] sm:$0xff]  ;;  %v20150_v47 = vld [vmem:[#allocation35_spill] sm:$0xff]  ;;  %v15540_v31 = vld [vmem:[#allocation8 + $0xcd0] sm:$0xf] }
 0x270   :  { %9437 = vmatpush.bf16.msra.mxu1 %v15021_v18  ;;  %v20146_v18 = vld [vmem:[#allocation28_spill] sm:$0xff]  ;;  %v4550_v4 = vmax.f32 %v19491_v12, 0.0  ;;  %v18400_v3 = vld [vmem:[#allocation8 + $0xcf4] sm:$0xf0]  ;;  %v708_v48 = vperm.slane %v19434_v45, 6  ;;  %v4128_v14 = vadd.f32 %v19390_v57, %v4114_v52  ;;  %v15221_v12 = vor.u32 %v18320_v20, %v15220_v42  ;;  %v20154_v57 = vld [vmem:[#allocation25_spill] sm:$0xff] }
 0x271   :  { %9451 = vmatpush.bf16.msra.mxu2 %v15341_v13  ;;  %v3934_v13 = vadd.f32 %v20146_v18, %v3920_v62  ;;  %v20152_v62 = vld [vmem:[#allocation39_spill] sm:$0xff]  ;;  %v18150_v7 = vld [vmem:[#allocation8 + $0x524] sm:$0xf0]  ;;  %v14860_v40 = vld [vmem:[#allocation8 + $0x780] sm:$0xf]  ;;  %v15541_v35 = vor.u32 %v18400_v3, %v15540_v31  ;;  %v4541_v52 = vmax.f32 %v20154_v57, 0.0 }
 0x272   :  { %9465 = vmatpush.bf16.msra.mxu3 %v15661_v11  ;;  %v15261_v11 = vor.u32 %v18330_v15, %v15260_v30  ;;  %v4046_v32 = vadd.f32 %v20152_v62, %v4032_v46  ;;  %v14581_v30 = vor.u32 %v18160_v21, %v14580_v19  ;;  %v14540_v15 = vld [vmem:[#allocation8 + $0x500] sm:$0xf]  ;;  %v18310_v18 = vld [vmem:[#allocation8 + $0xa24] sm:$0xf0]  ;;  %v16100_v21 = vld [vmem:[#allocation8 + $0x1130] sm:$0xf]  ;;  %v4142_v42 = vadd.f32 %v19397_v38, %v4128_v14 }
 0x273   :  { %9424 = vmatpush.bf16.msra.mxu0 %v14661_v5  ;;  %v4540_v5 = vmax.f32 %v20149_v0, 0.0  ;;  %v3948_v63 = vadd.f32 %v20151_v24, %v3934_v13  ;;  %v15500_v13 = vld [vmem:[#allocation8 + $0xc80] sm:$0xf]  ;;  %v18390_v19 = vld [vmem:[#allocation8 + $0xca4] sm:$0xf0]  ;;  %v15181_v0 = vor.u32 %v18310_v18, %v15180_v2 }
 0x274   :  { %9438 = vmatpush.bf16.msra.mxu1 %v14981_v55  ;;  %v4030_v55 = vadd.f32 %v20150_v47, %v4016_v22  ;;  %v18230_v22 = vld [vmem:[#allocation8 + $0x7a4] sm:$0xf0]  ;;  %v20153_v54 = vld [vmem:[#allocation36_spill] sm:$0xff]  ;;  %v18540_v27 = vld [vmem:[#allocation8 + $0x1154] sm:$0xf0]  ;;  %v709_v47 = vperm.slane %v19434_v45, 7 }
 0x275   :  { %9452 = vmatpush.bf16.msra.mxu2 %v15301_v41  ;;  %v4130_v41 = vadd.f32 %v19408_v60, %v4116_v61  ;;  %v14901_v60 = vor.u32 %v18240_v39, %v14900_v44  ;;  %v14541_v44 = vor.u32 %v18150_v7, %v14540_v15  ;;  %v16420_v46 = vld [vmem:[#allocation8 + $0x13b0] sm:$0xf]  ;;  %v4552_v39 = vmax.f32 %v4046_v32, 0.0  ;;  %v18700_v3 = vld [vmem:[#allocation8 + $0x1654] sm:$0xf0] }
 0x276   :  { %9466 = vmatpush.bf16.msra.mxu3 %v15621_v59  ;;  %v19508_v59 = vpop.f32.mrf.mxu0  ;;  %v4044_v61 = vadd.f32 %v20153_v54, %v4030_v55  ;;  %v14861_v20 = vor.u32 %v18230_v22, %v14860_v40  ;;  %v15501_v55 = vor.u32 %v18390_v19, %v15500_v13  ;;  %v16740_v31 = vld [vmem:[#allocation8 + $0x1630] sm:$0xf]  ;;  %v18530_v32 = vld [vmem:[#allocation8 + $0x1104] sm:$0xf0]  ;;  %v19521_v15 = vpack.c.bf16 %v4550_v4, %v4540_v5  ;;  %v19532_v4 = vpop.f32.mrf.mxu1  ;;  %v16700_v18 = vld [vmem:[#allocation8 + $0x15e0] sm:$0xf] }
 0x277   :  { %9425 = vmatpush.bf16.msra.mxu0 %v14621_v10  ;;  %v4144_v10 = vadd.f32 %v19411_v23, %v4130_v41  ;;  %v4156_v23 = vadd.f32 %v19400_v37, %v708_v48  ;;  %v16101_v41 = vor.u32 %v18540_v27, %v16100_v21  ;;  %v4283_v14 = vpop.f32.mrf.mxu3  ;;  %v16380_v37 = vld [vmem:[#allocation8 + $0x1360] sm:$0xf]  ;;  %v18610_v45 = vld [vmem:[#allocation8 + $0x1384] sm:$0xf0]  ;;  %v4543_v7 = vmax.f32 %v4142_v42, 0.0 }
 0x278   :  { %9439 = vmatpush.bf16.msra.mxu1 %v14941_v49  ;;  %v4551_v49 = vmax.f32 %v3948_v63, 0.0  ;;  %v4542_v24 = vmax.f32 %v4044_v61, 0.0  ;;  %v4158_v40 = vadd.f32 %v19414_v43, %v708_v48  ;;  %v16741_v22 = vor.u32 %v18700_v3, %v16740_v31  ;;  %v18690_v13 = vld [vmem:[#allocation8 + $0x1604] sm:$0xf0]  ;;  %v16020_v48 = vld [vmem:[#allocation8 + $0x1090] sm:$0xf] }
 0x279   :  { %9453 = vmatpush.bf16.msra.mxu2 %v15261_v11  ;;  %v19516_v11 = vpop.f32.mrf.mxu2  ;;  %v4553_v63 = vmax.f32 %v4144_v10, 0.0  ;;  %v4254_v5 = vadd.f32 %v19480_v50, %v709_v47  ;;  %v4256_v61 = vadd.f32 %v19510_v6, %v709_v47  ;;  %v16381_v43 = vor.u32 %v18610_v45, %v16380_v37  ;;  %v18520_v10 = vld [vmem:[#allocation8 + $0x10b4] sm:$0xf0]  ;;  %v16300_v42 = vld [vmem:[#allocation8 + $0x12c0] sm:$0xf] }
 0x27a   :  { %9467 = vmatpush.bf16.msra.mxu3 %v15581_v28  ;;  %v18620_v28 = vld [vmem:[#allocation8 + $0x13d4] sm:$0xf0]  ;;  %v19523_v38 = vpack.c.bf16 %v4551_v49, %v4541_v52  ;;  %v4172_v19 = vadd.f32 %v19418_v51, %v4158_v40  ;;  %v16701_v21 = vor.u32 %v18690_v13, %v16700_v18  ;;  %v16021_v52 = vor.u32 %v18520_v10, %v16020_v48  ;;  %v16660_v49 = vld [vmem:[#allocation8 + $0x1590] sm:$0xf]  ;;  %v18510_v51 = vld [vmem:[#allocation8 + $0x1064] sm:$0xf0] }
 0x27b   :  { %9426 = vmatpush.bf16.msra.mxu0 %v14581_v30  ;;  %v16421_v62 = vor.u32 %v18620_v28, %v16420_v46  ;;  %v16060_v30 = vld [vmem:[#allocation8 + $0x10e0] sm:$0xf]  ;;  %v19534_v54 = vpack.c.bf16 %v4553_v63, %v4543_v7  ;;  %v18600_v50 = vld [vmem:[#allocation8 + $0x1334] sm:$0xf0]  ;;  %v4268_v27 = vadd.f32 %v19488_v53, %v4254_v5  ;;  %v4270_v46 = vadd.f32 %v19516_v11, %v4256_v61  ;;  %v18670_v31 = vld [vmem:[#allocation8 + $0x1564] sm:$0xf0] }
 0x27c   :  { %9440 = vmatpush.bf16.msra.mxu1 %v14901_v60  ;;  %v16061_v2 = vor.u32 %v18530_v32, %v16060_v30  ;;  %v16620_v11 = vld [vmem:[#allocation8 + $0x1540] sm:$0xf]  ;;  %v15940_v63 = vld [vmem:[#allocation8 + $0xff0] sm:$0xf]  ;;  %v18580_v32 = vld [vmem:[#allocation8 + $0x1294] sm:$0xf0] }
 0x27d   :  { %9454 = vmatpush.bf16.msra.mxu2 %v15221_v12  ;;  %v19527_v12 = vpack.c.bf16 %v4552_v39, %v4542_v24  ;;  %v15980_v39 = vld [vmem:[#allocation8 + $0x1040] sm:$0xf]  ;;  %v4284_v3 = vadd.f32 %v4283_v14, %v4270_v46  ;;  %v18660_v14 = vld [vmem:[#allocation8 + $0x1514] sm:$0xf0]  ;;  %v18570_v61 = vld [vmem:[#allocation8 + $0x1244] sm:$0xf0] }
 0x27e   :  { %9468 = vmatpush.bf16.msra.mxu3 %v15541_v35  ;;  %v19525_v60 = vpop.f32.mrf.mxu0  ;;  %v4170_v35 = vadd.f32 %v19404_v33, %v4156_v23  ;;  %v16340_v33 = vld [vmem:[#allocation8 + $0x1310] sm:$0xf]  ;;  %v4282_v23 = vadd.f32 %v19499_v56, %v4268_v27  ;;  %v4311_v30 = vpop.f32.mrf.mxu1  ;;  %v16621_v56 = vor.u32 %v18670_v31, %v16620_v11  ;;  %v15900_v5 = vld [vmem:[#allocation8 + $0xfa0] sm:$0xf]  ;;  %v18560_v46 = vld [vmem:[#allocation8 + $0x11f4] sm:$0xf0] }
 0x27f   :  { %9427 = vmatpush.bf16.msra.mxu0 %v14541_v44  ;;  %v18680_v44 = vld [vmem:[#allocation8 + $0x15b4] sm:$0xf0]  ;;  %v16341_v28 = vor.u32 %v18600_v50, %v16340_v33  ;;  %v16220_v13 = vld [vmem:[#allocation8 + $0x1220] sm:$0xf]  ;;  %v18650_v50 = vld [vmem:[#allocation8 + $0x14c4] sm:$0xf0] }
 0x280   :  { %9441 = vmatpush.bf16.msra.mxu1 %v14861_v20  ;;  %v4184_v6 = vadd.f32 %v19422_v29, %v4170_v35  ;;  %v18590_v20 = vld [vmem:[#allocation8 + $0x12e4] sm:$0xf0]  ;;  %v16661_v29 = vor.u32 %v18680_v44, %v16660_v49  ;;  %v4296_v7 = vadd.f32 %v19525_v60, %v4282_v23  ;;  %v16540_v33 = vld [vmem:[#allocation8 + $0x14a0] sm:$0xf]  ;;  %v18480_v49 = vld [vmem:[#allocation8 + $0xf74] sm:$0xf0] }
 0x281   :  { %9455 = vmatpush.bf16.msra.mxu2 %v15181_v0  ;;  %v19544_v57 = vpop.f32.mrf.mxu2  ;;  %v4186_v0 = vadd.f32 %v19452_v17, %v4172_v19  ;;  %v16301_v24 = vor.u32 %v18590_v20, %v16300_v42  ;;  %v16260_v17 = vld [vmem:[#allocation8 + $0x1270] sm:$0xf]  ;;  %v19558_v19 = vld [vmem:[#allocation7 + $0x8] sm:$0x3]  ;;  %v18470_v11 = vld [vmem:[#allocation8 + $0xf24] sm:$0xf0] }
 0x282   :  { %9469 = vmatpush.bf16.msra.mxu3 %v15501_v55  ;;  %9428 = vmatmul.bf16.vlgmr.msra.gmra.mxu0 %v19521_v15  ;;  %v4198_v53 = vadd.f32 %v19430_v9, %v4184_v6  ;;  %v19550_v55 = vpop.f32.mrf.mxu3  ;;  %v16261_v35 = vor.u32 %v18580_v32, %v16260_v17  ;;  %v4310_v60 = vadd.f32 %v19532_v4, %v4296_v7  ;;  %v16180_v44 = vld [vmem:[#allocation8 + $0x11d0] sm:$0xf]  ;;  %v18550_v31 = vld [vmem:[#allocation8 + $0x11a4] sm:$0xf0] }
 0x283   :  { %9476 = vmatpush.bf16.msrb.mxu0 %v16101_v41  ;;  %9442 = vmatmul.bf16.vlgmr.msra.gmra.mxu1 %v19523_v38  ;;  %v15981_v41 = vor.u32 %v18510_v51, %v15980_v39  ;;  %v4200_v37 = vadd.f32 %v19457_v34, %v4186_v0  ;;  %v16221_v6 = vor.u32 %v18570_v61, %v16220_v13  ;;  %v710_v39 = vperm.slane %v19558_v19, 0  ;;  %v16500_v0 = vld [vmem:[#allocation8 + $0x1450] sm:$0xf]  ;;  %v14142_v13 = vld [vmem:[#allocation8 + $0x208] sm:$0xf0] }
 0x284   :  { %9490 = vmatpush.bf16.msrb.mxu1 %v16421_v62  ;;  %9456 = vmatmul.bf16.vlgmr.msra.gmra.mxu2 %v19527_v12  ;;  %v18500_v62 = vld [vmem:[#allocation8 + $0x1014] sm:$0xf0]  ;;  %v4212_v45 = vadd.f32 %v19437_v26, %v4198_v53  ;;  %v16541_v4 = vor.u32 %v18650_v50, %v16540_v33  ;;  %v4324_v42 = vadd.f32 %v19544_v57, %v4310_v60  ;;  %v15820_v53 = vld [vmem:[#allocation8 + $0xf00] sm:$0xf]  ;;  %v17060_v57 = vld [vmem:[#allocation8 + $0x18b0] sm:$0xf] }
 0x285   :  { %9470 = vmatmul.bf16.vlgmr.msra.gmra.mxu3 %v19534_v54  ;;  %9504 = vmatpush.bf16.msrb.mxu2 %v16741_v22  ;;  %v15941_v40 = vor.u32 %v18500_v62, %v15940_v63  ;;  %v16580_v22 = vld [vmem:[#allocation8 + $0x14f0] sm:$0xf]  ;;  %v4214_v34 = vadd.f32 %v19468_v25, %v4200_v37  ;;  %v18135_v63 = vld [vmem:[#allocation8 + $0x4b4] sm:$0xf]  ;;  %v14502_v62 = vld [vmem:[#allocation8 + $0x4d8] sm:$0xf0]  ;;  %v15821_v37 = vor.u32 %v18470_v11, %v15820_v53 }
 0x286   :  { %v4297_v47 = vpop.f32.mrf.mxu0  ;;  %v16581_v48 = vor.u32 %v18660_v14, %v16580_v22  ;;  %v4226_v26 = vadd.f32 %v19445_v8, %v4212_v45  ;;  %v4338_v32 = vadd.f32 %v19550_v55, %v4324_v42  ;;  %v18125_v61 = vld [vmem:[#allocation8 + $0x464] sm:$0xf]  ;;  %v18770_v60 = vld [vmem:[#allocation8 + $0x1884] sm:$0xf0]  ;;  %v14422_v42 = vld [vmem:[#allocation8 + $0x438] sm:$0xf0] }
 0x287   :  { %9477 = vmatpush.bf16.msrb.mxu0 %v16061_v2  ;;  %v4298_v9 = vadd.f32 %v4297_v47, %v4284_v3  ;;  %v18490_v2 = vld [vmem:[#allocation8 + $0xfc4] sm:$0xf0]  ;;  %v4228_v8 = vadd.f32 %v19475_v16, %v4214_v34  ;;  %v16140_v16 = vld [vmem:[#allocation8 + $0x1180] sm:$0xf]  ;;  %v18055_v3 = vld [vmem:[#allocation8 + $0x234] sm:$0xf] }
 0x288   :  { %9491 = vmatpush.bf16.msrb.mxu1 %v16381_v43  ;;  %v15901_v10 = vor.u32 %v18490_v2, %v15900_v5  ;;  %v4240_v51 = vadd.f32 %v19478_v1, %v4226_v26  ;;  %v16141_v22 = vor.u32 %v18550_v31, %v16140_v16  ;;  %v14822_v5 = vld [vmem:[#allocation8 + $0x758] sm:$0xf0]  ;;  %v14505_v2 = vor.u32 %v18135_v63, %v14502_v62  ;;  %v17020_v26 = vld [vmem:[#allocation8 + $0x1860] sm:$0xf]  ;;  %v18195_v11 = vld [vmem:[#allocation8 + $0x694] sm:$0xf] }
 0x289   :  { %9505 = vmatpush.bf16.msrb.mxu2 %v16701_v21  ;;  %v4325_v18 = vpop.f32.mrf.mxu2  ;;  %v4312_v43 = vadd.f32 %v4311_v30, %v4298_v9  ;;  %v4242_v23 = vadd.f32 %v19508_v59, %v4228_v8  ;;  %v18780_v30 = vld [vmem:[#allocation8 + $0x18d4] sm:$0xf0]  ;;  %v16460_v9 = vld [vmem:[#allocation8 + $0x1400] sm:$0xf]  ;;  %v14102_v8 = vld [vmem:[#allocation8 + $0x1b8] sm:$0xf0] }
 0x28a   :  { %v4339_v25 = vpop.f32.mrf.mxu3  ;;  %v4544_v17 = vmax.f32 %v4240_v51, 0.0  ;;  %v17061_v45 = vor.u32 %v18780_v30, %v17060_v57  ;;  %v14742_v16 = vld [vmem:[#allocation8 + $0x6b8] sm:$0xf0]  ;;  %v18105_v63 = vld [vmem:[#allocation8 + $0x3c4] sm:$0xf] }
 0x28b   :  { %9478 = vmatpush.bf16.msrb.mxu0 %v16021_v52  ;;  %v4326_v21 = vadd.f32 %v4325_v18, %v4312_v43  ;;  %v15860_v52 = vld [vmem:[#allocation8 + $0xf50] sm:$0xf]  ;;  %v4554_v7 = vmax.f32 %v4242_v23, 0.0  ;;  %v18045_v18 = vld [vmem:[#allocation8 + $0x1e4] sm:$0xf] }
 0x28c   :  { %9492 = vmatpush.bf16.msrb.mxu1 %v16341_v28  ;;  %v19560_v28 = vpop.f32.mrf.mxu1  ;;  %v15861_v20 = vor.u32 %v18480_v49, %v15860_v52  ;;  %9518 = vmatpush.bf16.msrb.mxu3 %v17061_v45  ;;  %v14145_v52 = vor.u32 %v18045_v18, %v14142_v13  ;;  %v18205_v49 = vld [vmem:[#allocation8 + $0x6e4] sm:$0xf]  ;;  %v14382_v62 = vld [vmem:[#allocation8 + $0x3e8] sm:$0xf0]  ;;  %v16940_v57 = vld [vmem:[#allocation8 + $0x17c0] sm:$0xf] }
 0x28d   :  { %9506 = vmatpush.bf16.msrb.mxu2 %v16661_v29  ;;  %v18640_v29 = vld [vmem:[#allocation8 + $0x1474] sm:$0xf0]  ;;  %v4340_v47 = vadd.f32 %v4339_v25, %v4326_v21  ;;  %v17021_v21 = vor.u32 %v18770_v60, %v17020_v26  ;;  %v14782_v25 = vld [vmem:[#allocation8 + $0x708] sm:$0xf0]  ;;  %v18750_v30 = vld [vmem:[#allocation8 + $0x17e4] sm:$0xf0] }
 0x28e   :  { %v4351_v27 = vpop.f32.mrf.mxu0  ;;  %v16501_v1 = vor.u32 %v18640_v29, %v16500_v0  ;;  %v18760_v0 = vld [vmem:[#allocation8 + $0x1834] sm:$0xf0]  ;;  %v14785_v53 = vor.u32 %v18205_v49, %v14782_v25  ;;  %v14702_v45 = vld [vmem:[#allocation8 + $0x668] sm:$0xf0]  ;;  %v16860_v49 = vld [vmem:[#allocation8 + $0x1720] sm:$0xf] }
 0x28f   :  { %9479 = vmatpush.bf16.msrb.mxu0 %v15981_v41  ;;  %v16181_v41 = vor.u32 %v18560_v46, %v16180_v44  ;;  %v4352_v55 = vadd.f32 %v4351_v27, %v710_v39  ;;  %v18035_v46 = vld [vmem:[#allocation8 + $0x194] sm:$0xf]  ;;  %v18740_v18 = vld [vmem:[#allocation8 + $0x1794] sm:$0xf0]  ;;  %v18730_v25 = vld [vmem:[#allocation8 + $0x1744] sm:$0xf0] }
 0x290   :  { %9493 = vmatpush.bf16.msrb.mxu1 %v16301_v24  ;;  %v14182_v24 = vld [vmem:[#allocation8 + $0x258] sm:$0xf0]  ;;  %9519 = vmatpush.bf16.msrb.mxu3 %v17021_v21 }
 0x291   :  { %9507 = vmatpush.bf16.msrb.mxu2 %v16621_v56  ;;  %v19568_v59 = vpop.f32.mrf.mxu2  ;;  %v18630_v56 = vld [vmem:[#allocation8 + $0x1424] sm:$0xf0]  ;;  %v14185_v14 = vor.u32 %v18055_v3, %v14182_v24  ;;  %v4366_v51 = vadd.f32 %v19560_v28, %v4352_v55  ;;  %v18025_v3 = vld [vmem:[#allocation8 + $0x144] sm:$0xf]  ;;  %v14062_v24 = vld [vmem:[#allocation8 + $0x168] sm:$0xf0] }
 0x292   :  { %v16461_v34 = vor.u32 %v18630_v56, %v16460_v9  ;;  %v4393_v29 = vpop.f32.mrf.mxu3  ;;  %v14065_v9 = vor.u32 %v18025_v3, %v14062_v24  ;;  %v18185_v56 = vld [vmem:[#allocation8 + $0x644] sm:$0xf] }
 0x293   :  { %9480 = vmatpush.bf16.msrb.mxu0 %v15941_v40  ;;  %v4555_v40 = vmax.f32 %v4340_v47, 0.0  ;;  %v14705_v13 = vor.u32 %v18185_v56, %v14702_v45  ;;  %v15462_v56 = vld [vmem:[#allocation8 + $0xc58] sm:$0xf0] }
 0x294   :  { %9494 = vmatpush.bf16.msrb.mxu1 %v16261_v35  ;;  %v18215_v35 = vld [vmem:[#allocation8 + $0x734] sm:$0xf]  ;;  %v4367_v50 = vpop.f32.mrf.mxu1 }
 0x295   :  { %9508 = vmatpush.bf16.msrb.mxu2 %v16581_v48  ;;  %v14462_v48 = vld [vmem:[#allocation8 + $0x488] sm:$0xf0]  ;;  %v14825_v33 = vor.u32 %v18215_v35, %v14822_v5  ;;  %v18095_v35 = vld [vmem:[#allocation8 + $0x374] sm:$0xf]  ;;  %v14342_v5 = vld [vmem:[#allocation8 + $0x398] sm:$0xf0] }
 0x296   :  { %v4353_v43 = vpop.f32.mrf.mxu0  ;;  %v14465_v27 = vor.u32 %v18125_v61, %v14462_v48  ;;  %v14662_v48 = vld [vmem:[#allocation8 + $0x618] sm:$0xf0]  ;;  %v14345_v60 = vor.u32 %v18095_v35, %v14342_v5 }
 0x297   :  { %9481 = vmatpush.bf16.msrb.mxu0 %v15901_v10  ;;  %v4545_v10 = vmax.f32 %v4338_v32, 0.0  ;;  %v4354_v47 = vadd.f32 %v4353_v43, %v710_v39  ;;  %v16941_v32 = vor.u32 %v18750_v30, %v16940_v57  ;;  %v18175_v43 = vld [vmem:[#allocation8 + $0x5f4] sm:$0xf]  ;;  %v17985_v30 = vld [vmem:[#allocation8 + $0x4] sm:$0xf] }
 0x298   :  { %9495 = vmatpush.bf16.msrb.mxu1 %v16221_v6  ;;  %v19572_v6 = vpack.c.bf16 %v4554_v7, %v4544_v17  ;;  %v14745_v17 = vor.u32 %v18195_v11, %v14742_v16  ;;  %v14385_v7 = vor.u32 %v18105_v63, %v14382_v62  ;;  %v14262_v16 = vld [vmem:[#allocation8 + $0x2f8] sm:$0xf0]  ;;  %v18155_v63 = vld [vmem:[#allocation8 + $0x554] sm:$0xf] }
 0x299   :  { %9509 = vmatpush.bf16.msrb.mxu2 %v16541_v4  ;;  %v19574_v44 = vpack.c.bf16 %v4555_v40, %v4545_v10  ;;  %v18115_v4 = vld [vmem:[#allocation8 + $0x414] sm:$0xf]  ;;  %v4381_v31 = vpop.f32.mrf.mxu2  ;;  %v4368_v39 = vadd.f32 %v4367_v50, %v4354_v47  ;;  %v18005_v10 = vld [vmem:[#allocation8 + $0xa4] sm:$0xf]  ;;  %v15782_v5 = vld [vmem:[#allocation8 + $0xed8] sm:$0xf0] }
 0x29a   :  { %v14425_v28 = vor.u32 %v18115_v4, %v14422_v42  ;;  %v4395_v26 = vpop.f32.mrf.mxu3  ;;  %v18085_v50 = vld [vmem:[#allocation8 + $0x324] sm:$0xf]  ;;  %v18075_v47 = vld [vmem:[#allocation8 + $0x2d4] sm:$0xf] }
 0x29b   :  { %9482 = vmatpush.bf16.msrb.mxu0 %v15861_v20  ;;  %v16980_v20 = vld [vmem:[#allocation8 + $0x1810] sm:$0xf]  ;;  %v4382_v55 = vadd.f32 %v4381_v31, %v4368_v39  ;;  %v18720_v31 = vld [vmem:[#allocation8 + $0x16f4] sm:$0xf0]  ;;  %v14265_v39 = vor.u32 %v18075_v47, %v14262_v16  ;;  %v18435_v16 = vld [vmem:[#allocation8 + $0xe14] sm:$0xf] }
 0x29c   :  { %9496 = vmatpush.bf16.msrb.mxu1 %v16181_v41  ;;  %v16981_v23 = vor.u32 %v18760_v0, %v16980_v20  ;;  %v14105_v41 = vor.u32 %v18035_v46, %v14102_v8  ;;  %v14665_v46 = vor.u32 %v18175_v43, %v14662_v48  ;;  %v16861_v8 = vor.u32 %v18730_v25, %v16860_v49  ;;  %v18165_v20 = vld [vmem:[#allocation8 + $0x5a4] sm:$0xf]  ;;  %v14622_v0 = vld [vmem:[#allocation8 + $0x5c8] sm:$0xf0] }
 0x29d   :  { %9510 = vmatpush.bf16.msrb.mxu2 %v16501_v1  ;;  %v4380_v1 = vadd.f32 %v19568_v59, %v4366_v51  ;;  %v4396_v4 = vadd.f32 %v4395_v26, %v4382_v55  ;;  %v14625_v24 = vor.u32 %v18165_v20, %v14622_v0  ;;  %v14542_v43 = vld [vmem:[#allocation8 + $0x528] sm:$0xf0]  ;;  %v18365_v49 = vld [vmem:[#allocation8 + $0xbe4] sm:$0xf] }
 0x29e   :  { %9520 = vmatpush.bf16.msrb.mxu3 %v16981_v23  ;;  %v13942_v23 = vld [vmem:[#allocation8 + $0x78] sm:$0xf0]  ;;  %v15422_v25 = vld [vmem:[#allocation8 + $0xc08] sm:$0xf0] }
 0x29f   :  { %9483 = vmatpush.bf16.msrb.mxu0 %v15821_v37  ;;  %v4407_v37 = vpop.f32.mrf.mxu0  ;;  %v4394_v59 = vadd.f32 %v4393_v29, %v4380_v1  ;;  %v14582_v1 = vld [vmem:[#allocation8 + $0x578] sm:$0xf0]  ;;  %v15102_v20 = vld [vmem:[#allocation8 + $0x988] sm:$0xf0]  ;;  %v15425_v0 = vor.u32 %v18365_v49, %v15422_v25  ;;  %v18245_v49 = vld [vmem:[#allocation8 + $0x824] sm:$0xf] }
 0x2a0   :  { %9497 = vmatpush.bf16.msrb.mxu1 %v16141_v22  ;;  %v4421_v40 = vpop.f32.mrf.mxu1  ;;  %v18015_v22 = vld [vmem:[#allocation8 + $0xf4] sm:$0xf]  ;;  %v14942_v25 = vld [vmem:[#allocation8 + $0x848] sm:$0xf0] }
 0x2a1   :  { %9511 = vmatpush.bf16.msrb.mxu2 %v16461_v34  ;;  %v4408_v21 = vadd.f32 %v4407_v37, %v4394_v59  ;;  %v14222_v37 = vld [vmem:[#allocation8 + $0x2a8] sm:$0xf0]  ;;  %v14585_v59 = vor.u32 %v18155_v63, %v14582_v1  ;;  %v18515_v1 = vld [vmem:[#allocation8 + $0x1094] sm:$0xf] }
 0x2a2   :  { %9484 = vmatmul.bf16.vlgmr.msrb.gmra.mxu0 %v19572_v6  ;;  %9521 = vmatpush.bf16.msrb.mxu3 %v16941_v32  ;;  %v18065_v32 = vld [vmem:[#allocation8 + $0x284] sm:$0xf] }
 0x2a3   :  { %9532 = vmatpush.bf16.msra.mxu0 %v14185_v14  ;;  %9498 = vmatmul.bf16.vlgmr.msrb.gmra.mxu1 %v19574_v44  ;;  %v14022_v14 = vld [vmem:[#allocation8 + $0x118] sm:$0xf0]  ;;  %v14225_v26 = vor.u32 %v18065_v32, %v14222_v37  ;;  %v15342_v32 = vld [vmem:[#allocation8 + $0xb68] sm:$0xf0] }
 0x2a4   :  { %9546 = vmatpush.bf16.msra.mxu1 %v14505_v2  ;;  %v16900_v2 = vld [vmem:[#allocation8 + $0x1770] sm:$0xf]  ;;  %v14025_v34 = vor.u32 %v18015_v22, %v14022_v14  ;;  %v16780_v22 = vld [vmem:[#allocation8 + $0x1680] sm:$0xf]  ;;  %v18710_v14 = vld [vmem:[#allocation8 + $0x16a4] sm:$0xf0] }
 0x2a5   :  { %9560 = vmatpush.bf16.msra.mxu2 %v14825_v33  ;;  %v16901_v61 = vor.u32 %v18740_v18, %v16900_v2  ;;  %v13982_v33 = vld [vmem:[#allocation8 + $0xc8] sm:$0xf0]  ;;  %v16781_v2 = vor.u32 %v18710_v14, %v16780_v22  ;;  %v18295_v18 = vld [vmem:[#allocation8 + $0x9b4] sm:$0xf] }
 0x2a6   :  { %v13985_v42 = vor.u32 %v18005_v10, %v13982_v33  ;;  %v18535_v10 = vld [vmem:[#allocation8 + $0x1134] sm:$0xf]  ;;  %v16102_v33 = vld [vmem:[#allocation8 + $0x1158] sm:$0xf0]  ;;  %v15662_v37 = vld [vmem:[#allocation8 + $0xde8] sm:$0xf0] }
 0x2a7   :  { %9533 = vmatpush.bf16.msra.mxu0 %v14145_v52  ;;  %9522 = vmatpush.bf16.msrb.mxu3 %v16901_v61  ;;  %v14302_v52 = vld [vmem:[#allocation8 + $0x348] sm:$0xf0]  ;;  %v4409_v51 = vpop.f32.mrf.mxu0 }
 0x2a8   :  { %9547 = vmatpush.bf16.msra.mxu1 %v14465_v27  ;;  %v4435_v27 = vpop.f32.mrf.mxu2  ;;  %v14305_v29 = vor.u32 %v18085_v50, %v14302_v52  ;;  %v4410_v11 = vadd.f32 %v4409_v51, %v4396_v4  ;;  %v4423_v3 = vpop.f32.mrf.mxu1  ;;  %v18285_v4 = vld [vmem:[#allocation8 + $0x964] sm:$0xf]  ;;  %v15982_v22 = vld [vmem:[#allocation8 + $0x1068] sm:$0xf0] }
 0x2a9   :  { %9561 = vmatpush.bf16.msra.mxu2 %v14785_v53  ;;  %v17995_v53 = vld [vmem:[#allocation8 + $0x54] sm:$0xf] }
 0x2aa   :  { %v13945_v57 = vor.u32 %v17995_v53, %v13942_v23  ;;  %v16062_v53 = vld [vmem:[#allocation8 + $0x1108] sm:$0xf0]  ;;  %v15105_v23 = vor.u32 %v18285_v4, %v15102_v20 }
 0x2ab   :  { %9534 = vmatpush.bf16.msra.mxu0 %v14105_v41  ;;  %9523 = vmatpush.bf16.msrb.mxu3 %v16861_v8  ;;  %v4422_v41 = vadd.f32 %v4421_v40, %v4408_v21  ;;  %v18455_v40 = vld [vmem:[#allocation8 + $0xeb4] sm:$0xf]  ;;  %v15742_v8 = vld [vmem:[#allocation8 + $0xe88] sm:$0xf0] }
 0x2ac   :  { %9548 = vmatpush.bf16.msra.mxu1 %v14425_v28  ;;  %v16820_v28 = vld [vmem:[#allocation8 + $0x16d0] sm:$0xf]  ;;  %v15785_v52 = vor.u32 %v18455_v40, %v15782_v5  ;;  %v18505_v40 = vld [vmem:[#allocation8 + $0x1044] sm:$0xf]  ;;  %v15302_v5 = vld [vmem:[#allocation8 + $0xb18] sm:$0xf0] }
 0x2ad   :  { %9562 = vmatpush.bf16.msra.mxu2 %v14745_v17  ;;  %v16821_v62 = vor.u32 %v18720_v31, %v16820_v28  ;;  %v13902_v17 = vld [vmem:[#allocation8 + $0x28] sm:$0xf0]  ;;  %v4436_v45 = vadd.f32 %v4435_v27, %v4422_v41  ;;  %v18355_v41 = vld [vmem:[#allocation8 + $0xb94] sm:$0xf]  ;;  %v15702_v28 = vld [vmem:[#allocation8 + $0xe38] sm:$0xf0] }
 0x2ae   :  { %v13905_v55 = vor.u32 %v17985_v30, %v13902_v17  ;;  %v18275_v31 = vld [vmem:[#allocation8 + $0x914] sm:$0xf]  ;;  %v15705_v30 = vor.u32 %v18435_v16, %v15702_v28  ;;  %v18345_v17 = vld [vmem:[#allocation8 + $0xb44] sm:$0xf]  ;;  %v15902_v4 = vld [vmem:[#allocation8 + $0xfc8] sm:$0xf0] }
 0x2af   :  { %9535 = vmatpush.bf16.msra.mxu0 %v14065_v9  ;;  %v18375_v9 = vld [vmem:[#allocation8 + $0xc34] sm:$0xf]  ;;  %9524 = vmatpush.bf16.msrb.mxu3 %v16821_v62  ;;  %v4546_v50 = vmax.f32 %v4436_v45, 0.0  ;;  %v16022_v62 = vld [vmem:[#allocation8 + $0x10b8] sm:$0xf0] }
 0x2b0   :  { %9549 = vmatpush.bf16.msra.mxu1 %v14385_v7  ;;  %v4424_v7 = vadd.f32 %v4423_v3, %v4410_v11  ;;  %v4437_v35 = vpop.f32.mrf.mxu2  ;;  %v15382_v11 = vld [vmem:[#allocation8 + $0xbb8] sm:$0xf0]  ;;  %v16025_v45 = vor.u32 %v18515_v1, %v16022_v62  ;;  %v18475_v28 = vld [vmem:[#allocation8 + $0xf54] sm:$0xf]  ;;  %v15182_v1 = vld [vmem:[#allocation8 + $0xa28] sm:$0xf0] }
 0x2b1   :  { %9563 = vmatpush.bf16.msra.mxu2 %v14705_v13  ;;  %v15142_v13 = vld [vmem:[#allocation8 + $0x9d8] sm:$0xf0]  ;;  %v15385_v63 = vor.u32 %v18355_v41, %v15382_v11  ;;  %v711_v11 = vperm.slane %v19558_v19, 1  ;;  %v18225_v19 = vld [vmem:[#allocation8 + $0x784] sm:$0xf] }
 0x2b2   :  { %v4438_v61 = vadd.f32 %v4437_v35, %v4424_v7  ;;  %v15145_v48 = vor.u32 %v18295_v18, %v15142_v13  ;;  %v15062_v3 = vld [vmem:[#allocation8 + $0x938] sm:$0xf0]  ;;  %v15345_v7 = vor.u32 %v18345_v17, %v15342_v32  ;;  %v19587_v18 = vpop.f32.mrf.mxu3  ;;  %v18385_v17 = vld [vmem:[#allocation8 + $0xc84] sm:$0xf]  ;;  %v15502_v32 = vld [vmem:[#allocation8 + $0xca8] sm:$0xf0] }
 0x2b3   :  { %9536 = vmatpush.bf16.msra.mxu0 %v14025_v34  ;;  %v18145_v34 = vld [vmem:[#allocation8 + $0x504] sm:$0xf]  ;;  %9525 = vmatpush.bf16.msrb.mxu3 %v16781_v2  ;;  %v18415_v2 = vld [vmem:[#allocation8 + $0xd74] sm:$0xf]  ;;  %v15622_v13 = vld [vmem:[#allocation8 + $0xd98] sm:$0xf0] }
 0x2b4   :  { %9550 = vmatpush.bf16.msra.mxu1 %v14345_v60  ;;  %v15465_v60 = vor.u32 %v18375_v9, %v15462_v56  ;;  %v4556_v21 = vmax.f32 %v4438_v61, 0.0  ;;  %v14545_v27 = vor.u32 %v18145_v34, %v14542_v43  ;;  %v18265_v9 = vld [vmem:[#allocation8 + $0x8c4] sm:$0xf]  ;;  %v15022_v56 = vld [vmem:[#allocation8 + $0x8e8] sm:$0xf0]  ;;  %v15985_v34 = vor.u32 %v18505_v40, %v15982_v22 }
 0x2b5   :  { %9564 = vmatpush.bf16.msra.mxu2 %v14665_v46  ;;  %v18445_v46 = vld [vmem:[#allocation8 + $0xe64] sm:$0xf]  ;;  %v15025_v14 = vor.u32 %v18265_v9, %v15022_v56  ;;  %v18255_v61 = vld [vmem:[#allocation8 + $0x874] sm:$0xf]  ;;  %v14902_v41 = vld [vmem:[#allocation8 + $0x7f8] sm:$0xf0] }
 0x2b6   :  { %v19582_v51 = vpack.c.bf16 %v4556_v21, %v4546_v50  ;;  %v15745_v47 = vor.u32 %v18445_v46, %v15742_v8  ;;  %v15262_v50 = vld [vmem:[#allocation8 + $0xac8] sm:$0xf0]  ;;  %v18405_v21 = vld [vmem:[#allocation8 + $0xd24] sm:$0xf]  ;;  %v16742_v9 = vld [vmem:[#allocation8 + $0x1658] sm:$0xf0] }
 0x2b7   :  { %9537 = vmatpush.bf16.msra.mxu0 %v13985_v42  ;;  %9574 = vmatpush.bf16.msra.mxu3 %v15145_v48  ;;  %v16105_v42 = vor.u32 %v18535_v10, %v16102_v33  ;;  %v18495_v48 = vld [vmem:[#allocation8 + $0xff4] sm:$0xf]  ;;  %v15625_v10 = vor.u32 %v18415_v2, %v15622_v13  ;;  %v18325_v33 = vld [vmem:[#allocation8 + $0xaa4] sm:$0xf]  ;;  %v14862_v56 = vld [vmem:[#allocation8 + $0x7a8] sm:$0xf0] }
 0x2b8   :  { %9551 = vmatpush.bf16.msra.mxu1 %v14305_v29  ;;  %v18525_v29 = vld [vmem:[#allocation8 + $0x10e4] sm:$0xf]  ;;  %9512 = vmatmul.bf16.vlgmr.msrb.gmra.mxu2 %v19582_v51  ;;  %v15265_v46 = vor.u32 %v18325_v33, %v15262_v50  ;;  %v17062_v40 = vld [vmem:[#allocation8 + $0x18d8] sm:$0xf0]  ;;  %v14188_v13 = vld [vmem:[#allocation8 + $0x238] sm:$0xf] }
 0x2b9   :  { %9565 = vmatpush.bf16.msra.mxu2 %v14625_v24  ;;  %v16065_v24 = vor.u32 %v18525_v29, %v16062_v53  ;;  %v18485_v8 = vld [vmem:[#allocation8 + $0xfa4] sm:$0xf]  ;;  %v15222_v29 = vld [vmem:[#allocation8 + $0xa78] sm:$0xf0]  ;;  %v18395_v53 = vld [vmem:[#allocation8 + $0xcd4] sm:$0xf] }
 0x2ba   :  { %v15905_v16 = vor.u32 %v18485_v8, %v15902_v4  ;;  %v18675_v8 = vld [vmem:[#allocation8 + $0x1594] sm:$0xf]  ;;  %v16662_v4 = vld [vmem:[#allocation8 + $0x15b8] sm:$0xf0] }
 0x2bb   :  { %9538 = vmatpush.bf16.msra.mxu0 %v13945_v57  ;;  %9575 = vmatpush.bf16.msra.mxu3 %v15105_v23  ;;  %v15065_v57 = vor.u32 %v18275_v31, %v15062_v3  ;;  %v15542_v23 = vld [vmem:[#allocation8 + $0xcf8] sm:$0xf0]  ;;  %v4451_v31 = vpop.f32.mrf.mxu3 }
 0x2bc   :  { %9552 = vmatpush.bf16.msra.mxu1 %v14265_v39  ;;  %v18425_v39 = vld [vmem:[#allocation8 + $0xdc4] sm:$0xf] }
 0x2bd   :  { %9566 = vmatpush.bf16.msra.mxu2 %v14585_v59  ;;  %v15665_v35 = vor.u32 %v18425_v39, %v15662_v37  ;;  %v18335_v59 = vld [vmem:[#allocation8 + $0xaf4] sm:$0xf] }
 0x2be   :  { %v15305_v43 = vor.u32 %v18335_v59, %v15302_v5  ;;  %v18695_v39 = vld [vmem:[#allocation8 + $0x1634] sm:$0xf]  ;;  %v14865_v59 = vor.u32 %v18225_v19, %v14862_v56  ;;  %v15505_v5 = vor.u32 %v18385_v17, %v15502_v32  ;;  %v16582_v19 = vld [vmem:[#allocation8 + $0x1518] sm:$0xf0] }
 0x2bf   :  { %9539 = vmatpush.bf16.msra.mxu0 %v13905_v55  ;;  %9576 = vmatpush.bf16.msra.mxu3 %v15065_v57  ;;  %v14982_v55 = vld [vmem:[#allocation8 + $0x898] sm:$0xf0]  ;;  %v4463_v57 = vpop.f32.mrf.mxu0  ;;  %v16745_v2 = vor.u32 %v18695_v39, %v16742_v9  ;;  %v18655_v9 = vld [vmem:[#allocation8 + $0x14f4] sm:$0xf] }
 0x2c0   :  { %9553 = vmatpush.bf16.msra.mxu1 %v14225_v26  ;;  %v15942_v26 = vld [vmem:[#allocation8 + $0x1018] sm:$0xf0]  ;;  %v4477_v37 = vpop.f32.mrf.mxu1 }
 0x2c1   :  { %9567 = vmatpush.bf16.msra.mxu2 %v14545_v27  ;;  %v15945_v27 = vor.u32 %v18495_v48, %v15942_v26  ;;  %v16702_v48 = vld [vmem:[#allocation8 + $0x1608] sm:$0xf0] }
 0x2c2   :  { %9540 = vmatmul.bf16.vlgmr.msra.gmra.mxu0 %v19439_v36 }
 0x2c3   :  { %9588 = vmatpush.bf16.msrb.mxu0 %v15465_v60  ;;  %9554 = vmatmul.bf16.vlgmr.msra.gmra.mxu1 %v19455_v58  ;;  %v14985_v60 = vor.u32 %v18255_v61, %v14982_v55  ;;  %v18061_v61 = vld [vmem:[#allocation8 + $0x25c] sm:$0xf0]  ;;  %v4450_v55 = vadd.f32 %v19587_v18, %v711_v11 }
 0x2c4   :  { %9602 = vmatpush.bf16.msrb.mxu1 %v15785_v52  ;;  %9577 = vmatpush.bf16.msra.mxu3 %v15025_v14  ;;  %v15582_v52 = vld [vmem:[#allocation8 + $0xd48] sm:$0xf0]  ;;  %v18465_v14 = vld [vmem:[#allocation8 + $0xf04] sm:$0xf]  ;;  %v14189_v50 = vor.u32 %v18061_v61, %v14188_v13 }
 0x2c5   :  { %9616 = vmatpush.bf16.msrb.mxu2 %v16105_v42  ;;  %v14945_v42 = vor.u32 %v18245_v49, %v14942_v25  ;;  %v15585_v20 = vor.u32 %v18405_v21, %v15582_v52  ;;  %v14148_v52 = vld [vmem:[#allocation8 + $0x1e8] sm:$0xf]  ;;  %v18051_v49 = vld [vmem:[#allocation8 + $0x20c] sm:$0xf0]  ;;  %v4452_v25 = vadd.f32 %v4451_v31, %v711_v11  ;;  %v18665_v31 = vld [vmem:[#allocation8 + $0x1544] sm:$0xf] }
 0x2c7   :  { %9589 = vmatpush.bf16.msrb.mxu0 %v15425_v0  ;;  %v18315_v0 = vld [vmem:[#allocation8 + $0xa54] sm:$0xf]  ;;  %v4491_v33 = vpop.f32.mrf.mxu2 }
 0x2c8   :  { %9603 = vmatpush.bf16.msrb.mxu1 %v15745_v47  ;;  %9578 = vmatpush.bf16.msra.mxu3 %v14985_v60  ;;  %v18235_v47 = vld [vmem:[#allocation8 + $0x7d4] sm:$0xf]  ;;  %v15225_v3 = vor.u32 %v18315_v0, %v15222_v29  ;;  %v18765_v60 = vld [vmem:[#allocation8 + $0x1864] sm:$0xf]  ;;  %v16982_v0 = vld [vmem:[#allocation8 + $0x1838] sm:$0xf0]  ;;  %v4479_v29 = vpop.f32.mrf.mxu1 }
 0x2c9   :  { %9617 = vmatpush.bf16.msrb.mxu2 %v16065_v24  ;;  %v15862_v24 = vld [vmem:[#allocation8 + $0xf78] sm:$0xf0]  ;;  %v14905_v62 = vor.u32 %v18235_v47, %v14902_v41  ;;  %v14108_v47 = vld [vmem:[#allocation8 + $0x198] sm:$0xf]  ;;  %v18041_v41 = vld [vmem:[#allocation8 + $0x1bc] sm:$0xf0] }
 0x2ca   :  { %9568 = vmatmul.bf16.vlgmr.msra.gmra.mxu2 %v19521_v15 }
 0x2cb   :  { %9590 = vmatpush.bf16.msrb.mxu0 %v15385_v63  ;;  %v18305_v63 = vld [vmem:[#allocation8 + $0xa04] sm:$0xf] }
 0x2cc   :  { %9604 = vmatpush.bf16.msrb.mxu1 %v15705_v30  ;;  %9579 = vmatpush.bf16.msra.mxu3 %v14945_v42  ;;  %v15545_v30 = vor.u32 %v18395_v53, %v15542_v23  ;;  %v15185_v22 = vor.u32 %v18305_v63, %v15182_v1  ;;  %v4465_v42 = vpop.f32.mrf.mxu0  ;;  %v14149_v53 = vor.u32 %v18051_v49, %v14148_v52  ;;  %v16942_v63 = vld [vmem:[#allocation8 + $0x17e8] sm:$0xf0]  ;;  %v18011_v52 = vld [vmem:[#allocation8 + $0xcc] sm:$0xf0] }
 0x2cd   :  { %9618 = vmatpush.bf16.msrb.mxu2 %v16025_v45  ;;  %v15865_v45 = vor.u32 %v18475_v28, %v15862_v24  ;;  %v16665_v23 = vor.u32 %v18675_v8, %v16662_v4  ;;  %v18745_v24 = vld [vmem:[#allocation8 + $0x17c4] sm:$0xf]  ;;  %v14109_v1 = vor.u32 %v18041_v41, %v14108_v47  ;;  %v13948_v47 = vld [vmem:[#allocation8 + $0x58] sm:$0xf] }
 0x2cf   :  { %9591 = vmatpush.bf16.msrb.mxu0 %v15345_v7  ;;  %v18775_v7 = vld [vmem:[#allocation8 + $0x18b4] sm:$0xf]  ;;  %v4493_v39 = vpop.f32.mrf.mxu2 }
 0x2d0   :  { %9605 = vmatpush.bf16.msrb.mxu1 %v15665_v35  ;;  %v15822_v35 = vld [vmem:[#allocation8 + $0xf28] sm:$0xf0]  ;;  %9580 = vmatpush.bf16.msra.mxu3 %v14905_v62 }
 0x2d1   :  { %9619 = vmatpush.bf16.msrb.mxu2 %v15985_v34  ;;  %v17065_v34 = vor.u32 %v18775_v7, %v17062_v40  ;;  %v15825_v26 = vor.u32 %v18465_v14, %v15822_v35  ;;  %v16902_v7 = vld [vmem:[#allocation8 + $0x1798] sm:$0xf0]  ;;  %v19595_v35 = vld [vmem:[#allocation10] sm:$0xff] }
 0x2d3   :  { %9592 = vmatpush.bf16.msrb.mxu0 %v15305_v43  ;;  %v18685_v43 = vld [vmem:[#allocation8 + $0x15e4] sm:$0xf] }
 0x2d4   :  { %9606 = vmatpush.bf16.msrb.mxu1 %v15625_v10  ;;  %v17022_v10 = vld [vmem:[#allocation8 + $0x1888] sm:$0xf0]  ;;  %9581 = vmatpush.bf16.msra.mxu3 %v14865_v59  ;;  %v16705_v21 = vor.u32 %v18685_v43, %v16702_v48  ;;  %v16585_v59 = vor.u32 %v18655_v9, %v16582_v19  ;;  %v20093_v48 = vperm.slane %v19595_v35, 0  ;;  %v15148_v19 = vld [vmem:[#allocation8 + $0x9b8] sm:$0xf] }
 0x2d5   :  { %9620 = vmatpush.bf16.msrb.mxu2 %v15945_v27  ;;  %v4464_v27 = vadd.f32 %v4463_v57, %v4450_v55  ;;  %v17025_v18 = vor.u32 %v18765_v60, %v17022_v10  ;;  %v14068_v57 = vld [vmem:[#allocation8 + $0x148] sm:$0xf]  ;;  %v16542_v43 = vld [vmem:[#allocation8 + $0x14c8] sm:$0xf0] }
 0x2d6   :  { %v16862_v60 = vld [vmem:[#allocation8 + $0x1748] sm:$0xf0] }
 0x2d7   :  { %9593 = vmatpush.bf16.msrb.mxu0 %v15265_v46  ;;  %v4505_v46 = vpop.f32.mrf.mxu3  ;;  %v4478_v11 = vadd.f32 %v4477_v37, %v4464_v27  ;;  %v16945_v37 = vor.u32 %v18745_v24, %v16942_v63 }
 0x2d8   :  { %9607 = vmatpush.bf16.msrb.mxu1 %v15585_v20  ;;  %v18755_v20 = vld [vmem:[#allocation8 + $0x1814] sm:$0xf] }
 0x2d9   :  { %9621 = vmatpush.bf16.msrb.mxu2 %v15905_v16  ;;  %v4466_v16 = vadd.f32 %v4465_v42, %v4452_v25  ;;  %v16985_v28 = vor.u32 %v18755_v20, %v16982_v0  ;;  %v4492_v17 = vadd.f32 %v4491_v33, %v4478_v11  ;;  %v18715_v42 = vld [vmem:[#allocation8 + $0x16d4] sm:$0xf]  ;;  %v16822_v20 = vld [vmem:[#allocation8 + $0x16f8] sm:$0xf0] }
 0x2da   :  { %v16825_v63 = vor.u32 %v18715_v42, %v16822_v20  ;;  %v15068_v42 = vld [vmem:[#allocation8 + $0x918] sm:$0xf]  ;;  %v18281_v20 = vld [vmem:[#allocation8 + $0x93c] sm:$0xf0] }
 0x2db   :  { %9594 = vmatpush.bf16.msrb.mxu0 %v15225_v3  ;;  %v16622_v3 = vld [vmem:[#allocation8 + $0x1568] sm:$0xf0]  ;;  %v4480_v32 = vadd.f32 %v4479_v29, %v4466_v16  ;;  %v4506_v13 = vadd.f32 %v4505_v46, %v4492_v17  ;;  %v18635_v46 = vld [vmem:[#allocation8 + $0x1454] sm:$0xf]  ;;  %v14828_v17 = vld [vmem:[#allocation8 + $0x738] sm:$0xf] }
 0x2dc   :  { %9608 = vmatpush.bf16.msrb.mxu1 %v15545_v30  ;;  %v16625_v62 = vor.u32 %v18665_v31, %v16622_v3  ;;  %v18031_v30 = vld [vmem:[#allocation8 + $0x16c] sm:$0xf0]  ;;  %v18615_v31 = vld [vmem:[#allocation8 + $0x13b4] sm:$0xf]  ;;  %v16422_v3 = vld [vmem:[#allocation8 + $0x13d8] sm:$0xf0] }
 0x2dd   :  { %9622 = vmatpush.bf16.msrb.mxu2 %v15865_v45  ;;  %v18735_v45 = vld [vmem:[#allocation8 + $0x1774] sm:$0xf]  ;;  %v14069_v14 = vor.u32 %v18031_v30, %v14068_v57  ;;  %v4494_v61 = vadd.f32 %v4493_v39, %v4480_v32  ;;  %v18705_v57 = vld [vmem:[#allocation8 + $0x1684] sm:$0xf]  ;;  %v16782_v30 = vld [vmem:[#allocation8 + $0x16a8] sm:$0xf0] }
 0x2de   :  { %v16905_v55 = vor.u32 %v18735_v45, %v16902_v7  ;;  %v18221_v32 = vld [vmem:[#allocation8 + $0x75c] sm:$0xf0]  ;;  %v16425_v45 = vor.u32 %v18615_v31, %v16422_v3  ;;  %v14708_v31 = vld [vmem:[#allocation8 + $0x648] sm:$0xf]  ;;  %v18191_v3 = vld [vmem:[#allocation8 + $0x66c] sm:$0xf0] }
 0x2df   :  { %9595 = vmatpush.bf16.msrb.mxu0 %v15185_v22  ;;  %v4519_v56 = vpop.f32.mrf.mxu0  ;;  %v4507_v40 = vpop.f32.mrf.mxu3 }
 0x2e0   :  { %9609 = vmatpush.bf16.msrb.mxu1 %v15505_v5  ;;  %v4533_v22 = vpop.f32.mrf.mxu1  ;;  %v14028_v5 = vld [vmem:[#allocation8 + $0xf8] sm:$0xf]  ;;  %v4520_v10 = vadd.f32 %v4519_v56, %v4506_v13  ;;  %v4508_v49 = vadd.f32 %v4507_v40, %v4494_v61  ;;  %v18301_v56 = vld [vmem:[#allocation8 + $0x9dc] sm:$0xf0]  ;;  %v13908_v40 = vld [vmem:[#allocation8 + $0x8] sm:$0xf] }
 0x2e1   :  { %9623 = vmatpush.bf16.msrb.mxu2 %v15825_v26  ;;  %v18725_v26 = vld [vmem:[#allocation8 + $0x1724] sm:$0xf]  ;;  %v16382_v13 = vld [vmem:[#allocation8 + $0x1388] sm:$0xf0]  ;;  %v15468_v61 = vld [vmem:[#allocation8 + $0xc38] sm:$0xf] }
 0x2e2   :  { %9596 = vmatmul.bf16.vlgmr.msrb.gmra.mxu0 %v19527_v12  ;;  %v16865_v27 = vor.u32 %v18725_v26, %v16862_v60  ;;  %v4534_v0 = vadd.f32 %v4533_v22, %v4520_v10  ;;  %v17991_v22 = vld [vmem:[#allocation8 + $0x2c] sm:$0xf0]  ;;  %v15108_v10 = vld [vmem:[#allocation8 + $0x968] sm:$0xf] }
 0x2e3   :  { %9644 = vmatpush.bf16.msra.mxu0 %v16745_v2  ;;  %9610 = vmatmul.bf16.vlgmr.msrb.gmra.mxu1 %v19534_v54  ;;  %v18021_v2 = vld [vmem:[#allocation8 + $0x11c] sm:$0xf0]  ;;  %v18211_v26 = vld [vmem:[#allocation8 + $0x70c] sm:$0xf0]  ;;  %v13909_v60 = vor.u32 %v17991_v22, %v13908_v40 }
 0x2e4   :  { %9658 = vmatpush.bf16.msra.mxu1 %v17065_v34  ;;  %9624 = vmatmul.bf16.vlgmr.msrb.gmra.mxu2 %v19572_v6  ;;  %v18645_v34 = vld [vmem:[#allocation8 + $0x14a4] sm:$0xf]  ;;  %v14029_v33 = vor.u32 %v18021_v2, %v14028_v5  ;;  %v4547_v39 = vmax.f32 %v4534_v0, 0.0  ;;  %v14829_v5 = vor.u32 %v18221_v32, %v14828_v17  ;;  %v16262_v17 = vld [vmem:[#allocation8 + $0x1298] sm:$0xf0] }
 0x2e5   :  { %9672 = vmatpush.bf16.msra.mxu2 %v14189_v50  ;;  %v16545_v50 = vor.u32 %v18645_v34, %v16542_v43  ;;  %v18605_v2 = vld [vmem:[#allocation8 + $0x1364] sm:$0xf]  ;;  %v18381_v34 = vld [vmem:[#allocation8 + $0xc5c] sm:$0xf0]  ;;  %v14788_v43 = vld [vmem:[#allocation8 + $0x6e8] sm:$0xf] }
 0x2e6   :  { %v15348_v32 = vld [vmem:[#allocation8 + $0xb48] sm:$0xf]  ;;  %v18261_v40 = vld [vmem:[#allocation8 + $0x89c] sm:$0xf0] }
 0x2e7   :  { %9645 = vmatpush.bf16.msra.mxu0 %v16705_v21  ;;  %v13988_v21 = vld [vmem:[#allocation8 + $0xa8] sm:$0xf]  ;;  %v9401_v25 = vpop.f32.mrf.mxu2  ;;  %v4521_v4 = vpop.f32.mrf.mxu0 }
 0x2e8   :  { %9659 = vmatpush.bf16.msra.mxu1 %v17025_v18  ;;  %v16502_v18 = vld [vmem:[#allocation8 + $0x1478] sm:$0xf0]  ;;  %v9402_v8 = vadd.f32 %v9401_v25, %v20093_v48  ;;  %v9415_v29 = vpop.f32.mrf.mxu3  ;;  %v4535_v11 = vpop.f32.mrf.mxu1 }
 0x2e9   :  { %9673 = vmatpush.bf16.msra.mxu2 %v14149_v53  ;;  %v4522_v53 = vadd.f32 %v4521_v4, %v4508_v49  ;;  %v16505_v16 = vor.u32 %v18635_v46, %v16502_v18  ;;  %v18595_v49 = vld [vmem:[#allocation8 + $0x1314] sm:$0xf]  ;;  %v16342_v25 = vld [vmem:[#allocation8 + $0x1338] sm:$0xf0]  ;;  %v18371_v18 = vld [vmem:[#allocation8 + $0xc0c] sm:$0xf0] }
 0x2ea   :  { %v19600_v41 = vadd.f32 %v9415_v29, %v9402_v8  ;;  %v14748_v8 = vld [vmem:[#allocation8 + $0x698] sm:$0xf]  ;;  %v18201_v4 = vld [vmem:[#allocation8 + $0x6bc] sm:$0xf0]  ;;  %v16345_v0 = vor.u32 %v18595_v49, %v16342_v25 }
 0x2eb   :  { %9646 = vmatpush.bf16.msra.mxu0 %v16665_v23  ;;  %v13989_v23 = vor.u32 %v18011_v52, %v13988_v21  ;;  %v4536_v24 = vadd.f32 %v4535_v11, %v4522_v53  ;;  %v15469_v21 = vor.u32 %v18381_v34, %v15468_v61  ;;  %v14789_v52 = vor.u32 %v18211_v26, %v14788_v43  ;;  %v15388_v11 = vld [vmem:[#allocation8 + $0xb98] sm:$0xf]  ;;  %v16222_v34 = vld [vmem:[#allocation8 + $0x1248] sm:$0xf0] }
 0x2ec   :  { %9660 = vmatpush.bf16.msra.mxu1 %v16985_v28  ;;  %v18001_v28 = vld [vmem:[#allocation8 + $0x7c] sm:$0xf0]  ;;  %v14749_v53 = vor.u32 %v18201_v4, %v14748_v8  ;;  %v15308_v43 = vld [vmem:[#allocation8 + $0xaf8] sm:$0xf] }
 0x2ed   :  { %9674 = vmatpush.bf16.msra.mxu2 %v14109_v1  ;;  %v18625_v1 = vld [vmem:[#allocation8 + $0x1404] sm:$0xf]  ;;  %v13949_v9 = vor.u32 %v18001_v28, %v13948_v47  ;;  %v16302_v47 = vld [vmem:[#allocation8 + $0x12e8] sm:$0xf0]  ;;  %v18361_v28 = vld [vmem:[#allocation8 + $0xbbc] sm:$0xf0] }
 0x2ef   :  { %9647 = vmatpush.bf16.msra.mxu0 %v16625_v62  ;;  %v16462_v62 = vld [vmem:[#allocation8 + $0x1428] sm:$0xf0] }
 0x2f0   :  { %9661 = vmatpush.bf16.msra.mxu1 %v16945_v37  ;;  %v4557_v37 = vmax.f32 %v4536_v24, 0.0  ;;  %v16465_v7 = vor.u32 %v18625_v1, %v16462_v62  ;;  %v15028_v24 = vld [vmem:[#allocation8 + $0x8c8] sm:$0xf]  ;;  %v15389_v62 = vor.u32 %v18361_v28, %v15388_v11  ;;  %v19610_v22 = vpop.f32.mrf.mxu3  ;;  %v16142_v28 = vld [vmem:[#allocation8 + $0x11a8] sm:$0xf0] }
 0x2f1   :  { %9675 = vmatpush.bf16.msra.mxu2 %v14069_v14 }
 0x2f2   :  { %v19602_v14 = vpack.c.bf16 %v4557_v37, %v4547_v39  ;;  %v19608_v39 = vpop.f32.mrf.mxu2 }
 0x2f3   :  { %9648 = vmatpush.bf16.msra.mxu0 %v16585_v59  ;;  %v16785_v59 = vor.u32 %v18705_v57, %v16782_v30  ;;  %v14709_v57 = vor.u32 %v18191_v3, %v14708_v31  ;;  %v18575_v30 = vld [vmem:[#allocation8 + $0x1274] sm:$0xf] }
 0x2f4   :  { %9662 = vmatpush.bf16.msra.mxu1 %v16905_v55  ;;  %v15149_v55 = vor.u32 %v18301_v56, %v15148_v19  ;;  %9526 = vmatmul.bf16.vlgmr.msrb.gmra.mxu3 %v19602_v14  ;;  %v14668_v19 = vld [vmem:[#allocation8 + $0x5f8] sm:$0xf]  ;;  %v18181_v56 = vld [vmem:[#allocation8 + $0x61c] sm:$0xf0] }
 0x2f5   :  { %9676 = vmatpush.bf16.msra.mxu2 %v14029_v33  ;;  %v18291_v33 = vld [vmem:[#allocation8 + $0x98c] sm:$0xf0]  ;;  %9630 = vmatpush.bf16.msrb.mxu3 %v16425_v45  ;;  %v14669_v61 = vor.u32 %v18181_v56, %v14668_v19  ;;  %v16108_v19 = vld [vmem:[#allocation8 + $0x1138] sm:$0xf] }
 0x2f6   :  { %v15109_v46 = vor.u32 %v18291_v33, %v15108_v10  ;;  %v18341_v10 = vld [vmem:[#allocation8 + $0xb1c] sm:$0xf0]  ;;  %v14628_v33 = vld [vmem:[#allocation8 + $0x5a8] sm:$0xf] }
 0x2f7   :  { %9649 = vmatpush.bf16.msra.mxu0 %v16545_v50  ;;  %v16385_v50 = vor.u32 %v18605_v2, %v16382_v13  ;;  %v15309_v49 = vor.u32 %v18341_v10, %v15308_v43  ;;  %v16748_v10 = vld [vmem:[#allocation8 + $0x1638] sm:$0xf] }
 0x2f8   :  { %9663 = vmatpush.bf16.msra.mxu1 %v16865_v27  ;;  %v15428_v27 = vld [vmem:[#allocation8 + $0xbe8] sm:$0xf] }
 0x2f9   :  { %9677 = vmatpush.bf16.msra.mxu2 %v13989_v23  ;;  %9631 = vmatpush.bf16.msrb.mxu3 %v16385_v50  ;;  %v15429_v29 = vor.u32 %v18371_v18, %v15428_v27  ;;  %v18585_v23 = vld [vmem:[#allocation8 + $0x12c4] sm:$0xf]  ;;  %v18171_v50 = vld [vmem:[#allocation8 + $0x5cc] sm:$0xf0]  ;;  %v18555_v27 = vld [vmem:[#allocation8 + $0x11d4] sm:$0xf] }
 0x2fa   :  { %v16305_v1 = vor.u32 %v18585_v23, %v16302_v47  ;;  %v14629_v25 = vor.u32 %v18171_v50, %v14628_v33  ;;  %v15268_v18 = vld [vmem:[#allocation8 + $0xaa8] sm:$0xf]  ;;  %v18241_v23 = vld [vmem:[#allocation8 + $0x7fc] sm:$0xf0] }
 0x2fb   :  { %9650 = vmatpush.bf16.msra.mxu0 %v16505_v16  ;;  %v15069_v16 = vor.u32 %v18281_v20, %v15068_v42  ;;  %v18331_v42 = vld [vmem:[#allocation8 + $0xacc] sm:$0xf0]  ;;  %v14588_v20 = vld [vmem:[#allocation8 + $0x558] sm:$0xf]  ;;  %v18701_v33 = vld [vmem:[#allocation8 + $0x165c] sm:$0xf0] }
 0x2fc   :  { %9664 = vmatpush.bf16.msra.mxu1 %v16825_v63  ;;  %v18271_v63 = vld [vmem:[#allocation8 + $0x8ec] sm:$0xf0]  ;;  %v15269_v3 = vor.u32 %v18331_v42, %v15268_v18  ;;  %v16068_v50 = vld [vmem:[#allocation8 + $0x10e8] sm:$0xf]  ;;  %v14428_v18 = vld [vmem:[#allocation8 + $0x418] sm:$0xf] }
 0x2fd   :  { %9678 = vmatpush.bf16.msra.mxu2 %v13949_v9  ;;  %9632 = vmatpush.bf16.msrb.mxu3 %v16345_v0  ;;  %v15029_v37 = vor.u32 %v18271_v63, %v15028_v24  ;;  %v18351_v9 = vld [vmem:[#allocation8 + $0xb6c] sm:$0xf0]  ;;  %v18161_v0 = vld [vmem:[#allocation8 + $0x57c] sm:$0xf0]  ;;  %v15228_v63 = vld [vmem:[#allocation8 + $0xa58] sm:$0xf] }
 0x2fe   :  { %v15349_v13 = vor.u32 %v18351_v9, %v15348_v32  ;;  %v14589_v24 = vor.u32 %v18161_v0, %v14588_v20  ;;  %v18151_v32 = vld [vmem:[#allocation8 + $0x52c] sm:$0xf0]  ;;  %v16028_v0 = vld [vmem:[#allocation8 + $0x1098] sm:$0xf] }
 0x2ff   :  { %9651 = vmatpush.bf16.msra.mxu0 %v16465_v7  ;;  %v9429_v45 = vpop.f32.mrf.mxu0  ;;  %v14988_v7 = vld [vmem:[#allocation8 + $0x878] sm:$0xf]  ;;  %v18231_v9 = vld [vmem:[#allocation8 + $0x7ac] sm:$0xf0] }
 0x300   :  { %9665 = vmatpush.bf16.msra.mxu1 %v16785_v59  ;;  %v9430_v59 = vadd.f32 %v9429_v45, %v19600_v41  ;;  %v9443_v2 = vpop.f32.mrf.mxu1  ;;  %v18251_v41 = vld [vmem:[#allocation8 + $0x84c] sm:$0xf0]  ;;  %v18541_v45 = vld [vmem:[#allocation8 + $0x115c] sm:$0xf0] }
 0x301   :  { %9679 = vmatpush.bf16.msra.mxu2 %v13909_v60  ;;  %9633 = vmatpush.bf16.msrb.mxu3 %v16305_v1  ;;  %v14989_v60 = vor.u32 %v18261_v40, %v14988_v7  ;;  %v18321_v1 = vld [vmem:[#allocation8 + $0xa7c] sm:$0xf0]  ;;  %v16428_v7 = vld [vmem:[#allocation8 + $0x13b8] sm:$0xf]  ;;  %v18691_v20 = vld [vmem:[#allocation8 + $0x160c] sm:$0xf0] }
 0x302   :  { %9652 = vmatmul.bf16.vlgmr.msra.gmra.mxu0 %v19582_v51  ;;  %v9444_v26 = vadd.f32 %v9443_v2, %v9430_v59  ;;  %v18621_v40 = vld [vmem:[#allocation8 + $0x13dc] sm:$0xf0]  ;;  %v15229_v59 = vor.u32 %v18321_v1, %v15228_v63  ;;  %v18111_v63 = vld [vmem:[#allocation8 + $0x3ec] sm:$0xf0]  ;;  %v16668_v1 = vld [vmem:[#allocation8 + $0x1598] sm:$0xf] }
 0x303   :  { %9700 = vmatpush.bf16.msrb.mxu0 %v14829_v5  ;;  %9666 = vmatmul.bf16.vlgmr.msra.gmra.mxu1 %v19602_v14  ;;  %v16265_v5 = vor.u32 %v18575_v30, %v16262_v17  ;;  %v18141_v30 = vld [vmem:[#allocation8 + $0x4dc] sm:$0xf0]  ;;  %v14548_v17 = vld [vmem:[#allocation8 + $0x508] sm:$0xf]  ;;  %v16429_v43 = vor.u32 %v18621_v40, %v16428_v7 }
 0x304   :  { %9714 = vmatpush.bf16.msrb.mxu1 %v15149_v55  ;;  %9680 = vmatmul.bf16.vlgmr.msra.gmra.mxu2 %v19439_v36  ;;  %v18565_v55 = vld [vmem:[#allocation8 + $0x1224] sm:$0xf]  ;;  %v14549_v2 = vor.u32 %v18151_v32, %v14548_v17  ;;  %v18511_v17 = vld [vmem:[#allocation8 + $0x106c] sm:$0xf0]  ;;  %v16308_v32 = vld [vmem:[#allocation8 + $0x12c8] sm:$0xf] }
 0x305   :  { %9728 = vmatpush.bf16.msrb.mxu2 %v15469_v21  ;;  %9582 = vmatmul.bf16.vlgmr.msra.gmra.mxu3 %v19523_v38  ;;  %v14948_v21 = vld [vmem:[#allocation8 + $0x828] sm:$0xf]  ;;  %v18101_v7 = vld [vmem:[#allocation8 + $0x39c] sm:$0xf0] }
 0x306   :  { %9634 = vmatpush.bf16.msrb.mxu3 %v16265_v5  ;;  %v14949_v4 = vor.u32 %v18251_v41, %v14948_v21  ;;  %v18531_v21 = vld [vmem:[#allocation8 + $0x110c] sm:$0xf0]  ;;  %v16388_v41 = vld [vmem:[#allocation8 + $0x1368] sm:$0xf] }
 0x307   :  { %9701 = vmatpush.bf16.msrb.mxu0 %v14789_v52  ;;  %v16225_v52 = vor.u32 %v18565_v55, %v16222_v34  ;;  %v9457_v8 = vpop.f32.mrf.mxu2  ;;  %v18311_v55 = vld [vmem:[#allocation8 + $0xa2c] sm:$0xf0]  ;;  %v16109_v34 = vor.u32 %v18541_v45, %v16108_v19  ;;  %v14348_v45 = vld [vmem:[#allocation8 + $0x378] sm:$0xf]  ;;  %v16628_v40 = vld [vmem:[#allocation8 + $0x1548] sm:$0xf] }
 0x308   :  { %9715 = vmatpush.bf16.msrb.mxu1 %v15109_v46  ;;  %v16182_v46 = vld [vmem:[#allocation8 + $0x11f8] sm:$0xf0]  ;;  %v9471_v47 = vpop.f32.mrf.mxu3 }
 0x309   :  { %9729 = vmatpush.bf16.msrb.mxu2 %v15429_v29  ;;  %v9458_v29 = vadd.f32 %v9457_v8, %v9444_v26  ;;  %v16185_v11 = vor.u32 %v18555_v27, %v16182_v46  ;;  %v14468_v26 = vld [vmem:[#allocation8 + $0x468] sm:$0xf]  ;;  %v16749_v27 = vor.u32 %v18701_v33, %v16748_v10  ;;  %v16069_v46 = vor.u32 %v18531_v21, %v16068_v50  ;;  %v18121_v8 = vld [vmem:[#allocation8 + $0x43c] sm:$0xf0]  ;;  %v18091_v21 = vld [vmem:[#allocation8 + $0x34c] sm:$0xf0] }
 0x30a   :  { %9635 = vmatpush.bf16.msrb.mxu3 %v16225_v52  ;;  %v18611_v52 = vld [vmem:[#allocation8 + $0x138c] sm:$0xf0]  ;;  %v14308_v50 = vld [vmem:[#allocation8 + $0x328] sm:$0xf] }
 0x30b   :  { %9702 = vmatpush.bf16.msrb.mxu0 %v14749_v53  ;;  %v14908_v53 = vld [vmem:[#allocation8 + $0x7d8] sm:$0xf]  ;;  %v19614_v31 = vadd.f32 %v9471_v47, %v9458_v29  ;;  %v16389_v42 = vor.u32 %v18611_v52, %v16388_v41  ;;  %v18521_v29 = vld [vmem:[#allocation8 + $0x10bc] sm:$0xf0] }
 0x30c   :  { %9716 = vmatpush.bf16.msrb.mxu1 %v15069_v16  ;;  %v18545_v16 = vld [vmem:[#allocation8 + $0x1184] sm:$0xf]  ;;  %v18601_v47 = vld [vmem:[#allocation8 + $0x133c] sm:$0xf0]  ;;  %v16588_v41 = vld [vmem:[#allocation8 + $0x14f8] sm:$0xf] }
 0x30d   :  { %9730 = vmatpush.bf16.msrb.mxu2 %v15389_v62  ;;  %v14508_v62 = vld [vmem:[#allocation8 + $0x4b8] sm:$0xf]  ;;  %v16145_v56 = vor.u32 %v18545_v16, %v16142_v28  ;;  %v19621_v16 = vpop.f32.mrf.mxu1 }
 0x30e   :  { %9636 = vmatpush.bf16.msrb.mxu3 %v16185_v11  ;;  %v14509_v5 = vor.u32 %v18141_v30, %v14508_v62  ;;  %v14429_v11 = vor.u32 %v18121_v8, %v14428_v18  ;;  %v15988_v30 = vld [vmem:[#allocation8 + $0x1048] sm:$0xf]  ;;  %v18571_v8 = vld [vmem:[#allocation8 + $0x124c] sm:$0xf0] }
 0x30f   :  { %9703 = vmatpush.bf16.msrb.mxu0 %v14709_v57  ;;  %v14909_v57 = vor.u32 %v18241_v23, %v14908_v53  ;;  %v19617_v53 = vpop.f32.mrf.mxu0  ;;  %v16348_v23 = vld [vmem:[#allocation8 + $0x1318] sm:$0xf]  ;;  %v16228_v18 = vld [vmem:[#allocation8 + $0x1228] sm:$0xf] }
 0x310   :  { %9717 = vmatpush.bf16.msrb.mxu1 %v15029_v37  ;;  %v14868_v37 = vld [vmem:[#allocation8 + $0x788] sm:$0xf]  ;;  %v16349_v62 = vor.u32 %v18601_v47, %v16348_v23  ;;  %v16229_v23 = vor.u32 %v18571_v8, %v16228_v18  ;;  %v18651_v47 = vld [vmem:[#allocation8 + $0x14cc] sm:$0xf0]  ;;  %v18126_v18 = vld [vmem:[#allocation8 + $0x46c] sm:$0xf] }
 0x311   :  { %9731 = vmatpush.bf16.msrb.mxu2 %v15349_v13  ;;  %v14869_v13 = vor.u32 %v18231_v9, %v14868_v37  ;;  %v18591_v37 = vld [vmem:[#allocation8 + $0x12ec] sm:$0xf0]  ;;  %v14470_v8 = vld [vmem:[#allocation8 + $0x490] sm:$0xf0] }
 0x312   :  { %9637 = vmatpush.bf16.msrb.mxu3 %v16145_v56  ;;  %v15989_v56 = vor.u32 %v18511_v17, %v15988_v30  ;;  %v16508_v17 = vld [vmem:[#allocation8 + $0x1458] sm:$0xf] }
 0x313   :  { %9704 = vmatpush.bf16.msrb.mxu0 %v14669_v61  ;;  %v15188_v61 = vld [vmem:[#allocation8 + $0xa08] sm:$0xf] }
 0x314   :  { %9718 = vmatpush.bf16.msrb.mxu1 %v14989_v60  ;;  %v18131_v60 = vld [vmem:[#allocation8 + $0x48c] sm:$0xf0] }
 0x315   :  { %9732 = vmatpush.bf16.msrb.mxu2 %v15309_v49  ;;  %v15189_v49 = vor.u32 %v18311_v55, %v15188_v61  ;;  %9638 = vmatmul.bf16.vlgmr.msrb.gmra.mxu3 %v19574_v44  ;;  %v16268_v55 = vld [vmem:[#allocation8 + $0x1278] sm:$0xf] }
 0x316   :  { %9686 = vmatpush.bf16.msra.mxu3 %v14509_v5  ;;  %v18671_v5 = vld [vmem:[#allocation8 + $0x156c] sm:$0xf0] }
 0x317   :  { %9705 = vmatpush.bf16.msrb.mxu0 %v14629_v25  ;;  %v14469_v25 = vor.u32 %v18131_v60, %v14468_v26  ;;  %v14349_v26 = vor.u32 %v18101_v7, %v14348_v45  ;;  %v16629_v10 = vor.u32 %v18671_v5, %v16628_v40  ;;  %v18471_v45 = vld [vmem:[#allocation8 + $0xf2c] sm:$0xf0]  ;;  %v16148_v7 = vld [vmem:[#allocation8 + $0x1188] sm:$0xf] }
 0x318   :  { %9719 = vmatpush.bf16.msrb.mxu1 %v14949_v4  ;;  %v16708_v4 = vld [vmem:[#allocation8 + $0x15e8] sm:$0xf]  ;;  %v18551_v40 = vld [vmem:[#allocation8 + $0x11ac] sm:$0xf0] }
 0x319   :  { %9733 = vmatpush.bf16.msrb.mxu2 %v15269_v3  ;;  %v16709_v28 = vor.u32 %v18691_v20, %v16708_v4  ;;  %v16029_v3 = vor.u32 %v18521_v29, %v16028_v0  ;;  %v14268_v20 = vld [vmem:[#allocation8 + $0x2d8] sm:$0xf]  ;;  %v18081_v0 = vld [vmem:[#allocation8 + $0x2fc] sm:$0xf0]  ;;  %v16548_v29 = vld [vmem:[#allocation8 + $0x14a8] sm:$0xf] }
 0x31a   :  { %9687 = vmatpush.bf16.msra.mxu3 %v14469_v25  ;;  %v18661_v25 = vld [vmem:[#allocation8 + $0x151c] sm:$0xf0] }
 0x31b   :  { %9706 = vmatpush.bf16.msrb.mxu0 %v14589_v24  ;;  %v14388_v24 = vld [vmem:[#allocation8 + $0x3c8] sm:$0xf]  ;;  %v16589_v4 = vor.u32 %v18661_v25, %v16588_v41  ;;  %v18451_v41 = vld [vmem:[#allocation8 + $0xe8c] sm:$0xf0]  ;;  %v14830_v25 = vld [vmem:[#allocation8 + $0x760] sm:$0xf0] }
 0x31c   :  { %9720 = vmatpush.bf16.msrb.mxu1 %v14909_v57  ;;  %v18681_v57 = vld [vmem:[#allocation8 + $0x15bc] sm:$0xf0]  ;;  %v14389_v9 = vor.u32 %v18111_v63, %v14388_v24  ;;  %v14269_v63 = vor.u32 %v18081_v0, %v14268_v20  ;;  %v15708_v0 = vld [vmem:[#allocation8 + $0xe18] sm:$0xf] }
 0x31d   :  { %9734 = vmatpush.bf16.msrb.mxu2 %v15229_v59  ;;  %v16669_v19 = vor.u32 %v18681_v57, %v16668_v1  ;;  %v16309_v59 = vor.u32 %v18591_v37, %v16308_v32  ;;  %v18561_v24 = vld [vmem:[#allocation8 + $0x11fc] sm:$0xf0]  ;;  %v14228_v1 = vld [vmem:[#allocation8 + $0x288] sm:$0xf]  ;;  %v16549_v57 = vor.u32 %v18651_v47, %v16548_v29  ;;  %v15788_v37 = vld [vmem:[#allocation8 + $0xeb8] sm:$0xf] }
 0x31e   :  { %9688 = vmatpush.bf16.msra.mxu3 %v14429_v11  ;;  %v15868_v11 = vld [vmem:[#allocation8 + $0xf58] sm:$0xf]  ;;  %v18641_v32 = vld [vmem:[#allocation8 + $0x147c] sm:$0xf0] }
 0x31f   :  { %9707 = vmatpush.bf16.msrb.mxu0 %v14549_v2  ;;  %v15948_v2 = vld [vmem:[#allocation8 + $0xff8] sm:$0xf]  ;;  %v9485_v61 = vpop.f32.mrf.mxu0  ;;  %v18441_v29 = vld [vmem:[#allocation8 + $0xe3c] sm:$0xf0] }
 0x320   :  { %9721 = vmatpush.bf16.msrb.mxu1 %v14869_v13  ;;  %v18501_v13 = vld [vmem:[#allocation8 + $0x101c] sm:$0xf0]  ;;  %v9499_v60 = vpop.f32.mrf.mxu1 }
 0x321   :  { %9735 = vmatpush.bf16.msrb.mxu2 %v15189_v49  ;;  %v15949_v33 = vor.u32 %v18501_v13, %v15948_v2  ;;  %v14190_v2 = vld [vmem:[#allocation8 + $0x260] sm:$0xf0]  ;;  %v18136_v13 = vld [vmem:[#allocation8 + $0x4bc] sm:$0xf] }
 0x322   :  { %9708 = vmatmul.bf16.vlgmr.msrb.gmra.mxu0 %v19521_v15  ;;  %9689 = vmatpush.bf16.msra.mxu3 %v14389_v9 }
 0x323   :  { %9756 = vmatpush.bf16.msra.mxu0 %v16109_v34  ;;  %9722 = vmatmul.bf16.vlgmr.msrb.gmra.mxu1 %v19523_v38  ;;  %v18581_v34 = vld [vmem:[#allocation8 + $0x129c] sm:$0xf0] }
 0x324   :  { %9770 = vmatpush.bf16.msra.mxu1 %v16429_v43  ;;  %9736 = vmatmul.bf16.vlgmr.msrb.gmra.mxu2 %v19527_v12  ;;  %v9486_v43 = vadd.f32 %v9485_v61, %v19614_v31  ;;  %v16269_v49 = vor.u32 %v18581_v34, %v16268_v55  ;;  %v14309_v31 = vor.u32 %v18091_v21, %v14308_v50  ;;  %v14510_v61 = vld [vmem:[#allocation8 + $0x4e0] sm:$0xf0]  ;;  %v15748_v21 = vld [vmem:[#allocation8 + $0xe68] sm:$0xf] }
 0x325   :  { %9784 = vmatpush.bf16.msra.mxu2 %v16749_v27  ;;  %v15908_v27 = vld [vmem:[#allocation8 + $0xfa8] sm:$0xf]  ;;  %v16509_v55 = vor.u32 %v18641_v32, %v16508_v17  ;;  %v14513_v50 = vor.u32 %v18136_v13, %v14510_v61 }
 0x326   :  { %v19625_v52 = vadd.f32 %v9499_v60, %v9486_v43  ;;  %9690 = vmatpush.bf16.msra.mxu3 %v14349_v26  ;;  %v16149_v26 = vor.u32 %v18551_v40, %v16148_v7  ;;  %v16468_v60 = vld [vmem:[#allocation8 + $0x1408] sm:$0xf]  ;;  %v14070_v7 = vld [vmem:[#allocation8 + $0x170] sm:$0xf0]  ;;  %v19634_v40 = vpop.f32.mrf.mxu2 }
 0x327   :  { %9757 = vmatpush.bf16.msra.mxu0 %v16069_v46  ;;  %v18491_v46 = vld [vmem:[#allocation8 + $0xfcc] sm:$0xf0]  ;;  %v19627_v47 = vpop.f32.mrf.mxu0  ;;  %v15668_v32 = vld [vmem:[#allocation8 + $0xdc8] sm:$0xf] }
 0x328   :  { %9771 = vmatpush.bf16.msra.mxu1 %v16389_v42  ;;  %v15909_v42 = vor.u32 %v18491_v46, %v15908_v27  ;;  %v18046_v27 = vld [vmem:[#allocation8 + $0x1ec] sm:$0xf]  ;;  %v14150_v46 = vld [vmem:[#allocation8 + $0x210] sm:$0xf0] }
 0x329   :  { %9785 = vmatpush.bf16.msra.mxu2 %v16709_v28  ;;  %v18481_v28 = vld [vmem:[#allocation8 + $0xf7c] sm:$0xf0]  ;;  %v14153_v20 = vor.u32 %v18046_v27, %v14150_v46 }
 0x32a   :  { %9691 = vmatpush.bf16.msra.mxu3 %v14309_v31  ;;  %v15869_v30 = vor.u32 %v18481_v28, %v15868_v11  ;;  %v14473_v11 = vor.u32 %v18126_v18, %v14470_v8  ;;  %v14790_v28 = vld [vmem:[#allocation8 + $0x710] sm:$0xf0] }
 0x32b   :  { %9758 = vmatpush.bf16.msra.mxu0 %v16029_v3  ;;  %v16188_v3 = vld [vmem:[#allocation8 + $0x11d8] sm:$0xf] }
 0x32c   :  { %9772 = vmatpush.bf16.msra.mxu1 %v16349_v62  ;;  %v18071_v62 = vld [vmem:[#allocation8 + $0x2ac] sm:$0xf0]  ;;  %v16189_v9 = vor.u32 %v18561_v24, %v16188_v3  ;;  %v18036_v3 = vld [vmem:[#allocation8 + $0x19c] sm:$0xf]  ;;  %v14110_v24 = vld [vmem:[#allocation8 + $0x1c0] sm:$0xf0] }
 0x32d   :  { %9786 = vmatpush.bf16.msra.mxu2 %v16669_v19  ;;  %v18461_v19 = vld [vmem:[#allocation8 + $0xedc] sm:$0xf0]  ;;  %v14229_v5 = vor.u32 %v18071_v62, %v14228_v1  ;;  %v14430_v1 = vld [vmem:[#allocation8 + $0x440] sm:$0xf0]  ;;  %v19632_v62 = vpop.f32.mrf.mxu1  ;;  %v14113_v17 = vor.u32 %v18036_v3, %v14110_v24  ;;  %v18086_v3 = vld [vmem:[#allocation8 + $0x32c] sm:$0xf] }
 0x32e   :  { %9692 = vmatpush.bf16.msra.mxu3 %v14269_v63  ;;  %v15789_v34 = vor.u32 %v18461_v19, %v15788_v37  ;;  %v18116_v63 = vld [vmem:[#allocation8 + $0x41c] sm:$0xf]  ;;  %v18431_v37 = vld [vmem:[#allocation8 + $0xdec] sm:$0xf0]  ;;  %v14310_v24 = vld [vmem:[#allocation8 + $0x350] sm:$0xf0] }
 0x32f   :  { %9759 = vmatpush.bf16.msra.mxu0 %v15989_v56  ;;  %v15828_v56 = vld [vmem:[#allocation8 + $0xf08] sm:$0xf]  ;;  %v14433_v19 = vor.u32 %v18116_v63, %v14430_v1  ;;  %v15669_v13 = vor.u32 %v18431_v37, %v15668_v32  ;;  %v18401_v32 = vld [vmem:[#allocation8 + $0xcfc] sm:$0xf0]  ;;  %v18166_v37 = vld [vmem:[#allocation8 + $0x5ac] sm:$0xf] }
 0x330   :  { %9773 = vmatpush.bf16.msra.mxu1 %v16309_v59  ;;  %v18056_v59 = vld [vmem:[#allocation8 + $0x23c] sm:$0xf]  ;;  %v15829_v43 = vor.u32 %v18471_v45, %v15828_v56  ;;  %v14750_v56 = vld [vmem:[#allocation8 + $0x6c0] sm:$0xf0]  ;;  %v18026_v45 = vld [vmem:[#allocation8 + $0x14c] sm:$0xf] }
 0x331   :  { %9787 = vmatpush.bf16.msra.mxu2 %v16629_v10  ;;  %v18631_v10 = vld [vmem:[#allocation8 + $0x142c] sm:$0xf0] }
 0x332   :  { %9693 = vmatpush.bf16.msra.mxu3 %v14229_v5  ;;  %v16469_v31 = vor.u32 %v18631_v10, %v16468_v60  ;;  %v18106_v5 = vld [vmem:[#allocation8 + $0x3cc] sm:$0xf] }
 0x333   :  { %9760 = vmatpush.bf16.msra.mxu0 %v15949_v33  ;;  %v14193_v33 = vor.u32 %v18056_v59, %v14190_v2  ;;  %v20092_v59 = vperm.slane %v19595_v35, 1  ;;  %v14390_v2 = vld [vmem:[#allocation8 + $0x3f0] sm:$0xf0] }
 0x334   :  { %9774 = vmatpush.bf16.msra.mxu1 %v16269_v49  ;;  %v18216_v49 = vld [vmem:[#allocation8 + $0x73c] sm:$0xf]  ;;  %v14393_v10 = vor.u32 %v18106_v5, %v14390_v2  ;;  %v14270_v5 = vld [vmem:[#allocation8 + $0x300] sm:$0xf0] }
 0x335   :  { %9788 = vmatpush.bf16.msra.mxu2 %v16589_v4  ;;  %v15749_v4 = vor.u32 %v18451_v41, %v15748_v21  ;;  %9694 = vmatmul.bf16.vlgmr.msra.gmra.mxu3 %v19455_v58  ;;  %v14030_v21 = vld [vmem:[#allocation8 + $0x120] sm:$0xf0] }
 0x336   :  { %9742 = vmatpush.bf16.msrb.mxu3 %v15789_v34  ;;  %v15628_v34 = vld [vmem:[#allocation8 + $0xd78] sm:$0xf] }
 0x337   :  { %9761 = vmatpush.bf16.msra.mxu0 %v15909_v42  ;;  %v14833_v42 = vor.u32 %v18216_v49, %v14830_v25  ;;  %v18096_v49 = vld [vmem:[#allocation8 + $0x37c] sm:$0xf]  ;;  %v14350_v25 = vld [vmem:[#allocation8 + $0x3a0] sm:$0xf0] }
 0x338   :  { %9775 = vmatpush.bf16.msra.mxu1 %v16229_v23  ;;  %v18206_v23 = vld [vmem:[#allocation8 + $0x6ec] sm:$0xf] }
 0x339   :  { %9789 = vmatpush.bf16.msra.mxu2 %v16549_v57  ;;  %v15709_v57 = vor.u32 %v18441_v29, %v15708_v0  ;;  %v14353_v0 = vor.u32 %v18096_v49, %v14350_v25  ;;  %v14670_v29 = vld [vmem:[#allocation8 + $0x620] sm:$0xf0]  ;;  %v14230_v49 = vld [vmem:[#allocation8 + $0x2b0] sm:$0xf0]  ;;  %v18376_v25 = vld [vmem:[#allocation8 + $0xc3c] sm:$0xf] }
 0x33a   :  { %9743 = vmatpush.bf16.msrb.mxu3 %v15749_v4  ;;  %v15588_v4 = vld [vmem:[#allocation8 + $0xd28] sm:$0xf] }
 0x33b   :  { %9762 = vmatpush.bf16.msra.mxu0 %v15869_v30  ;;  %v14793_v30 = vor.u32 %v18206_v23, %v14790_v28  ;;  %v18006_v23 = vld [vmem:[#allocation8 + $0xac] sm:$0xf]  ;;  %v9513_v28 = vpop.f32.mrf.mxu2 }
 0x33c   :  { %9776 = vmatpush.bf16.msra.mxu1 %v16189_v9  ;;  %v18196_v9 = vld [vmem:[#allocation8 + $0x69c] sm:$0xf]  ;;  %v19643_v63 = vadd.f32 %v9513_v28, %v19625_v52  ;;  %v18391_v52 = vld [vmem:[#allocation8 + $0xcac] sm:$0xf0] }
 0x33d   :  { %9790 = vmatpush.bf16.msra.mxu2 %v16509_v55  ;;  %v14753_v61 = vor.u32 %v18196_v9, %v14750_v56  ;;  %v14073_v55 = vor.u32 %v18026_v45, %v14070_v7  ;;  %v14313_v9 = vor.u32 %v18086_v3, %v14310_v24  ;;  %v17996_v56 = vld [vmem:[#allocation8 + $0x5c] sm:$0xf]  ;;  %v13950_v45 = vld [vmem:[#allocation8 + $0x80] sm:$0xf0]  ;;  %v17028_v3 = vld [vmem:[#allocation8 + $0x1868] sm:$0xf] }
 0x33e   :  { %9744 = vmatpush.bf16.msrb.mxu3 %v15709_v57  ;;  %v18076_v7 = vld [vmem:[#allocation8 + $0x2dc] sm:$0xf]  ;;  %v18771_v24 = vld [vmem:[#allocation8 + $0x188c] sm:$0xf0] }
 0x33f   :  { %9763 = vmatpush.bf16.msra.mxu0 %v15829_v43  ;;  %v18421_v43 = vld [vmem:[#allocation8 + $0xd9c] sm:$0xf0]  ;;  %v9541_v60 = vpop.f32.mrf.mxu0 }
 0x340   :  { %9777 = vmatpush.bf16.msra.mxu1 %v16149_v26  ;;  %v18186_v26 = vld [vmem:[#allocation8 + $0x64c] sm:$0xf]  ;;  %v9542_v41 = vadd.f32 %v9541_v60, %v20092_v59  ;;  %v9555_v27 = vpop.f32.mrf.mxu1  ;;  %v15629_v46 = vor.u32 %v18421_v43, %v15628_v34  ;;  %v18156_v34 = vld [vmem:[#allocation8 + $0x55c] sm:$0xf]  ;;  %v14590_v43 = vld [vmem:[#allocation8 + $0x580] sm:$0xf0]  ;;  %v14273_v60 = vor.u32 %v18076_v7, %v14270_v5 }
 0x341   :  { %9791 = vmatpush.bf16.msra.mxu2 %v16469_v31  ;;  %v16988_v5 = vld [vmem:[#allocation8 + $0x1818] sm:$0xf] }
 0x342   :  { %9764 = vmatmul.bf16.vlgmr.msra.gmra.mxu0 %v19572_v6  ;;  %9745 = vmatpush.bf16.msrb.mxu3 %v15669_v13  ;;  %v19640_v18 = vadd.f32 %v9555_v27, %v9542_v41  ;;  %v15508_v13 = vld [vmem:[#allocation8 + $0xc88] sm:$0xf]  ;;  %v18066_v41 = vld [vmem:[#allocation8 + $0x28c] sm:$0xf]  ;;  %v18532_v59 = vld [vmem:[#allocation8 + $0x1114] sm:$0xf0] }
 0x343   :  { %9812 = vmatpush.bf16.msrb.mxu0 %v14193_v33  ;;  %9778 = vmatmul.bf16.vlgmr.msra.gmra.mxu1 %v19574_v44  ;;  %v14710_v33 = vld [vmem:[#allocation8 + $0x670] sm:$0xf0]  ;;  %v15509_v27 = vor.u32 %v18391_v52, %v15508_v13  ;;  %v18526_v13 = vld [vmem:[#allocation8 + $0x10ec] sm:$0xf] }
 0x344   :  { %9826 = vmatpush.bf16.msrb.mxu1 %v14513_v50  ;;  %9792 = vmatmul.bf16.vlgmr.msra.gmra.mxu2 %v19582_v51  ;;  %v18016_v50 = vld [vmem:[#allocation8 + $0xfc] sm:$0xf]  ;;  %v14713_v8 = vor.u32 %v18186_v26, %v14710_v33  ;;  %v17068_v26 = vld [vmem:[#allocation8 + $0x18b8] sm:$0xf]  ;;  %v17986_v33 = vld [vmem:[#allocation8 + $0xc] sm:$0xf] }
 0x345   :  { %9840 = vmatpush.bf16.msrb.mxu2 %v14833_v42  ;;  %v14033_v31 = vor.u32 %v18016_v50, %v14030_v21  ;;  %v18411_v42 = vld [vmem:[#allocation8 + $0xd4c] sm:$0xf0]  ;;  %v13910_v50 = vld [vmem:[#allocation8 + $0x30] sm:$0xf0]  ;;  %v19645_v21 = vpop.f32.mrf.mxu2 }
 0x346   :  { %9746 = vmatpush.bf16.msrb.mxu3 %v15629_v46  ;;  %v15589_v1 = vor.u32 %v18411_v42, %v15588_v4  ;;  %v15470_v46 = vld [vmem:[#allocation8 + $0xc60] sm:$0xf0]  ;;  %v14593_v4 = vor.u32 %v18156_v34, %v14590_v43  ;;  %v18356_v34 = vld [vmem:[#allocation8 + $0xb9c] sm:$0xf] }
 0x347   :  { %9813 = vmatpush.bf16.msrb.mxu0 %v14153_v20  ;;  %v18176_v20 = vld [vmem:[#allocation8 + $0x5fc] sm:$0xf]  ;;  %v15390_v43 = vld [vmem:[#allocation8 + $0xbc0] sm:$0xf0] }
 0x348   :  { %9827 = vmatpush.bf16.msrb.mxu1 %v14473_v11  ;;  %v13990_v11 = vld [vmem:[#allocation8 + $0xd0] sm:$0xf0]  ;;  %v14673_v57 = vor.u32 %v18176_v20, %v14670_v29  ;;  %v13913_v20 = vor.u32 %v17986_v33, %v13910_v50  ;;  %v18146_v29 = vld [vmem:[#allocation8 + $0x50c] sm:$0xf]  ;;  %v15393_v50 = vor.u32 %v18356_v34, %v15390_v43 }
 0x349   :  { %9841 = vmatpush.bf16.msrb.mxu2 %v14793_v30  ;;  %v13993_v30 = vor.u32 %v18006_v23, %v13990_v11  ;;  %v14550_v23 = vld [vmem:[#allocation8 + $0x530] sm:$0xf0]  ;;  %v15473_v11 = vor.u32 %v18376_v25, %v15470_v46  ;;  %v18346_v46 = vld [vmem:[#allocation8 + $0xb4c] sm:$0xf] }
 0x34a   :  { %9747 = vmatpush.bf16.msrb.mxu3 %v15589_v1  ;;  %v18536_v1 = vld [vmem:[#allocation8 + $0x113c] sm:$0xf] }
 0x34b   :  { %9814 = vmatpush.bf16.msrb.mxu0 %v14113_v17  ;;  %v15548_v17 = vld [vmem:[#allocation8 + $0xcd8] sm:$0xf] }
 0x34c   :  { %9828 = vmatpush.bf16.msrb.mxu1 %v14433_v19  ;;  %v14630_v19 = vld [vmem:[#allocation8 + $0x5d0] sm:$0xf0]  ;;  %v15549_v2 = vor.u32 %v18401_v32, %v15548_v17  ;;  %v18446_v32 = vld [vmem:[#allocation8 + $0xe6c] sm:$0xf] }
 0x34d   :  { %9842 = vmatpush.bf16.msrb.mxu2 %v14753_v61  ;;  %v14633_v61 = vor.u32 %v18166_v37, %v14630_v19  ;;  %v15430_v17 = vld [vmem:[#allocation8 + $0xc10] sm:$0xf0]  ;;  %v17029_v19 = vor.u32 %v18771_v24, %v17028_v3  ;;  %v9569_v7 = vpop.f32.mrf.mxu2  ;;  %v18336_v24 = vld [vmem:[#allocation8 + $0xafc] sm:$0xf] }
 0x34e   :  { %9748 = vmatpush.bf16.msrb.mxu3 %v15549_v2  ;;  %v15750_v37 = vld [vmem:[#allocation8 + $0xe90] sm:$0xf0]  ;;  %v18761_v2 = vld [vmem:[#allocation8 + $0x183c] sm:$0xf0] }
 0x34f   :  { %9815 = vmatpush.bf16.msrb.mxu0 %v14073_v55  ;;  %v13953_v55 = vor.u32 %v17996_v56, %v13950_v45  ;;  %v15753_v52 = vor.u32 %v18446_v32, %v15750_v37  ;;  %v15990_v3 = vld [vmem:[#allocation8 + $0x1070] sm:$0xf0] }
 0x350   :  { %9829 = vmatpush.bf16.msrb.mxu1 %v14393_v10  ;;  %v18781_v10 = vld [vmem:[#allocation8 + $0x18dc] sm:$0xf0] }
 0x351   :  { %9843 = vmatpush.bf16.msrb.mxu2 %v14713_v8  ;;  %v18456_v8 = vld [vmem:[#allocation8 + $0xebc] sm:$0xf]  ;;  %v17069_v42 = vor.u32 %v18781_v10, %v17068_v26  ;;  %v16989_v10 = vor.u32 %v18761_v2, %v16988_v5  ;;  %v18326_v5 = vld [vmem:[#allocation8 + $0xaac] sm:$0xf]  ;;  %v15270_v2 = vld [vmem:[#allocation8 + $0xad0] sm:$0xf0] }
 0x352   :  { %9749 = vmatpush.bf16.msrb.mxu3 %v15509_v27  ;;  %v18436_v26 = vld [vmem:[#allocation8 + $0xe1c] sm:$0xf]  ;;  %v16030_v27 = vld [vmem:[#allocation8 + $0x10c0] sm:$0xf0]  ;;  %v15273_v43 = vor.u32 %v18326_v5, %v15270_v2 }
 0x353   :  { %9816 = vmatpush.bf16.msrb.mxu0 %v14033_v31  ;;  %v15790_v31 = vld [vmem:[#allocation8 + $0xee0] sm:$0xf0] }
 0x354   :  { %9830 = vmatpush.bf16.msrb.mxu1 %v14353_v0  ;;  %v14233_v0 = vor.u32 %v18066_v41, %v14230_v49  ;;  %v15793_v28 = vor.u32 %v18456_v8, %v15790_v31  ;;  %v16948_v41 = vld [vmem:[#allocation8 + $0x17c8] sm:$0xf]  ;;  %v18751_v49 = vld [vmem:[#allocation8 + $0x17ec] sm:$0xf0]  ;;  %v15350_v8 = vld [vmem:[#allocation8 + $0xb70] sm:$0xf0] }
 0x355   :  { %9844 = vmatpush.bf16.msrb.mxu2 %v14673_v57  ;;  %v16110_v57 = vld [vmem:[#allocation8 + $0x1160] sm:$0xf0]  ;;  %9750 = vmatmul.bf16.vlgmr.msrb.gmra.mxu3 %v19534_v54  ;;  %v18426_v31 = vld [vmem:[#allocation8 + $0xdcc] sm:$0xf] }
 0x356   :  { %9798 = vmatpush.bf16.msra.mxu3 %v17069_v42  ;;  %v16113_v56 = vor.u32 %v18536_v1, %v16110_v57  ;;  %v16949_v42 = vor.u32 %v18751_v49, %v16948_v41  ;;  %v15310_v1 = vld [vmem:[#allocation8 + $0xb20] sm:$0xf0]  ;;  %v18416_v57 = vld [vmem:[#allocation8 + $0xd7c] sm:$0xf] }
 0x357   :  { %9817 = vmatpush.bf16.msrb.mxu0 %v13993_v30  ;;  %v18366_v30 = vld [vmem:[#allocation8 + $0xbec] sm:$0xf]  ;;  %v15313_v37 = vor.u32 %v18336_v24, %v15310_v1  ;;  %v18316_v41 = vld [vmem:[#allocation8 + $0xa5c] sm:$0xf]  ;;  %v15230_v49 = vld [vmem:[#allocation8 + $0xa80] sm:$0xf0] }
 0x358   :  { %9831 = vmatpush.bf16.msrb.mxu1 %v14313_v9  ;;  %v14553_v9 = vor.u32 %v18146_v29, %v14550_v23  ;;  %v15433_v45 = vor.u32 %v18366_v30, %v15430_v17  ;;  %v16908_v29 = vld [vmem:[#allocation8 + $0x1778] sm:$0xf]  ;;  %v18741_v23 = vld [vmem:[#allocation8 + $0x179c] sm:$0xf0]  ;;  %v15630_v30 = vld [vmem:[#allocation8 + $0xda0] sm:$0xf0] }
 0x359   :  { %9845 = vmatpush.bf16.msrb.mxu2 %v14633_v61  ;;  %v19649_v61 = vadd.f32 %v9569_v7, %v19640_v18  ;;  %v18516_v18 = vld [vmem:[#allocation8 + $0x109c] sm:$0xf]  ;;  %v16909_v17 = vor.u32 %v18741_v23, %v16908_v29  ;;  %v15950_v7 = vld [vmem:[#allocation8 + $0x1020] sm:$0xf0]  ;;  %v15510_v24 = vld [vmem:[#allocation8 + $0xcb0] sm:$0xf0] }
 0x35a   :  { %9799 = vmatpush.bf16.msra.mxu3 %v17029_v19  ;;  %v18731_v19 = vld [vmem:[#allocation8 + $0x174c] sm:$0xf0]  ;;  %v15150_v23 = vld [vmem:[#allocation8 + $0x9e0] sm:$0xf0]  ;;  %v18696_v1 = vld [vmem:[#allocation8 + $0x163c] sm:$0xf] }
 0x35b   :  { %9818 = vmatpush.bf16.msrb.mxu0 %v13953_v55  ;;  %v16070_v55 = vld [vmem:[#allocation8 + $0x1110] sm:$0xf0] }
 0x35c   :  { %9832 = vmatpush.bf16.msrb.mxu1 %v14273_v60  ;;  %v15710_v60 = vld [vmem:[#allocation8 + $0xe40] sm:$0xf0]  ;;  %v16073_v33 = vor.u32 %v18526_v13, %v16070_v55  ;;  %v18406_v13 = vld [vmem:[#allocation8 + $0xd2c] sm:$0xf] }
 0x35d   :  { %9846 = vmatpush.bf16.msrb.mxu2 %v14593_v4  ;;  %v15713_v25 = vor.u32 %v18436_v26, %v15710_v60  ;;  %v15670_v4 = vld [vmem:[#allocation8 + $0xdf0] sm:$0xf0]  ;;  %v16828_v26 = vld [vmem:[#allocation8 + $0x16d8] sm:$0xf]  ;;  %v18721_v60 = vld [vmem:[#allocation8 + $0x16fc] sm:$0xf0] }
 0x35e   :  { %9800 = vmatpush.bf16.msra.mxu3 %v16989_v10  ;;  %v18486_v10 = vld [vmem:[#allocation8 + $0xfac] sm:$0xf] }
 0x35f   :  { %9819 = vmatpush.bf16.msrb.mxu0 %v13913_v20  ;;  %v16033_v20 = vor.u32 %v18516_v18, %v16030_v27  ;;  %v18396_v18 = vld [vmem:[#allocation8 + $0xcdc] sm:$0xf]  ;;  %v16829_v27 = vor.u32 %v18721_v60, %v16828_v26  ;;  %v16710_v26 = vld [vmem:[#allocation8 + $0x1610] sm:$0xf0]  ;;  %v18766_v60 = vld [vmem:[#allocation8 + $0x186c] sm:$0xf] }
 0x360   :  { %9833 = vmatpush.bf16.msrb.mxu1 %v14233_v0  ;;  %v15353_v0 = vor.u32 %v18346_v46, %v15350_v8  ;;  %v16788_v46 = vld [vmem:[#allocation8 + $0x1688] sm:$0xf]  ;;  %v18711_v8 = vld [vmem:[#allocation8 + $0x16ac] sm:$0xf0] }
 0x361   :  { %9847 = vmatpush.bf16.msrb.mxu2 %v14553_v9  ;;  %v16868_v9 = vld [vmem:[#allocation8 + $0x1728] sm:$0xf] }
 0x362   :  { %9820 = vmatmul.bf16.vlgmr.msrb.gmra.mxu0 %v19439_v36  ;;  %9801 = vmatpush.bf16.msra.mxu3 %v16949_v42  ;;  %v16869_v55 = vor.u32 %v18731_v19, %v16868_v9  ;;  %v18476_v42 = vld [vmem:[#allocation8 + $0xf5c] sm:$0xf] }
 0x363   :  { %9868 = vmatpush.bf16.msra.mxu0 %v15473_v11  ;;  %9834 = vmatmul.bf16.vlgmr.msrb.gmra.mxu1 %v19455_v58  ;;  %v18506_v11 = vld [vmem:[#allocation8 + $0x104c] sm:$0xf] }
 0x364   :  { %9882 = vmatpush.bf16.msra.mxu1 %v15793_v28  ;;  %9848 = vmatmul.bf16.vlgmr.msrb.gmra.mxu2 %v19521_v15  ;;  %v15673_v28 = vor.u32 %v18426_v31, %v15670_v4  ;;  %v15993_v32 = vor.u32 %v18506_v11, %v15990_v3  ;;  %v15233_v4 = vor.u32 %v18316_v41, %v15230_v49  ;;  %v18306_v11 = vld [vmem:[#allocation8 + $0xa0c] sm:$0xf] }
 0x365   :  { %9896 = vmatpush.bf16.msra.mxu2 %v16113_v56  ;;  %v18496_v56 = vld [vmem:[#allocation8 + $0xffc] sm:$0xf]  ;;  %v18386_v3 = vld [vmem:[#allocation8 + $0xc8c] sm:$0xf] }
 0x366   :  { %9802 = vmatpush.bf16.msra.mxu3 %v16909_v17  ;;  %v15953_v34 = vor.u32 %v18496_v56, %v15950_v7  ;;  %v18776_v17 = vld [vmem:[#allocation8 + $0x18bc] sm:$0xf]  ;;  %v15513_v56 = vor.u32 %v18386_v3, %v15510_v24  ;;  %v15830_v7 = vld [vmem:[#allocation8 + $0xf30] sm:$0xf0]  ;;  %v14116_v24 = vld [vmem:[#allocation8 + $0x1a0] sm:$0xf] }
 0x367   :  { %9869 = vmatpush.bf16.msra.mxu0 %v15433_v45  ;;  %v15633_v45 = vor.u32 %v18416_v57, %v15630_v30  ;;  %v16789_v57 = vor.u32 %v18711_v8, %v16788_v46  ;;  %v16750_v30 = vld [vmem:[#allocation8 + $0x1660] sm:$0xf0]  ;;  %v19654_v46 = vpop.f32.mrf.mxu3  ;;  %v15030_v3 = vld [vmem:[#allocation8 + $0x8f0] sm:$0xf0] }
 0x368   :  { %9883 = vmatpush.bf16.msra.mxu1 %v15753_v52  ;;  %v15590_v52 = vld [vmem:[#allocation8 + $0xd50] sm:$0xf0]  ;;  %v16753_v5 = vor.u32 %v18696_v1, %v16750_v30  ;;  %v18666_v30 = vld [vmem:[#allocation8 + $0x154c] sm:$0xf] }
 0x369   :  { %9897 = vmatpush.bf16.msra.mxu2 %v16073_v33  ;;  %v15593_v33 = vor.u32 %v18406_v13, %v15590_v52  ;;  %v18286_v13 = vld [vmem:[#allocation8 + $0x96c] sm:$0xf]  ;;  %v15110_v52 = vld [vmem:[#allocation8 + $0x990] sm:$0xf0] }
 0x36a   :  { %9803 = vmatpush.bf16.msra.mxu3 %v16869_v55  ;;  %v14196_v55 = vld [vmem:[#allocation8 + $0x240] sm:$0xf] }
 0x36b   :  { %9870 = vmatpush.bf16.msra.mxu0 %v15393_v50  ;;  %v15910_v50 = vld [vmem:[#allocation8 + $0xfd0] sm:$0xf0] }
 0x36c   :  { %9884 = vmatpush.bf16.msra.mxu1 %v15713_v25  ;;  %v15550_v25 = vld [vmem:[#allocation8 + $0xd00] sm:$0xf0]  ;;  %v15913_v31 = vor.u32 %v18486_v10, %v15910_v50  ;;  %v17030_v10 = vld [vmem:[#allocation8 + $0x1890] sm:$0xf0]  ;;  %v15113_v50 = vor.u32 %v18286_v13, %v15110_v52  ;;  %v18032_v52 = vld [vmem:[#allocation8 + $0x174] sm:$0xf0] }
 0x36d   :  { %9898 = vmatpush.bf16.msra.mxu2 %v16033_v20  ;;  %v15870_v20 = vld [vmem:[#allocation8 + $0xf80] sm:$0xf0]  ;;  %v15553_v29 = vor.u32 %v18396_v18, %v15550_v25  ;;  %v18276_v18 = vld [vmem:[#allocation8 + $0x91c] sm:$0xf]  ;;  %v17033_v8 = vor.u32 %v18766_v60, %v17030_v10 }
 0x36e   :  { %9804 = vmatpush.bf16.msra.mxu3 %v16829_v27  ;;  %v15070_v25 = vld [vmem:[#allocation8 + $0x940] sm:$0xf0]  ;;  %v14156_v27 = vld [vmem:[#allocation8 + $0x1f0] sm:$0xf] }
 0x36f   :  { %9871 = vmatpush.bf16.msra.mxu0 %v15353_v0  ;;  %v18296_v0 = vld [vmem:[#allocation8 + $0x9bc] sm:$0xf]  ;;  %v16910_v60 = vld [vmem:[#allocation8 + $0x17a0] sm:$0xf0] }
 0x370   :  { %9885 = vmatpush.bf16.msra.mxu1 %v15673_v28  ;;  %v15190_v28 = vld [vmem:[#allocation8 + $0xa30] sm:$0xf0]  ;;  %v15153_v9 = vor.u32 %v18296_v0, %v15150_v23  ;;  %v16990_v0 = vld [vmem:[#allocation8 + $0x1840] sm:$0xf0] }
 0x371   :  { %9899 = vmatpush.bf16.msra.mxu2 %v15993_v32  ;;  %v17070_v32 = vld [vmem:[#allocation8 + $0x18e0] sm:$0xf0]  ;;  %v15193_v19 = vor.u32 %v18306_v11, %v15190_v28  ;;  %v18266_v28 = vld [vmem:[#allocation8 + $0x8cc] sm:$0xf] }
 0x372   :  { %v17073_v2 = vor.u32 %v18776_v17, %v17070_v32  ;;  %9805 = vmatpush.bf16.msra.mxu3 %v16789_v57  ;;  %v18042_v57 = vld [vmem:[#allocation8 + $0x1c4] sm:$0xf0]  ;;  %v16630_v17 = vld [vmem:[#allocation8 + $0x1570] sm:$0xf0]  ;;  %v18746_v32 = vld [vmem:[#allocation8 + $0x17cc] sm:$0xf] }
 0x373   :  { %9872 = vmatpush.bf16.msra.mxu0 %v15313_v37  ;;  %v15873_v37 = vor.u32 %v18476_v42, %v15870_v20  ;;  %v16670_v42 = vld [vmem:[#allocation8 + $0x15c0] sm:$0xf0]  ;;  %v18756_v20 = vld [vmem:[#allocation8 + $0x181c] sm:$0xf] }
 0x374   :  { %9886 = vmatpush.bf16.msra.mxu1 %v15633_v45  ;;  %v18466_v45 = vld [vmem:[#allocation8 + $0xf0c] sm:$0xf]  ;;  %v16993_v1 = vor.u32 %v18756_v20, %v16990_v0 }
 0x375   :  { %9900 = vmatpush.bf16.msra.mxu2 %v15953_v34  ;;  %v18062_v34 = vld [vmem:[#allocation8 + $0x264] sm:$0xf0]  ;;  %9806 = vmatmul.bf16.vlgmr.msra.gmra.mxu3 %v19602_v14 }
 0x376   :  { %9854 = vmatpush.bf16.msrb.mxu3 %v15153_v9  ;;  %v14197_v41 = vor.u32 %v18062_v34, %v14196_v55  ;;  %v15033_v9 = vor.u32 %v18266_v28, %v15030_v3  ;;  %v18656_v55 = vld [vmem:[#allocation8 + $0x14fc] sm:$0xf]  ;;  %v16590_v34 = vld [vmem:[#allocation8 + $0x1520] sm:$0xf0]  ;;  %v19663_v28 = vpop.f32.mrf.mxu0 }
 0x377   :  { %9873 = vmatpush.bf16.msra.mxu0 %v15273_v43  ;;  %v18686_v43 = vld [vmem:[#allocation8 + $0x15ec] sm:$0xf]  ;;  %v9527_v13 = vpop.f32.mrf.mxu3  ;;  %20156 = vst [vmem:[#allocation40_spill] sm:$0xff] %v19663_v28  ;;  %v18717_v28 = vld [vmem:[#allocation8 + $0x16e4] sm:$0xf] }
 0x378   :  { %9887 = vmatpush.bf16.msra.mxu1 %v15593_v33  ;;  %v15833_v33 = vor.u32 %v18466_v45, %v15830_v7  ;;  %v16713_v49 = vor.u32 %v18686_v43, %v16710_v26  ;;  %v18256_v45 = vld [vmem:[#allocation8 + $0x87c] sm:$0xf]  ;;  %v14990_v7 = vld [vmem:[#allocation8 + $0x8a0] sm:$0xf0]  ;;  %v19661_v43 = vadd.f32 %v9527_v13, %v19643_v63 }
 0x379   :  { %9901 = vmatpush.bf16.msra.mxu2 %v15913_v31  ;;  %v18052_v31 = vld [vmem:[#allocation8 + $0x214] sm:$0xf0]  ;;  %v18736_v26 = vld [vmem:[#allocation8 + $0x177c] sm:$0xf]  ;;  %v14993_v10 = vor.u32 %v18256_v45, %v14990_v7 }
 0x37a   :  { %9855 = vmatpush.bf16.msrb.mxu3 %v15113_v50  ;;  %v14157_v23 = vor.u32 %v18052_v31, %v14156_v27  ;;  %20155 = vst [vmem:[#allocation31_spill] sm:$0xff] %v19661_v43  ;;  %v16593_v50 = vor.u32 %v18656_v55, %v16590_v34  ;;  %v18022_v27 = vld [vmem:[#allocation8 + $0x124] sm:$0xf0]  ;;  %v16550_v31 = vld [vmem:[#allocation8 + $0x14d0] sm:$0xf0] }
 0x37b   :  { %9874 = vmatpush.bf16.msra.mxu0 %v15233_v4  ;;  %v18676_v4 = vld [vmem:[#allocation8 + $0x159c] sm:$0xf]  ;;  %v16430_v34 = vld [vmem:[#allocation8 + $0x13e0] sm:$0xf0]  ;;  %v18453_v43 = vld [vmem:[#allocation8 + $0xe9c] sm:$0xf0] }
 0x37c   :  { %9888 = vmatpush.bf16.msra.mxu1 %v15553_v29  ;;  %v15073_v29 = vor.u32 %v18276_v18, %v15070_v25  ;;  %v16673_v11 = vor.u32 %v18676_v4, %v16670_v42  ;;  %v14036_v18 = vld [vmem:[#allocation8 + $0x100] sm:$0xf]  ;;  %v16913_v25 = vor.u32 %v18736_v26, %v16910_v60  ;;  %v18726_v4 = vld [vmem:[#allocation8 + $0x172c] sm:$0xf]  ;;  %v16870_v42 = vld [vmem:[#allocation8 + $0x1750] sm:$0xf0] }
 0x37d   :  { %9902 = vmatpush.bf16.msra.mxu2 %v15873_v37  ;;  %v16950_v37 = vld [vmem:[#allocation8 + $0x17f0] sm:$0xf0]  ;;  %v14037_v20 = vor.u32 %v18022_v27, %v14036_v18  ;;  %v16873_v3 = vor.u32 %v18726_v4, %v16870_v42  ;;  %v18616_v13 = vld [vmem:[#allocation8 + $0x13bc] sm:$0xf]  ;;  %v18626_v26 = vld [vmem:[#allocation8 + $0x140c] sm:$0xf] }
 0x37e   :  { %9856 = vmatpush.bf16.msrb.mxu3 %v15073_v29  ;;  %v18236_v29 = vld [vmem:[#allocation8 + $0x7dc] sm:$0xf]  ;;  %v16470_v60 = vld [vmem:[#allocation8 + $0x1430] sm:$0xf0]  ;;  %v15156_v18 = vld [vmem:[#allocation8 + $0x9c0] sm:$0xf] }
 0x37f   :  { %9875 = vmatpush.bf16.msra.mxu0 %v15193_v19  ;;  %v14117_v19 = vor.u32 %v18042_v57, %v14116_v24  ;;  %v19665_v24 = vpop.f32.mrf.mxu3  ;;  %v18636_v57 = vld [vmem:[#allocation8 + $0x145c] sm:$0xf]  ;;  %v16473_v4 = vor.u32 %v18626_v26, %v16470_v60 }
 0x380   :  { %9889 = vmatpush.bf16.msra.mxu1 %v15513_v56  ;;  %v16633_v56 = vor.u32 %v18666_v30, %v16630_v17  ;;  %v16510_v30 = vld [vmem:[#allocation8 + $0x1480] sm:$0xf0]  ;;  %v18716_v17 = vld [vmem:[#allocation8 + $0x16dc] sm:$0xf] }
 0x381   :  { %9903 = vmatpush.bf16.msra.mxu2 %v15833_v33  ;;  %v16513_v7 = vor.u32 %v18636_v57, %v16510_v30  ;;  %v15476_v57 = vld [vmem:[#allocation8 + $0xc40] sm:$0xf] }
 0x382   :  { %9876 = vmatmul.bf16.vlgmr.msra.gmra.mxu0 %v19527_v12  ;;  %9857 = vmatpush.bf16.msrb.mxu3 %v15033_v9 }
 0x383   :  { %9924 = vmatpush.bf16.msrb.mxu0 %v16753_v5  ;;  %9890 = vmatmul.bf16.vlgmr.msra.gmra.mxu1 %v19534_v54  ;;  %v14076_v5 = vld [vmem:[#allocation8 + $0x150] sm:$0xf] }
 0x384   :  { %9938 = vmatpush.bf16.msrb.mxu1 %v17073_v2  ;;  %9904 = vmatmul.bf16.vlgmr.msra.gmra.mxu2 %v19572_v6  ;;  %v16953_v2 = vor.u32 %v18746_v32, %v16950_v37  ;;  %v14077_v33 = vor.u32 %v18032_v52, %v14076_v5  ;;  %v16830_v32 = vld [vmem:[#allocation8 + $0x1700] sm:$0xf0]  ;;  %v19667_v37 = vpop.f32.mrf.mxu1  ;;  %v13956_v5 = vld [vmem:[#allocation8 + $0x60] sm:$0xf]  ;;  %v19669_v52 = vpop.f32.mrf.mxu2 }
 0x385   :  { %9952 = vmatpush.bf16.msrb.mxu2 %v14197_v41  ;;  %v18246_v41 = vld [vmem:[#allocation8 + $0x82c] sm:$0xf]  ;;  %20157 = vst [vmem:[#allocation44_spill] sm:$0xff] %v19667_v37  ;;  %v16833_v55 = vor.u32 %v18716_v17, %v16830_v32  ;;  %v18382_v17 = vld [vmem:[#allocation8 + $0xc64] sm:$0xf0] }
 0x386   :  { %9858 = vmatpush.bf16.msrb.mxu3 %v14993_v10  ;;  %20158 = vst [vmem:[#allocation20_spill] sm:$0xff] %v19669_v52  ;;  %v18706_v10 = vld [vmem:[#allocation8 + $0x168c] sm:$0xf]  ;;  %v14796_v32 = vld [vmem:[#allocation8 + $0x6f0] sm:$0xf] }
 0x387   :  { %9925 = vmatpush.bf16.msrb.mxu0 %v16713_v49  ;;  %v14950_v49 = vld [vmem:[#allocation8 + $0x850] sm:$0xf0]  ;;  %v13998_v52 = vld [vmem:[#allocation8 + $0xd8] sm:$0xf0]  ;;  %v18537_v37 = vld [vmem:[#allocation8 + $0x1144] sm:$0xf] }
 0x388   :  { %9939 = vmatpush.bf16.msrb.mxu1 %v17033_v8  ;;  %v18646_v8 = vld [vmem:[#allocation8 + $0x14ac] sm:$0xf]  ;;  %v14953_v63 = vor.u32 %v18246_v41, %v14950_v49  ;;  %v18222_v49 = vld [vmem:[#allocation8 + $0x764] sm:$0xf0] }
 0x389   :  { %9953 = vmatpush.bf16.msrb.mxu2 %v14157_v23  ;;  %v16553_v0 = vor.u32 %v18646_v8, %v16550_v31  ;;  %v14910_v23 = vld [vmem:[#allocation8 + $0x800] sm:$0xf0]  ;;  %v16433_v8 = vor.u32 %v18616_v13, %v16430_v34  ;;  %v9597_v31 = vpop.f32.mrf.mxu0  ;;  %v18596_v13 = vld [vmem:[#allocation8 + $0x131c] sm:$0xf]  ;;  %v15436_v34 = vld [vmem:[#allocation8 + $0xbf0] sm:$0xf] }
 0x38a   :  { %9859 = vmatpush.bf16.msrb.mxu3 %v14953_v63  ;;  %v14913_v9 = vor.u32 %v18236_v29, %v14910_v23  ;;  %v9583_v63 = vpop.f32.mrf.mxu3 }
 0x38b   :  { %9926 = vmatpush.bf16.msrb.mxu0 %v16673_v11  ;;  %v13996_v11 = vld [vmem:[#allocation8 + $0xb0] sm:$0xf] }
 0x38c   :  { %9940 = vmatpush.bf16.msrb.mxu1 %v16993_v1  ;;  %v18012_v1 = vld [vmem:[#allocation8 + $0xd4] sm:$0xf0]  ;;  %v9611_v30 = vpop.f32.mrf.mxu1  ;;  %v9625_v60 = vpop.f32.mrf.mxu2 }
 0x38d   :  { %9954 = vmatpush.bf16.msrb.mxu2 %v14117_v19  ;;  %v18226_v19 = vld [vmem:[#allocation8 + $0x78c] sm:$0xf]  ;;  %v13997_v45 = vor.u32 %v18012_v1, %v13996_v11  ;;  %v9584_v11 = vadd.f32 %v9583_v63, %v19649_v61  ;;  %v16390_v1 = vld [vmem:[#allocation8 + $0x1390] sm:$0xf0]  ;;  %v15477_v61 = vor.u32 %v18382_v17, %v15476_v57  ;;  %v18272_v57 = vld [vmem:[#allocation8 + $0x8f4] sm:$0xf0] }
 0x38e   :  { %9860 = vmatpush.bf16.msrb.mxu3 %v14913_v9  ;;  %v18212_v9 = vld [vmem:[#allocation8 + $0x714] sm:$0xf0]  ;;  %v16310_v63 = vld [vmem:[#allocation8 + $0x12f0] sm:$0xf0] }
 0x38f   :  { %9927 = vmatpush.bf16.msrb.mxu0 %v16633_v56  ;;  %v14870_v56 = vld [vmem:[#allocation8 + $0x7b0] sm:$0xf0] }
 0x390   :  { %9941 = vmatpush.bf16.msrb.mxu1 %v16953_v2  ;;  %v18002_v2 = vld [vmem:[#allocation8 + $0x84] sm:$0xf0]  ;;  %v14873_v41 = vor.u32 %v18226_v19, %v14870_v56  ;;  %v9598_v19 = vadd.f32 %v9597_v31, %v9584_v11  ;;  %v15116_v56 = vld [vmem:[#allocation8 + $0x970] sm:$0xf] }
 0x391   :  { %9955 = vmatpush.bf16.msrb.mxu2 %v14077_v33  ;;  %v16790_v33 = vld [vmem:[#allocation8 + $0x16b0] sm:$0xf0]  ;;  %v13957_v27 = vor.u32 %v18002_v2, %v13956_v5  ;;  %v14797_v2 = vor.u32 %v18212_v9, %v14796_v32  ;;  %v14716_v11 = vld [vmem:[#allocation8 + $0x650] sm:$0xf] }
 0x392   :  { %v16793_v42 = vor.u32 %v18706_v10, %v16790_v33  ;;  %9861 = vmatpush.bf16.msrb.mxu3 %v14873_v41  ;;  %v9612_v26 = vadd.f32 %v9611_v30, %v9598_v19  ;;  %v18372_v33 = vld [vmem:[#allocation8 + $0xc14] sm:$0xf0]  ;;  %v18202_v41 = vld [vmem:[#allocation8 + $0x6c4] sm:$0xf0]  ;;  %v18576_v19 = vld [vmem:[#allocation8 + $0x127c] sm:$0xf] }
 0x393   :  { %9928 = vmatpush.bf16.msrb.mxu0 %v16593_v50  ;;  %v14836_v50 = vld [vmem:[#allocation8 + $0x740] sm:$0xf]  ;;  %v15437_v31 = vor.u32 %v18372_v33, %v15436_v34  ;;  %v18566_v33 = vld [vmem:[#allocation8 + $0x122c] sm:$0xf] }
 0x394   :  { %9942 = vmatpush.bf16.msrb.mxu1 %v16913_v25  ;;  %v18302_v25 = vld [vmem:[#allocation8 + $0x9e4] sm:$0xf0]  ;;  %v14837_v29 = vor.u32 %v18222_v49, %v14836_v50  ;;  %v14756_v50 = vld [vmem:[#allocation8 + $0x6a0] sm:$0xf]  ;;  %v19680_v30 = vpop.f32.mrf.mxu1 }
 0x395   :  { %9956 = vmatpush.bf16.msrb.mxu2 %v14037_v20  ;;  %v13916_v20 = vld [vmem:[#allocation8 + $0x10] sm:$0xf]  ;;  %v15157_v23 = vor.u32 %v18302_v25, %v15156_v18  ;;  %9862 = vmatmul.bf16.vlgmr.msrb.gmra.mxu3 %v19523_v38  ;;  %v15076_v49 = vld [vmem:[#allocation8 + $0x920] sm:$0xf]  ;;  %v18282_v18 = vld [vmem:[#allocation8 + $0x944] sm:$0xf0]  ;;  %v9626_v25 = vadd.f32 %v9625_v60, %v9612_v26 }
 0x396   :  { %9910 = vmatpush.bf16.msra.mxu3 %v16433_v8  ;;  %v19675_v8 = vpop.f32.mrf.mxu3  ;;  %20161 = vst [vmem:[#allocation41_spill] sm:$0xff] %v19680_v30  ;;  %v18452_v30 = vld [vmem:[#allocation8 + $0xe94] sm:$0xf0] }
 0x397   :  { %9929 = vmatpush.bf16.msrb.mxu0 %v16553_v0  ;;  %v17992_v0 = vld [vmem:[#allocation8 + $0x34] sm:$0xf0]  ;;  %20159 = vst [vmem:[#allocation24_spill] sm:$0xff] %v19675_v8 }
 0x398   :  { %9943 = vmatpush.bf16.msrb.mxu1 %v16873_v3  ;;  %v18606_v3 = vld [vmem:[#allocation8 + $0x136c] sm:$0xf] }
 0x399   :  { %9957 = vmatpush.bf16.msrb.mxu2 %v13997_v45  ;;  %v18292_v45 = vld [vmem:[#allocation8 + $0x994] sm:$0xf0]  ;;  %v16393_v5 = vor.u32 %v18606_v3, %v16390_v1  ;;  %v15036_v1 = vld [vmem:[#allocation8 + $0x8d0] sm:$0xf] }
 0x39a   :  { %v15117_v10 = vor.u32 %v18292_v45, %v15116_v56  ;;  %v18192_v3 = vld [vmem:[#allocation8 + $0x674] sm:$0xf0]  ;;  %v16270_v56 = vld [vmem:[#allocation8 + $0x12a0] sm:$0xf0]  ;;  %v15356_v45 = vld [vmem:[#allocation8 + $0xb50] sm:$0xf] }
 0x39b   :  { %9930 = vmatpush.bf16.msrb.mxu0 %v16513_v7  ;;  %v13917_v7 = vor.u32 %v17992_v0, %v13916_v20  ;;  %9911 = vmatpush.bf16.msra.mxu3 %v16393_v5  ;;  %v15396_v20 = vld [vmem:[#allocation8 + $0xba0] sm:$0xf]  ;;  %v19677_v0 = vpop.f32.mrf.mxu0  ;;  %v14717_v9 = vor.u32 %v18192_v3, %v14716_v11  ;;  %v18352_v5 = vld [vmem:[#allocation8 + $0xb74] sm:$0xf0]  ;;  %v16273_v34 = vor.u32 %v18576_v19, %v16270_v56 }
 0x39c   :  { %9944 = vmatpush.bf16.msrb.mxu1 %v16833_v55  ;;  %v16350_v55 = vld [vmem:[#allocation8 + $0x1340] sm:$0xf0]  ;;  %20160 = vst [vmem:[#allocation32_spill] sm:$0xff] %v19677_v0  ;;  %v15357_v26 = vor.u32 %v18352_v5, %v15356_v45  ;;  %v18332_v56 = vld [vmem:[#allocation8 + $0xad4] sm:$0xf0] }
 0x39d   :  { %9958 = vmatpush.bf16.msrb.mxu2 %v13957_v27  ;;  %v16353_v27 = vor.u32 %v18596_v13, %v16350_v55  ;;  %v14996_v13 = vld [vmem:[#allocation8 + $0x880] sm:$0xf]  ;;  %v18262_v55 = vld [vmem:[#allocation8 + $0x8a4] sm:$0xf0]  ;;  %v18217_v0 = vld [vmem:[#allocation8 + $0x744] sm:$0xf] }
 0x39e   :  { %v14596_v45 = vld [vmem:[#allocation8 + $0x560] sm:$0xf] }
 0x39f   :  { %9931 = vmatpush.bf16.msrb.mxu0 %v16473_v4  ;;  %v14757_v4 = vor.u32 %v18202_v41, %v14756_v50  ;;  %9912 = vmatpush.bf16.msra.mxu3 %v16353_v27  ;;  %v16230_v50 = vld [vmem:[#allocation8 + $0x1250] sm:$0xf0]  ;;  %v15316_v41 = vld [vmem:[#allocation8 + $0xb00] sm:$0xf] }
 0x3a0   :  { %9945 = vmatpush.bf16.msrb.mxu1 %v16793_v42  ;;  %v18586_v42 = vld [vmem:[#allocation8 + $0x12cc] sm:$0xf]  ;;  %v16233_v3 = vor.u32 %v18566_v33, %v16230_v50  ;;  %v14916_v5 = vld [vmem:[#allocation8 + $0x7e0] sm:$0xf] }
 0x3a1   :  { %9959 = vmatpush.bf16.msrb.mxu2 %v13917_v7  ;;  %v16313_v17 = vor.u32 %v18586_v42, %v16310_v63  ;;  %v15037_v7 = vor.u32 %v18272_v57, %v15036_v1  ;;  %v18172_v42 = vld [vmem:[#allocation8 + $0x5d4] sm:$0xf0]  ;;  %v14956_v63 = vld [vmem:[#allocation8 + $0x830] sm:$0xf]  ;;  %v14516_v33 = vld [vmem:[#allocation8 + $0x4c0] sm:$0xf] }
 0x3a2   :  { %9932 = vmatmul.bf16.vlgmr.msrb.gmra.mxu0 %v19582_v51 }
 0x3a3   :  { %9980 = vmatpush.bf16.msra.mxu0 %v14837_v29  ;;  %9946 = vmatmul.bf16.vlgmr.msrb.gmra.mxu1 %v19602_v14  ;;  %v15077_v29 = vor.u32 %v18282_v18, %v15076_v49  ;;  %v9653_v49 = vpop.f32.mrf.mxu0  ;;  %v14997_v18 = vor.u32 %v18262_v55, %v14996_v13  ;;  %v18546_v13 = vld [vmem:[#allocation8 + $0x118c] sm:$0xf]  ;;  %v16150_v55 = vld [vmem:[#allocation8 + $0x11b0] sm:$0xf0] }
 0x3a4   :  { %9994 = vmatpush.bf16.msra.mxu1 %v15157_v23  ;;  %v18362_v23 = vld [vmem:[#allocation8 + $0xbc4] sm:$0xf0]  ;;  %9960 = vmatmul.bf16.vlgmr.msrb.gmra.mxu2 %v19439_v36 }
 0x3a5   :  { %10008 = vmatpush.bf16.msra.mxu2 %v15477_v61  ;;  %v15397_v32 = vor.u32 %v18362_v23, %v15396_v20  ;;  %v14676_v61 = vld [vmem:[#allocation8 + $0x600] sm:$0xf]  ;;  %9913 = vmatpush.bf16.msra.mxu3 %v16313_v17  ;;  %v18252_v20 = vld [vmem:[#allocation8 + $0x854] sm:$0xf0]  ;;  %v9667_v23 = vpop.f32.mrf.mxu1  ;;  %v18556_v17 = vld [vmem:[#allocation8 + $0x11dc] sm:$0xf] }
 0x3a6   :  { %v14957_v19 = vor.u32 %v18252_v20, %v14956_v63  ;;  %v16153_v20 = vor.u32 %v18546_v13, %v16150_v55  ;;  %v18702_v13 = vld [vmem:[#allocation8 + $0x1664] sm:$0xf0]  ;;  %v16076_v55 = vld [vmem:[#allocation8 + $0x10f0] sm:$0xf] }
 0x3a7   :  { %9981 = vmatpush.bf16.msra.mxu0 %v14797_v2  ;;  %v18182_v2 = vld [vmem:[#allocation8 + $0x624] sm:$0xf0] }
 0x3a8   :  { %9995 = vmatpush.bf16.msra.mxu1 %v15117_v10  ;;  %v14677_v60 = vor.u32 %v18182_v2, %v14676_v61  ;;  %v9639_v10 = vpop.f32.mrf.mxu3  ;;  %v18242_v61 = vld [vmem:[#allocation8 + $0x804] sm:$0xf0] }
 0x3a9   :  { %10009 = vmatpush.bf16.msra.mxu2 %v15437_v31  ;;  %v9640_v27 = vadd.f32 %v9639_v10, %v9626_v25  ;;  %v18342_v31 = vld [vmem:[#allocation8 + $0xb24] sm:$0xf0]  ;;  %9914 = vmatpush.bf16.msra.mxu3 %v16273_v34  ;;  %v14917_v50 = vor.u32 %v18242_v61, %v14916_v5  ;;  %v14476_v5 = vld [vmem:[#allocation8 + $0x470] sm:$0xf]  ;;  %v18132_v61 = vld [vmem:[#allocation8 + $0x494] sm:$0xf0] }
 0x3aa   :  { %v15317_v1 = vor.u32 %v18342_v31, %v15316_v41  ;;  %v18322_v10 = vld [vmem:[#allocation8 + $0xa84] sm:$0xf0]  ;;  %v18232_v31 = vld [vmem:[#allocation8 + $0x7b4] sm:$0xf0] }
 0x3ab   :  { %9982 = vmatpush.bf16.msra.mxu0 %v14757_v4  ;;  %v14636_v4 = vld [vmem:[#allocation8 + $0x5b0] sm:$0xf]  ;;  %v9654_v11 = vadd.f32 %v9653_v49, %v9640_v27  ;;  %v18142_v41 = vld [vmem:[#allocation8 + $0x4e4] sm:$0xf0] }
 0x3ac   :  { %9996 = vmatpush.bf16.msra.mxu1 %v15077_v29  ;;  %v19682_v29 = vpop.f32.mrf.mxu2  ;;  %v14637_v57 = vor.u32 %v18172_v42, %v14636_v4  ;;  %v14556_v49 = vld [vmem:[#allocation8 + $0x510] sm:$0xf]  ;;  %v16116_v4 = vld [vmem:[#allocation8 + $0x1140] sm:$0xf]  ;;  %v19686_v42 = vpop.f32.mrf.mxu0 }
 0x3ad   :  { %10010 = vmatpush.bf16.msra.mxu2 %v15397_v32  ;;  %20162 = vst [vmem:[#allocation45_spill] sm:$0xff] %v19682_v29  ;;  %v16190_v32 = vld [vmem:[#allocation8 + $0x1200] sm:$0xf0]  ;;  %v19684_v25 = vadd.f32 %v9667_v23, %v9654_v11  ;;  %9915 = vmatpush.bf16.msra.mxu3 %v16233_v3  ;;  %v14876_v27 = vld [vmem:[#allocation8 + $0x790] sm:$0xf] }
 0x3ae   :  { %v16193_v2 = vor.u32 %v18556_v17, %v16190_v32  ;;  %20164 = vst [vmem:[#allocation22_spill] sm:$0xff] %v19686_v42  ;;  %v18542_v23 = vld [vmem:[#allocation8 + $0x1164] sm:$0xf0]  ;;  %v16436_v11 = vld [vmem:[#allocation8 + $0x13c0] sm:$0xf]  ;;  %v19690_v17 = vpop.f32.mrf.mxu1 }
 0x3af   :  { %9983 = vmatpush.bf16.msra.mxu0 %v14717_v9  ;;  %v15276_v9 = vld [vmem:[#allocation8 + $0xab0] sm:$0xf]  ;;  %20163 = vst [vmem:[#allocation26_spill] sm:$0xff] %v19684_v25  ;;  %v18622_v3 = vld [vmem:[#allocation8 + $0x13e4] sm:$0xf0] }
 0x3b0   :  { %9997 = vmatpush.bf16.msra.mxu1 %v15037_v7  ;;  %v18162_v7 = vld [vmem:[#allocation8 + $0x584] sm:$0xf0]  ;;  %v15277_v34 = vor.u32 %v18332_v56, %v15276_v9  ;;  %20165 = vst [vmem:[#allocation33_spill] sm:$0xff] %v19690_v17  ;;  %v14877_v9 = vor.u32 %v18232_v31, %v14876_v27  ;;  %v18312_v56 = vld [vmem:[#allocation8 + $0xa34] sm:$0xf0] }
 0x3b1   :  { %10011 = vmatpush.bf16.msra.mxu2 %v15357_v26  ;;  %v14597_v26 = vor.u32 %v18162_v7, %v14596_v45  ;;  %9916 = vmatpush.bf16.msra.mxu3 %v16193_v2  ;;  %v16117_v45 = vor.u32 %v18542_v23, %v16116_v4  ;;  %v16437_v7 = vor.u32 %v18622_v3, %v16436_v11  ;;  %v16756_v2 = vld [vmem:[#allocation8 + $0x1640] sm:$0xf]  ;;  %v18692_v4 = vld [vmem:[#allocation8 + $0x1614] sm:$0xf0]  ;;  %v18522_v23 = vld [vmem:[#allocation8 + $0x10c4] sm:$0xf0] }
 0x3b2   :  { %v16356_v11 = vld [vmem:[#allocation8 + $0x1320] sm:$0xf]  ;;  %v18602_v3 = vld [vmem:[#allocation8 + $0x1344] sm:$0xf0]  ;;  %v16236_v17 = vld [vmem:[#allocation8 + $0x1230] sm:$0xf] }
 0x3b3   :  { %9984 = vmatpush.bf16.msra.mxu0 %v14677_v60  ;;  %v15236_v60 = vld [vmem:[#allocation8 + $0xa60] sm:$0xf]  ;;  %v18662_v25 = vld [vmem:[#allocation8 + $0x1524] sm:$0xf0]  ;;  %v18572_v42 = vld [vmem:[#allocation8 + $0x1254] sm:$0xf0] }
 0x3b4   :  { %9998 = vmatpush.bf16.msra.mxu1 %v14997_v18  ;;  %v18152_v18 = vld [vmem:[#allocation8 + $0x534] sm:$0xf0]  ;;  %v19688_v63 = vpop.f32.mrf.mxu2  ;;  %v19692_v27 = vpop.f32.mrf.mxu0  ;;  %v15756_v29 = vld [vmem:[#allocation8 + $0xe70] sm:$0xf] }
 0x3b5   :  { %10012 = vmatpush.bf16.msra.mxu2 %v15317_v1  ;;  %v15237_v1 = vor.u32 %v18322_v10, %v15236_v60  ;;  %v14557_v32 = vor.u32 %v18152_v18, %v14556_v49  ;;  %9917 = vmatpush.bf16.msra.mxu3 %v16153_v20  ;;  %v14477_v10 = vor.u32 %v18132_v61, %v14476_v5  ;;  %v18122_v49 = vld [vmem:[#allocation8 + $0x444] sm:$0xf0]  ;;  %v16716_v18 = vld [vmem:[#allocation8 + $0x15f0] sm:$0xf]  ;;  %v16036_v20 = vld [vmem:[#allocation8 + $0x10a0] sm:$0xf] }
 0x3b6   :  { %v16357_v5 = vor.u32 %v18602_v3, %v16356_v11  ;;  %v18682_v61 = vld [vmem:[#allocation8 + $0x15c4] sm:$0xf0]  ;;  %v16276_v11 = vld [vmem:[#allocation8 + $0x1280] sm:$0xf] }
 0x3b7   :  { %9985 = vmatpush.bf16.msra.mxu0 %v14637_v57  ;;  %v14517_v57 = vor.u32 %v18142_v41, %v14516_v33  ;;  %v16757_v33 = vor.u32 %v18702_v13, %v16756_v2  ;;  %v14436_v41 = vld [vmem:[#allocation8 + $0x420] sm:$0xf]  ;;  %v15996_v2 = vld [vmem:[#allocation8 + $0x1050] sm:$0xf]  ;;  %v18512_v13 = vld [vmem:[#allocation8 + $0x1074] sm:$0xf0] }
 0x3b8   :  { %9999 = vmatpush.bf16.msra.mxu1 %v14957_v19  ;;  %v15196_v19 = vld [vmem:[#allocation8 + $0xa10] sm:$0xf]  ;;  %9918 = vmatmul.bf16.vlgmr.msra.gmra.mxu3 %v19574_v44  ;;  %v18582_v3 = vld [vmem:[#allocation8 + $0x12a4] sm:$0xf0] }
 0x3b9   :  { %10013 = vmatpush.bf16.msra.mxu2 %v15277_v34  ;;  %9966 = vmatpush.bf16.msrb.mxu3 %v14517_v57  ;;  %v16396_v34 = vld [vmem:[#allocation8 + $0x1370] sm:$0xf]  ;;  %v15197_v60 = vor.u32 %v18312_v56, %v15196_v19  ;;  %v14437_v57 = vor.u32 %v18122_v49, %v14436_v41  ;;  %v16037_v19 = vor.u32 %v18522_v23, %v16036_v20  ;;  %v14356_v41 = vld [vmem:[#allocation8 + $0x380] sm:$0xf]  ;;  %v18102_v49 = vld [vmem:[#allocation8 + $0x3a4] sm:$0xf0] }
 0x3ba   :  { %v14396_v56 = vld [vmem:[#allocation8 + $0x3d0] sm:$0xf]  ;;  %v15956_v20 = vld [vmem:[#allocation8 + $0x1000] sm:$0xf]  ;;  %v18502_v23 = vld [vmem:[#allocation8 + $0x1024] sm:$0xf0] }
 0x3bb   :  { %9986 = vmatpush.bf16.msra.mxu0 %v14597_v26  ;;  %v18612_v26 = vld [vmem:[#allocation8 + $0x1394] sm:$0xf0] }
 0x3bc   :  { %10000 = vmatpush.bf16.msra.mxu1 %v14917_v50  ;;  %v16077_v50 = vor.u32 %v18532_v59, %v16076_v55  ;;  %v16397_v31 = vor.u32 %v18612_v26, %v16396_v34  ;;  %v19699_v59 = vpop.f32.mrf.mxu1  ;;  %v16316_v55 = vld [vmem:[#allocation8 + $0x12d0] sm:$0xf]  ;;  %v18592_v34 = vld [vmem:[#allocation8 + $0x12f4] sm:$0xf0]  ;;  %v19704_v26 = vld [vmem:[#allocation10] sm:$0xff] }
 0x3bd   :  { %10014 = vmatpush.bf16.msra.mxu2 %v15237_v1  ;;  %v19697_v1 = vpop.f32.mrf.mxu2  ;;  %9967 = vmatpush.bf16.msrb.mxu3 %v14477_v10 }
 0x3bf   :  { %9987 = vmatpush.bf16.msra.mxu0 %v14557_v32  ;;  %v19701_v32 = vpop.f32.mrf.mxu3 }
 0x3c0   :  { %10001 = vmatpush.bf16.msra.mxu1 %v14877_v9  ;;  %20166 = vst [vmem:[#allocation42_spill] sm:$0xff] %v19701_v32  ;;  %v16717_v9 = vor.u32 %v18692_v4, %v16716_v18  ;;  %v16636_v18 = vld [vmem:[#allocation8 + $0x1550] sm:$0xf]  ;;  %v18672_v4 = vld [vmem:[#allocation8 + $0x1574] sm:$0xf0] }
 0x3c1   :  { %10015 = vmatpush.bf16.msra.mxu2 %v15197_v60  ;;  %v20094_v60 = vperm.slane %v19704_v26, 2  ;;  %9968 = vmatpush.bf16.msrb.mxu3 %v14437_v57  ;;  %v19710_v57 = vpop.f32.mrf.mxu0 }
 0x3c2   :  { %9988 = vmatmul.bf16.vlgmr.msra.gmra.mxu0 %v19521_v15 }
 0x3c3   :  { %10036 = vmatpush.bf16.msrb.mxu0 %v16117_v45  ;;  %10002 = vmatmul.bf16.vlgmr.msra.gmra.mxu1 %v19523_v38  ;;  %v18112_v45 = vld [vmem:[#allocation8 + $0x3f4] sm:$0xf0]  ;;  %v9682_v48 = vadd.f32 %v19688_v63, %v20094_v60  ;;  %v15916_v63 = vld [vmem:[#allocation8 + $0xfb0] sm:$0xf] }
 0x3c4   :  { %10050 = vmatpush.bf16.msrb.mxu1 %v16437_v7  ;;  %v16676_v7 = vld [vmem:[#allocation8 + $0x15a0] sm:$0xf]  ;;  %10016 = vmatmul.bf16.vlgmr.msra.gmra.mxu2 %v19527_v12  ;;  %v14397_v10 = vor.u32 %v18112_v45, %v14396_v56  ;;  %v16637_v56 = vor.u32 %v18672_v4, %v16636_v18  ;;  %v18492_v60 = vld [vmem:[#allocation8 + $0xfd4] sm:$0xf0]  ;;  %v18082_v18 = vld [vmem:[#allocation8 + $0x304] sm:$0xf0] }
 0x3c5   :  { %10064 = vmatpush.bf16.msrb.mxu2 %v16757_v33  ;;  %v16677_v33 = vor.u32 %v18682_v61, %v16676_v7  ;;  %v15957_v7 = vor.u32 %v18502_v23, %v15956_v20  ;;  %v18092_v61 = vld [vmem:[#allocation8 + $0x354] sm:$0xf0]  ;;  %v16556_v4 = vld [vmem:[#allocation8 + $0x14b0] sm:$0xf]  ;;  %v15876_v20 = vld [vmem:[#allocation8 + $0xf60] sm:$0xf] }
 0x3c6   :  { %9969 = vmatpush.bf16.msrb.mxu3 %v14397_v10  ;;  %v18482_v23 = vld [vmem:[#allocation8 + $0xf84] sm:$0xf0] }
 0x3c7   :  { %10037 = vmatpush.bf16.msrb.mxu0 %v16077_v50  ;;  %v15997_v50 = vor.u32 %v18512_v13, %v15996_v2  ;;  %v9695_v45 = vpop.f32.mrf.mxu3  ;;  %v16596_v2 = vld [vmem:[#allocation8 + $0x1500] sm:$0xf]  ;;  %v19712_v13 = vpop.f32.mrf.mxu1 }
 0x3c8   :  { %10051 = vmatpush.bf16.msrb.mxu1 %v16397_v31  ;;  %v16317_v31 = vor.u32 %v18592_v34, %v16316_v55  ;;  %20167 = vst [vmem:[#allocation27_spill] sm:$0xff] %v19712_v13  ;;  %v9696_v55 = vadd.f32 %v9695_v45, %v9682_v48  ;;  %v16277_v34 = vor.u32 %v18582_v3, %v16276_v11  ;;  %v18652_v48 = vld [vmem:[#allocation8 + $0x14d4] sm:$0xf0]  ;;  %v16196_v3 = vld [vmem:[#allocation8 + $0x11e0] sm:$0xf] }
 0x3c9   :  { %10065 = vmatpush.bf16.msrb.mxu2 %v16717_v9  ;;  %v9737_v9 = vpop.f32.mrf.mxu2  ;;  %v18562_v45 = vld [vmem:[#allocation8 + $0x1204] sm:$0xf0]  ;;  %v18218_v13 = vld [vmem:[#allocation8 + $0x74c] sm:$0xf] }
 0x3ca   :  { %v9710_v10 = vadd.f32 %v19692_v27, %v9696_v55  ;;  %v16197_v55 = vor.u32 %v18562_v45, %v16196_v3  ;;  %v18632_v3 = vld [vmem:[#allocation8 + $0x1434] sm:$0xf0] }
 0x3cb   :  { %10038 = vmatpush.bf16.msrb.mxu0 %v16037_v19  ;;  %v14357_v19 = vor.u32 %v18102_v49, %v14356_v41  ;;  %v15917_v41 = vor.u32 %v18492_v60, %v15916_v63  ;;  %v14276_v49 = vld [vmem:[#allocation8 + $0x2e0] sm:$0xf]  ;;  %v16557_v60 = vor.u32 %v18652_v48, %v16556_v4  ;;  %v15836_v63 = vld [vmem:[#allocation8 + $0xf10] sm:$0xf]  ;;  %v14518_v4 = vld [vmem:[#allocation8 + $0x4e8] sm:$0xf0] }
 0x3cc   :  { %10052 = vmatpush.bf16.msrb.mxu1 %v16357_v5  ;;  %v14316_v5 = vld [vmem:[#allocation8 + $0x330] sm:$0xf]  ;;  %v9724_v11 = vadd.f32 %v19699_v59, %v9710_v10  ;;  %v14277_v27 = vor.u32 %v18082_v18, %v14276_v49  ;;  %v18472_v10 = vld [vmem:[#allocation8 + $0xf34] sm:$0xf0]  ;;  %v18137_v18 = vld [vmem:[#allocation8 + $0x4c4] sm:$0xf] }
 0x3cd   :  { %10066 = vmatpush.bf16.msrb.mxu2 %v16677_v33  ;;  %9970 = vmatpush.bf16.msrb.mxu3 %v14357_v19  ;;  %v14317_v33 = vor.u32 %v18092_v61, %v14316_v5  ;;  %v19716_v19 = vpop.f32.mrf.mxu0  ;;  %v15877_v5 = vor.u32 %v18482_v23, %v15876_v20  ;;  %v15796_v61 = vld [vmem:[#allocation8 + $0xec0] sm:$0xf]  ;;  %v18552_v49 = vld [vmem:[#allocation8 + $0x11b4] sm:$0xf0]  ;;  %v15837_v23 = vor.u32 %v18472_v10, %v15836_v63 }
 0x3ce   :  { %v14521_v32 = vor.u32 %v18137_v18, %v14518_v4  ;;  %v15716_v10 = vld [vmem:[#allocation8 + $0xe20] sm:$0xf]  ;;  %v18037_v18 = vld [vmem:[#allocation8 + $0x1a4] sm:$0xf]  ;;  %v14118_v4 = vld [vmem:[#allocation8 + $0x1c8] sm:$0xf0] }
 0x3cf   :  { %10039 = vmatpush.bf16.msrb.mxu0 %v15997_v50  ;;  %v16597_v50 = vor.u32 %v18662_v25, %v16596_v2  ;;  %v19718_v25 = vadd.f32 %v9737_v9, %v9724_v11  ;;  %v19722_v59 = vpop.f32.mrf.mxu1  ;;  %v18057_v9 = vld [vmem:[#allocation8 + $0x244] sm:$0xf] }
 0x3d0   :  { %10053 = vmatpush.bf16.msrb.mxu1 %v16317_v31  ;;  %v16237_v31 = vor.u32 %v18572_v42, %v16236_v17  ;;  %v16516_v42 = vld [vmem:[#allocation8 + $0x1460] sm:$0xf]  ;;  %v18642_v17 = vld [vmem:[#allocation8 + $0x1484] sm:$0xf0] }
 0x3d1   :  { %10067 = vmatpush.bf16.msrb.mxu2 %v16637_v56  ;;  %9971 = vmatpush.bf16.msrb.mxu3 %v14317_v33  ;;  %v14236_v56 = vld [vmem:[#allocation8 + $0x290] sm:$0xf]  ;;  %v19720_v2 = vpop.f32.mrf.mxu2  ;;  %v16517_v48 = vor.u32 %v18642_v17, %v16516_v42 }
 0x3d2   :  { %20168 = vst [vmem:[#allocation37_spill] sm:$0xff] %v19720_v2  ;;  %v16156_v33 = vld [vmem:[#allocation8 + $0x1190] sm:$0xf]  ;;  %v18533_v2 = vld [vmem:[#allocation8 + $0x111c] sm:$0xf0] }
 0x3d3   :  { %10040 = vmatpush.bf16.msrb.mxu0 %v15957_v7  ;;  %v18072_v7 = vld [vmem:[#allocation8 + $0x2b4] sm:$0xf0]  ;;  %v16157_v11 = vor.u32 %v18552_v49, %v16156_v33  ;;  %v18442_v33 = vld [vmem:[#allocation8 + $0xe44] sm:$0xf0]  ;;  %v18207_v49 = vld [vmem:[#allocation8 + $0x6f4] sm:$0xf] }
 0x3d4   :  { %10054 = vmatpush.bf16.msrb.mxu1 %v16277_v34  ;;  %v18462_v34 = vld [vmem:[#allocation8 + $0xee4] sm:$0xf0] }
 0x3d5   :  { %10068 = vmatpush.bf16.msrb.mxu2 %v16597_v50  ;;  %9972 = vmatpush.bf16.msrb.mxu3 %v14277_v27  ;;  %v14237_v50 = vor.u32 %v18072_v7, %v14236_v56  ;;  %v15797_v20 = vor.u32 %v18462_v34, %v15796_v61  ;;  %v14838_v27 = vld [vmem:[#allocation8 + $0x768] sm:$0xf0]  ;;  %v18047_v56 = vld [vmem:[#allocation8 + $0x1f4] sm:$0xf]  ;;  %v14158_v7 = vld [vmem:[#allocation8 + $0x218] sm:$0xf0]  ;;  %v19724_v42 = vpop.f32.mrf.mxu0 }
 0x3d6   :  { %20169 = vst [vmem:[#allocation23_spill] sm:$0xff] %v19724_v42  ;;  %v14841_v34 = vor.u32 %v18217_v0, %v14838_v27  ;;  %v14161_v63 = vor.u32 %v18047_v56, %v14158_v7  ;;  %v15717_v0 = vor.u32 %v18442_v33, %v15716_v10  ;;  %v14758_v27 = vld [vmem:[#allocation8 + $0x6c8] sm:$0xf0]  ;;  %v18027_v56 = vld [vmem:[#allocation8 + $0x154] sm:$0xf] }
 0x3d7   :  { %10041 = vmatpush.bf16.msrb.mxu0 %v15917_v41  ;;  %v14198_v41 = vld [vmem:[#allocation8 + $0x268] sm:$0xf0]  ;;  %v14078_v7 = vld [vmem:[#allocation8 + $0x178] sm:$0xf0]  ;;  %v15636_v33 = vld [vmem:[#allocation8 + $0xd80] sm:$0xf] }
 0x3d8   :  { %10055 = vmatpush.bf16.msrb.mxu1 %v16237_v31  ;;  %v16476_v31 = vld [vmem:[#allocation8 + $0x1410] sm:$0xf]  ;;  %v14201_v45 = vor.u32 %v18057_v9, %v14198_v41  ;;  %v19728_v9 = vpop.f32.mrf.mxu1  ;;  %v14798_v41 = vld [vmem:[#allocation8 + $0x718] sm:$0xf0]  ;;  %v14081_v10 = vor.u32 %v18027_v56, %v14078_v7  ;;  %v18412_v7 = vld [vmem:[#allocation8 + $0xd54] sm:$0xf0] }
 0x3d9   :  { %10069 = vmatpush.bf16.msrb.mxu2 %v16557_v60  ;;  %9973 = vmatpush.bf16.msrb.mxu3 %v14237_v50  ;;  %v18127_v60 = vld [vmem:[#allocation8 + $0x474] sm:$0xf]  ;;  %v19726_v17 = vpop.f32.mrf.mxu2  ;;  %v16477_v61 = vor.u32 %v18632_v3, %v16476_v31  ;;  %20170 = vst [vmem:[#allocation30_spill] sm:$0xff] %v19728_v9  ;;  %v18432_v31 = vld [vmem:[#allocation8 + $0xdf4] sm:$0xf0] }
 0x3da   :  { %v18197_v3 = vld [vmem:[#allocation8 + $0x6a4] sm:$0xf]  ;;  %v15596_v56 = vld [vmem:[#allocation8 + $0xd30] sm:$0xf]  ;;  %v15484_v9 = vld [vmem:[#allocation8 + $0xc48] sm:$0xf] }
 0x3db   :  { %10042 = vmatpush.bf16.msrb.mxu0 %v15877_v5  ;;  %v14478_v5 = vld [vmem:[#allocation8 + $0x498] sm:$0xf0]  ;;  %v14924_v42 = vld [vmem:[#allocation8 + $0x7e8] sm:$0xf] }
 0x3dc   :  { %10056 = vmatpush.bf16.msrb.mxu1 %v16197_v55  ;;  %v15757_v55 = vor.u32 %v18452_v30, %v15756_v29  ;;  %9974 = vmatmul.bf16.vlgmr.msrb.gmra.mxu3 %v19455_v58  ;;  %v14481_v50 = vor.u32 %v18127_v60, %v14478_v5  ;;  %v18117_v30 = vld [vmem:[#allocation8 + $0x424] sm:$0xf]  ;;  %v14438_v29 = vld [vmem:[#allocation8 + $0x448] sm:$0xf0]  ;;  %v18107_v60 = vld [vmem:[#allocation8 + $0x3d4] sm:$0xf] }
 0x3dd   :  { %10070 = vmatpush.bf16.msrb.mxu2 %v16517_v48  ;;  %10022 = vmatpush.bf16.msra.mxu3 %v15797_v20  ;;  %v19734_v48 = vpop.f32.mrf.mxu3  ;;  %v14801_v20 = vor.u32 %v18207_v49, %v14798_v41  ;;  %v14398_v5 = vld [vmem:[#allocation8 + $0x3f8] sm:$0xf0]  ;;  %v18422_v49 = vld [vmem:[#allocation8 + $0xda4] sm:$0xf0] }
 0x3df   :  { %10043 = vmatpush.bf16.msrb.mxu0 %v15837_v23  ;;  %v14121_v23 = vor.u32 %v18037_v18, %v14118_v4  ;;  %v14401_v4 = vor.u32 %v18107_v60, %v14398_v5  ;;  %v14678_v5 = vld [vmem:[#allocation8 + $0x628] sm:$0xf0] }
 0x3e0   :  { %10057 = vmatpush.bf16.msrb.mxu1 %v16157_v11  ;;  %v15676_v11 = vld [vmem:[#allocation8 + $0xdd0] sm:$0xf]  ;;  %v9835_v18 = vpop.f32.mrf.mxu1 }
 0x3e1   :  { %10071 = vmatpush.bf16.msrb.mxu2 %v16477_v61  ;;  %10023 = vmatpush.bf16.msra.mxu3 %v15757_v55  ;;  %v9821_v61 = vpop.f32.mrf.mxu0  ;;  %v15677_v55 = vor.u32 %v18432_v31, %v15676_v11  ;;  %v19739_v41 = vpop.f32.mrf.mxu2  ;;  %v18097_v11 = vld [vmem:[#allocation8 + $0x384] sm:$0xf] }
 0x3e2   :  { %10044 = vmatmul.bf16.vlgmr.msrb.gmra.mxu0 %v19572_v6  ;;  %20171 = vst [vmem:[#allocation34_spill] sm:$0xff] %v19739_v41  ;;  %v16838_v41 = vld [vmem:[#allocation8 + $0x1708] sm:$0xf0] }
 0x3e3   :  { %10092 = vmatpush.bf16.msra.mxu0 %v14201_v45  ;;  %10058 = vmatmul.bf16.vlgmr.msrb.gmra.mxu1 %v19574_v44  ;;  %v14441_v45 = vor.u32 %v18117_v30, %v14438_v29  ;;  %v14718_v30 = vld [vmem:[#allocation8 + $0x678] sm:$0xf0]  ;;  %v18017_v29 = vld [vmem:[#allocation8 + $0x104] sm:$0xf] }
 0x3e4   :  { %10106 = vmatpush.bf16.msra.mxu1 %v14521_v32  ;;  %v20095_v32 = vperm.slane %v19704_v26, 3  ;;  %10072 = vmatmul.bf16.vlgmr.msrb.gmra.mxu2 %v19582_v51 }
 0x3e5   :  { %10120 = vmatpush.bf16.msra.mxu2 %v14841_v34  ;;  %10024 = vmatpush.bf16.msra.mxu3 %v15717_v0  ;;  %v14038_v0 = vld [vmem:[#allocation8 + $0x128] sm:$0xf0] }
 0x3e6   :  { %v9822_v34 = vadd.f32 %v9821_v61, %v20095_v32  ;;  %v18177_v61 = vld [vmem:[#allocation8 + $0x604] sm:$0xf]  ;;  %v18007_v32 = vld [vmem:[#allocation8 + $0xb4] sm:$0xf] }
 0x3e7   :  { %10093 = vmatpush.bf16.msra.mxu0 %v14161_v63  ;;  %v14761_v63 = vor.u32 %v18197_v3, %v14758_v27  ;;  %v9751_v3 = vpop.f32.mrf.mxu3  ;;  %v14041_v27 = vor.u32 %v18017_v29, %v14038_v0  ;;  %v14638_v29 = vld [vmem:[#allocation8 + $0x5d8] sm:$0xf0]  ;;  %v17997_v0 = vld [vmem:[#allocation8 + $0x64] sm:$0xf] }
 0x3e8   :  { %10107 = vmatpush.bf16.msra.mxu1 %v14481_v50  ;;  %v18187_v50 = vld [vmem:[#allocation8 + $0x654] sm:$0xf]  ;;  %v9836_v8 = vadd.f32 %v9835_v18, %v9822_v34  ;;  %v14318_v18 = vld [vmem:[#allocation8 + $0x358] sm:$0xf0] }
 0x3e9   :  { %10121 = vmatpush.bf16.msra.mxu2 %v14801_v20  ;;  %v14358_v20 = vld [vmem:[#allocation8 + $0x3a8] sm:$0xf0]  ;;  %10025 = vmatpush.bf16.msra.mxu3 %v15677_v55  ;;  %v14721_v31 = vor.u32 %v18187_v50, %v14718_v30  ;;  %v18087_v34 = vld [vmem:[#allocation8 + $0x334] sm:$0xf]  ;;  %v18402_v50 = vld [vmem:[#allocation8 + $0xd04] sm:$0xf0] }
 0x3ea   :  { %v14361_v60 = vor.u32 %v18097_v11, %v14358_v20  ;;  %v18167_v30 = vld [vmem:[#allocation8 + $0x5b4] sm:$0xf]  ;;  %v13958_v11 = vld [vmem:[#allocation8 + $0x88] sm:$0xf0] }
 0x3eb   :  { %10094 = vmatpush.bf16.msra.mxu0 %v14121_v23  ;;  %v15637_v23 = vor.u32 %v18422_v49, %v15636_v33  ;;  %v14001_v33 = vor.u32 %v18007_v32, %v13998_v52  ;;  %v15556_v49 = vld [vmem:[#allocation8 + $0xce0] sm:$0xf]  ;;  %v14641_v32 = vor.u32 %v18167_v30, %v14638_v29 }
 0x3ec   :  { %10108 = vmatpush.bf16.msra.mxu1 %v14441_v45  ;;  %v9752_v45 = vadd.f32 %v9751_v3, %v19718_v25  ;;  %v14321_v25 = vor.u32 %v18087_v34, %v14318_v18  ;;  %v13918_v34 = vld [vmem:[#allocation8 + $0x38] sm:$0xf0]  ;;  %v18067_v18 = vld [vmem:[#allocation8 + $0x294] sm:$0xf] }
 0x3ed   :  { %10122 = vmatpush.bf16.msra.mxu2 %v14761_v63  ;;  %10026 = vmatpush.bf16.msra.mxu3 %v15637_v23  ;;  %v15597_v63 = vor.u32 %v18412_v7, %v15596_v56  ;;  %v18077_v23 = vld [vmem:[#allocation8 + $0x2e4] sm:$0xf]  ;;  %v18392_v56 = vld [vmem:[#allocation8 + $0xcb4] sm:$0xf0]  ;;  %v13961_v7 = vor.u32 %v17997_v0, %v13958_v11  ;;  %v14558_v0 = vld [vmem:[#allocation8 + $0x538] sm:$0xf0] }
 0x3ee   :  { %v9766_v55 = vadd.f32 %v19716_v19, %v9752_v45  ;;  %v14278_v19 = vld [vmem:[#allocation8 + $0x308] sm:$0xf0] }
 0x3ef   :  { %10095 = vmatpush.bf16.msra.mxu0 %v14081_v10  ;;  %v14681_v10 = vor.u32 %v18177_v61, %v14678_v5  ;;  %v18157_v61 = vld [vmem:[#allocation8 + $0x564] sm:$0xf]  ;;  %v14598_v45 = vld [vmem:[#allocation8 + $0x588] sm:$0xf0]  ;;  %v17987_v5 = vld [vmem:[#allocation8 + $0x14] sm:$0xf] }
 0x3f0   :  { %10109 = vmatpush.bf16.msra.mxu1 %v14401_v4  ;;  %v9849_v4 = vpop.f32.mrf.mxu2  ;;  %v9780_v20 = vadd.f32 %v19722_v59, %v9766_v55  ;;  %v14281_v59 = vor.u32 %v18077_v23, %v14278_v19  ;;  %v14238_v55 = vld [vmem:[#allocation8 + $0x2b8] sm:$0xf0]  ;;  %v13921_v30 = vor.u32 %v17987_v5, %v13918_v34  ;;  %v17036_v23 = vld [vmem:[#allocation8 + $0x1870] sm:$0xf]  ;;  %v18772_v19 = vld [vmem:[#allocation8 + $0x1894] sm:$0xf0] }
 0x3f1   :  { %10123 = vmatpush.bf16.msra.mxu2 %v14721_v31  ;;  %v19744_v3 = vadd.f32 %v9849_v4, %v9836_v8  ;;  %10027 = vmatpush.bf16.msra.mxu3 %v15597_v63  ;;  %v15557_v31 = vor.u32 %v18402_v50, %v15556_v49  ;;  %v18782_v8 = vld [vmem:[#allocation8 + $0x18e4] sm:$0xf0]  ;;  %v18377_v63 = vld [vmem:[#allocation8 + $0xc44] sm:$0xf]  ;;  %v15478_v50 = vld [vmem:[#allocation8 + $0xc68] sm:$0xf0]  ;;  %v14241_v29 = vor.u32 %v18067_v18, %v14238_v55 }
 0x3f2   :  { %v19747_v52 = vadd.f32 %v19726_v17, %v9780_v20  ;;  %v18457_v17 = vld [vmem:[#allocation8 + $0xec4] sm:$0xf]  ;;  %v15798_v4 = vld [vmem:[#allocation8 + $0xee8] sm:$0xf0]  ;;  %v15481_v11 = vor.u32 %v18377_v63, %v15478_v50  ;;  %v18762_v5 = vld [vmem:[#allocation8 + $0x1844] sm:$0xf0] }
 0x3f3   :  { %10096 = vmatpush.bf16.msra.mxu0 %v14041_v27  ;;  %v15516_v27 = vld [vmem:[#allocation8 + $0xc90] sm:$0xf]  ;;  %v15801_v20 = vor.u32 %v18457_v17, %v15798_v4  ;;  %v18527_v34 = vld [vmem:[#allocation8 + $0x10f4] sm:$0xf]  ;;  %v16078_v55 = vld [vmem:[#allocation8 + $0x1118] sm:$0xf0] }
 0x3f4   :  { %10110 = vmatpush.bf16.msra.mxu1 %v14361_v60  ;;  %v17076_v60 = vld [vmem:[#allocation8 + $0x18c0] sm:$0xf]  ;;  %v15517_v49 = vor.u32 %v18392_v56, %v15516_v27  ;;  %v18367_v27 = vld [vmem:[#allocation8 + $0xbf4] sm:$0xf]  ;;  %v15438_v56 = vld [vmem:[#allocation8 + $0xc18] sm:$0xf0] }
 0x3f5   :  { %10124 = vmatpush.bf16.msra.mxu2 %v14681_v10  ;;  %10028 = vmatpush.bf16.msra.mxu3 %v15557_v31  ;;  %v14601_v10 = vor.u32 %v18157_v61, %v14598_v45  ;;  %v16118_v31 = vld [vmem:[#allocation8 + $0x1168] sm:$0xf0]  ;;  %v17037_v45 = vor.u32 %v18772_v19, %v17036_v23  ;;  %v18357_v63 = vld [vmem:[#allocation8 + $0xba4] sm:$0xf]  ;;  %v15358_v23 = vld [vmem:[#allocation8 + $0xb78] sm:$0xf0] }
 0x3f6   :  { %v18437_v50 = vld [vmem:[#allocation8 + $0xe24] sm:$0xf]  ;;  %v15718_v17 = vld [vmem:[#allocation8 + $0xe48] sm:$0xf0]  ;;  %v18427_v19 = vld [vmem:[#allocation8 + $0xdd4] sm:$0xf] }
 0x3f7   :  { %10097 = vmatpush.bf16.msra.mxu0 %v14001_v33  ;;  %v17077_v33 = vor.u32 %v18782_v8, %v17076_v60  ;;  %v16121_v60 = vor.u32 %v18537_v37, %v16118_v31  ;;  %v16996_v8 = vld [vmem:[#allocation8 + $0x1820] sm:$0xf]  ;;  %v19752_v37 = vpop.f32.mrf.mxu3  ;;  %v15678_v31 = vld [vmem:[#allocation8 + $0xdf8] sm:$0xf0] }
 0x3f8   :  { %10111 = vmatpush.bf16.msra.mxu1 %v14321_v25  ;;  %v18147_v25 = vld [vmem:[#allocation8 + $0x514] sm:$0xf]  ;;  %v16997_v4 = vor.u32 %v18762_v5, %v16996_v8  ;;  %20172 = vst [vmem:[#allocation28_spill] sm:$0xff] %v19752_v37  ;;  %v18337_v8 = vld [vmem:[#allocation8 + $0xb04] sm:$0xf] }
 0x3f9   :  { %10125 = vmatpush.bf16.msra.mxu2 %v14641_v32  ;;  %10029 = vmatpush.bf16.msra.mxu3 %v15517_v49  ;;  %v18447_v32 = vld [vmem:[#allocation8 + $0xe74] sm:$0xf]  ;;  %v14561_v61 = vor.u32 %v18147_v25, %v14558_v0  ;;  %v15398_v49 = vld [vmem:[#allocation8 + $0xbc8] sm:$0xf0]  ;;  %v18517_v25 = vld [vmem:[#allocation8 + $0x10a4] sm:$0xf]  ;;  %v15721_v0 = vor.u32 %v18437_v50, %v15718_v17 }
 0x3fa   :  { %v15318_v5 = vld [vmem:[#allocation8 + $0xb28] sm:$0xf0]  ;;  %v16876_v17 = vld [vmem:[#allocation8 + $0x1730] sm:$0xf]  ;;  %v18133_v37 = vld [vmem:[#allocation8 + $0x49c] sm:$0xf0] }
 0x3fb   :  { %10098 = vmatpush.bf16.msra.mxu0 %v13961_v7  ;;  %v15758_v7 = vld [vmem:[#allocation8 + $0xe98] sm:$0xf0]  ;;  %v15321_v50 = vor.u32 %v18337_v8, %v15318_v5  ;;  %v16796_v5 = vld [vmem:[#allocation8 + $0x1690] sm:$0xf] }
 0x3fc   :  { %10112 = vmatpush.bf16.msra.mxu1 %v14281_v59  ;;  %v15441_v59 = vor.u32 %v18367_v27, %v15438_v56  ;;  %10030 = vmatmul.bf16.vlgmr.msra.gmra.mxu3 %v19534_v54  ;;  %v15761_v18 = vor.u32 %v18447_v32, %v15758_v7  ;;  %v16916_v7 = vld [vmem:[#allocation8 + $0x1780] sm:$0xf] }
 0x3fd   :  { %10126 = vmatpush.bf16.msra.mxu2 %v14601_v10  ;;  %10078 = vmatpush.bf16.msrb.mxu3 %v17077_v33  ;;  %v16081_v10 = vor.u32 %v18527_v34, %v16078_v55  ;;  %v15401_v33 = vor.u32 %v18357_v63, %v15398_v49  ;;  %v18417_v34 = vld [vmem:[#allocation8 + $0xd84] sm:$0xf] }
 0x3ff   :  { %10099 = vmatpush.bf16.msra.mxu0 %v13921_v30  ;;  %v16956_v30 = vld [vmem:[#allocation8 + $0x17d0] sm:$0xf]  ;;  %v9807_v49 = vpop.f32.mrf.mxu3 }
 0x400   :  { %10113 = vmatpush.bf16.msra.mxu1 %v14241_v29  ;;  %v18752_v29 = vld [vmem:[#allocation8 + $0x17f4] sm:$0xf0] }
 0x401   :  { %10127 = vmatpush.bf16.msra.mxu2 %v14561_v61  ;;  %10079 = vmatpush.bf16.msrb.mxu3 %v17037_v45  ;;  %v16957_v27 = vor.u32 %v18752_v29, %v16956_v30  ;;  %v18742_v61 = vld [vmem:[#allocation8 + $0x17a4] sm:$0xf0]  ;;  %v18507_v45 = vld [vmem:[#allocation8 + $0x1054] sm:$0xf]  ;;  %v15958_v29 = vld [vmem:[#allocation8 + $0x1028] sm:$0xf0] }
 0x402   :  { %10100 = vmatmul.bf16.vlgmr.msra.gmra.mxu0 %v19439_v36  ;;  %v16917_v55 = vor.u32 %v18742_v61, %v16916_v7  ;;  %v15918_v61 = vld [vmem:[#allocation8 + $0xfd8] sm:$0xf0] }
 0x403   :  { %10148 = vmatpush.bf16.msrb.mxu0 %v15481_v11  ;;  %10114 = vmatmul.bf16.vlgmr.msra.gmra.mxu1 %v19455_v58  ;;  %v16038_v11 = vld [vmem:[#allocation8 + $0x10c8] sm:$0xf0] }
 0x404   :  { %10162 = vmatpush.bf16.msrb.mxu1 %v15801_v20  ;;  %v18347_v20 = vld [vmem:[#allocation8 + $0xb54] sm:$0xf]  ;;  %10128 = vmatmul.bf16.vlgmr.msra.gmra.mxu2 %v19521_v15  ;;  %v16041_v56 = vor.u32 %v18517_v25, %v16038_v11 }
 0x405   :  { %10176 = vmatpush.bf16.msrb.mxu2 %v16121_v60  ;;  %10080 = vmatpush.bf16.msrb.mxu3 %v16997_v4  ;;  %v15361_v32 = vor.u32 %v18347_v20, %v15358_v23  ;;  %v15681_v60 = vor.u32 %v18427_v19, %v15678_v31  ;;  %v18732_v4 = vld [vmem:[#allocation8 + $0x1754] sm:$0xf0]  ;;  %v18327_v25 = vld [vmem:[#allocation8 + $0xab4] sm:$0xf]  ;;  %v15598_v20 = vld [vmem:[#allocation8 + $0xd58] sm:$0xf0] }
 0x406   :  { %v18407_v11 = vld [vmem:[#allocation8 + $0xd34] sm:$0xf]  ;;  %v16877_v23 = vor.u32 %v18732_v4, %v16876_v17  ;;  %v15158_v4 = vld [vmem:[#allocation8 + $0x9e8] sm:$0xf0] }
 0x407   :  { %10149 = vmatpush.bf16.msrb.mxu0 %v15441_v59  ;;  %v15998_v59 = vld [vmem:[#allocation8 + $0x1078] sm:$0xf0]  ;;  %v15601_v7 = vor.u32 %v18407_v11, %v15598_v20  ;;  %v16758_v20 = vld [vmem:[#allocation8 + $0x1668] sm:$0xf0] }
 0x408   :  { %10163 = vmatpush.bf16.msrb.mxu1 %v15761_v18  ;;  %v15638_v18 = vld [vmem:[#allocation8 + $0xda8] sm:$0xf0]  ;;  %v16001_v63 = vor.u32 %v18507_v45, %v15998_v59 }
 0x409   :  { %10177 = vmatpush.bf16.msrb.mxu2 %v16081_v10  ;;  %10081 = vmatpush.bf16.msrb.mxu3 %v16957_v27  ;;  %v18497_v10 = vld [vmem:[#allocation8 + $0x1004] sm:$0xf]  ;;  %v15641_v30 = vor.u32 %v18417_v34, %v15638_v18  ;;  %v16836_v27 = vld [vmem:[#allocation8 + $0x16e0] sm:$0xf]  ;;  %v15238_v45 = vld [vmem:[#allocation8 + $0xa88] sm:$0xf0] }
 0x40a   :  { %v15961_v19 = vor.u32 %v18497_v10, %v15958_v29  ;;  %v15558_v59 = vld [vmem:[#allocation8 + $0xd08] sm:$0xf0]  ;;  %v18712_v34 = vld [vmem:[#allocation8 + $0x16b4] sm:$0xf0]  ;;  %v18307_v10 = vld [vmem:[#allocation8 + $0xa14] sm:$0xf] }
 0x40b   :  { %10150 = vmatpush.bf16.msrb.mxu0 %v15401_v33  ;;  %v19756_v33 = vadd.f32 %v9807_v49, %v19747_v52  ;;  %v18317_v52 = vld [vmem:[#allocation8 + $0xa64] sm:$0xf]  ;;  %v15878_v49 = vld [vmem:[#allocation8 + $0xf88] sm:$0xf0]  ;;  %v18387_v29 = vld [vmem:[#allocation8 + $0xc94] sm:$0xf]  ;;  %v16797_v11 = vor.u32 %v18712_v34, %v16796_v5 }
 0x40c   :  { %10164 = vmatpush.bf16.msrb.mxu1 %v15721_v0  ;;  %v15278_v0 = vld [vmem:[#allocation8 + $0xad8] sm:$0xf0]  ;;  %v18687_v5 = vld [vmem:[#allocation8 + $0x15f4] sm:$0xf] }
 0x40d   :  { %10178 = vmatpush.bf16.msrb.mxu2 %v16041_v56  ;;  %20173 = vst [vmem:[#allocation43_spill] sm:$0xff] %v19756_v33  ;;  %10082 = vmatpush.bf16.msrb.mxu3 %v16917_v55  ;;  %v15281_v31 = vor.u32 %v18327_v25, %v15278_v0  ;;  %v18722_v56 = vld [vmem:[#allocation8 + $0x1704] sm:$0xf0]  ;;  %v15241_v55 = vor.u32 %v18317_v52, %v15238_v45  ;;  %v15518_v25 = vld [vmem:[#allocation8 + $0xcb8] sm:$0xf0] }
 0x40e   :  { %v16837_v8 = vor.u32 %v18722_v56, %v16836_v27  ;;  %v18697_v0 = vld [vmem:[#allocation8 + $0x1644] sm:$0xf]  ;;  %v17078_v27 = vld [vmem:[#allocation8 + $0x18e8] sm:$0xf0]  ;;  %v14204_v33 = vld [vmem:[#allocation8 + $0x248] sm:$0xf] }
 0x40f   :  { %10151 = vmatpush.bf16.msrb.mxu0 %v15361_v32  ;;  %v18487_v32 = vld [vmem:[#allocation8 + $0xfb4] sm:$0xf]  ;;  %v16761_v52 = vor.u32 %v18697_v0, %v16758_v20  ;;  %v16718_v34 = vld [vmem:[#allocation8 + $0x1618] sm:$0xf0]  ;;  %v18677_v0 = vld [vmem:[#allocation8 + $0x15a4] sm:$0xf] }
 0x410   :  { %10165 = vmatpush.bf16.msrb.mxu1 %v15681_v60  ;;  %v18397_v60 = vld [vmem:[#allocation8 + $0xce4] sm:$0xf]  ;;  %v15921_v18 = vor.u32 %v18487_v32, %v15918_v61  ;;  %v15521_v32 = vor.u32 %v18387_v29, %v15518_v25  ;;  %v15838_v61 = vld [vmem:[#allocation8 + $0xf38] sm:$0xf0]  ;;  %v18053_v25 = vld [vmem:[#allocation8 + $0x21c] sm:$0xf0] }
 0x411   :  { %10179 = vmatpush.bf16.msrb.mxu2 %v16001_v63  ;;  %10083 = vmatpush.bf16.msrb.mxu3 %v16877_v23  ;;  %v18477_v63 = vld [vmem:[#allocation8 + $0xf64] sm:$0xf]  ;;  %v15561_v17 = vor.u32 %v18397_v60, %v15558_v59  ;;  %v18287_v60 = vld [vmem:[#allocation8 + $0x974] sm:$0xf]  ;;  %v15118_v59 = vld [vmem:[#allocation8 + $0x998] sm:$0xf0] }
 0x412   :  { %v18777_v23 = vld [vmem:[#allocation8 + $0x18c4] sm:$0xf] }
 0x413   :  { %10152 = vmatpush.bf16.msrb.mxu0 %v15321_v50  ;;  %v18297_v50 = vld [vmem:[#allocation8 + $0x9c4] sm:$0xf]  ;;  %v17081_v45 = vor.u32 %v18777_v23, %v17078_v27  ;;  %v16998_v23 = vld [vmem:[#allocation8 + $0x1848] sm:$0xf0] }
 0x414   :  { %10166 = vmatpush.bf16.msrb.mxu1 %v15641_v30  ;;  %v15198_v30 = vld [vmem:[#allocation8 + $0xa38] sm:$0xf0]  ;;  %v18757_v20 = vld [vmem:[#allocation8 + $0x1824] sm:$0xf] }
 0x415   :  { %10180 = vmatpush.bf16.msrb.mxu2 %v15961_v19  ;;  %10084 = vmatpush.bf16.msrb.mxu3 %v16837_v8  ;;  %v15881_v19 = vor.u32 %v18477_v63, %v15878_v49  ;;  %v15201_v56 = vor.u32 %v18307_v10, %v15198_v30  ;;  %v18063_v8 = vld [vmem:[#allocation8 + $0x26c] sm:$0xf0]  ;;  %v15121_v49 = vor.u32 %v18287_v60, %v15118_v59  ;;  %v15078_v10 = vld [vmem:[#allocation8 + $0x948] sm:$0xf0]  ;;  %v14164_v30 = vld [vmem:[#allocation8 + $0x1f8] sm:$0xf]  ;;  %v19763_v59 = vpop.f32.mrf.mxu0 }
 0x416   :  { %v16638_v60 = vld [vmem:[#allocation8 + $0x1578] sm:$0xf0] }
 0x417   :  { %10153 = vmatpush.bf16.msrb.mxu0 %v15281_v31  ;;  %v15161_v31 = vor.u32 %v18297_v50, %v15158_v4  ;;  %v14205_v50 = vor.u32 %v18063_v8, %v14204_v33  ;;  %v18277_v4 = vld [vmem:[#allocation8 + $0x924] sm:$0xf]  ;;  %v19761_v33 = vpop.f32.mrf.mxu3  ;;  %v18747_v8 = vld [vmem:[#allocation8 + $0x17d4] sm:$0xf] }
 0x418   :  { %10167 = vmatpush.bf16.msrb.mxu1 %v15601_v7  ;;  %v18467_v7 = vld [vmem:[#allocation8 + $0xf14] sm:$0xf]  ;;  %v15081_v27 = vor.u32 %v18277_v4, %v15078_v10  ;;  %20174 = vst [vmem:[#allocation38_spill] sm:$0xff] %v19761_v33  ;;  %v18033_v10 = vld [vmem:[#allocation8 + $0x17c] sm:$0xf0] }
 0x419   :  { %10181 = vmatpush.bf16.msrb.mxu2 %v15921_v18  ;;  %10085 = vmatpush.bf16.msrb.mxu3 %v16797_v11  ;;  %v18767_v18 = vld [vmem:[#allocation8 + $0x1874] sm:$0xf]  ;;  %v15841_v63 = vor.u32 %v18467_v7, %v15838_v61  ;;  %v16678_v11 = vld [vmem:[#allocation8 + $0x15c8] sm:$0xf0]  ;;  %v14124_v7 = vld [vmem:[#allocation8 + $0x1a8] sm:$0xf]  ;;  %v17001_v61 = vor.u32 %v18757_v20, %v16998_v23 }
 0x41a   :  { %v16878_v33 = vld [vmem:[#allocation8 + $0x1758] sm:$0xf0] }
 0x41b   :  { %10154 = vmatpush.bf16.msrb.mxu0 %v15241_v55  ;;  %v17038_v55 = vld [vmem:[#allocation8 + $0x1898] sm:$0xf0] }
 0x41c   :  { %10168 = vmatpush.bf16.msrb.mxu1 %v15561_v17  ;;  %v16721_v17 = vor.u32 %v18687_v5, %v16718_v34  ;;  %10086 = vmatmul.bf16.vlgmr.msrb.gmra.mxu3 %v19602_v14  ;;  %v17041_v29 = vor.u32 %v18767_v18, %v17038_v55  ;;  %v16958_v5 = vld [vmem:[#allocation8 + $0x17f8] sm:$0xf0]  ;;  %v19766_v18 = vpop.f32.mrf.mxu1 }
 0x41d   :  { %10182 = vmatpush.bf16.msrb.mxu2 %v15881_v19  ;;  %10134 = vmatpush.bf16.msra.mxu3 %v15161_v31  ;;  %v14165_v19 = vor.u32 %v18053_v25, %v14164_v30  ;;  %v16681_v31 = vor.u32 %v18677_v0, %v16678_v11  ;;  %v16961_v4 = vor.u32 %v18747_v8, %v16958_v5  ;;  %v18657_v30 = vld [vmem:[#allocation8 + $0x1504] sm:$0xf]  ;;  %v19768_v25 = vpop.f32.mrf.mxu2  ;;  %v16918_v11 = vld [vmem:[#allocation8 + $0x17a8] sm:$0xf0]  ;;  %v9877_v8 = vpop.f32.mrf.mxu0  ;;  %v18727_v5 = vld [vmem:[#allocation8 + $0x1734] sm:$0xf] }
 0x41e   :  { %v18737_v0 = vld [vmem:[#allocation8 + $0x1784] sm:$0xf] }
 0x41f   :  { %10155 = vmatpush.bf16.msrb.mxu0 %v15201_v56  ;;  %v18267_v56 = vld [vmem:[#allocation8 + $0x8d4] sm:$0xf] }
 0x420   :  { %10169 = vmatpush.bf16.msrb.mxu1 %v15521_v32  ;;  %v15038_v32 = vld [vmem:[#allocation8 + $0x8f8] sm:$0xf0] }
 0x421   :  { %10183 = vmatpush.bf16.msrb.mxu2 %v15841_v63  ;;  %10135 = vmatpush.bf16.msra.mxu3 %v15121_v49  ;;  %v15041_v34 = vor.u32 %v18267_v56, %v15038_v32  ;;  %v18257_v49 = vld [vmem:[#allocation8 + $0x884] sm:$0xf]  ;;  %v14958_v56 = vld [vmem:[#allocation8 + $0x858] sm:$0xf0]  ;;  %v14044_v32 = vld [vmem:[#allocation8 + $0x108] sm:$0xf] }
 0x422   :  { %10156 = vmatmul.bf16.vlgmr.msrb.gmra.mxu0 %v19527_v12 }
 0x423   :  { %10204 = vmatpush.bf16.msra.mxu0 %v16761_v52  ;;  %10170 = vmatmul.bf16.vlgmr.msrb.gmra.mxu1 %v19534_v54  ;;  %v18043_v52 = vld [vmem:[#allocation8 + $0x1cc] sm:$0xf0] }
 0x424   :  { %10218 = vmatpush.bf16.msra.mxu1 %v17081_v45  ;;  %v18667_v45 = vld [vmem:[#allocation8 + $0x1554] sm:$0xf]  ;;  %10184 = vmatmul.bf16.vlgmr.msrb.gmra.mxu2 %v19572_v6  ;;  %v14125_v55 = vor.u32 %v18043_v52, %v14124_v7  ;;  %v18023_v52 = vld [vmem:[#allocation8 + $0x12c] sm:$0xf0] }
 0x425   :  { %10232 = vmatpush.bf16.msra.mxu2 %v14205_v50  ;;  %10136 = vmatpush.bf16.msra.mxu3 %v15081_v27  ;;  %v16641_v63 = vor.u32 %v18667_v45, %v16638_v60  ;;  %v14998_v50 = vld [vmem:[#allocation8 + $0x8a8] sm:$0xf0]  ;;  %v9863_v27 = vpop.f32.mrf.mxu3  ;;  %v18647_v45 = vld [vmem:[#allocation8 + $0x14b4] sm:$0xf]  ;;  %v16558_v60 = vld [vmem:[#allocation8 + $0x14d8] sm:$0xf0] }
 0x426   :  { %v15001_v20 = vor.u32 %v18257_v49, %v14998_v50  ;;  %v9864_v7 = vadd.f32 %v9863_v27, %v19744_v3  ;;  %v14045_v49 = vor.u32 %v18023_v52, %v14044_v32  ;;  %v16561_v50 = vor.u32 %v18647_v45, %v16558_v60  ;;  %v9905_v27 = vpop.f32.mrf.mxu2  ;;  %v16438_v45 = vld [vmem:[#allocation8 + $0x13e8] sm:$0xf0]  ;;  %v18627_v60 = vld [vmem:[#allocation8 + $0x1414] sm:$0xf] }
 0x427   :  { %10205 = vmatpush.bf16.msra.mxu0 %v16721_v17  ;;  %v14084_v17 = vld [vmem:[#allocation8 + $0x158] sm:$0xf]  ;;  %v16881_v3 = vor.u32 %v18727_v5, %v16878_v33  ;;  %v18617_v33 = vld [vmem:[#allocation8 + $0x13c4] sm:$0xf]  ;;  %v16841_v52 = vor.u32 %v18717_v28, %v16838_v41  ;;  %v18707_v5 = vld [vmem:[#allocation8 + $0x1694] sm:$0xf] }
 0x428   :  { %10219 = vmatpush.bf16.msra.mxu1 %v17041_v29  ;;  %v16598_v29 = vld [vmem:[#allocation8 + $0x1528] sm:$0xf0]  ;;  %v14085_v23 = vor.u32 %v18033_v10, %v14084_v17  ;;  %v18237_v17 = vld [vmem:[#allocation8 + $0x7e4] sm:$0xf]  ;;  %v17993_v28 = vld [vmem:[#allocation8 + $0x3c] sm:$0xf0] }
 0x429   :  { %10233 = vmatpush.bf16.msra.mxu2 %v14165_v19  ;;  %10137 = vmatpush.bf16.msra.mxu3 %v15041_v34  ;;  %v16601_v19 = vor.u32 %v18657_v30, %v16598_v29  ;;  %v9878_v34 = vadd.f32 %v9877_v8, %v9864_v7  ;;  %v14918_v10 = vld [vmem:[#allocation8 + $0x808] sm:$0xf0]  ;;  %v18013_v30 = vld [vmem:[#allocation8 + $0xdc] sm:$0xf0]  ;;  %v18637_v29 = vld [vmem:[#allocation8 + $0x1464] sm:$0xf] }
 0x42a   :  { %v13964_v7 = vld [vmem:[#allocation8 + $0x68] sm:$0xf]  ;;  %v16478_v8 = vld [vmem:[#allocation8 + $0x1438] sm:$0xf0] }
 0x42b   :  { %10206 = vmatpush.bf16.msra.mxu0 %v16681_v31  ;;  %v18247_v31 = vld [vmem:[#allocation8 + $0x834] sm:$0xf] }
 0x42c   :  { %10220 = vmatpush.bf16.msra.mxu1 %v17001_v61  ;;  %v16921_v61 = vor.u32 %v18737_v0, %v16918_v11  ;;  %v16518_v0 = vld [vmem:[#allocation8 + $0x1488] sm:$0xf0] }
 0x42d   :  { %10234 = vmatpush.bf16.msra.mxu2 %v14125_v55  ;;  %10138 = vmatpush.bf16.msra.mxu3 %v15001_v20  ;;  %v14961_v55 = vor.u32 %v18247_v31, %v14958_v56  ;;  %v14921_v20 = vor.u32 %v18237_v17, %v14918_v10  ;;  %v18227_v31 = vld [vmem:[#allocation8 + $0x794] sm:$0xf]  ;;  %v14878_v56 = vld [vmem:[#allocation8 + $0x7b8] sm:$0xf0]  ;;  %v16521_v32 = vor.u32 %v18637_v29, %v16518_v0  ;;  %v18223_v17 = vld [vmem:[#allocation8 + $0x76c] sm:$0xf0] }
 0x42e   :  { %v15164_v10 = vld [vmem:[#allocation8 + $0x9c8] sm:$0xf]  ;;  %v18607_v0 = vld [vmem:[#allocation8 + $0x1374] sm:$0xf] }
 0x42f   :  { %10207 = vmatpush.bf16.msra.mxu0 %v16641_v63  ;;  %v9891_v63 = vpop.f32.mrf.mxu1 }
 0x430   :  { %10221 = vmatpush.bf16.msra.mxu1 %v16961_v4  ;;  %v14004_v4 = vld [vmem:[#allocation8 + $0xb8] sm:$0xf]  ;;  %v9892_v11 = vadd.f32 %v9891_v63, %v9878_v34  ;;  %v16798_v34 = vld [vmem:[#allocation8 + $0x16b8] sm:$0xf0]  ;;  %v14881_v63 = vor.u32 %v18227_v31, %v14878_v56  ;;  %v18213_v56 = vld [vmem:[#allocation8 + $0x71c] sm:$0xf0] }
 0x431   :  { %10235 = vmatpush.bf16.msra.mxu2 %v14085_v23  ;;  %10139 = vmatpush.bf16.msra.mxu3 %v14961_v55  ;;  %v14844_v55 = vld [vmem:[#allocation8 + $0x748] sm:$0xf]  ;;  %v14804_v31 = vld [vmem:[#allocation8 + $0x6f8] sm:$0xf] }
 0x432   :  { %v19771_v23 = vadd.f32 %v9905_v27, %v9892_v11  ;;  %v18303_v11 = vld [vmem:[#allocation8 + $0x9ec] sm:$0xf0]  ;;  %v14845_v41 = vor.u32 %v18223_v17, %v14844_v55  ;;  %v16398_v27 = vld [vmem:[#allocation8 + $0x1398] sm:$0xf0]  ;;  %v14764_v55 = vld [vmem:[#allocation8 + $0x6a8] sm:$0xf] }
 0x433   :  { %10208 = vmatpush.bf16.msra.mxu0 %v16601_v19  ;;  %v14005_v19 = vor.u32 %v18013_v30, %v14004_v4  ;;  %v16481_v4 = vor.u32 %v18627_v60, %v16478_v8  ;;  %v16801_v30 = vor.u32 %v18707_v5, %v16798_v34  ;;  %v15165_v29 = vor.u32 %v18303_v11, %v15164_v10  ;;  %v16358_v60 = vld [vmem:[#allocation8 + $0x1348] sm:$0xf0]  ;;  %v15444_v8 = vld [vmem:[#allocation8 + $0xbf8] sm:$0xf]  ;;  %v18373_v34 = vld [vmem:[#allocation8 + $0xc1c] sm:$0xf0] }
 0x434   :  { %10222 = vmatpush.bf16.msra.mxu1 %v16921_v61  ;;  %v18003_v61 = vld [vmem:[#allocation8 + $0x8c] sm:$0xf0]  ;;  %v15084_v17 = vld [vmem:[#allocation8 + $0x928] sm:$0xf] }
 0x435   :  { %10236 = vmatpush.bf16.msra.mxu2 %v14045_v49  ;;  %10140 = vmatpush.bf16.msra.mxu3 %v14921_v20  ;;  %v13965_v49 = vor.u32 %v18003_v61, %v13964_v7  ;;  %v18383_v20 = vld [vmem:[#allocation8 + $0xc6c] sm:$0xf0]  ;;  %v16401_v61 = vor.u32 %v18607_v0, %v16398_v27  ;;  %v14724_v0 = vld [vmem:[#allocation8 + $0x658] sm:$0xf]  ;;  %v18193_v27 = vld [vmem:[#allocation8 + $0x67c] sm:$0xf0] }
 0x436   :  { %v18283_v10 = vld [vmem:[#allocation8 + $0x94c] sm:$0xf0] }
 0x437   :  { %10209 = vmatpush.bf16.msra.mxu0 %v16561_v50  ;;  %v16441_v50 = vor.u32 %v18617_v33, %v16438_v45  ;;  %v15485_v33 = vor.u32 %v18383_v20, %v15484_v9  ;;  %v18597_v45 = vld [vmem:[#allocation8 + $0x1324] sm:$0xf]  ;;  %v19776_v9 = vpop.f32.mrf.mxu3  ;;  %v15044_v20 = vld [vmem:[#allocation8 + $0x8d8] sm:$0xf] }
 0x438   :  { %10223 = vmatpush.bf16.msra.mxu1 %v16881_v3  ;;  %v13924_v3 = vld [vmem:[#allocation8 + $0x18] sm:$0xf]  ;;  %v16361_v11 = vor.u32 %v18597_v45, %v16358_v60  ;;  %v18353_v60 = vld [vmem:[#allocation8 + $0xb7c] sm:$0xf0] }
 0x439   :  { %10237 = vmatpush.bf16.msra.mxu2 %v14005_v19  ;;  %10141 = vmatpush.bf16.msra.mxu3 %v14881_v63  ;;  %v15124_v19 = vld [vmem:[#allocation8 + $0x978] sm:$0xf]  ;;  %v13925_v7 = vor.u32 %v17993_v28, %v13924_v3  ;;  %v18203_v63 = vld [vmem:[#allocation8 + $0x6cc] sm:$0xf0]  ;;  %v15404_v3 = vld [vmem:[#allocation8 + $0xba8] sm:$0xf]  ;;  %v19778_v28 = vpop.f32.mrf.mxu0 }
 0x43a   :  { %20175 = vst [vmem:[#allocation21_spill] sm:$0xff] %v19778_v28  ;;  %v16244_v28 = vld [vmem:[#allocation8 + $0x1238] sm:$0xf] }
 0x43b   :  { %10210 = vmatpush.bf16.msra.mxu0 %v16521_v32  ;;  %v18293_v32 = vld [vmem:[#allocation8 + $0x99c] sm:$0xf0] }
 0x43c   :  { %10224 = vmatpush.bf16.msra.mxu1 %v16841_v52  ;;  %v14805_v52 = vor.u32 %v18213_v56, %v14804_v31  ;;  %10142 = vmatmul.bf16.vlgmr.msra.gmra.mxu3 %v19523_v38  ;;  %v15125_v5 = vor.u32 %v18293_v32, %v15124_v19  ;;  %v18273_v31 = vld [vmem:[#allocation8 + $0x8fc] sm:$0xf0]  ;;  %v19781_v56 = vpop.f32.mrf.mxu1 }
 0x43d   :  { %10238 = vmatpush.bf16.msra.mxu2 %v13965_v49  ;;  %10190 = vmatpush.bf16.msrb.mxu3 %v16441_v50  ;;  %v15445_v49 = vor.u32 %v18373_v34, %v15444_v8  ;;  %v14765_v50 = vor.u32 %v18203_v63, %v14764_v55  ;;  %20176 = vst [vmem:[#allocation35_spill] sm:$0xff] %v19781_v56  ;;  %v14684_v8 = vld [vmem:[#allocation8 + $0x608] sm:$0xf]  ;;  %v18263_v55 = vld [vmem:[#allocation8 + $0x8ac] sm:$0xf0] }
 0x43e   :  { %v15045_v45 = vor.u32 %v18273_v31, %v15044_v20  ;;  %v15004_v34 = vld [vmem:[#allocation8 + $0x888] sm:$0xf]  ;;  %v14964_v20 = vld [vmem:[#allocation8 + $0x838] sm:$0xf]  ;;  %v18253_v31 = vld [vmem:[#allocation8 + $0x85c] sm:$0xf0] }
 0x43f   :  { %10211 = vmatpush.bf16.msra.mxu0 %v16481_v4  ;;  %v18587_v4 = vld [vmem:[#allocation8 + $0x12d4] sm:$0xf]  ;;  %v14484_v56 = vld [vmem:[#allocation8 + $0x478] sm:$0xf] }
 0x440   :  { %10225 = vmatpush.bf16.msra.mxu1 %v16801_v30  ;;  %v16318_v30 = vld [vmem:[#allocation8 + $0x12f8] sm:$0xf0] }
 0x441   :  { %10239 = vmatpush.bf16.msra.mxu2 %v13925_v7  ;;  %10191 = vmatpush.bf16.msrb.mxu3 %v16401_v61  ;;  %v16321_v19 = vor.u32 %v18587_v4, %v16318_v30  ;;  %v14725_v7 = vor.u32 %v18193_v27, %v14724_v0  ;;  %v18577_v61 = vld [vmem:[#allocation8 + $0x1284] sm:$0xf]  ;;  %v15324_v4 = vld [vmem:[#allocation8 + $0xb08] sm:$0xf]  ;;  %v9933_v30 = vpop.f32.mrf.mxu0  ;;  %v14644_v0 = vld [vmem:[#allocation8 + $0x5b8] sm:$0xf] }
 0x442   :  { %10212 = vmatmul.bf16.vlgmr.msra.gmra.mxu0 %v19582_v51  ;;  %v18173_v27 = vld [vmem:[#allocation8 + $0x5dc] sm:$0xf0] }
 0x443   :  { %10260 = vmatpush.bf16.msrb.mxu0 %v14845_v41  ;;  %10226 = vmatmul.bf16.vlgmr.msra.gmra.mxu1 %v19602_v14  ;;  %v15085_v41 = vor.u32 %v18283_v10, %v15084_v17  ;;  %v9919_v10 = vpop.f32.mrf.mxu3 }
 0x444   :  { %10274 = vmatpush.bf16.msrb.mxu1 %v15165_v29  ;;  %v18363_v29 = vld [vmem:[#allocation8 + $0xbcc] sm:$0xf0]  ;;  %10240 = vmatmul.bf16.vlgmr.msra.gmra.mxu2 %v19439_v36 }
 0x445   :  { %10288 = vmatpush.bf16.msrb.mxu2 %v15485_v33  ;;  %10192 = vmatpush.bf16.msrb.mxu3 %v16361_v11  ;;  %v15405_v32 = vor.u32 %v18363_v29, %v15404_v3  ;;  %v16278_v33 = vld [vmem:[#allocation8 + $0x12a8] sm:$0xf0]  ;;  %v9920_v3 = vadd.f32 %v9919_v10, %v19771_v23  ;;  %v18343_v29 = vld [vmem:[#allocation8 + $0xb2c] sm:$0xf0] }
 0x446   :  { %v16281_v63 = vor.u32 %v18577_v61, %v16278_v33  ;;  %v15325_v33 = vor.u32 %v18343_v29, %v15324_v4  ;;  %v18163_v10 = vld [vmem:[#allocation8 + $0x58c] sm:$0xf0] }
 0x447   :  { %10261 = vmatpush.bf16.msrb.mxu0 %v14805_v52  ;;  %v15364_v52 = vld [vmem:[#allocation8 + $0xb58] sm:$0xf]  ;;  %v18323_v4 = vld [vmem:[#allocation8 + $0xa8c] sm:$0xf0] }
 0x448   :  { %10275 = vmatpush.bf16.msrb.mxu1 %v15125_v5  ;;  %v18183_v5 = vld [vmem:[#allocation8 + $0x62c] sm:$0xf0]  ;;  %v15365_v17 = vor.u32 %v18353_v60, %v15364_v52  ;;  %v14645_v52 = vor.u32 %v18173_v27, %v14644_v0  ;;  %v18557_v60 = vld [vmem:[#allocation8 + $0x11e4] sm:$0xf]  ;;  %v14564_v0 = vld [vmem:[#allocation8 + $0x518] sm:$0xf] }
 0x449   :  { %10289 = vmatpush.bf16.msrb.mxu2 %v15445_v49  ;;  %10193 = vmatpush.bf16.msrb.mxu3 %v16321_v19  ;;  %v14685_v11 = vor.u32 %v18183_v5, %v14684_v8  ;;  %v18567_v49 = vld [vmem:[#allocation8 + $0x1234] sm:$0xf]  ;;  %v19784_v19 = vpop.f32.mrf.mxu2  ;;  %v15284_v8 = vld [vmem:[#allocation8 + $0xab8] sm:$0xf]  ;;  %v14965_v5 = vor.u32 %v18253_v31, %v14964_v20  ;;  %v18153_v27 = vld [vmem:[#allocation8 + $0x53c] sm:$0xf0] }
 0x44a   :  { %20177 = vst [vmem:[#allocation29_spill] sm:$0xff] %v19784_v19  ;;  %v18243_v19 = vld [vmem:[#allocation8 + $0x80c] sm:$0xf0]  ;;  %v14884_v20 = vld [vmem:[#allocation8 + $0x798] sm:$0xf] }
 0x44b   :  { %10262 = vmatpush.bf16.msrb.mxu0 %v14765_v50  ;;  %v16238_v50 = vld [vmem:[#allocation8 + $0x1258] sm:$0xf0]  ;;  %v14925_v29 = vor.u32 %v18243_v19, %v14924_v42  ;;  %v18233_v31 = vld [vmem:[#allocation8 + $0x7bc] sm:$0xf0]  ;;  %v14565_v19 = vor.u32 %v18153_v27, %v14564_v0  ;;  %v18123_v0 = vld [vmem:[#allocation8 + $0x44c] sm:$0xf0] }
 0x44c   :  { %10276 = vmatpush.bf16.msrb.mxu1 %v15085_v41  ;;  %v15005_v41 = vor.u32 %v18263_v55, %v15004_v34  ;;  %v16241_v61 = vor.u32 %v18567_v49, %v16238_v50  ;;  %v18333_v34 = vld [vmem:[#allocation8 + $0xadc] sm:$0xf0]  ;;  %v14604_v55 = vld [vmem:[#allocation8 + $0x568] sm:$0xf]  ;;  %v16158_v49 = vld [vmem:[#allocation8 + $0x11b8] sm:$0xf0] }
 0x44d   :  { %10290 = vmatpush.bf16.msrb.mxu2 %v15405_v32  ;;  %v9947_v32 = vpop.f32.mrf.mxu1  ;;  %10194 = vmatpush.bf16.msrb.mxu3 %v16281_v63  ;;  %v15244_v50 = vld [vmem:[#allocation8 + $0xa68] sm:$0xf]  ;;  %v16724_v27 = vld [vmem:[#allocation8 + $0x15f8] sm:$0xf] }
 0x44f   :  { %10263 = vmatpush.bf16.msrb.mxu0 %v14725_v7  ;;  %v9934_v7 = vadd.f32 %v9933_v30, %v9920_v3  ;;  %v18547_v30 = vld [vmem:[#allocation8 + $0x1194] sm:$0xf]  ;;  %v14524_v3 = vld [vmem:[#allocation8 + $0x4c8] sm:$0xf] }
 0x450   :  { %10277 = vmatpush.bf16.msrb.mxu1 %v15045_v45  ;;  %v16198_v45 = vld [vmem:[#allocation8 + $0x1208] sm:$0xf0] }
 0x451   :  { %10291 = vmatpush.bf16.msrb.mxu2 %v15365_v17  ;;  %v19786_v23 = vadd.f32 %v9947_v32, %v9934_v7  ;;  %10195 = vmatpush.bf16.msrb.mxu3 %v16241_v61  ;;  %v16201_v63 = vor.u32 %v18557_v60, %v16198_v45  ;;  %v15285_v17 = vor.u32 %v18333_v34, %v15284_v8  ;;  %v16124_v32 = vld [vmem:[#allocation8 + $0x1148] sm:$0xf]  ;;  %v19788_v7 = vpop.f32.mrf.mxu0  ;;  %v19790_v61 = vpop.f32.mrf.mxu2  ;;  %v18623_v45 = vld [vmem:[#allocation8 + $0x13ec] sm:$0xf0] }
 0x452   :  { %20179 = vst [vmem:[#allocation36_spill] sm:$0xff] %v19788_v7  ;;  %v16444_v60 = vld [vmem:[#allocation8 + $0x13c8] sm:$0xf]  ;;  %v15245_v8 = vor.u32 %v18323_v4, %v15244_v50  ;;  %v14885_v34 = vor.u32 %v18233_v31, %v14884_v20  ;;  %v14485_v4 = vor.u32 %v18133_v37, %v14484_v56  ;;  %v18603_v56 = vld [vmem:[#allocation8 + $0x134c] sm:$0xf0] }
 0x453   :  { %10264 = vmatpush.bf16.msrb.mxu0 %v14685_v11  ;;  %20178 = vst [vmem:[#allocation39_spill] sm:$0xff] %v19786_v23  ;;  %v14605_v11 = vor.u32 %v18163_v10, %v14604_v55  ;;  %v15204_v55 = vld [vmem:[#allocation8 + $0xa18] sm:$0xf]  ;;  %v18313_v10 = vld [vmem:[#allocation8 + $0xa3c] sm:$0xf0]  ;;  %v16445_v7 = vor.u32 %v18623_v45, %v16444_v60  ;;  %v19803_v60 = vpop.f32.mrf.mxu3 }
 0x454   :  { %10278 = vmatpush.bf16.msrb.mxu1 %v15005_v41  ;;  %v18143_v41 = vld [vmem:[#allocation8 + $0x4ec] sm:$0xf0]  ;;  %v15205_v50 = vor.u32 %v18313_v10, %v15204_v55  ;;  %v16364_v37 = vld [vmem:[#allocation8 + $0x1328] sm:$0xf]  ;;  %20181 = vst [vmem:[#allocation46_spill] sm:$0xff] %v19803_v60 }
 0x455   :  { %10292 = vmatpush.bf16.msrb.mxu2 %v15325_v33  ;;  %10196 = vmatpush.bf16.msrb.mxu3 %v16201_v63  ;;  %v16161_v33 = vor.u32 %v18547_v30, %v16158_v49  ;;  %v19792_v42 = vpop.f32.mrf.mxu1  ;;  %v16764_v63 = vld [vmem:[#allocation8 + $0x1648] sm:$0xf]  ;;  %v18703_v30 = vld [vmem:[#allocation8 + $0x166c] sm:$0xf0]  ;;  %v16084_v49 = vld [vmem:[#allocation8 + $0x10f8] sm:$0xf]  ;;  %v16365_v55 = vor.u32 %v18603_v56, %v16364_v37 }
 0x456   :  { %20180 = vst [vmem:[#allocation25_spill] sm:$0xff] %v19792_v42  ;;  %v18683_v10 = vld [vmem:[#allocation8 + $0x15cc] sm:$0xf0]  ;;  %v16284_v37 = vld [vmem:[#allocation8 + $0x1288] sm:$0xf] }
 0x457   :  { %10265 = vmatpush.bf16.msrb.mxu0 %v14645_v52  ;;  %v18543_v52 = vld [vmem:[#allocation8 + $0x116c] sm:$0xf0] }
 0x458   :  { %10279 = vmatpush.bf16.msrb.mxu1 %v14965_v5  ;;  %v14525_v5 = vor.u32 %v18143_v41, %v14524_v3  ;;  %v16125_v23 = vor.u32 %v18543_v52, %v16124_v32  ;;  %v16765_v3 = vor.u32 %v18703_v30, %v16764_v63  ;;  %v14444_v41 = vld [vmem:[#allocation8 + $0x428] sm:$0xf]  ;;  %v18693_v32 = vld [vmem:[#allocation8 + $0x161c] sm:$0xf0]  ;;  %v18523_v52 = vld [vmem:[#allocation8 + $0x10cc] sm:$0xf0] }
 0x459   :  { %10293 = vmatpush.bf16.msrb.mxu2 %v15285_v17  ;;  %10197 = vmatpush.bf16.msrb.mxu3 %v16161_v33  ;;  %v16404_v17 = vld [vmem:[#allocation8 + $0x1378] sm:$0xf]  ;;  %v19794_v20 = vpop.f32.mrf.mxu0  ;;  %v16044_v33 = vld [vmem:[#allocation8 + $0x10a8] sm:$0xf]  ;;  %v16725_v45 = vor.u32 %v18693_v32, %v16724_v27  ;;  %v18513_v30 = vld [vmem:[#allocation8 + $0x107c] sm:$0xf0] }
 0x45a   :  { %v16004_v63 = vld [vmem:[#allocation8 + $0x1058] sm:$0xf]  ;;  %v18673_v32 = vld [vmem:[#allocation8 + $0x157c] sm:$0xf0]  ;;  %v18583_v56 = vld [vmem:[#allocation8 + $0x12ac] sm:$0xf0] }
 0x45b   :  { %10266 = vmatpush.bf16.msrb.mxu0 %v14605_v11  ;;  %v18613_v11 = vld [vmem:[#allocation8 + $0x139c] sm:$0xf0]  ;;  %v16644_v27 = vld [vmem:[#allocation8 + $0x1558] sm:$0xf]  ;;  %v18663_v60 = vld [vmem:[#allocation8 + $0x152c] sm:$0xf0] }
 0x45c   :  { %10280 = vmatpush.bf16.msrb.mxu1 %v14925_v29  ;;  %v16085_v29 = vor.u32 %v18533_v2, %v16084_v49  ;;  %10198 = vmatmul.bf16.vlgmr.msrb.gmra.mxu3 %v19574_v44  ;;  %v16405_v31 = vor.u32 %v18613_v11, %v16404_v17  ;;  %v16324_v49 = vld [vmem:[#allocation8 + $0x12d8] sm:$0xf]  ;;  %v18593_v17 = vld [vmem:[#allocation8 + $0x12fc] sm:$0xf0] }
 0x45d   :  { %10294 = vmatpush.bf16.msrb.mxu2 %v15245_v8  ;;  %10246 = vmatpush.bf16.msra.mxu3 %v14525_v5  ;;  %v19801_v2 = vpop.f32.mrf.mxu1  ;;  %v16045_v8 = vor.u32 %v18523_v52, %v16044_v33  ;;  %v14404_v5 = vld [vmem:[#allocation8 + $0x3d8] sm:$0xf]  ;;  %v19806_v11 = vld [vmem:[#allocation10] sm:$0xff]  ;;  %v15964_v33 = vld [vmem:[#allocation8 + $0x1008] sm:$0xf] }
 0x45e   :  { %v18503_v52 = vld [vmem:[#allocation8 + $0x102c] sm:$0xf0] }
 0x45f   :  { %10267 = vmatpush.bf16.msrb.mxu0 %v14565_v19  ;;  %v18113_v19 = vld [vmem:[#allocation8 + $0x3fc] sm:$0xf0] }
 0x460   :  { %10281 = vmatpush.bf16.msrb.mxu1 %v14885_v34  ;;  %v16684_v34 = vld [vmem:[#allocation8 + $0x15a8] sm:$0xf] }
 0x461   :  { %10295 = vmatpush.bf16.msrb.mxu2 %v15205_v50  ;;  %10247 = vmatpush.bf16.msra.mxu3 %v14485_v4  ;;  %v20096_v50 = vperm.slane %v19806_v11, 4  ;;  %v14405_v4 = vor.u32 %v18113_v19, %v14404_v5  ;;  %v16645_v5 = vor.u32 %v18673_v32, %v16644_v27  ;;  %v9975_v19 = vpop.f32.mrf.mxu3  ;;  %v18083_v27 = vld [vmem:[#allocation8 + $0x30c] sm:$0xf0]  ;;  %v16564_v32 = vld [vmem:[#allocation8 + $0x14b8] sm:$0xf] }
 0x462   :  { %10268 = vmatmul.bf16.vlgmr.msrb.gmra.mxu0 %v19521_v15 }
 0x463   :  { %10316 = vmatpush.bf16.msra.mxu0 %v16125_v23  ;;  %10282 = vmatmul.bf16.vlgmr.msrb.gmra.mxu1 %v19523_v38  ;;  %v19799_v23 = vpop.f32.mrf.mxu2  ;;  %v9962_v42 = vadd.f32 %v19790_v61, %v20096_v50  ;;  %v15924_v61 = vld [vmem:[#allocation8 + $0xfb8] sm:$0xf]  ;;  %v18493_v50 = vld [vmem:[#allocation8 + $0xfdc] sm:$0xf0] }
 0x464   :  { %10330 = vmatpush.bf16.msra.mxu1 %v16445_v7  ;;  %v14445_v7 = vor.u32 %v18123_v0, %v14444_v41  ;;  %10296 = vmatmul.bf16.vlgmr.msrb.gmra.mxu2 %v19527_v12  ;;  %v14364_v41 = vld [vmem:[#allocation8 + $0x388] sm:$0xf]  ;;  %v18103_v0 = vld [vmem:[#allocation8 + $0x3ac] sm:$0xf0] }
 0x465   :  { %10344 = vmatpush.bf16.msra.mxu2 %v16765_v3  ;;  %v16685_v3 = vor.u32 %v18683_v10, %v16684_v34  ;;  %v15965_v34 = vor.u32 %v18503_v52, %v15964_v33  ;;  %v18093_v10 = vld [vmem:[#allocation8 + $0x35c] sm:$0xf0]  ;;  %v15884_v33 = vld [vmem:[#allocation8 + $0xf68] sm:$0xf]  ;;  %v18483_v52 = vld [vmem:[#allocation8 + $0xf8c] sm:$0xf0] }
 0x466   :  { %10248 = vmatpush.bf16.msra.mxu3 %v14445_v7  ;;  %v19812_v7 = vpop.f32.mrf.mxu0 }
 0x467   :  { %10317 = vmatpush.bf16.msra.mxu0 %v16085_v29  ;;  %v16005_v29 = vor.u32 %v18513_v30, %v16004_v63  ;;  %20182 = vst [vmem:[#allocation47_spill] sm:$0xff] %v19812_v7  ;;  %v16604_v63 = vld [vmem:[#allocation8 + $0x1508] sm:$0xf]  ;;  %v19814_v30 = vpop.f32.mrf.mxu1  ;;  %v18573_v7 = vld [vmem:[#allocation8 + $0x125c] sm:$0xf0] }
 0x468   :  { %10331 = vmatpush.bf16.msra.mxu1 %v16405_v31  ;;  %v16325_v31 = vor.u32 %v18593_v17, %v16324_v49  ;;  %20183 = vst [vmem:[#allocation48_spill] sm:$0xff] %v19814_v30  ;;  %v9976_v49 = vadd.f32 %v9975_v19, %v9962_v42  ;;  %v16285_v17 = vor.u32 %v18583_v56, %v16284_v37  ;;  %v18653_v42 = vld [vmem:[#allocation8 + $0x14dc] sm:$0xf0]  ;;  %v16204_v56 = vld [vmem:[#allocation8 + $0x11e8] sm:$0xf] }
 0x469   :  { %10345 = vmatpush.bf16.msra.mxu2 %v16725_v45  ;;  %v18563_v19 = vld [vmem:[#allocation8 + $0x120c] sm:$0xf0]  ;;  %v15764_v30 = vld [vmem:[#allocation8 + $0xe78] sm:$0xf] }
 0x46a   :  { %10249 = vmatpush.bf16.msra.mxu3 %v14405_v4  ;;  %v9990_v4 = vadd.f32 %v19794_v20, %v9976_v49  ;;  %v16205_v49 = vor.u32 %v18563_v19, %v16204_v56  ;;  %v18633_v56 = vld [vmem:[#allocation8 + $0x143c] sm:$0xf0] }
 0x46b   :  { %10318 = vmatpush.bf16.msra.mxu0 %v16045_v8  ;;  %v10017_v45 = vpop.f32.mrf.mxu2  ;;  %v14365_v8 = vor.u32 %v18103_v0, %v14364_v41  ;;  %v15925_v41 = vor.u32 %v18493_v50, %v15924_v61  ;;  %v14284_v0 = vld [vmem:[#allocation8 + $0x2e8] sm:$0xf]  ;;  %v16565_v50 = vor.u32 %v18653_v42, %v16564_v32  ;;  %v15844_v61 = vld [vmem:[#allocation8 + $0xf18] sm:$0xf]  ;;  %v14526_v32 = vld [vmem:[#allocation8 + $0x4f0] sm:$0xf0] }
 0x46c   :  { %10332 = vmatpush.bf16.msra.mxu1 %v16365_v55  ;;  %v14324_v55 = vld [vmem:[#allocation8 + $0x338] sm:$0xf]  ;;  %v10004_v37 = vadd.f32 %v19801_v2, %v9990_v4  ;;  %v14285_v20 = vor.u32 %v18083_v27, %v14284_v0  ;;  %v18473_v4 = vld [vmem:[#allocation8 + $0xf3c] sm:$0xf0]  ;;  %v18138_v27 = vld [vmem:[#allocation8 + $0x4cc] sm:$0xf] }
 0x46d   :  { %10346 = vmatpush.bf16.msra.mxu2 %v16685_v3  ;;  %v14325_v3 = vor.u32 %v18093_v10, %v14324_v55  ;;  %v15885_v55 = vor.u32 %v18483_v52, %v15884_v33  ;;  %v15804_v10 = vld [vmem:[#allocation8 + $0xec8] sm:$0xf]  ;;  %v18553_v0 = vld [vmem:[#allocation8 + $0x11bc] sm:$0xf0]  ;;  %v15845_v52 = vor.u32 %v18473_v4, %v15844_v61 }
 0x46e   :  { %10250 = vmatpush.bf16.msra.mxu3 %v14365_v8  ;;  %v19818_v8 = vpop.f32.mrf.mxu0  ;;  %v15724_v4 = vld [vmem:[#allocation8 + $0xe28] sm:$0xf] }
 0x46f   :  { %10319 = vmatpush.bf16.msra.mxu0 %v16005_v29  ;;  %v16605_v29 = vor.u32 %v18663_v60, %v16604_v63  ;;  %v19820_v60 = vadd.f32 %v10017_v45, %v10004_v37  ;;  %v19824_v2 = vpop.f32.mrf.mxu1  ;;  %v18058_v45 = vld [vmem:[#allocation8 + $0x24c] sm:$0xf] }
 0x470   :  { %10333 = vmatpush.bf16.msra.mxu1 %v16325_v31  ;;  %v16245_v31 = vor.u32 %v18573_v7, %v16244_v28  ;;  %v16524_v28 = vld [vmem:[#allocation8 + $0x1468] sm:$0xf]  ;;  %v18643_v7 = vld [vmem:[#allocation8 + $0x148c] sm:$0xf0] }
 0x471   :  { %10347 = vmatpush.bf16.msra.mxu2 %v16645_v5  ;;  %v14244_v5 = vld [vmem:[#allocation8 + $0x298] sm:$0xf]  ;;  %v16525_v42 = vor.u32 %v18643_v7, %v16524_v28 }
 0x472   :  { %10251 = vmatpush.bf16.msra.mxu3 %v14325_v3  ;;  %v16164_v3 = vld [vmem:[#allocation8 + $0x1198] sm:$0xf] }
 0x473   :  { %10320 = vmatpush.bf16.msra.mxu0 %v15965_v34  ;;  %v18073_v34 = vld [vmem:[#allocation8 + $0x2bc] sm:$0xf0]  ;;  %v19822_v63 = vpop.f32.mrf.mxu2  ;;  %v16165_v37 = vor.u32 %v18553_v0, %v16164_v3  ;;  %v18443_v3 = vld [vmem:[#allocation8 + $0xe4c] sm:$0xf0]  ;;  %v18208_v0 = vld [vmem:[#allocation8 + $0x6fc] sm:$0xf] }
 0x474   :  { %10334 = vmatpush.bf16.msra.mxu1 %v16285_v17  ;;  %20184 = vst [vmem:[#allocation49_spill] sm:$0xff] %v19822_v63  ;;  %v18463_v17 = vld [vmem:[#allocation8 + $0xeec] sm:$0xf0]  ;;  %v14529_v63 = vor.u32 %v18138_v27, %v14526_v32  ;;  %v18038_v27 = vld [vmem:[#allocation8 + $0x1ac] sm:$0xf] }
 0x475   :  { %10348 = vmatpush.bf16.msra.mxu2 %v16605_v29  ;;  %v14245_v29 = vor.u32 %v18073_v34, %v14244_v5  ;;  %v15805_v33 = vor.u32 %v18463_v17, %v15804_v10  ;;  %v18048_v5 = vld [vmem:[#allocation8 + $0x1fc] sm:$0xf]  ;;  %v14166_v34 = vld [vmem:[#allocation8 + $0x220] sm:$0xf0]  ;;  %v14126_v32 = vld [vmem:[#allocation8 + $0x1d0] sm:$0xf0] }
 0x476   :  { %10252 = vmatpush.bf16.msra.mxu3 %v14285_v20  ;;  %v14846_v20 = vld [vmem:[#allocation8 + $0x770] sm:$0xf0]  ;;  %v19826_v28 = vpop.f32.mrf.mxu0  ;;  %v14169_v61 = vor.u32 %v18048_v5, %v14166_v34  ;;  %v18028_v5 = vld [vmem:[#allocation8 + $0x15c] sm:$0xf]  ;;  %v14086_v34 = vld [vmem:[#allocation8 + $0x180] sm:$0xf0] }
 0x477   :  { %10321 = vmatpush.bf16.msra.mxu0 %v15925_v41  ;;  %v14206_v41 = vld [vmem:[#allocation8 + $0x270] sm:$0xf0]  ;;  %20185 = vst [vmem:[#allocation50_spill] sm:$0xff] %v19826_v28  ;;  %v14849_v17 = vor.u32 %v18218_v13, %v14846_v20  ;;  %v15725_v13 = vor.u32 %v18443_v3, %v15724_v4  ;;  %v14089_v4 = vor.u32 %v18028_v5, %v14086_v34  ;;  %v15644_v3 = vld [vmem:[#allocation8 + $0xd88] sm:$0xf] }
 0x478   :  { %10335 = vmatpush.bf16.msra.mxu1 %v16245_v31  ;;  %v16484_v31 = vld [vmem:[#allocation8 + $0x1418] sm:$0xf]  ;;  %v14209_v19 = vor.u32 %v18058_v45, %v14206_v41  ;;  %v19830_v45 = vpop.f32.mrf.mxu1  ;;  %v14806_v41 = vld [vmem:[#allocation8 + $0x720] sm:$0xf0]  ;;  %v14766_v20 = vld [vmem:[#allocation8 + $0x6d0] sm:$0xf0] }
 0x479   :  { %10349 = vmatpush.bf16.msra.mxu2 %v16565_v50  ;;  %v18128_v50 = vld [vmem:[#allocation8 + $0x47c] sm:$0xf]  ;;  %v16485_v10 = vor.u32 %v18633_v56, %v16484_v31  ;;  %20186 = vst [vmem:[#allocation51_spill] sm:$0xff] %v19830_v45  ;;  %v18433_v31 = vld [vmem:[#allocation8 + $0xdfc] sm:$0xf0] }
 0x47a   :  { %10253 = vmatpush.bf16.msra.mxu3 %v14245_v29  ;;  %v18198_v56 = vld [vmem:[#allocation8 + $0x6ac] sm:$0xf]  ;;  %v15604_v5 = vld [vmem:[#allocation8 + $0xd38] sm:$0xf]  ;;  %v18413_v34 = vld [vmem:[#allocation8 + $0xd5c] sm:$0xf0] }
 0x47b   :  { %10322 = vmatpush.bf16.msra.mxu0 %v15885_v55  ;;  %v14486_v55 = vld [vmem:[#allocation8 + $0x4a0] sm:$0xf0]  ;;  %v19828_v7 = vpop.f32.mrf.mxu2  ;;  %v18538_v28 = vld [vmem:[#allocation8 + $0x114c] sm:$0xf] }
 0x47c   :  { %10336 = vmatpush.bf16.msra.mxu1 %v16205_v49  ;;  %v15765_v49 = vor.u32 %v18453_v43, %v15764_v30  ;;  %v14489_v29 = vor.u32 %v18128_v50, %v14486_v55  ;;  %v18118_v43 = vld [vmem:[#allocation8 + $0x42c] sm:$0xf]  ;;  %v14446_v30 = vld [vmem:[#allocation8 + $0x450] sm:$0xf0]  ;;  %v18108_v50 = vld [vmem:[#allocation8 + $0x3dc] sm:$0xf] }
 0x47d   :  { %10350 = vmatpush.bf16.msra.mxu2 %v16525_v42  ;;  %10254 = vmatmul.bf16.vlgmr.msra.gmra.mxu3 %v19455_v58  ;;  %v19836_v42 = vpop.f32.mrf.mxu3  ;;  %v14406_v55 = vld [vmem:[#allocation8 + $0x400] sm:$0xf0] }
 0x47e   :  { %10302 = vmatpush.bf16.msrb.mxu3 %v15805_v33  ;;  %v14809_v33 = vor.u32 %v18208_v0, %v14806_v41  ;;  %v18423_v0 = vld [vmem:[#allocation8 + $0xdac] sm:$0xf0] }
 0x47f   :  { %10323 = vmatpush.bf16.msra.mxu0 %v15845_v52  ;;  %v14129_v52 = vor.u32 %v18038_v27, %v14126_v32  ;;  %v14409_v32 = vor.u32 %v18108_v50, %v14406_v55  ;;  %v14686_v55 = vld [vmem:[#allocation8 + $0x630] sm:$0xf0] }
 0x480   :  { %10337 = vmatpush.bf16.msra.mxu1 %v16165_v37  ;;  %v15684_v37 = vld [vmem:[#allocation8 + $0xdd8] sm:$0xf]  ;;  %v10115_v27 = vpop.f32.mrf.mxu1 }
 0x481   :  { %10351 = vmatpush.bf16.msra.mxu2 %v16485_v10  ;;  %v10101_v10 = vpop.f32.mrf.mxu0 }
 0x482   :  { %10324 = vmatmul.bf16.vlgmr.msra.gmra.mxu0 %v19572_v6  ;;  %10303 = vmatpush.bf16.msrb.mxu3 %v15765_v49  ;;  %v15685_v49 = vor.u32 %v18433_v31, %v15684_v37  ;;  %v18098_v37 = vld [vmem:[#allocation8 + $0x38c] sm:$0xf] }
 0x483   :  { %10372 = vmatpush.bf16.msrb.mxu0 %v14209_v19  ;;  %10338 = vmatmul.bf16.vlgmr.msra.gmra.mxu1 %v19574_v44  ;;  %v14449_v19 = vor.u32 %v18118_v43, %v14446_v30  ;;  %v19841_v41 = vpop.f32.mrf.mxu2  ;;  %v14726_v43 = vld [vmem:[#allocation8 + $0x680] sm:$0xf0]  ;;  %v18018_v30 = vld [vmem:[#allocation8 + $0x10c] sm:$0xf] }
 0x484   :  { %10386 = vmatpush.bf16.msrb.mxu1 %v14529_v63  ;;  %v20097_v63 = vperm.slane %v19806_v11, 5  ;;  %10352 = vmatmul.bf16.vlgmr.msra.gmra.mxu2 %v19582_v51  ;;  %20187 = vst [vmem:[#allocation52_spill] sm:$0xff] %v19841_v41  ;;  %v14006_v41 = vld [vmem:[#allocation8 + $0xe0] sm:$0xf0] }
 0x485   :  { %10400 = vmatpush.bf16.msrb.mxu2 %v14849_v17 }
 0x486   :  { %10304 = vmatpush.bf16.msrb.mxu3 %v15725_v13  ;;  %v10102_v17 = vadd.f32 %v10101_v10, %v20097_v63  ;;  %v14046_v13 = vld [vmem:[#allocation8 + $0x130] sm:$0xf0]  ;;  %v18178_v10 = vld [vmem:[#allocation8 + $0x60c] sm:$0xf]  ;;  %v18008_v63 = vld [vmem:[#allocation8 + $0xbc] sm:$0xf] }
 0x487   :  { %10373 = vmatpush.bf16.msrb.mxu0 %v14169_v61  ;;  %v14769_v61 = vor.u32 %v18198_v56, %v14766_v20  ;;  %v10031_v56 = vpop.f32.mrf.mxu3  ;;  %v14049_v20 = vor.u32 %v18018_v30, %v14046_v13  ;;  %v14646_v30 = vld [vmem:[#allocation8 + $0x5e0] sm:$0xf0]  ;;  %v17998_v13 = vld [vmem:[#allocation8 + $0x6c] sm:$0xf] }
 0x488   :  { %10387 = vmatpush.bf16.msrb.mxu1 %v14489_v29  ;;  %v18188_v29 = vld [vmem:[#allocation8 + $0x65c] sm:$0xf]  ;;  %v10116_v45 = vadd.f32 %v10115_v27, %v10102_v17  ;;  %v14326_v27 = vld [vmem:[#allocation8 + $0x360] sm:$0xf0] }
 0x489   :  { %10401 = vmatpush.bf16.msrb.mxu2 %v14809_v33  ;;  %v14366_v33 = vld [vmem:[#allocation8 + $0x3b0] sm:$0xf0]  ;;  %v14729_v31 = vor.u32 %v18188_v29, %v14726_v43  ;;  %v18088_v17 = vld [vmem:[#allocation8 + $0x33c] sm:$0xf]  ;;  %v18403_v29 = vld [vmem:[#allocation8 + $0xd0c] sm:$0xf0] }
 0x48a   :  { %10305 = vmatpush.bf16.msrb.mxu3 %v15685_v49  ;;  %v14369_v50 = vor.u32 %v18098_v37, %v14366_v33  ;;  %v18168_v43 = vld [vmem:[#allocation8 + $0x5bc] sm:$0xf]  ;;  %v13966_v37 = vld [vmem:[#allocation8 + $0x90] sm:$0xf0] }
 0x48b   :  { %10374 = vmatpush.bf16.msrb.mxu0 %v14129_v52  ;;  %v15645_v52 = vor.u32 %v18423_v0, %v15644_v3  ;;  %v14009_v3 = vor.u32 %v18008_v63, %v14006_v41  ;;  %v15564_v0 = vld [vmem:[#allocation8 + $0xce8] sm:$0xf]  ;;  %v14649_v41 = vor.u32 %v18168_v43, %v14646_v30 }
 0x48c   :  { %10388 = vmatpush.bf16.msrb.mxu1 %v14449_v19  ;;  %v10032_v19 = vadd.f32 %v10031_v56, %v19820_v60  ;;  %v14329_v60 = vor.u32 %v18088_v17, %v14326_v27  ;;  %v13926_v17 = vld [vmem:[#allocation8 + $0x40] sm:$0xf0]  ;;  %v18068_v27 = vld [vmem:[#allocation8 + $0x29c] sm:$0xf] }
 0x48d   :  { %10402 = vmatpush.bf16.msrb.mxu2 %v14769_v61  ;;  %v15605_v61 = vor.u32 %v18413_v34, %v15604_v5  ;;  %v18393_v5 = vld [vmem:[#allocation8 + $0xcbc] sm:$0xf0]  ;;  %v13969_v34 = vor.u32 %v17998_v13, %v13966_v37  ;;  %v14566_v13 = vld [vmem:[#allocation8 + $0x540] sm:$0xf0] }
 0x48e   :  { %10306 = vmatpush.bf16.msrb.mxu3 %v15645_v52  ;;  %v10046_v49 = vadd.f32 %v19818_v8, %v10032_v19  ;;  %v18078_v52 = vld [vmem:[#allocation8 + $0x2ec] sm:$0xf]  ;;  %v14286_v8 = vld [vmem:[#allocation8 + $0x310] sm:$0xf0] }
 0x48f   :  { %10375 = vmatpush.bf16.msrb.mxu0 %v14089_v4  ;;  %v14689_v4 = vor.u32 %v18178_v10, %v14686_v55  ;;  %v18158_v10 = vld [vmem:[#allocation8 + $0x56c] sm:$0xf]  ;;  %v14606_v19 = vld [vmem:[#allocation8 + $0x590] sm:$0xf0]  ;;  %v17988_v55 = vld [vmem:[#allocation8 + $0x1c] sm:$0xf] }
 0x490   :  { %10389 = vmatpush.bf16.msrb.mxu1 %v14409_v32  ;;  %v10129_v32 = vpop.f32.mrf.mxu2  ;;  %v10060_v33 = vadd.f32 %v19824_v2, %v10046_v49  ;;  %v14289_v2 = vor.u32 %v18078_v52, %v14286_v8  ;;  %v14246_v49 = vld [vmem:[#allocation8 + $0x2c0] sm:$0xf0]  ;;  %v13929_v43 = vor.u32 %v17988_v55, %v13926_v17  ;;  %v17044_v52 = vld [vmem:[#allocation8 + $0x1878] sm:$0xf]  ;;  %v18773_v8 = vld [vmem:[#allocation8 + $0x189c] sm:$0xf0] }
 0x491   :  { %10403 = vmatpush.bf16.msrb.mxu2 %v14729_v31  ;;  %v19846_v56 = vadd.f32 %v10129_v32, %v10116_v45  ;;  %v15565_v31 = vor.u32 %v18403_v29, %v15564_v0  ;;  %v18783_v45 = vld [vmem:[#allocation8 + $0x18ec] sm:$0xf0]  ;;  %v15486_v29 = vld [vmem:[#allocation8 + $0xc70] sm:$0xf0]  ;;  %v14249_v30 = vor.u32 %v18068_v27, %v14246_v49  ;;  %v18528_v17 = vld [vmem:[#allocation8 + $0x10fc] sm:$0xf] }
 0x492   :  { %10307 = vmatpush.bf16.msrb.mxu3 %v15605_v61  ;;  %v19849_v63 = vadd.f32 %v19828_v7, %v10060_v33  ;;  %v18378_v61 = vld [vmem:[#allocation8 + $0xc4c] sm:$0xf]  ;;  %v15806_v32 = vld [vmem:[#allocation8 + $0xef0] sm:$0xf0]  ;;  %v18763_v55 = vld [vmem:[#allocation8 + $0x184c] sm:$0xf0] }
 0x493   :  { %10376 = vmatpush.bf16.msrb.mxu0 %v14049_v20  ;;  %v15524_v20 = vld [vmem:[#allocation8 + $0xc98] sm:$0xf]  ;;  %v18458_v7 = vld [vmem:[#allocation8 + $0xecc] sm:$0xf]  ;;  %v15489_v37 = vor.u32 %v18378_v61, %v15486_v29  ;;  %v16086_v49 = vld [vmem:[#allocation8 + $0x1120] sm:$0xf0] }
 0x494   :  { %10390 = vmatpush.bf16.msrb.mxu1 %v14369_v50  ;;  %v17084_v50 = vld [vmem:[#allocation8 + $0x18c8] sm:$0xf]  ;;  %v15525_v0 = vor.u32 %v18393_v5, %v15524_v20  ;;  %v15809_v33 = vor.u32 %v18458_v7, %v15806_v32  ;;  %v18368_v20 = vld [vmem:[#allocation8 + $0xbfc] sm:$0xf]  ;;  %v15446_v5 = vld [vmem:[#allocation8 + $0xc20] sm:$0xf0] }
 0x495   :  { %10404 = vmatpush.bf16.msrb.mxu2 %v14689_v4  ;;  %v14609_v4 = vor.u32 %v18158_v10, %v14606_v19  ;;  %v17045_v19 = vor.u32 %v18773_v8, %v17044_v52  ;;  %v18358_v61 = vld [vmem:[#allocation8 + $0xbac] sm:$0xf]  ;;  %v15726_v7 = vld [vmem:[#allocation8 + $0xe50] sm:$0xf0]  ;;  %v15366_v52 = vld [vmem:[#allocation8 + $0xb80] sm:$0xf0] }
 0x496   :  { %10308 = vmatpush.bf16.msrb.mxu3 %v15565_v31  ;;  %v16126_v31 = vld [vmem:[#allocation8 + $0x1170] sm:$0xf0]  ;;  %v18438_v29 = vld [vmem:[#allocation8 + $0xe2c] sm:$0xf]  ;;  %v18428_v8 = vld [vmem:[#allocation8 + $0xddc] sm:$0xf] }
 0x497   :  { %10377 = vmatpush.bf16.msrb.mxu0 %v14009_v3  ;;  %v17085_v3 = vor.u32 %v18783_v45, %v17084_v50  ;;  %v16129_v50 = vor.u32 %v18538_v28, %v16126_v31  ;;  %v17004_v45 = vld [vmem:[#allocation8 + $0x1828] sm:$0xf]  ;;  %v19854_v28 = vpop.f32.mrf.mxu3  ;;  %v15686_v31 = vld [vmem:[#allocation8 + $0xe00] sm:$0xf0] }
 0x498   :  { %10391 = vmatpush.bf16.msrb.mxu1 %v14329_v60  ;;  %v18148_v60 = vld [vmem:[#allocation8 + $0x51c] sm:$0xf]  ;;  %v17005_v32 = vor.u32 %v18763_v55, %v17004_v45  ;;  %v18338_v45 = vld [vmem:[#allocation8 + $0xb0c] sm:$0xf]  ;;  %v15326_v55 = vld [vmem:[#allocation8 + $0xb30] sm:$0xf0] }
 0x499   :  { %10405 = vmatpush.bf16.msrb.mxu2 %v14649_v41  ;;  %v18448_v41 = vld [vmem:[#allocation8 + $0xe7c] sm:$0xf]  ;;  %v14569_v10 = vor.u32 %v18148_v60, %v14566_v13  ;;  %v18518_v60 = vld [vmem:[#allocation8 + $0x10ac] sm:$0xf]  ;;  %v15729_v13 = vor.u32 %v18438_v29, %v15726_v7  ;;  %v15329_v29 = vor.u32 %v18338_v45, %v15326_v55  ;;  %v16884_v7 = vld [vmem:[#allocation8 + $0x1738] sm:$0xf] }
 0x49a   :  { %10309 = vmatpush.bf16.msrb.mxu3 %v15525_v0  ;;  %v15406_v0 = vld [vmem:[#allocation8 + $0xbd0] sm:$0xf0]  ;;  %v16804_v55 = vld [vmem:[#allocation8 + $0x1698] sm:$0xf] }
 0x49b   :  { %10378 = vmatpush.bf16.msrb.mxu0 %v13969_v34  ;;  %v15766_v34 = vld [vmem:[#allocation8 + $0xea0] sm:$0xf0] }
 0x49c   :  { %10392 = vmatpush.bf16.msrb.mxu1 %v14289_v2  ;;  %v15449_v2 = vor.u32 %v18368_v20, %v15446_v5  ;;  %v15769_v27 = vor.u32 %v18448_v41, %v15766_v34  ;;  %v16924_v34 = vld [vmem:[#allocation8 + $0x1788] sm:$0xf] }
 0x49d   :  { %10406 = vmatpush.bf16.msrb.mxu2 %v14609_v4  ;;  %10310 = vmatmul.bf16.vlgmr.msrb.gmra.mxu3 %v19534_v54  ;;  %v16089_v4 = vor.u32 %v18528_v17, %v16086_v49  ;;  %v18418_v17 = vld [vmem:[#allocation8 + $0xd8c] sm:$0xf] }
 0x49e   :  { %10358 = vmatpush.bf16.msra.mxu3 %v17085_v3  ;;  %v15409_v3 = vor.u32 %v18358_v61, %v15406_v0 }
 0x49f   :  { %10379 = vmatpush.bf16.msrb.mxu0 %v13929_v43  ;;  %v16964_v43 = vld [vmem:[#allocation8 + $0x17d8] sm:$0xf]  ;;  %v10087_v0 = vpop.f32.mrf.mxu3 }
 0x4a0   :  { %10393 = vmatpush.bf16.msrb.mxu1 %v14249_v30  ;;  %v18753_v30 = vld [vmem:[#allocation8 + $0x17fc] sm:$0xf0] }
 0x4a1   :  { %10407 = vmatpush.bf16.msrb.mxu2 %v14569_v10  ;;  %v16965_v20 = vor.u32 %v18753_v30, %v16964_v43  ;;  %v18743_v10 = vld [vmem:[#allocation8 + $0x17ac] sm:$0xf0]  ;;  %v15966_v30 = vld [vmem:[#allocation8 + $0x1030] sm:$0xf0] }
 0x4a2   :  { %10380 = vmatmul.bf16.vlgmr.msrb.gmra.mxu0 %v19439_v36  ;;  %10359 = vmatpush.bf16.msra.mxu3 %v17045_v19  ;;  %v18508_v19 = vld [vmem:[#allocation8 + $0x105c] sm:$0xf]  ;;  %v16925_v49 = vor.u32 %v18743_v10, %v16924_v34  ;;  %v15926_v10 = vld [vmem:[#allocation8 + $0xfe0] sm:$0xf0] }
 0x4a3   :  { %10428 = vmatpush.bf16.msra.mxu0 %v15489_v37  ;;  %10394 = vmatmul.bf16.vlgmr.msrb.gmra.mxu1 %v19455_v58  ;;  %v16046_v37 = vld [vmem:[#allocation8 + $0x10d0] sm:$0xf0] }
 0x4a4   :  { %10442 = vmatpush.bf16.msra.mxu1 %v15809_v33  ;;  %v18348_v33 = vld [vmem:[#allocation8 + $0xb5c] sm:$0xf]  ;;  %10408 = vmatmul.bf16.vlgmr.msrb.gmra.mxu2 %v19521_v15  ;;  %v16049_v5 = vor.u32 %v18518_v60, %v16046_v37 }
 0x4a5   :  { %10456 = vmatpush.bf16.msra.mxu2 %v16129_v50  ;;  %v15369_v41 = vor.u32 %v18348_v33, %v15366_v52  ;;  %v15689_v50 = vor.u32 %v18428_v8, %v15686_v31  ;;  %v18328_v60 = vld [vmem:[#allocation8 + $0xabc] sm:$0xf]  ;;  %v15606_v33 = vld [vmem:[#allocation8 + $0xd60] sm:$0xf0] }
 0x4a6   :  { %10360 = vmatpush.bf16.msra.mxu3 %v17005_v32  ;;  %v18733_v32 = vld [vmem:[#allocation8 + $0x175c] sm:$0xf0]  ;;  %v18408_v37 = vld [vmem:[#allocation8 + $0xd3c] sm:$0xf] }
 0x4a7   :  { %10429 = vmatpush.bf16.msra.mxu0 %v15449_v2  ;;  %v16006_v2 = vld [vmem:[#allocation8 + $0x1080] sm:$0xf0]  ;;  %v16885_v52 = vor.u32 %v18733_v32, %v16884_v7  ;;  %v15609_v34 = vor.u32 %v18408_v37, %v15606_v33  ;;  %v15166_v32 = vld [vmem:[#allocation8 + $0x9f0] sm:$0xf0] }
 0x4a8   :  { %10443 = vmatpush.bf16.msra.mxu1 %v15769_v27  ;;  %v15646_v27 = vld [vmem:[#allocation8 + $0xdb0] sm:$0xf0]  ;;  %v16009_v61 = vor.u32 %v18508_v19, %v16006_v2 }
 0x4a9   :  { %10457 = vmatpush.bf16.msra.mxu2 %v16089_v4  ;;  %v18498_v4 = vld [vmem:[#allocation8 + $0x100c] sm:$0xf]  ;;  %v15649_v43 = vor.u32 %v18418_v17, %v15646_v27  ;;  %v15246_v19 = vld [vmem:[#allocation8 + $0xa90] sm:$0xf0]  ;;  %v18713_v17 = vld [vmem:[#allocation8 + $0x16bc] sm:$0xf0] }
 0x4aa   :  { %10361 = vmatpush.bf16.msra.mxu3 %v16965_v20  ;;  %v15969_v8 = vor.u32 %v18498_v4, %v15966_v30  ;;  %v16844_v20 = vld [vmem:[#allocation8 + $0x16e8] sm:$0xf]  ;;  %v15566_v2 = vld [vmem:[#allocation8 + $0xd10] sm:$0xf0]  ;;  %v18308_v4 = vld [vmem:[#allocation8 + $0xa1c] sm:$0xf]  ;;  %v16805_v37 = vor.u32 %v18713_v17, %v16804_v55 }
 0x4ab   :  { %10430 = vmatpush.bf16.msra.mxu0 %v15409_v3  ;;  %v19858_v3 = vadd.f32 %v10087_v0, %v19849_v63  ;;  %v18318_v63 = vld [vmem:[#allocation8 + $0xa6c] sm:$0xf]  ;;  %v15886_v0 = vld [vmem:[#allocation8 + $0xf90] sm:$0xf0]  ;;  %v18388_v30 = vld [vmem:[#allocation8 + $0xc9c] sm:$0xf] }
 0x4ac   :  { %10444 = vmatpush.bf16.msra.mxu1 %v15729_v13  ;;  %v15286_v13 = vld [vmem:[#allocation8 + $0xae0] sm:$0xf0]  ;;  %v16766_v33 = vld [vmem:[#allocation8 + $0x1670] sm:$0xf0]  ;;  %v18688_v55 = vld [vmem:[#allocation8 + $0x15fc] sm:$0xf] }
 0x4ad   :  { %10458 = vmatpush.bf16.msra.mxu2 %v16049_v5  ;;  %20188 = vst [vmem:[#allocation53_spill] sm:$0xff] %v19858_v3  ;;  %v15289_v31 = vor.u32 %v18328_v60, %v15286_v13  ;;  %v18723_v5 = vld [vmem:[#allocation8 + $0x170c] sm:$0xf0]  ;;  %v15526_v60 = vld [vmem:[#allocation8 + $0xcc0] sm:$0xf0] }
 0x4ae   :  { %10362 = vmatpush.bf16.msra.mxu3 %v16925_v49  ;;  %v16845_v45 = vor.u32 %v18723_v5, %v16844_v20  ;;  %v15249_v49 = vor.u32 %v18318_v63, %v15246_v19  ;;  %v18698_v13 = vld [vmem:[#allocation8 + $0x164c] sm:$0xf]  ;;  %v17086_v20 = vld [vmem:[#allocation8 + $0x18f0] sm:$0xf0]  ;;  %v14212_v3 = vld [vmem:[#allocation8 + $0x250] sm:$0xf] }
 0x4af   :  { %10431 = vmatpush.bf16.msra.mxu0 %v15369_v41  ;;  %v18488_v41 = vld [vmem:[#allocation8 + $0xfbc] sm:$0xf]  ;;  %v16769_v63 = vor.u32 %v18698_v13, %v16766_v33  ;;  %v16726_v17 = vld [vmem:[#allocation8 + $0x1620] sm:$0xf0]  ;;  %v18678_v13 = vld [vmem:[#allocation8 + $0x15ac] sm:$0xf] }
 0x4b0   :  { %10445 = vmatpush.bf16.msra.mxu1 %v15689_v50  ;;  %v18398_v50 = vld [vmem:[#allocation8 + $0xcec] sm:$0xf]  ;;  %v15929_v27 = vor.u32 %v18488_v41, %v15926_v10  ;;  %v15529_v41 = vor.u32 %v18388_v30, %v15526_v60  ;;  %v15846_v10 = vld [vmem:[#allocation8 + $0xf40] sm:$0xf0]  ;;  %v18054_v60 = vld [vmem:[#allocation8 + $0x224] sm:$0xf0] }
 0x4b1   :  { %10459 = vmatpush.bf16.msra.mxu2 %v16009_v61  ;;  %v18478_v61 = vld [vmem:[#allocation8 + $0xf6c] sm:$0xf]  ;;  %v15569_v7 = vor.u32 %v18398_v50, %v15566_v2  ;;  %v18288_v50 = vld [vmem:[#allocation8 + $0x97c] sm:$0xf]  ;;  %v15126_v2 = vld [vmem:[#allocation8 + $0x9a0] sm:$0xf0] }
 0x4b2   :  { %10363 = vmatpush.bf16.msra.mxu3 %v16885_v52  ;;  %v18778_v52 = vld [vmem:[#allocation8 + $0x18cc] sm:$0xf] }
 0x4b3   :  { %10432 = vmatpush.bf16.msra.mxu0 %v15329_v29  ;;  %v18298_v29 = vld [vmem:[#allocation8 + $0x9cc] sm:$0xf]  ;;  %v17089_v19 = vor.u32 %v18778_v52, %v17086_v20  ;;  %v17006_v52 = vld [vmem:[#allocation8 + $0x1850] sm:$0xf0] }
 0x4b4   :  { %10446 = vmatpush.bf16.msra.mxu1 %v15649_v43  ;;  %v15206_v43 = vld [vmem:[#allocation8 + $0xa40] sm:$0xf0]  ;;  %v18758_v33 = vld [vmem:[#allocation8 + $0x182c] sm:$0xf] }
 0x4b5   :  { %10460 = vmatpush.bf16.msra.mxu2 %v15969_v8  ;;  %v15889_v8 = vor.u32 %v18478_v61, %v15886_v0  ;;  %v15209_v5 = vor.u32 %v18308_v4, %v15206_v43  ;;  %v15129_v0 = vor.u32 %v18288_v50, %v15126_v2  ;;  %v15086_v4 = vld [vmem:[#allocation8 + $0x950] sm:$0xf0]  ;;  %v14172_v43 = vld [vmem:[#allocation8 + $0x200] sm:$0xf]  ;;  %v16646_v50 = vld [vmem:[#allocation8 + $0x1580] sm:$0xf0]  ;;  %v19865_v2 = vpop.f32.mrf.mxu0 }
 0x4b6   :  { %10364 = vmatpush.bf16.msra.mxu3 %v16845_v45  ;;  %v18064_v45 = vld [vmem:[#allocation8 + $0x274] sm:$0xf0]  ;;  %20190 = vst [vmem:[#allocation55_spill] sm:$0xff] %v19865_v2  ;;  %v16846_v2 = vld [vmem:[#allocation8 + $0x1710] sm:$0xf0] }
 0x4b7   :  { %10433 = vmatpush.bf16.msra.mxu0 %v15289_v31  ;;  %v15169_v31 = vor.u32 %v18298_v29, %v15166_v32  ;;  %v14213_v29 = vor.u32 %v18064_v45, %v14212_v3  ;;  %v18278_v32 = vld [vmem:[#allocation8 + $0x92c] sm:$0xf]  ;;  %v19863_v3 = vpop.f32.mrf.mxu3  ;;  %v18748_v45 = vld [vmem:[#allocation8 + $0x17dc] sm:$0xf] }
 0x4b8   :  { %10447 = vmatpush.bf16.msra.mxu1 %v15609_v34  ;;  %v18468_v34 = vld [vmem:[#allocation8 + $0xf1c] sm:$0xf]  ;;  %v15089_v20 = vor.u32 %v18278_v32, %v15086_v4  ;;  %20189 = vst [vmem:[#allocation54_spill] sm:$0xff] %v19863_v3  ;;  %v18034_v4 = vld [vmem:[#allocation8 + $0x184] sm:$0xf0] }
 0x4b9   :  { %10461 = vmatpush.bf16.msra.mxu2 %v15929_v27  ;;  %v18768_v27 = vld [vmem:[#allocation8 + $0x187c] sm:$0xf]  ;;  %v15849_v61 = vor.u32 %v18468_v34, %v15846_v10  ;;  %v14132_v34 = vld [vmem:[#allocation8 + $0x1b0] sm:$0xf]  ;;  %v17009_v10 = vor.u32 %v18758_v33, %v17006_v52 }
 0x4ba   :  { %10365 = vmatpush.bf16.msra.mxu3 %v16805_v37  ;;  %v16686_v37 = vld [vmem:[#allocation8 + $0x15d0] sm:$0xf0]  ;;  %v15492_v3 = vld [vmem:[#allocation8 + $0xc50] sm:$0xf] }
 0x4bb   :  { %10434 = vmatpush.bf16.msra.mxu0 %v15249_v49  ;;  %v17046_v49 = vld [vmem:[#allocation8 + $0x18a0] sm:$0xf0] }
 0x4bc   :  { %10448 = vmatpush.bf16.msra.mxu1 %v15569_v7  ;;  %v16729_v7 = vor.u32 %v18688_v55, %v16726_v17  ;;  %v17049_v30 = vor.u32 %v18768_v27, %v17046_v49  ;;  %v16966_v55 = vld [vmem:[#allocation8 + $0x1800] sm:$0xf0]  ;;  %v19868_v27 = vpop.f32.mrf.mxu1 }
 0x4bd   :  { %10462 = vmatpush.bf16.msra.mxu2 %v15889_v8  ;;  %10366 = vmatmul.bf16.vlgmr.msra.gmra.mxu3 %v19602_v14  ;;  %v14173_v8 = vor.u32 %v18054_v60, %v14172_v43  ;;  %20191 = vst [vmem:[#allocation56_spill] sm:$0xff] %v19868_v27  ;;  %v16969_v32 = vor.u32 %v18748_v45, %v16966_v55  ;;  %v18658_v43 = vld [vmem:[#allocation8 + $0x150c] sm:$0xf]  ;;  %v19870_v60 = vpop.f32.mrf.mxu2  ;;  %v10157_v45 = vpop.f32.mrf.mxu0  ;;  %v18728_v55 = vld [vmem:[#allocation8 + $0x173c] sm:$0xf] }
 0x4be   :  { %10414 = vmatpush.bf16.msrb.mxu3 %v15169_v31  ;;  %v16689_v31 = vor.u32 %v18678_v13, %v16686_v37  ;;  %20192 = vst [vmem:[#allocation57_spill] sm:$0xff] %v19870_v60  ;;  %v18738_v13 = vld [vmem:[#allocation8 + $0x178c] sm:$0xf]  ;;  %v16926_v37 = vld [vmem:[#allocation8 + $0x17b0] sm:$0xf0] }
 0x4bf   :  { %10435 = vmatpush.bf16.msra.mxu0 %v15209_v5  ;;  %v18268_v5 = vld [vmem:[#allocation8 + $0x8dc] sm:$0xf]  ;;  %v16886_v60 = vld [vmem:[#allocation8 + $0x1760] sm:$0xf0]  ;;  %v18718_v27 = vld [vmem:[#allocation8 + $0x16ec] sm:$0xf] }
 0x4c0   :  { %10449 = vmatpush.bf16.msra.mxu1 %v15529_v41  ;;  %v15046_v41 = vld [vmem:[#allocation8 + $0x900] sm:$0xf0] }
 0x4c1   :  { %10463 = vmatpush.bf16.msra.mxu2 %v15849_v61  ;;  %v15049_v17 = vor.u32 %v18268_v5, %v15046_v41  ;;  %v14966_v5 = vld [vmem:[#allocation8 + $0x860] sm:$0xf0]  ;;  %v14052_v41 = vld [vmem:[#allocation8 + $0x110] sm:$0xf] }
 0x4c2   :  { %10436 = vmatmul.bf16.vlgmr.msra.gmra.mxu0 %v19527_v12  ;;  %10415 = vmatpush.bf16.msrb.mxu3 %v15129_v0  ;;  %v18258_v0 = vld [vmem:[#allocation8 + $0x88c] sm:$0xf] }
 0x4c3   :  { %10484 = vmatpush.bf16.msrb.mxu0 %v16769_v63  ;;  %10450 = vmatmul.bf16.vlgmr.msra.gmra.mxu1 %v19534_v54  ;;  %v18044_v63 = vld [vmem:[#allocation8 + $0x1d4] sm:$0xf0] }
 0x4c4   :  { %10498 = vmatpush.bf16.msrb.mxu1 %v17089_v19  ;;  %v18668_v19 = vld [vmem:[#allocation8 + $0x155c] sm:$0xf]  ;;  %10464 = vmatmul.bf16.vlgmr.msra.gmra.mxu2 %v19572_v6  ;;  %v14133_v49 = vor.u32 %v18044_v63, %v14132_v34  ;;  %v18024_v63 = vld [vmem:[#allocation8 + $0x134] sm:$0xf0] }
 0x4c5   :  { %10512 = vmatpush.bf16.msrb.mxu2 %v14213_v29  ;;  %v16649_v61 = vor.u32 %v18668_v19, %v16646_v50  ;;  %v15006_v29 = vld [vmem:[#allocation8 + $0x8b0] sm:$0xf0]  ;;  %v18648_v19 = vld [vmem:[#allocation8 + $0x14bc] sm:$0xf]  ;;  %v16566_v50 = vld [vmem:[#allocation8 + $0x14e0] sm:$0xf0] }
 0x4c6   :  { %10416 = vmatpush.bf16.msrb.mxu3 %v15089_v20  ;;  %v15009_v33 = vor.u32 %v18258_v0, %v15006_v29  ;;  %v10143_v20 = vpop.f32.mrf.mxu3  ;;  %v14053_v0 = vor.u32 %v18024_v63, %v14052_v41  ;;  %v16569_v29 = vor.u32 %v18648_v19, %v16566_v50  ;;  %v16849_v63 = vor.u32 %v18718_v27, %v16846_v2  ;;  %v16446_v19 = vld [vmem:[#allocation8 + $0x13f0] sm:$0xf0]  ;;  %v18628_v50 = vld [vmem:[#allocation8 + $0x141c] sm:$0xf]  ;;  %v17994_v2 = vld [vmem:[#allocation8 + $0x44] sm:$0xf0] }
 0x4c7   :  { %10485 = vmatpush.bf16.msrb.mxu0 %v16729_v7  ;;  %v14092_v7 = vld [vmem:[#allocation8 + $0x160] sm:$0xf]  ;;  %v10144_v34 = vadd.f32 %v10143_v20, %v19846_v56  ;;  %v16889_v56 = vor.u32 %v18728_v55, %v16886_v60  ;;  %v10185_v20 = vpop.f32.mrf.mxu2  ;;  %v18618_v60 = vld [vmem:[#allocation8 + $0x13cc] sm:$0xf]  ;;  %v18708_v55 = vld [vmem:[#allocation8 + $0x169c] sm:$0xf] }
 0x4c8   :  { %10499 = vmatpush.bf16.msrb.mxu1 %v17049_v30  ;;  %v16606_v30 = vld [vmem:[#allocation8 + $0x1530] sm:$0xf0]  ;;  %v14093_v52 = vor.u32 %v18034_v4, %v14092_v7  ;;  %v18238_v7 = vld [vmem:[#allocation8 + $0x7ec] sm:$0xf] }
 0x4c9   :  { %10513 = vmatpush.bf16.msrb.mxu2 %v14173_v8  ;;  %v16609_v8 = vor.u32 %v18658_v43, %v16606_v30  ;;  %v14926_v4 = vld [vmem:[#allocation8 + $0x810] sm:$0xf0]  ;;  %v18014_v43 = vld [vmem:[#allocation8 + $0xe4] sm:$0xf0]  ;;  %v18638_v30 = vld [vmem:[#allocation8 + $0x146c] sm:$0xf] }
 0x4ca   :  { %10417 = vmatpush.bf16.msrb.mxu3 %v15049_v17  ;;  %v10158_v17 = vadd.f32 %v10157_v45, %v10144_v34  ;;  %v13972_v34 = vld [vmem:[#allocation8 + $0x70] sm:$0xf]  ;;  %v16486_v45 = vld [vmem:[#allocation8 + $0x1440] sm:$0xf0] }
 0x4cb   :  { %10486 = vmatpush.bf16.msrb.mxu0 %v16689_v31  ;;  %v18248_v31 = vld [vmem:[#allocation8 + $0x83c] sm:$0xf] }
 0x4cc   :  { %10500 = vmatpush.bf16.msrb.mxu1 %v17009_v10  ;;  %v16929_v10 = vor.u32 %v18738_v13, %v16926_v37  ;;  %v16526_v13 = vld [vmem:[#allocation8 + $0x1490] sm:$0xf0] }
 0x4cd   :  { %10514 = vmatpush.bf16.msrb.mxu2 %v14133_v49  ;;  %v14969_v49 = vor.u32 %v18248_v31, %v14966_v5  ;;  %v18228_v31 = vld [vmem:[#allocation8 + $0x79c] sm:$0xf]  ;;  %v14886_v5 = vld [vmem:[#allocation8 + $0x7c0] sm:$0xf0]  ;;  %v16529_v41 = vor.u32 %v18638_v30, %v16526_v13 }
 0x4ce   :  { %10418 = vmatpush.bf16.msrb.mxu3 %v15009_v33  ;;  %v14929_v33 = vor.u32 %v18238_v7, %v14926_v4  ;;  %v18224_v7 = vld [vmem:[#allocation8 + $0x774] sm:$0xf0]  ;;  %v15172_v4 = vld [vmem:[#allocation8 + $0x9d0] sm:$0xf]  ;;  %v18608_v13 = vld [vmem:[#allocation8 + $0x137c] sm:$0xf] }
 0x4cf   :  { %10487 = vmatpush.bf16.msrb.mxu0 %v16649_v61  ;;  %v10171_v61 = vpop.f32.mrf.mxu1 }
 0x4d0   :  { %10501 = vmatpush.bf16.msrb.mxu1 %v16969_v32  ;;  %v14012_v32 = vld [vmem:[#allocation8 + $0xc0] sm:$0xf]  ;;  %v10172_v37 = vadd.f32 %v10171_v61, %v10158_v17  ;;  %v16806_v17 = vld [vmem:[#allocation8 + $0x16c0] sm:$0xf0]  ;;  %v14889_v61 = vor.u32 %v18228_v31, %v14886_v5  ;;  %v18214_v5 = vld [vmem:[#allocation8 + $0x724] sm:$0xf0] }
 0x4d1   :  { %10515 = vmatpush.bf16.msrb.mxu2 %v14093_v52  ;;  %v14812_v31 = vld [vmem:[#allocation8 + $0x700] sm:$0xf] }
 0x4d2   :  { %10419 = vmatpush.bf16.msrb.mxu3 %v14969_v49  ;;  %v19873_v52 = vadd.f32 %v10185_v20, %v10172_v37  ;;  %v14852_v49 = vld [vmem:[#allocation8 + $0x750] sm:$0xf]  ;;  %v18304_v37 = vld [vmem:[#allocation8 + $0x9f4] sm:$0xf0]  ;;  %v16406_v20 = vld [vmem:[#allocation8 + $0x13a0] sm:$0xf0] }
 0x4d3   :  { %10488 = vmatpush.bf16.msrb.mxu0 %v16609_v8  ;;  %v14013_v8 = vor.u32 %v18014_v43, %v14012_v32  ;;  %v16489_v32 = vor.u32 %v18628_v50, %v16486_v45  ;;  %v16809_v43 = vor.u32 %v18708_v55, %v16806_v17  ;;  %v14853_v27 = vor.u32 %v18224_v7, %v14852_v49  ;;  %v16366_v50 = vld [vmem:[#allocation8 + $0x1350] sm:$0xf0]  ;;  %v15452_v45 = vld [vmem:[#allocation8 + $0xc00] sm:$0xf]  ;;  %v18374_v17 = vld [vmem:[#allocation8 + $0xc24] sm:$0xf0] }
 0x4d4   :  { %10502 = vmatpush.bf16.msrb.mxu1 %v16929_v10  ;;  %v18004_v10 = vld [vmem:[#allocation8 + $0x94] sm:$0xf0]  ;;  %v15173_v30 = vor.u32 %v18304_v37, %v15172_v4  ;;  %v14772_v49 = vld [vmem:[#allocation8 + $0x6b0] sm:$0xf] }
 0x4d5   :  { %10516 = vmatpush.bf16.msrb.mxu2 %v14053_v0  ;;  %v13973_v0 = vor.u32 %v18004_v10, %v13972_v34  ;;  %v16409_v10 = vor.u32 %v18608_v13, %v16406_v20  ;;  %v15092_v7 = vld [vmem:[#allocation8 + $0x930] sm:$0xf]  ;;  %v18284_v4 = vld [vmem:[#allocation8 + $0x954] sm:$0xf0]  ;;  %v18194_v13 = vld [vmem:[#allocation8 + $0x684] sm:$0xf0]  ;;  %v19880_v20 = vpop.f32.mrf.mxu0 }
 0x4d6   :  { %10420 = vmatpush.bf16.msrb.mxu3 %v14929_v33  ;;  %v18384_v33 = vld [vmem:[#allocation8 + $0xc74] sm:$0xf0]  ;;  %20193 = vst [vmem:[#allocation58_spill] sm:$0xff] %v19880_v20  ;;  %v16772_v20 = vld [vmem:[#allocation8 + $0x1650] sm:$0xf] }
 0x4d7   :  { %10489 = vmatpush.bf16.msrb.mxu0 %v16569_v29  ;;  %v16449_v29 = vor.u32 %v18618_v60, %v16446_v19  ;;  %v15493_v60 = vor.u32 %v18384_v33, %v15492_v3  ;;  %v18598_v19 = vld [vmem:[#allocation8 + $0x132c] sm:$0xf]  ;;  %v19878_v3 = vpop.f32.mrf.mxu3  ;;  %v15052_v33 = vld [vmem:[#allocation8 + $0x8e0] sm:$0xf] }
 0x4d8   :  { %10503 = vmatpush.bf16.msrb.mxu1 %v16889_v56  ;;  %v13932_v56 = vld [vmem:[#allocation8 + $0x20] sm:$0xf]  ;;  %v16369_v37 = vor.u32 %v18598_v19, %v16366_v50  ;;  %v18354_v50 = vld [vmem:[#allocation8 + $0xb84] sm:$0xf0] }
 0x4d9   :  { %10517 = vmatpush.bf16.msrb.mxu2 %v14013_v8  ;;  %v15132_v8 = vld [vmem:[#allocation8 + $0x980] sm:$0xf]  ;;  %v13933_v34 = vor.u32 %v17994_v2, %v13932_v56  ;;  %v15412_v56 = vld [vmem:[#allocation8 + $0xbb0] sm:$0xf]  ;;  %v15093_v2 = vor.u32 %v18284_v4, %v15092_v7 }
 0x4da   :  { %10421 = vmatpush.bf16.msrb.mxu3 %v14889_v61  ;;  %v18204_v61 = vld [vmem:[#allocation8 + $0x6d4] sm:$0xf0] }
 0x4db   :  { %10490 = vmatpush.bf16.msrb.mxu0 %v16529_v41  ;;  %v18294_v41 = vld [vmem:[#allocation8 + $0x9a4] sm:$0xf0] }
 0x4dc   :  { %10504 = vmatpush.bf16.msrb.mxu1 %v16849_v63  ;;  %v14813_v63 = vor.u32 %v18214_v5, %v14812_v31  ;;  %v15133_v55 = vor.u32 %v18294_v41, %v15132_v8  ;;  %v18274_v31 = vld [vmem:[#allocation8 + $0x904] sm:$0xf0]  ;;  %v19883_v8 = vpop.f32.mrf.mxu1 }
 0x4dd   :  { %10518 = vmatpush.bf16.msrb.mxu2 %v13973_v0  ;;  %10422 = vmatmul.bf16.vlgmr.msrb.gmra.mxu3 %v19523_v38  ;;  %v15453_v0 = vor.u32 %v18374_v17, %v15452_v45  ;;  %20194 = vst [vmem:[#allocation59_spill] sm:$0xff] %v19883_v8  ;;  %v15053_v19 = vor.u32 %v18274_v31, %v15052_v33  ;;  %v14692_v45 = vld [vmem:[#allocation8 + $0x610] sm:$0xf]  ;;  %v14972_v33 = vld [vmem:[#allocation8 + $0x840] sm:$0xf] }
 0x4de   :  { %10470 = vmatpush.bf16.msra.mxu3 %v16449_v29  ;;  %v14773_v29 = vor.u32 %v18204_v61, %v14772_v49  ;;  %v15012_v17 = vld [vmem:[#allocation8 + $0x890] sm:$0xf]  ;;  %v18264_v49 = vld [vmem:[#allocation8 + $0x8b4] sm:$0xf0]  ;;  %v18254_v31 = vld [vmem:[#allocation8 + $0x864] sm:$0xf0] }
 0x4df   :  { %10491 = vmatpush.bf16.msrb.mxu0 %v16489_v32  ;;  %v18588_v32 = vld [vmem:[#allocation8 + $0x12dc] sm:$0xf]  ;;  %v10199_v4 = vpop.f32.mrf.mxu3  ;;  %v18244_v8 = vld [vmem:[#allocation8 + $0x814] sm:$0xf0] }
 0x4e0   :  { %10505 = vmatpush.bf16.msrb.mxu1 %v16809_v43  ;;  %v16326_v43 = vld [vmem:[#allocation8 + $0x1300] sm:$0xf0] }
 0x4e1   :  { %10519 = vmatpush.bf16.msrb.mxu2 %v13933_v34  ;;  %v16329_v5 = vor.u32 %v18588_v32, %v16326_v43  ;;  %v15332_v32 = vld [vmem:[#allocation8 + $0xb10] sm:$0xf]  ;;  %v10200_v43 = vadd.f32 %v10199_v4, %v19873_v52  ;;  %v14973_v52 = vor.u32 %v18254_v31, %v14972_v33  ;;  %v14892_v33 = vld [vmem:[#allocation8 + $0x7a0] sm:$0xf]  ;;  %v18234_v31 = vld [vmem:[#allocation8 + $0x7c4] sm:$0xf0] }
 0x4e2   :  { %10492 = vmatmul.bf16.vlgmr.msrb.gmra.mxu0 %v19582_v51  ;;  %10471 = vmatpush.bf16.msra.mxu3 %v16409_v10  ;;  %v18578_v10 = vld [vmem:[#allocation8 + $0x128c] sm:$0xf]  ;;  %v14932_v4 = vld [vmem:[#allocation8 + $0x7f0] sm:$0xf] }
 0x4e3   :  { %10540 = vmatpush.bf16.msra.mxu0 %v14853_v27  ;;  %10506 = vmatmul.bf16.vlgmr.msrb.gmra.mxu1 %v19602_v14  ;;  %v18364_v27 = vld [vmem:[#allocation8 + $0xbd4] sm:$0xf0] }
 0x4e4   :  { %10554 = vmatpush.bf16.msra.mxu1 %v15173_v30  ;;  %v14732_v30 = vld [vmem:[#allocation8 + $0x660] sm:$0xf]  ;;  %10520 = vmatmul.bf16.vlgmr.msrb.gmra.mxu2 %v19439_v36  ;;  %v15413_v41 = vor.u32 %v18364_v27, %v15412_v56  ;;  %v15013_v56 = vor.u32 %v18264_v49, %v15012_v17  ;;  %v14612_v17 = vld [vmem:[#allocation8 + $0x570] sm:$0xf]  ;;  %v18164_v49 = vld [vmem:[#allocation8 + $0x594] sm:$0xf0] }
 0x4e5   :  { %10568 = vmatpush.bf16.msra.mxu2 %v15493_v60  ;;  %v14733_v34 = vor.u32 %v18194_v13, %v14732_v30  ;;  %v16286_v60 = vld [vmem:[#allocation8 + $0x12b0] sm:$0xf0]  ;;  %v14652_v27 = vld [vmem:[#allocation8 + $0x5c0] sm:$0xf]  ;;  %v18174_v30 = vld [vmem:[#allocation8 + $0x5e4] sm:$0xf0]  ;;  %v10213_v13 = vpop.f32.mrf.mxu0 }
 0x4e6   :  { %10472 = vmatpush.bf16.msra.mxu3 %v16369_v37  ;;  %v16289_v61 = vor.u32 %v18578_v10, %v16286_v60  ;;  %v14653_v60 = vor.u32 %v18174_v30, %v14652_v27  ;;  %v14933_v27 = vor.u32 %v18244_v8, %v14932_v4  ;;  %v14572_v30 = vld [vmem:[#allocation8 + $0x520] sm:$0xf]  ;;  %v18314_v8 = vld [vmem:[#allocation8 + $0xa44] sm:$0xf0] }
 0x4e7   :  { %10541 = vmatpush.bf16.msra.mxu0 %v14813_v63  ;;  %v15372_v63 = vld [vmem:[#allocation8 + $0xb60] sm:$0xf] }
 0x4e8   :  { %10555 = vmatpush.bf16.msra.mxu1 %v15133_v55  ;;  %v18184_v55 = vld [vmem:[#allocation8 + $0x634] sm:$0xf0]  ;;  %v15373_v7 = vor.u32 %v18354_v50, %v15372_v63  ;;  %v18558_v63 = vld [vmem:[#allocation8 + $0x11ec] sm:$0xf]  ;;  %v16206_v50 = vld [vmem:[#allocation8 + $0x1210] sm:$0xf0] }
 0x4e9   :  { %10569 = vmatpush.bf16.msra.mxu2 %v15453_v0  ;;  %v14693_v37 = vor.u32 %v18184_v55, %v14692_v45  ;;  %v18568_v0 = vld [vmem:[#allocation8 + $0x123c] sm:$0xf]  ;;  %v18334_v55 = vld [vmem:[#allocation8 + $0xae4] sm:$0xf0]  ;;  %v14492_v4 = vld [vmem:[#allocation8 + $0x480] sm:$0xf] }
 0x4ea   :  { %10473 = vmatpush.bf16.msra.mxu3 %v16329_v5  ;;  %v10214_v5 = vadd.f32 %v10213_v13, %v10200_v43  ;;  %v18324_v43 = vld [vmem:[#allocation8 + $0xa94] sm:$0xf0]  ;;  %v18154_v13 = vld [vmem:[#allocation8 + $0x544] sm:$0xf0] }
 0x4eb   :  { %10542 = vmatpush.bf16.msra.mxu0 %v14773_v29  ;;  %v16246_v29 = vld [vmem:[#allocation8 + $0x1260] sm:$0xf0] }
 0x4ec   :  { %10556 = vmatpush.bf16.msra.mxu1 %v15093_v2  ;;  %v18344_v2 = vld [vmem:[#allocation8 + $0xb34] sm:$0xf0] }
 0x4ed   :  { %10570 = vmatpush.bf16.msra.mxu2 %v15413_v41  ;;  %v16249_v41 = vor.u32 %v18568_v0, %v16246_v29  ;;  %v15333_v10 = vor.u32 %v18344_v2, %v15332_v32  ;;  %v18548_v0 = vld [vmem:[#allocation8 + $0x119c] sm:$0xf]  ;;  %v16166_v29 = vld [vmem:[#allocation8 + $0x11c0] sm:$0xf0]  ;;  %v15252_v32 = vld [vmem:[#allocation8 + $0xa70] sm:$0xf] }
 0x4ee   :  { %10474 = vmatpush.bf16.msra.mxu3 %v16289_v61  ;;  %v16209_v61 = vor.u32 %v18558_v63, %v16206_v50  ;;  %v14532_v2 = vld [vmem:[#allocation8 + $0x4d0] sm:$0xf]  ;;  %v18624_v50 = vld [vmem:[#allocation8 + $0x13f4] sm:$0xf0] }
 0x4ef   :  { %10543 = vmatpush.bf16.msra.mxu0 %v14733_v34  ;;  %v10227_v34 = vpop.f32.mrf.mxu1  ;;  %v16452_v63 = vld [vmem:[#allocation8 + $0x13d0] sm:$0xf] }
 0x4f0   :  { %10557 = vmatpush.bf16.msra.mxu1 %v15053_v19  ;;  %v15292_v19 = vld [vmem:[#allocation8 + $0xac0] sm:$0xf]  ;;  %v19886_v45 = vadd.f32 %v10227_v34, %v10214_v5  ;;  %v16132_v5 = vld [vmem:[#allocation8 + $0x1150] sm:$0xf]  ;;  %v18544_v34 = vld [vmem:[#allocation8 + $0x1174] sm:$0xf0] }
 0x4f1   :  { %10571 = vmatpush.bf16.msra.mxu2 %v15373_v7  ;;  %v15293_v7 = vor.u32 %v18334_v55, %v15292_v19  ;;  %v14573_v19 = vor.u32 %v18154_v13, %v14572_v30  ;;  %v14893_v55 = vor.u32 %v18234_v31, %v14892_v33  ;;  %v18124_v30 = vld [vmem:[#allocation8 + $0x454] sm:$0xf0]  ;;  %v16732_v13 = vld [vmem:[#allocation8 + $0x1600] sm:$0xf]  ;;  %v18694_v31 = vld [vmem:[#allocation8 + $0x1624] sm:$0xf0] }
 0x4f2   :  { %20195 = vst [vmem:[#allocation60_spill] sm:$0xff] %v19886_v45  ;;  %10475 = vmatpush.bf16.msra.mxu3 %v16249_v41  ;;  %v16169_v41 = vor.u32 %v18548_v0, %v16166_v29  ;;  %v18134_v45 = vld [vmem:[#allocation8 + $0x4a4] sm:$0xf0]  ;;  %v16092_v0 = vld [vmem:[#allocation8 + $0x1100] sm:$0xf] }
 0x4f3   :  { %10544 = vmatpush.bf16.msra.mxu0 %v14693_v37  ;;  %v14613_v37 = vor.u32 %v18164_v49, %v14612_v17  ;;  %v16133_v17 = vor.u32 %v18544_v34, %v16132_v5  ;;  %v16453_v49 = vor.u32 %v18624_v50, %v16452_v63  ;;  %v18534_v29 = vld [vmem:[#allocation8 + $0x1124] sm:$0xf0]  ;;  %v16052_v5 = vld [vmem:[#allocation8 + $0x10b0] sm:$0xf]  ;;  %v18604_v63 = vld [vmem:[#allocation8 + $0x1354] sm:$0xf0] }
 0x4f4   :  { %10558 = vmatpush.bf16.msra.mxu1 %v15013_v56  ;;  %v18144_v56 = vld [vmem:[#allocation8 + $0x4f4] sm:$0xf0]  ;;  %v16372_v34 = vld [vmem:[#allocation8 + $0x1330] sm:$0xf] }
 0x4f5   :  { %10572 = vmatpush.bf16.msra.mxu2 %v15333_v10  ;;  %v15253_v10 = vor.u32 %v18324_v43, %v15252_v32  ;;  %v14493_v43 = vor.u32 %v18134_v45, %v14492_v4  ;;  %v18594_v4 = vld [vmem:[#allocation8 + $0x1304] sm:$0xf0] }
 0x4f6   :  { %10476 = vmatpush.bf16.msra.mxu3 %v16209_v61  ;;  %v18704_v61 = vld [vmem:[#allocation8 + $0x1674] sm:$0xf0] }
 0x4f7   :  { %10545 = vmatpush.bf16.msra.mxu0 %v14653_v60  ;;  %v14533_v60 = vor.u32 %v18144_v56, %v14532_v2  ;;  %v16773_v2 = vor.u32 %v18704_v61, %v16772_v20  ;;  %v14452_v56 = vld [vmem:[#allocation8 + $0x430] sm:$0xf]  ;;  %v16733_v20 = vor.u32 %v18694_v31, %v16732_v13  ;;  %v18584_v13 = vld [vmem:[#allocation8 + $0x12b4] sm:$0xf0] }
 0x4f8   :  { %10559 = vmatpush.bf16.msra.mxu1 %v14973_v52  ;;  %v15212_v52 = vld [vmem:[#allocation8 + $0xa20] sm:$0xf]  ;;  %v14453_v45 = vor.u32 %v18124_v30, %v14452_v56  ;;  %v18504_v56 = vld [vmem:[#allocation8 + $0x1034] sm:$0xf0]  ;;  %v16292_v30 = vld [vmem:[#allocation8 + $0x1290] sm:$0xf] }
 0x4f9   :  { %10573 = vmatpush.bf16.msra.mxu2 %v15293_v7  ;;  %v16412_v7 = vld [vmem:[#allocation8 + $0x1380] sm:$0xf]  ;;  %v15213_v32 = vor.u32 %v18314_v8, %v15212_v52  ;;  %v18684_v52 = vld [vmem:[#allocation8 + $0x15d4] sm:$0xf0] }
 0x4fa   :  { %10477 = vmatpush.bf16.msra.mxu3 %v16169_v41  ;;  %v18524_v41 = vld [vmem:[#allocation8 + $0x10d4] sm:$0xf0]  ;;  %v16012_v8 = vld [vmem:[#allocation8 + $0x1060] sm:$0xf] }
 0x4fb   :  { %10546 = vmatpush.bf16.msra.mxu0 %v14613_v37  ;;  %v18614_v37 = vld [vmem:[#allocation8 + $0x13a4] sm:$0xf0]  ;;  %v16053_v50 = vor.u32 %v18524_v41, %v16052_v5  ;;  %v14332_v41 = vld [vmem:[#allocation8 + $0x340] sm:$0xf] }
 0x4fc   :  { %10560 = vmatpush.bf16.msra.mxu1 %v14933_v27  ;;  %v16093_v27 = vor.u32 %v18534_v29, %v16092_v0  ;;  %v16413_v33 = vor.u32 %v18614_v37, %v16412_v7  ;;  %v14372_v7 = vld [vmem:[#allocation8 + $0x390] sm:$0xf]  ;;  %v18104_v37 = vld [vmem:[#allocation8 + $0x3b4] sm:$0xf0] }
 0x4fd   :  { %10574 = vmatpush.bf16.msra.mxu2 %v15253_v10  ;;  %10478 = vmatmul.bf16.vlgmr.msra.gmra.mxu3 %v19574_v44  ;;  %v14412_v10 = vld [vmem:[#allocation8 + $0x3e0] sm:$0xf] }
 0x4fe   :  { %10526 = vmatpush.bf16.msrb.mxu3 %v14533_v60  ;;  %v18114_v60 = vld [vmem:[#allocation8 + $0x404] sm:$0xf0] }
 0x4ff   :  { %10547 = vmatpush.bf16.msra.mxu0 %v14573_v19  ;;  %v16692_v19 = vld [vmem:[#allocation8 + $0x15b0] sm:$0xf]  ;;  %v14413_v61 = vor.u32 %v18114_v60, %v14412_v10  ;;  %v18494_v10 = vld [vmem:[#allocation8 + $0xfe4] sm:$0xf0]  ;;  %v16252_v60 = vld [vmem:[#allocation8 + $0x1240] sm:$0xf] }
 0x500   :  { %10561 = vmatpush.bf16.msra.mxu1 %v14893_v55  ;;  %v16373_v55 = vor.u32 %v18604_v63, %v16372_v34  ;;  %v16693_v0 = vor.u32 %v18684_v52, %v16692_v19  ;;  %v18094_v34 = vld [vmem:[#allocation8 + $0x364] sm:$0xf0]  ;;  %v16612_v63 = vld [vmem:[#allocation8 + $0x1510] sm:$0xf] }
 0x501   :  { %10575 = vmatpush.bf16.msra.mxu2 %v15213_v32  ;;  %v16652_v32 = vld [vmem:[#allocation8 + $0x1560] sm:$0xf]  ;;  %v18574_v19 = vld [vmem:[#allocation8 + $0x1264] sm:$0xf0] }
 0x502   :  { %10548 = vmatmul.bf16.vlgmr.msra.gmra.mxu0 %v19521_v15  ;;  %10527 = vmatpush.bf16.msrb.mxu3 %v14493_v43 }
 0x503   :  { %10596 = vmatpush.bf16.msrb.mxu0 %v16133_v17  ;;  %10562 = vmatmul.bf16.vlgmr.msra.gmra.mxu1 %v19523_v38  ;;  %v18514_v17 = vld [vmem:[#allocation8 + $0x1084] sm:$0xf0] }
 0x504   :  { %10610 = vmatpush.bf16.msrb.mxu1 %v16453_v49  ;;  %10576 = vmatmul.bf16.vlgmr.msra.gmra.mxu2 %v19527_v12  ;;  %v16332_v49 = vld [vmem:[#allocation8 + $0x12e0] sm:$0xf]  ;;  %v16013_v29 = vor.u32 %v18514_v17, %v16012_v8  ;;  %v14292_v17 = vld [vmem:[#allocation8 + $0x2f0] sm:$0xf] }
 0x505   :  { %10624 = vmatpush.bf16.msrb.mxu2 %v16773_v2  ;;  %v16333_v43 = vor.u32 %v18594_v4, %v16332_v49  ;;  %v18674_v2 = vld [vmem:[#allocation8 + $0x1584] sm:$0xf0]  ;;  %v18084_v49 = vld [vmem:[#allocation8 + $0x314] sm:$0xf0]  ;;  %v16572_v4 = vld [vmem:[#allocation8 + $0x14c0] sm:$0xf] }
 0x506   :  { %10528 = vmatpush.bf16.msrb.mxu3 %v14453_v45  ;;  %v16653_v31 = vor.u32 %v18674_v2, %v16652_v32  ;;  %v16293_v45 = vor.u32 %v18584_v13, %v16292_v30  ;;  %v18564_v32 = vld [vmem:[#allocation8 + $0x1214] sm:$0xf0]  ;;  %v14252_v2 = vld [vmem:[#allocation8 + $0x2a0] sm:$0xf]  ;;  %v16532_v13 = vld [vmem:[#allocation8 + $0x1470] sm:$0xf] }
 0x507   :  { %10597 = vmatpush.bf16.msrb.mxu0 %v16093_v27  ;;  %v15972_v27 = vld [vmem:[#allocation8 + $0x1010] sm:$0xf] }
 0x508   :  { %10611 = vmatpush.bf16.msrb.mxu1 %v16413_v33  ;;  %v14373_v33 = vor.u32 %v18104_v37, %v14372_v7  ;;  %v15973_v5 = vor.u32 %v18504_v56, %v15972_v27  ;;  %v18484_v7 = vld [vmem:[#allocation8 + $0xf94] sm:$0xf0]  ;;  %v16212_v37 = vld [vmem:[#allocation8 + $0x11f0] sm:$0xf]  ;;  %v18074_v27 = vld [vmem:[#allocation8 + $0x2c4] sm:$0xf0] }
 0x509   :  { %10625 = vmatpush.bf16.msrb.mxu2 %v16733_v20  ;;  %v18664_v20 = vld [vmem:[#allocation8 + $0x1534] sm:$0xf0] }
 0x50a   :  { %10529 = vmatpush.bf16.msrb.mxu3 %v14413_v61  ;;  %v16613_v52 = vor.u32 %v18664_v20, %v16612_v63  ;;  %v16253_v61 = vor.u32 %v18574_v19, %v16252_v60  ;;  %v18474_v63 = vld [vmem:[#allocation8 + $0xf44] sm:$0xf0]  ;;  %v14214_v60 = vld [vmem:[#allocation8 + $0x278] sm:$0xf0]  ;;  %v18139_v19 = vld [vmem:[#allocation8 + $0x4d4] sm:$0xf] }
 0x50b   :  { %10598 = vmatpush.bf16.msrb.mxu0 %v16053_v50  ;;  %v15932_v50 = vld [vmem:[#allocation8 + $0xfc0] sm:$0xf]  ;;  %v18554_v20 = vld [vmem:[#allocation8 + $0x11c4] sm:$0xf0] }
 0x50c   :  { %10612 = vmatpush.bf16.msrb.mxu1 %v16373_v55  ;;  %v14333_v55 = vor.u32 %v18094_v34, %v14332_v41  ;;  %v15933_v8 = vor.u32 %v18494_v10, %v15932_v50  ;;  %v18464_v41 = vld [vmem:[#allocation8 + $0xef4] sm:$0xf0]  ;;  %v15852_v34 = vld [vmem:[#allocation8 + $0xf20] sm:$0xf]  ;;  %v18059_v50 = vld [vmem:[#allocation8 + $0x254] sm:$0xf]  ;;  %v14253_v10 = vor.u32 %v18074_v27, %v14252_v2 }
 0x50d   :  { %10626 = vmatpush.bf16.msrb.mxu2 %v16693_v0  ;;  %v18654_v0 = vld [vmem:[#allocation8 + $0x14e4] sm:$0xf0]  ;;  %v18049_v2 = vld [vmem:[#allocation8 + $0x204] sm:$0xf]  ;;  %v14174_v27 = vld [vmem:[#allocation8 + $0x228] sm:$0xf0] }
 0x50e   :  { %10530 = vmatpush.bf16.msrb.mxu3 %v14373_v33  ;;  %v16573_v56 = vor.u32 %v18654_v0, %v16572_v4  ;;  %v18644_v33 = vld [vmem:[#allocation8 + $0x1494] sm:$0xf0]  ;;  %v16492_v4 = vld [vmem:[#allocation8 + $0x1420] sm:$0xf]  ;;  %v14217_v0 = vor.u32 %v18059_v50, %v14214_v60  ;;  %v18039_v50 = vld [vmem:[#allocation8 + $0x1b4] sm:$0xf] }
 0x50f   :  { %10599 = vmatpush.bf16.msrb.mxu0 %v16013_v29  ;;  %v15892_v29 = vld [vmem:[#allocation8 + $0xf70] sm:$0xf]  ;;  %v18119_v60 = vld [vmem:[#allocation8 + $0x434] sm:$0xf] }
 0x510   :  { %10613 = vmatpush.bf16.msrb.mxu1 %v16333_v43  ;;  %v14293_v43 = vor.u32 %v18084_v49, %v14292_v17  ;;  %v15893_v30 = vor.u32 %v18484_v7, %v15892_v29  ;;  %v15853_v17 = vor.u32 %v18474_v63, %v15852_v34  ;;  %v15772_v7 = vld [vmem:[#allocation8 + $0xe80] sm:$0xf]  ;;  %v18444_v34 = vld [vmem:[#allocation8 + $0xe54] sm:$0xf0]  ;;  %v18209_v63 = vld [vmem:[#allocation8 + $0x704] sm:$0xf] }
 0x511   :  { %10627 = vmatpush.bf16.msrb.mxu2 %v16653_v31  ;;  %v15812_v31 = vld [vmem:[#allocation8 + $0xed0] sm:$0xf] }
 0x512   :  { %10531 = vmatpush.bf16.msrb.mxu3 %v14333_v55  ;;  %v14534_v55 = vld [vmem:[#allocation8 + $0x4f8] sm:$0xf0] }
 0x513   :  { %10600 = vmatpush.bf16.msrb.mxu0 %v15973_v5  ;;  %v16213_v5 = vor.u32 %v18564_v32, %v16212_v37  ;;  %v14537_v29 = vor.u32 %v18139_v19, %v14534_v55  ;;  %v18454_v37 = vld [vmem:[#allocation8 + $0xea4] sm:$0xf0]  ;;  %v18219_v32 = vld [vmem:[#allocation8 + $0x754] sm:$0xf]  ;;  %v14454_v19 = vld [vmem:[#allocation8 + $0x458] sm:$0xf0] }
 0x514   :  { %10614 = vmatpush.bf16.msrb.mxu1 %v16293_v45  ;;  %v16172_v45 = vld [vmem:[#allocation8 + $0x11a0] sm:$0xf] }
 0x515   :  { %10628 = vmatpush.bf16.msrb.mxu2 %v16613_v52  ;;  %v16533_v52 = vor.u32 %v18644_v33, %v16532_v13  ;;  %v16173_v49 = vor.u32 %v18554_v20, %v16172_v45  ;;  %v15773_v33 = vor.u32 %v18454_v37, %v15772_v7  ;;  %v14814_v20 = vld [vmem:[#allocation8 + $0x728] sm:$0xf0]  ;;  %v18109_v37 = vld [vmem:[#allocation8 + $0x3e4] sm:$0xf] }
 0x516   :  { %10532 = vmatpush.bf16.msrb.mxu3 %v14293_v43  ;;  %v14854_v43 = vld [vmem:[#allocation8 + $0x778] sm:$0xf0]  ;;  %v14094_v7 = vld [vmem:[#allocation8 + $0x188] sm:$0xf0] }
 0x517   :  { %10601 = vmatpush.bf16.msrb.mxu0 %v15933_v8  ;;  %v15813_v8 = vor.u32 %v18464_v41, %v15812_v31  ;;  %v14857_v31 = vor.u32 %v18219_v32, %v14854_v43  ;;  %v15732_v41 = vld [vmem:[#allocation8 + $0xe30] sm:$0xf]  ;;  %v14414_v32 = vld [vmem:[#allocation8 + $0x408] sm:$0xf0] }
 0x518   :  { %10615 = vmatpush.bf16.msrb.mxu1 %v16253_v61  ;;  %v18634_v61 = vld [vmem:[#allocation8 + $0x1444] sm:$0xf0]  ;;  %v15733_v55 = vor.u32 %v18444_v34, %v15732_v41  ;;  %v14054_v41 = vld [vmem:[#allocation8 + $0x138] sm:$0xf0]  ;;  %v18099_v34 = vld [vmem:[#allocation8 + $0x394] sm:$0xf] }
 0x519   :  { %10629 = vmatpush.bf16.msrb.mxu2 %v16573_v56  ;;  %v18129_v56 = vld [vmem:[#allocation8 + $0x484] sm:$0xf]  ;;  %v16493_v13 = vor.u32 %v18634_v61, %v16492_v4  ;;  %v18199_v4 = vld [vmem:[#allocation8 + $0x6b4] sm:$0xf]  ;;  %v14457_v61 = vor.u32 %v18119_v60, %v14454_v19  ;;  %v18414_v60 = vld [vmem:[#allocation8 + $0xd64] sm:$0xf0] }
 0x51a   :  { %10533 = vmatpush.bf16.msrb.mxu3 %v14253_v10  ;;  %v14134_v10 = vld [vmem:[#allocation8 + $0x1d8] sm:$0xf0]  ;;  %v18179_v19 = vld [vmem:[#allocation8 + $0x614] sm:$0xf] }
 0x51b   :  { %10602 = vmatpush.bf16.msrb.mxu0 %v15893_v30  ;;  %v14494_v30 = vld [vmem:[#allocation8 + $0x4a8] sm:$0xf0] }
 0x51c   :  { %10616 = vmatpush.bf16.msrb.mxu1 %v16213_v5  ;;  %v14177_v5 = vor.u32 %v18049_v2, %v14174_v27  ;;  %v14497_v45 = vor.u32 %v18129_v56, %v14494_v30  ;;  %v15652_v56 = vld [vmem:[#allocation8 + $0xd90] sm:$0xf]  ;;  %v18424_v30 = vld [vmem:[#allocation8 + $0xdb4] sm:$0xf0] }
 0x51d   :  { %10630 = vmatpush.bf16.msrb.mxu2 %v16533_v52  ;;  %10534 = vmatmul.bf16.vlgmr.msrb.gmra.mxu3 %v19455_v58  ;;  %v14817_v52 = vor.u32 %v18209_v63, %v14814_v20  ;;  %v14374_v63 = vld [vmem:[#allocation8 + $0x3b8] sm:$0xf0] }
 0x51e   :  { %10582 = vmatpush.bf16.msra.mxu3 %v15813_v8  ;;  %v14137_v8 = vor.u32 %v18039_v50, %v14134_v10  ;;  %v15612_v10 = vld [vmem:[#allocation8 + $0xd40] sm:$0xf] }
 0x51f   :  { %10603 = vmatpush.bf16.msrb.mxu0 %v15853_v17  ;;  %v15692_v17 = vld [vmem:[#allocation8 + $0xde0] sm:$0xf] }
 0x520   :  { %10617 = vmatpush.bf16.msrb.mxu1 %v16173_v49  ;;  %v18434_v49 = vld [vmem:[#allocation8 + $0xe04] sm:$0xf0] }
 0x521   :  { %10631 = vmatpush.bf16.msrb.mxu2 %v16493_v13  ;;  %v15693_v43 = vor.u32 %v18434_v49, %v15692_v17  ;;  %v18189_v13 = vld [vmem:[#allocation8 + $0x664] sm:$0xf]  ;;  %v14014_v17 = vld [vmem:[#allocation8 + $0xe8] sm:$0xf0] }
 0x522   :  { %10604 = vmatmul.bf16.vlgmr.msrb.gmra.mxu0 %v19572_v6  ;;  %10583 = vmatpush.bf16.msra.mxu3 %v15773_v33  ;;  %v14417_v33 = vor.u32 %v18109_v37, %v14414_v32  ;;  %v18089_v49 = vld [vmem:[#allocation8 + $0x344] sm:$0xf]  ;;  %v18404_v37 = vld [vmem:[#allocation8 + $0xd14] sm:$0xf0] }
 0x523   :  { %10652 = vmatpush.bf16.msra.mxu0 %v14217_v0  ;;  %10618 = vmatmul.bf16.vlgmr.msrb.gmra.mxu1 %v19574_v44  ;;  %v14774_v0 = vld [vmem:[#allocation8 + $0x6d8] sm:$0xf0]  ;;  %v18169_v32 = vld [vmem:[#allocation8 + $0x5c4] sm:$0xf] }
 0x524   :  { %10666 = vmatpush.bf16.msra.mxu1 %v14537_v29  ;;  %v18029_v29 = vld [vmem:[#allocation8 + $0x164] sm:$0xf]  ;;  %10632 = vmatmul.bf16.vlgmr.msrb.gmra.mxu2 %v19582_v51  ;;  %v14777_v2 = vor.u32 %v18199_v4, %v14774_v0  ;;  %v14334_v4 = vld [vmem:[#allocation8 + $0x368] sm:$0xf0] }
 0x525   :  { %10680 = vmatpush.bf16.msra.mxu2 %v14857_v31  ;;  %v14097_v27 = vor.u32 %v18029_v29, %v14094_v7  ;;  %v14734_v31 = vld [vmem:[#allocation8 + $0x688] sm:$0xf0]  ;;  %v15572_v7 = vld [vmem:[#allocation8 + $0xcf0] sm:$0xf] }
 0x526   :  { %10584 = vmatpush.bf16.msra.mxu3 %v15733_v55  ;;  %v14737_v20 = vor.u32 %v18189_v13, %v14734_v31  ;;  %v14377_v55 = vor.u32 %v18099_v34, %v14374_v63  ;;  %v14294_v13 = vld [vmem:[#allocation8 + $0x318] sm:$0xf0]  ;;  %v15532_v31 = vld [vmem:[#allocation8 + $0xca0] sm:$0xf]  ;;  %v18159_v63 = vld [vmem:[#allocation8 + $0x574] sm:$0xf] }
 0x527   :  { %10653 = vmatpush.bf16.msra.mxu0 %v14177_v5  ;;  %v18019_v5 = vld [vmem:[#allocation8 + $0x114] sm:$0xf] }
 0x528   :  { %10667 = vmatpush.bf16.msra.mxu1 %v14497_v45  ;;  %v15653_v45 = vor.u32 %v18424_v30, %v15652_v56  ;;  %v14057_v50 = vor.u32 %v18019_v5, %v14054_v41  ;;  %v13974_v56 = vld [vmem:[#allocation8 + $0x98] sm:$0xf0]  ;;  %v18079_v30 = vld [vmem:[#allocation8 + $0x2f4] sm:$0xf]  ;;  %v18394_v5 = vld [vmem:[#allocation8 + $0xcc4] sm:$0xf0] }
 0x529   :  { %10681 = vmatpush.bf16.msra.mxu2 %v14817_v52  ;;  %v14694_v52 = vld [vmem:[#allocation8 + $0x638] sm:$0xf0] }
 0x52a   :  { %10585 = vmatpush.bf16.msra.mxu3 %v15693_v43  ;;  %v14697_v0 = vor.u32 %v18179_v19, %v14694_v52  ;;  %v14337_v43 = vor.u32 %v18089_v49, %v14334_v4  ;;  %v13934_v19 = vld [vmem:[#allocation8 + $0x48] sm:$0xf0]  ;;  %v15494_v49 = vld [vmem:[#allocation8 + $0xc78] sm:$0xf0]  ;;  %v18459_v4 = vld [vmem:[#allocation8 + $0xed4] sm:$0xf] }
 0x52b   :  { %10654 = vmatpush.bf16.msra.mxu0 %v14137_v8  ;;  %v18009_v8 = vld [vmem:[#allocation8 + $0xc4] sm:$0xf]  ;;  %v14254_v52 = vld [vmem:[#allocation8 + $0x2c8] sm:$0xf0] }
 0x52c   :  { %10668 = vmatpush.bf16.msra.mxu1 %v14457_v61  ;;  %v15613_v61 = vor.u32 %v18414_v60, %v15612_v10  ;;  %v14017_v29 = vor.u32 %v18009_v8, %v14014_v17  ;;  %v18784_v10 = vld [vmem:[#allocation8 + $0x18f4] sm:$0xf0]  ;;  %v17989_v60 = vld [vmem:[#allocation8 + $0x24] sm:$0xf]  ;;  %v18379_v8 = vld [vmem:[#allocation8 + $0xc54] sm:$0xf]  ;;  %v15533_v17 = vor.u32 %v18394_v5, %v15532_v31 }
 0x52d   :  { %10682 = vmatpush.bf16.msra.mxu2 %v14777_v2  ;;  %v14654_v2 = vld [vmem:[#allocation8 + $0x5e8] sm:$0xf0]  ;;  %v18369_v31 = vld [vmem:[#allocation8 + $0xc04] sm:$0xf] }
 0x52e   :  { %10586 = vmatpush.bf16.msra.mxu3 %v15653_v45  ;;  %v14657_v41 = vor.u32 %v18169_v32, %v14654_v2  ;;  %v14614_v45 = vld [vmem:[#allocation8 + $0x598] sm:$0xf0]  ;;  %v18149_v32 = vld [vmem:[#allocation8 + $0x524] sm:$0xf]  ;;  %v15497_v2 = vor.u32 %v18379_v8, %v15494_v49  ;;  %v15454_v5 = vld [vmem:[#allocation8 + $0xc28] sm:$0xf0] }
 0x52f   :  { %10655 = vmatpush.bf16.msra.mxu0 %v14097_v27  ;;  %v17999_v27 = vld [vmem:[#allocation8 + $0x74] sm:$0xf] }
 0x530   :  { %10669 = vmatpush.bf16.msra.mxu1 %v14417_v33  ;;  %v15573_v33 = vor.u32 %v18404_v37, %v15572_v7  ;;  %v13977_v34 = vor.u32 %v17999_v27, %v13974_v56  ;;  %v13937_v7 = vor.u32 %v17989_v60, %v13934_v19  ;;  %v17052_v56 = vld [vmem:[#allocation8 + $0x1880] sm:$0xf]  ;;  %v18764_v60 = vld [vmem:[#allocation8 + $0x1854] sm:$0xf0]  ;;  %v18529_v19 = vld [vmem:[#allocation8 + $0x1104] sm:$0xf] }
 0x531   :  { %10683 = vmatpush.bf16.msra.mxu2 %v14737_v20  ;;  %v17092_v20 = vld [vmem:[#allocation8 + $0x18d0] sm:$0xf]  ;;  %v18359_v8 = vld [vmem:[#allocation8 + $0xbb4] sm:$0xf] }
 0x532   :  { %10587 = vmatpush.bf16.msra.mxu3 %v15613_v61  ;;  %v15814_v61 = vld [vmem:[#allocation8 + $0xef8] sm:$0xf0]  ;;  %v18439_v49 = vld [vmem:[#allocation8 + $0xe34] sm:$0xf] }
 0x533   :  { %10656 = vmatpush.bf16.msra.mxu0 %v14057_v50  ;;  %v14297_v50 = vor.u32 %v18079_v30, %v14294_v13  ;;  %v15817_v27 = vor.u32 %v18459_v4, %v15814_v61  ;;  %v18774_v30 = vld [vmem:[#allocation8 + $0x18a4] sm:$0xf0]  ;;  %v18539_v13 = vld [vmem:[#allocation8 + $0x1154] sm:$0xf]  ;;  %v15734_v4 = vld [vmem:[#allocation8 + $0xe58] sm:$0xf0] }
 0x534   :  { %10670 = vmatpush.bf16.msra.mxu1 %v14377_v55  ;;  %v18069_v55 = vld [vmem:[#allocation8 + $0x2a4] sm:$0xf] }
 0x535   :  { %10684 = vmatpush.bf16.msra.mxu2 %v14697_v0  ;;  %v14617_v0 = vor.u32 %v18159_v63, %v14614_v45  ;;  %v14257_v37 = vor.u32 %v18069_v55, %v14254_v52  ;;  %v17053_v45 = vor.u32 %v18774_v30, %v17052_v56  ;;  %v16094_v52 = vld [vmem:[#allocation8 + $0x1128] sm:$0xf0] }
 0x536   :  { %10588 = vmatpush.bf16.msra.mxu3 %v15573_v33  ;;  %v16134_v33 = vld [vmem:[#allocation8 + $0x1178] sm:$0xf0]  ;;  %v15374_v56 = vld [vmem:[#allocation8 + $0xb88] sm:$0xf0] }
 0x537   :  { %10657 = vmatpush.bf16.msra.mxu0 %v14017_v29  ;;  %v17093_v29 = vor.u32 %v18784_v10, %v17092_v20  ;;  %v16137_v20 = vor.u32 %v18539_v13, %v16134_v33  ;;  %v17012_v10 = vld [vmem:[#allocation8 + $0x1830] sm:$0xf] }
 0x538   :  { %10671 = vmatpush.bf16.msra.mxu1 %v14337_v43  ;;  %v14574_v43 = vld [vmem:[#allocation8 + $0x548] sm:$0xf0]  ;;  %v17013_v61 = vor.u32 %v18764_v60, %v17012_v10  ;;  %v18419_v10 = vld [vmem:[#allocation8 + $0xd94] sm:$0xf]  ;;  %v19902_v60 = vpop.f32.mrf.mxu3 }
 0x539   :  { %10685 = vmatpush.bf16.msra.mxu2 %v14657_v41  ;;  %v18449_v41 = vld [vmem:[#allocation8 + $0xe84] sm:$0xf]  ;;  %v14577_v63 = vor.u32 %v18149_v32, %v14574_v43  ;;  %v18519_v32 = vld [vmem:[#allocation8 + $0x10b4] sm:$0xf]  ;;  %v15737_v43 = vor.u32 %v18439_v49, %v15734_v4  ;;  %20196 = vst [vmem:[#allocation61_spill] sm:$0xff] %v19902_v60 }
 0x53a   :  { %10589 = vmatpush.bf16.msra.mxu3 %v15533_v17  ;;  %v15414_v17 = vld [vmem:[#allocation8 + $0xbd8] sm:$0xf0]  ;;  %v18499_v49 = vld [vmem:[#allocation8 + $0x1014] sm:$0xf]  ;;  %v15134_v60 = vld [vmem:[#allocation8 + $0x9a8] sm:$0xf0] }
 0x53b   :  { %10658 = vmatpush.bf16.msra.mxu0 %v13977_v34  ;;  %v15774_v34 = vld [vmem:[#allocation8 + $0xea8] sm:$0xf0] }
 0x53c   :  { %10672 = vmatpush.bf16.msra.mxu1 %v14297_v50  ;;  %v15457_v50 = vor.u32 %v18369_v31, %v15454_v5  ;;  %v15777_v55 = vor.u32 %v18449_v41, %v15774_v34  ;;  %v16932_v31 = vld [vmem:[#allocation8 + $0x1790] sm:$0xf]  ;;  %v18744_v5 = vld [vmem:[#allocation8 + $0x17b4] sm:$0xf0]  ;;  %v18509_v41 = vld [vmem:[#allocation8 + $0x1064] sm:$0xf] }
 0x53d   :  { %10686 = vmatpush.bf16.msra.mxu2 %v14617_v0  ;;  %10590 = vmatmul.bf16.vlgmr.msra.gmra.mxu3 %v19534_v54  ;;  %v16097_v0 = vor.u32 %v18529_v19, %v16094_v52  ;;  %v16933_v19 = vor.u32 %v18744_v5, %v16932_v31  ;;  %v15254_v31 = vld [vmem:[#allocation8 + $0xa98] sm:$0xf0] }
 0x53e   :  { %10638 = vmatpush.bf16.msrb.mxu3 %v17093_v29  ;;  %v15417_v29 = vor.u32 %v18359_v8, %v15414_v17  ;;  %v16892_v8 = vld [vmem:[#allocation8 + $0x1740] sm:$0xf]  ;;  %v18734_v17 = vld [vmem:[#allocation8 + $0x1764] sm:$0xf0] }
 0x53f   :  { %10659 = vmatpush.bf16.msra.mxu0 %v13937_v7  ;;  %v16972_v7 = vld [vmem:[#allocation8 + $0x17e0] sm:$0xf] }
 0x540   :  { %10673 = vmatpush.bf16.msra.mxu1 %v14257_v37  ;;  %v18754_v37 = vld [vmem:[#allocation8 + $0x1804] sm:$0xf0] }
 0x541   :  { %10687 = vmatpush.bf16.msra.mxu2 %v14577_v63  ;;  %v16973_v30 = vor.u32 %v18754_v37, %v16972_v7  ;;  %v16014_v63 = vld [vmem:[#allocation8 + $0x1088] sm:$0xf0]  ;;  %v18409_v7 = vld [vmem:[#allocation8 + $0xd44] sm:$0xf] }
 0x542   :  { %10660 = vmatmul.bf16.vlgmr.msra.gmra.mxu0 %v19439_v36  ;;  %10639 = vmatpush.bf16.msrb.mxu3 %v17053_v45  ;;  %v18429_v36 = vld [vmem:[#allocation8 + $0xde4] sm:$0xf]  ;;  %v18339_v45 = vld [vmem:[#allocation8 + $0xb14] sm:$0xf]  ;;  %v15614_v37 = vld [vmem:[#allocation8 + $0xd68] sm:$0xf0] }
 0x543   :  { %10708 = vmatpush.bf16.msrb.mxu0 %v15497_v2  ;;  %10674 = vmatmul.bf16.vlgmr.msra.gmra.mxu1 %v19455_v58  ;;  %v16054_v2 = vld [vmem:[#allocation8 + $0x10d8] sm:$0xf0]  ;;  %v15694_v58 = vld [vmem:[#allocation8 + $0xe08] sm:$0xf0] }
 0x544   :  { %10722 = vmatpush.bf16.msrb.mxu1 %v15817_v27  ;;  %v18349_v27 = vld [vmem:[#allocation8 + $0xb64] sm:$0xf]  ;;  %10688 = vmatmul.bf16.vlgmr.msra.gmra.mxu2 %v19521_v15  ;;  %v16057_v13 = vor.u32 %v18519_v32, %v16054_v2  ;;  %v15697_v34 = vor.u32 %v18429_v36, %v15694_v58  ;;  %v15654_v15 = vld [vmem:[#allocation8 + $0xdb8] sm:$0xf0]  ;;  %v16893_v32 = vor.u32 %v18734_v17, %v16892_v8  ;;  %v19904_v58 = vpop.f32.mrf.mxu0  ;;  %v18299_v8 = vld [vmem:[#allocation8 + $0x9d4] sm:$0xf]  ;;  %v19910_v17 = vpop.f32.mrf.mxu1 }
 0x545   :  { %10736 = vmatpush.bf16.msrb.mxu2 %v16137_v20  ;;  %v15377_v33 = vor.u32 %v18349_v27, %v15374_v56  ;;  %v15334_v20 = vld [vmem:[#allocation8 + $0xb38] sm:$0xf0]  ;;  %v15657_v4 = vor.u32 %v18419_v10, %v15654_v15  ;;  %v16852_v27 = vld [vmem:[#allocation8 + $0x16f0] sm:$0xf]  ;;  %v18724_v56 = vld [vmem:[#allocation8 + $0x1714] sm:$0xf0] }
 0x546   :  { %10640 = vmatpush.bf16.msrb.mxu3 %v17013_v61  ;;  %v15337_v52 = vor.u32 %v18339_v45, %v15334_v20  ;;  %v15974_v61 = vld [vmem:[#allocation8 + $0x1038] sm:$0xf0]  ;;  %v18489_v36 = vld [vmem:[#allocation8 + $0xfc4] sm:$0xf]  ;;  %20197 = vst [vmem:[#allocation62_spill] sm:$0xff] %v19904_v58  ;;  %v16853_v45 = vor.u32 %v18724_v56, %v16852_v27 }
 0x547   :  { %10709 = vmatpush.bf16.msrb.mxu0 %v15457_v50  ;;  %v19900_v50 = vpop.f32.mrf.mxu2  ;;  %v16812_v20 = vld [vmem:[#allocation8 + $0x16a0] sm:$0xf]  ;;  %v18714_v10 = vld [vmem:[#allocation8 + $0x16c4] sm:$0xf0]  ;;  %20198 = vst [vmem:[#allocation63_spill] sm:$0xff] %v19910_v17 }
 0x548   :  { %10723 = vmatpush.bf16.msrb.mxu1 %v15777_v55  ;;  %v16017_v55 = vor.u32 %v18509_v41, %v16014_v63  ;;  %v18399_v41 = vld [vmem:[#allocation8 + $0xcf4] sm:$0xf]  ;;  %v19908_v63 = vpop.f32.mrf.mxu3  ;;  %v16774_v27 = vld [vmem:[#allocation8 + $0x1678] sm:$0xf0]  ;;  %v15854_v17 = vld [vmem:[#allocation8 + $0xf48] sm:$0xf0] }
 0x549   :  { %10737 = vmatpush.bf16.msrb.mxu2 %v16097_v0  ;;  %v18329_v0 = vld [vmem:[#allocation8 + $0xac4] sm:$0xf] }
 0x54a   :  { %10641 = vmatpush.bf16.msrb.mxu3 %v16973_v30  ;;  %v15617_v30 = vor.u32 %v18409_v7, %v15614_v37  ;;  %v15534_v7 = vld [vmem:[#allocation8 + $0xcc8] sm:$0xf0]  ;;  %v18699_v37 = vld [vmem:[#allocation8 + $0x1654] sm:$0xf]  ;;  %v18289_v58 = vld [vmem:[#allocation8 + $0x984] sm:$0xf] }
 0x54b   :  { %10710 = vmatpush.bf16.msrb.mxu0 %v15417_v29  ;;  %v15294_v29 = vld [vmem:[#allocation8 + $0xae8] sm:$0xf0] }
 0x54c   :  { %10724 = vmatpush.bf16.msrb.mxu1 %v15737_v43  ;;  %v15977_v43 = vor.u32 %v18499_v49, %v15974_v61  ;;  %v15297_v2 = vor.u32 %v18329_v0, %v15294_v29  ;;  %v18309_v61 = vld [vmem:[#allocation8 + $0xa24] sm:$0xf]  ;;  %v15214_v0 = vld [vmem:[#allocation8 + $0xa48] sm:$0xf0] }
 0x54d   :  { %10738 = vmatpush.bf16.msrb.mxu2 %v16057_v13  ;;  %v15934_v13 = vld [vmem:[#allocation8 + $0xfe8] sm:$0xf0]  ;;  %v18389_v29 = vld [vmem:[#allocation8 + $0xca4] sm:$0xf] }
 0x54e   :  { %10642 = vmatpush.bf16.msrb.mxu3 %v16933_v19  ;;  %v15937_v15 = vor.u32 %v18489_v36, %v15934_v13  ;;  %v19912_v13 = vpop.f32.mrf.mxu0 }
 0x54f   :  { %10711 = vmatpush.bf16.msrb.mxu0 %v15377_v33  ;;  %v18319_v33 = vld [vmem:[#allocation8 + $0xa74] sm:$0xf]  ;;  %v19906_v5 = vpop.f32.mrf.mxu2 }
 0x550   :  { %10725 = vmatpush.bf16.msrb.mxu1 %v15697_v34  ;;  %v15574_v34 = vld [vmem:[#allocation8 + $0xd18] sm:$0xf0]  ;;  %v15257_v19 = vor.u32 %v18319_v33, %v15254_v31  ;;  %v15537_v33 = vor.u32 %v18389_v29, %v15534_v7  ;;  %v18469_v31 = vld [vmem:[#allocation8 + $0xf24] sm:$0xf]  ;;  %v18279_v7 = vld [vmem:[#allocation8 + $0x934] sm:$0xf] }
 0x551   :  { %10739 = vmatpush.bf16.msrb.mxu2 %v16017_v55  ;;  %v18479_v55 = vld [vmem:[#allocation8 + $0xf74] sm:$0xf]  ;;  %v15577_v49 = vor.u32 %v18399_v41, %v15574_v34  ;;  %v16777_v41 = vor.u32 %v18699_v37, %v16774_v27  ;;  %v15094_v37 = vld [vmem:[#allocation8 + $0x958] sm:$0xf0] }
 0x552   :  { %10643 = vmatpush.bf16.msrb.mxu3 %v16893_v32  ;;  %v16813_v32 = vor.u32 %v18714_v10, %v16812_v20  ;;  %v16734_v20 = vld [vmem:[#allocation8 + $0x1628] sm:$0xf0]  ;;  %v18679_v27 = vld [vmem:[#allocation8 + $0x15b4] sm:$0xf] }
 0x553   :  { %10712 = vmatpush.bf16.msrb.mxu0 %v15337_v52  ;;  %v15894_v52 = vld [vmem:[#allocation8 + $0xf98] sm:$0xf0] }
 0x554   :  { %10726 = vmatpush.bf16.msrb.mxu1 %v15657_v4  ;;  %v15174_v4 = vld [vmem:[#allocation8 + $0x9f8] sm:$0xf0]  ;;  %v15897_v56 = vor.u32 %v18479_v55, %v15894_v52  ;;  %v19916_v55 = vpop.f32.mrf.mxu1  ;;  %v19918_v52 = vpop.f32.mrf.mxu3 }
 0x555   :  { %10740 = vmatpush.bf16.msrb.mxu2 %v15977_v43  ;;  %v18779_v43 = vld [vmem:[#allocation8 + $0x18d4] sm:$0xf]  ;;  %v15177_v36 = vor.u32 %v18299_v8, %v15174_v4  ;;  %v15857_v8 = vor.u32 %v18469_v31, %v15854_v17  ;;  %v20199_v4 = vperm.slane %v19595_v35, 0 }
 0x556   :  { %10644 = vmatpush.bf16.msrb.mxu3 %v16853_v45  ;;  %v18689_v45 = vld [vmem:[#allocation8 + $0x1604] sm:$0xf] }
 0x557   :  { %10713 = vmatpush.bf16.msrb.mxu0 %v15297_v2  ;;  %v17094_v2 = vld [vmem:[#allocation8 + $0x18f8] sm:$0xf0]  ;;  %v19914_v10 = vpop.f32.mrf.mxu2  ;;  %v16737_v29 = vor.u32 %v18689_v45, %v16734_v20  ;;  %v18749_v45 = vld [vmem:[#allocation8 + $0x17e4] sm:$0xf] }
 0x558   :  { %10727 = vmatpush.bf16.msrb.mxu1 %v15617_v30  ;;  %v15217_v30 = vor.u32 %v18309_v61, %v15214_v0  ;;  %v17097_v34 = vor.u32 %v18779_v43, %v17094_v2  ;;  %v9404_v61 = vadd.f32 %v19608_v39, %v20199_v4  ;;  %v18792_v0 = vld [vmem:[#allocation11 + $0x38] sm:$0xff]  ;;  %v16694_v43 = vld [vmem:[#allocation8 + $0x15d8] sm:$0xf0]  ;;  %v15097_v39 = vor.u32 %v18279_v7, %v15094_v37  ;;  %v18739_v7 = vld [vmem:[#allocation8 + $0x1794] sm:$0xf] }
 0x559   :  { %10741 = vmatpush.bf16.msrb.mxu2 %v15937_v15  ;;  %v18769_v15 = vld [vmem:[#allocation8 + $0x1884] sm:$0xf]  ;;  %v18791_v2 = vld [vmem:[#allocation11 + $0x30] sm:$0xff] }
 0x55a   :  { %10645 = vmatpush.bf16.msrb.mxu3 %v16813_v32  ;;  %v9418_v17 = vadd.f32 %v19610_v22, %v9404_v61  ;;  %v16974_v22 = vld [vmem:[#allocation8 + $0x1808] sm:$0xf0]  ;;  %v15014_v4 = vld [vmem:[#allocation8 + $0x8b8] sm:$0xf0] }
 0x55b   :  { %10714 = vmatpush.bf16.msrb.mxu0 %v15257_v19  ;;  %v17054_v19 = vld [vmem:[#allocation8 + $0x18a8] sm:$0xf0]  ;;  %v16934_v37 = vld [vmem:[#allocation8 + $0x17b8] sm:$0xf0] }
 0x55c   :  { %10728 = vmatpush.bf16.msrb.mxu1 %v15577_v49  ;;  %v15137_v49 = vor.u32 %v18289_v58, %v15134_v60  ;;  %v17057_v32 = vor.u32 %v18769_v15, %v17054_v19  ;;  %v18759_v60 = vld [vmem:[#allocation8 + $0x1834] sm:$0xf]  ;;  %v17014_v58 = vld [vmem:[#allocation8 + $0x1858] sm:$0xf0]  ;;  %v19933_v20 = vpop.f32.mrf.mxu3  ;;  %v19935_v61 = vpop.f32.mrf.mxu1 }
 0x55d   :  { %10742 = vmatpush.bf16.msrb.mxu2 %v15897_v56  ;;  %10646 = vmatmul.bf16.vlgmr.msrb.gmra.mxu3 %v19602_v14  ;;  %v16697_v56 = vor.u32 %v18679_v27, %v16694_v43  ;;  %v17017_v31 = vor.u32 %v18759_v60, %v17014_v58  ;;  %v18790_v19 = vld [vmem:[#allocation11 + $0x28] sm:$0xff]  ;;  %v18789_v43 = vld [vmem:[#allocation11 + $0x20] sm:$0xff]  ;;  %v18249_v58 = vld [vmem:[#allocation8 + $0x844] sm:$0xf] }
 0x55e   :  { %10694 = vmatpush.bf16.msra.mxu3 %v15177_v36  ;;  %v18269_v36 = vld [vmem:[#allocation8 + $0x8e4] sm:$0xf] }
 0x55f   :  { %10715 = vmatpush.bf16.msrb.mxu0 %v15217_v30  ;;  %v15054_v30 = vld [vmem:[#allocation8 + $0x908] sm:$0xf0] }
 0x560   :  { %10729 = vmatpush.bf16.msrb.mxu1 %v15537_v33  ;;  %v19927_v33 = vpop.f32.mrf.mxu0  ;;  %v15057_v15 = vor.u32 %v18269_v36, %v15054_v30  ;;  %v16574_v36 = vld [vmem:[#allocation8 + $0x14e8] sm:$0xf0]  ;;  %v18729_v30 = vld [vmem:[#allocation8 + $0x1744] sm:$0xf] }
 0x561   :  { %10743 = vmatpush.bf16.msrb.mxu2 %v15857_v8 }
 0x562   :  { %10716 = vmatmul.bf16.vlgmr.msrb.gmra.mxu0 %v19527_v12  ;;  %10695 = vmatpush.bf16.msra.mxu3 %v15137_v49  ;;  %v18669_v12 = vld [vmem:[#allocation8 + $0x1564] sm:$0xf]  ;;  %v18259_v49 = vld [vmem:[#allocation8 + $0x894] sm:$0xf] }
 0x563   :  { %10764 = vmatpush.bf16.msra.mxu0 %v16777_v41  ;;  %10730 = vmatmul.bf16.vlgmr.msrb.gmra.mxu1 %v19534_v54  ;;  %v16654_v41 = vld [vmem:[#allocation8 + $0x1588] sm:$0xf0]  ;;  %v9432_v54 = vadd.f32 %v19617_v53, %v9418_v17  ;;  %v16977_v53 = vor.u32 %v18749_v45, %v16974_v22  ;;  %v18239_v45 = vld [vmem:[#allocation8 + $0x7f4] sm:$0xf]  ;;  %v14934_v22 = vld [vmem:[#allocation8 + $0x818] sm:$0xf0] }
 0x564   :  { %10778 = vmatpush.bf16.msra.mxu1 %v17097_v34  ;;  %v19930_v34 = vpop.f32.mrf.mxu2  ;;  %10744 = vmatmul.bf16.vlgmr.msrb.gmra.mxu2 %v19572_v6  ;;  %v16657_v8 = vor.u32 %v18669_v12, %v16654_v41 }
 0x565   :  { %11466 = vmatpush.bf16.msra.mxu2 %v18792_v0  ;;  %v18659_v0 = vld [vmem:[#allocation8 + $0x1514] sm:$0xf]  ;;  %v9446_v6 = vadd.f32 %v19621_v16, %v9432_v54  ;;  %v16894_v16 = vld [vmem:[#allocation8 + $0x1768] sm:$0xf0] }
 0x566   :  { %10696 = vmatpush.bf16.msra.mxu3 %v15097_v39  ;;  %v14974_v39 = vld [vmem:[#allocation8 + $0x868] sm:$0xf0] }
 0x567   :  { %10765 = vmatpush.bf16.msra.mxu0 %v16737_v29  ;;  %v16614_v29 = vld [vmem:[#allocation8 + $0x1538] sm:$0xf0]  ;;  %v9460_v27 = vadd.f32 %v19634_v40, %v9446_v6  ;;  %v18788_v40 = vld [vmem:[#allocation11 + $0x18] sm:$0xff] }
 0x568   :  { %10779 = vmatpush.bf16.msra.mxu1 %v17057_v32  ;;  %v15017_v32 = vor.u32 %v18259_v49, %v15014_v4  ;;  %v16617_v60 = vor.u32 %v18659_v0, %v16614_v29  ;;  %v19939_v17 = vpop.f32.mrf.mxu0  ;;  %v18639_v49 = vld [vmem:[#allocation8 + $0x1474] sm:$0xf]  ;;  %v16534_v4 = vld [vmem:[#allocation8 + $0x1498] sm:$0xf0]  ;;  %v14937_v29 = vor.u32 %v18239_v45, %v14934_v22 }
 0x569   :  { %11467 = vmatpush.bf16.msra.mxu2 %v18791_v2  ;;  %v16937_v2 = vor.u32 %v18739_v7, %v16934_v37  ;;  %v9474_v12 = vadd.f32 %v19654_v46, %v9460_v27  ;;  %v18719_v0 = vld [vmem:[#allocation8 + $0x16f4] sm:$0xf]  ;;  %v16854_v46 = vld [vmem:[#allocation8 + $0x1718] sm:$0xf0]  ;;  %v16537_v7 = vor.u32 %v18639_v49, %v16534_v4  ;;  %v18229_v37 = vld [vmem:[#allocation8 + $0x7a4] sm:$0xf] }
 0x56a   :  { %10697 = vmatpush.bf16.msra.mxu3 %v15057_v15  ;;  %v19944_v15 = vpop.f32.mrf.mxu1  ;;  %v18787_v6 = vld [vmem:[#allocation11 + $0x10] sm:$0xff]  ;;  %v20200_v27 = vperm.slane %v19704_v26, 2  ;;  %v18808_v49 = vld [vmem:[#allocation11 + $0xb8] sm:$0xff] }
 0x56b   :  { %10766 = vmatpush.bf16.msra.mxu0 %v16697_v56  ;;  %v18649_v56 = vld [vmem:[#allocation8 + $0x14c4] sm:$0xf] }
 0x56c   :  { %10780 = vmatpush.bf16.msra.mxu1 %v17017_v31  ;;  %v14977_v31 = vor.u32 %v18249_v58, %v14974_v39  ;;  %v19942_v41 = vpop.f32.mrf.mxu2  ;;  %v16577_v54 = vor.u32 %v18649_v56, %v16574_v36  ;;  %v18619_v58 = vld [vmem:[#allocation8 + $0x13d4] sm:$0xf]  ;;  %v16454_v39 = vld [vmem:[#allocation8 + $0x13f8] sm:$0xf0]  ;;  %v20201_v56 = vperm.slane %v19704_v26, 3 }
 0x56d   :  { %11468 = vmatpush.bf16.msra.mxu2 %v18790_v19  ;;  %v19946_v19 = vpop.f32.mrf.mxu3  ;;  %v16457_v22 = vor.u32 %v18619_v58, %v16454_v39  ;;  %v16374_v58 = vld [vmem:[#allocation8 + $0x1358] sm:$0xf0]  ;;  %v20203_v39 = vld [vmem:[#allocation27_spill] sm:$0xff] }
 0x56e   :  { %10698 = vmatpush.bf16.msra.mxu3 %v15017_v32  ;;  %v14894_v32 = vld [vmem:[#allocation8 + $0x7c8] sm:$0xf0]  ;;  %v9824_v36 = vadd.f32 %v19763_v59, %v20201_v56 }
 0x56f   :  { %10767 = vmatpush.bf16.msra.mxu0 %v16657_v8  ;;  %v16897_v8 = vor.u32 %v18729_v30, %v16894_v16  ;;  %v16494_v30 = vld [vmem:[#allocation8 + $0x1448] sm:$0xf0]  ;;  %v18709_v16 = vld [vmem:[#allocation8 + $0x16a4] sm:$0xf] }
 0x570   :  { %10781 = vmatpush.bf16.msra.mxu1 %v16977_v53  ;;  %v9488_v53 = vadd.f32 %v19627_v47, %v9474_v12  ;;  %v9838_v4 = vadd.f32 %v19766_v18, %v9824_v36  ;;  %v20205_v36 = vld [vmem:[#allocation47_spill] sm:$0xff] }
 0x571   :  { %11469 = vmatpush.bf16.msra.mxu2 %v18789_v43  ;;  %v9684_v43 = vadd.f32 %v19697_v1, %v20200_v27  ;;  %v14897_v1 = vor.u32 %v18229_v37, %v14894_v32  ;;  %v18824_v27 = vld [vmem:[#allocation11 + $0x138] sm:$0xff] }
 0x572   :  { %10699 = vmatpush.bf16.msra.mxu3 %v14977_v31  ;;  %v9502_v47 = vadd.f32 %v19632_v62, %v9488_v53  ;;  %v16814_v31 = vld [vmem:[#allocation8 + $0x16c8] sm:$0xf0]  ;;  %v18786_v62 = vld [vmem:[#allocation11 + $0x8] sm:$0xff]  ;;  %v20202_v53 = vperm.slane %v19806_v11, 4  ;;  %v9852_v37 = vadd.f32 %v19768_v25, %v9838_v4 }
 0x573   :  { %10768 = vmatpush.bf16.msra.mxu0 %v16617_v60  ;;  %v16857_v60 = vor.u32 %v18719_v0, %v16854_v46  ;;  %v9698_v12 = vadd.f32 %v19734_v48, %v9684_v43  ;;  %v18816_v0 = vld [vmem:[#allocation11 + $0xf8] sm:$0xff] }
 0x574   :  { %10782 = vmatpush.bf16.msra.mxu1 %v16937_v2  ;;  %v18629_v2 = vld [vmem:[#allocation8 + $0x1424] sm:$0xf]  ;;  %v19960_v45 = vpop.f32.mrf.mxu2  ;;  %v9866_v43 = vadd.f32 %v19776_v9, %v9852_v37  ;;  %v18805_v37 = vld [vmem:[#allocation11 + $0xa0] sm:$0xff] }
 0x575   :  { %11470 = vmatpush.bf16.msra.mxu2 %v18788_v40  ;;  %v19957_v40 = vpop.f32.mrf.mxu0  ;;  %v19962_v26 = vpop.f32.mrf.mxu3  ;;  %v16497_v59 = vor.u32 %v18629_v2, %v16494_v30  ;;  %v18609_v46 = vld [vmem:[#allocation8 + $0x1384] sm:$0xf] }
 0x576   :  { %10700 = vmatpush.bf16.msra.mxu3 %v14937_v29  ;;  %v16414_v29 = vld [vmem:[#allocation8 + $0x13a8] sm:$0xf0] }
 0x577   :  { %10769 = vmatpush.bf16.msra.mxu0 %v16577_v54  ;;  %v9516_v54 = vadd.f32 %v19645_v21, %v9502_v47  ;;  %v9964_v21 = vadd.f32 %v19799_v23, %v20202_v53  ;;  %v16417_v18 = vor.u32 %v18609_v46, %v16414_v29  ;;  %v20204_v47 = vld [vmem:[#allocation31_spill] sm:$0xff]  ;;  %v20209_v53 = vld [vmem:[#allocation28_spill] sm:$0xff] }
 0x578   :  { %10783 = vmatpush.bf16.msra.mxu1 %v16897_v8  ;;  %v16817_v8 = vor.u32 %v18709_v16, %v16814_v31  ;;  %v10792_v56 = vmax.f32 %v20204_v47, 0.0  ;;  %v18823_v16 = vld [vmem:[#allocation11 + $0x130] sm:$0xff]  ;;  %v18822_v46 = vld [vmem:[#allocation11 + $0x128] sm:$0xff] }
 0x579   :  { %11471 = vmatpush.bf16.msra.mxu2 %v18787_v6  ;;  %v9530_v48 = vadd.f32 %v19665_v24, %v9516_v54  ;;  %v9712_v6 = vadd.f32 %v19710_v57, %v9698_v12  ;;  %v9978_v32 = vadd.f32 %v19836_v42, %v9964_v21  ;;  %v18785_v24 = vld [vmem:[#allocation11] sm:$0xff]  ;;  %v18807_v57 = vld [vmem:[#allocation11 + $0xb0] sm:$0xff] }
 0x57a   :  { %10701 = vmatpush.bf16.msra.mxu3 %v14897_v1  ;;  %v18815_v42 = vld [vmem:[#allocation11 + $0xf0] sm:$0xff]  ;;  %v20206_v12 = vld [vmem:[#allocation21_spill] sm:$0xff] }
 0x57b   :  { %10770 = vmatpush.bf16.msra.mxu0 %v16537_v7  ;;  %v19970_v7 = vpop.f32.mrf.mxu1  ;;  %v10802_v23 = vmax.f32 %v9530_v48, 0.0  ;;  %v9726_v2 = vadd.f32 %v20203_v39, %v9712_v6  ;;  %v9992_v30 = vadd.f32 %v20205_v36, %v9978_v32  ;;  %v9880_v1 = vadd.f32 %v20206_v12, %v9866_v43  ;;  %v20208_v48 = vld [vmem:[#allocation48_spill] sm:$0xff]  ;;  %v20210_v29 = vld [vmem:[#allocation35_spill] sm:$0xff]  ;;  %v18821_v39 = vld [vmem:[#allocation11 + $0x120] sm:$0xff] }
 0x57c   :  { %10784 = vmatpush.bf16.msra.mxu1 %v16857_v60  ;;  %v18599_v60 = vld [vmem:[#allocation8 + $0x1334] sm:$0xf]  ;;  %v19984_v54 = vpop.f32.mrf.mxu2  ;;  %v18804_v36 = vld [vmem:[#allocation11 + $0x98] sm:$0xff]  ;;  %v20214_v12 = vld [vmem:[#allocation46_spill] sm:$0xff] }
 0x57d   :  { %11472 = vmatpush.bf16.msra.mxu2 %v18786_v62  ;;  %v19976_v25 = vpop.f32.mrf.mxu0  ;;  %10702 = vmatmul.bf16.vlgmr.msra.gmra.mxu3 %v19523_v38  ;;  %v16377_v9 = vor.u32 %v18599_v60, %v16374_v58  ;;  %v10812_v31 = vpack.c.bf16 %v10802_v23, %v10792_v56  ;;  %v18806_v38 = vld [vmem:[#allocation11 + $0xa8] sm:$0xff]  ;;  %v18589_v62 = vld [vmem:[#allocation8 + $0x12e4] sm:$0xf]  ;;  %v10006_v4 = vadd.f32 %v20208_v48, %v9992_v30  ;;  %v18803_v48 = vld [vmem:[#allocation11 + $0x90] sm:$0xff] }
 0x57e   :  { %10750 = vmatpush.bf16.msrb.mxu3 %v16457_v22  ;;  %v16334_v22 = vld [vmem:[#allocation8 + $0x1308] sm:$0xf0]  ;;  %v9894_v6 = vadd.f32 %v20210_v29, %v9880_v1  ;;  %v18579_v32 = vld [vmem:[#allocation8 + $0x1294] sm:$0xf]  ;;  %v18569_v30 = vld [vmem:[#allocation8 + $0x1244] sm:$0xf] }
 0x57f   :  { %10771 = vmatpush.bf16.msra.mxu0 %v16497_v59  ;;  %v20207_v59 = vld [vmem:[#allocation37_spill] sm:$0xff]  ;;  %v20212_v43 = vld [vmem:[#allocation23_spill] sm:$0xff]  ;;  %v20218_v29 = vld [vmem:[#allocation34_spill] sm:$0xff] }
 0x580   :  { %10785 = vmatpush.bf16.msra.mxu1 %v16817_v8  ;;  %v9740_v8 = vadd.f32 %v20207_v59, %v9726_v2  ;;  %v20213_v2 = vld [vmem:[#allocation29_spill] sm:$0xff] }
 0x581   :  { %11473 = vmatpush.bf16.msra.mxu2 %v18785_v24  ;;  %v16294_v24 = vld [vmem:[#allocation8 + $0x12b8] sm:$0xf0] }
 0x582   :  { %10772 = vmatmul.bf16.vlgmr.msra.gmra.mxu0 %v19582_v51  ;;  %10751 = vmatpush.bf16.msrb.mxu3 %v16417_v18  ;;  %v19989_v51 = vpop.f32.mrf.mxu3  ;;  %v9754_v21 = vadd.f32 %v20209_v53, %v9740_v8  ;;  %v18813_v18 = vld [vmem:[#allocation11 + $0xe0] sm:$0xff]  ;;  %v16297_v58 = vor.u32 %v18579_v32, %v16294_v24  ;;  %v18820_v8 = vld [vmem:[#allocation11 + $0x118] sm:$0xff]  ;;  %v16214_v53 = vld [vmem:[#allocation8 + $0x1218] sm:$0xf0] }
 0x583   :  { %11494 = vmatpush.bf16.msrb.mxu0 %v18808_v49  ;;  %10786 = vmatmul.bf16.vlgmr.msra.gmra.mxu1 %v19602_v14  ;;  %v19987_v49 = vpop.f32.mrf.mxu1  ;;  %v18814_v14 = vld [vmem:[#allocation11 + $0xe8] sm:$0xff] }
 0x584   :  { %11508 = vmatpush.bf16.msrb.mxu1 %v18816_v0  ;;  %11474 = vmatmul.bf16.vlgmr.msra.gmra.mxu2 %v10812_v31  ;;  %v16337_v0 = vor.u32 %v18589_v62, %v16334_v22  ;;  %v19998_v56 = vpop.f32.mrf.mxu2  ;;  %v18812_v31 = vld [vmem:[#allocation11 + $0xd8] sm:$0xff] }
 0x585   :  { %11522 = vmatpush.bf16.msrb.mxu2 %v18824_v27  ;;  %v20211_v27 = vld [vmem:[#allocation49_spill] sm:$0xff]  ;;  %v10383_v60 = vpop.f32.mrf.mxu0 }
 0x586   :  { %10752 = vmatpush.bf16.msrb.mxu3 %v16377_v9  ;;  %v10020_v23 = vadd.f32 %v20211_v27, %v10006_v4  ;;  %v16254_v9 = vld [vmem:[#allocation8 + $0x1268] sm:$0xf0]  ;;  %v18559_v4 = vld [vmem:[#allocation8 + $0x11f4] sm:$0xf]  ;;  %v18819_v27 = vld [vmem:[#allocation11 + $0x110] sm:$0xff] }
 0x587   :  { %11495 = vmatpush.bf16.msrb.mxu0 %v18807_v57  ;;  %v9768_v57 = vadd.f32 %v20212_v43, %v9754_v21  ;;  %v16257_v59 = vor.u32 %v18569_v30, %v16254_v9  ;;  %v18811_v21 = vld [vmem:[#allocation11 + $0xd0] sm:$0xff]  ;;  %v20222_v30 = vld [vmem:[#allocation38_spill] sm:$0xff] }
 0x588   :  { %11509 = vmatpush.bf16.msrb.mxu1 %v18815_v42  ;;  %v9908_v42 = vadd.f32 %v20213_v2, %v9894_v6  ;;  %v10034_v47 = vadd.f32 %v19854_v28, %v10020_v23  ;;  %v20216_v28 = vld [vmem:[#allocation50_spill] sm:$0xff]  ;;  %v20219_v23 = vperm.slane %v19595_v35, 1  ;;  %v20220_v43 = vld [vmem:[#allocation40_spill] sm:$0xff] }
 0x589   :  { %11523 = vmatpush.bf16.msrb.mxu2 %v18823_v16 }
 0x58a   :  { %10753 = vmatpush.bf16.msrb.mxu3 %v16337_v0  ;;  %v20000_v16 = vpop.f32.mrf.mxu3  ;;  %v9922_v1 = vadd.f32 %v20214_v12, %v9908_v42  ;;  %v20217_v0 = vld [vmem:[#allocation36_spill] sm:$0xff]  ;;  %v18802_v42 = vld [vmem:[#allocation11 + $0x88] sm:$0xff] }
 0x58b   :  { %11496 = vmatpush.bf16.msrb.mxu0 %v18806_v38  ;;  %v20215_v38 = vld [vmem:[#allocation30_spill] sm:$0xff]  ;;  %v10397_v22 = vpop.f32.mrf.mxu1 }
 0x58c   :  { %11510 = vmatpush.bf16.msrb.mxu1 %v18814_v14  ;;  %v9782_v62 = vadd.f32 %v20215_v38, %v9768_v57  ;;  %v10048_v14 = vadd.f32 %v20216_v28, %v10034_v47  ;;  %v9544_v57 = vadd.f32 %v20220_v43, %v20219_v23  ;;  %v18549_v47 = vld [vmem:[#allocation8 + $0x11a4] sm:$0xf]  ;;  %v18810_v12 = vld [vmem:[#allocation11 + $0xc8] sm:$0xff]  ;;  %v10411_v35 = vpop.f32.mrf.mxu2 }
 0x58d   :  { %11524 = vmatpush.bf16.msrb.mxu2 %v18822_v46  ;;  %v9936_v46 = vadd.f32 %v20217_v0, %v9922_v1  ;;  %v20007_v24 = vpop.f32.mrf.mxu0  ;;  %v20223_v1 = vld [vmem:[#allocation25_spill] sm:$0xff]  ;;  %v20225_v0 = vld [vmem:[#allocation52_spill] sm:$0xff]  ;;  %v20227_v23 = vld [vmem:[#allocation54_spill] sm:$0xff] }
 0x58e   :  { %10754 = vmatpush.bf16.msrb.mxu3 %v16297_v58  ;;  %v9796_v6 = vadd.f32 %v20218_v29, %v9782_v62  ;;  %v20221_v58 = vld [vmem:[#allocation51_spill] sm:$0xff] }
 0x58f   :  { %11497 = vmatpush.bf16.msrb.mxu0 %v18805_v37  ;;  %v18886_v37 = vld [vmem:[#allocation10] sm:$0xff]  ;;  %v9950_v38 = vadd.f32 %v20223_v1, %v9936_v46  ;;  %v18817_v1 = vld [vmem:[#allocation11 + $0x100] sm:$0xff] }
 0x590   :  { %11511 = vmatpush.bf16.msrb.mxu1 %v18813_v18  ;;  %v5378_v32 = vperm.slane %v18886_v37, 6  ;;  %v16217_v18 = vor.u32 %v18559_v4, %v16214_v53  ;;  %v5379_v2 = vperm.slane %v18886_v37, 7  ;;  %v9810_v9 = vadd.f32 %v20222_v30, %v9796_v6  ;;  %v20224_v4 = vld [vmem:[#allocation44_spill] sm:$0xff]  ;;  %v18809_v6 = vld [vmem:[#allocation11 + $0xc0] sm:$0xff] }
 0x591   :  { %11525 = vmatpush.bf16.msrb.mxu2 %v18821_v39  ;;  %v10062_v39 = vadd.f32 %v20221_v58, %v10048_v14  ;;  %v9558_v53 = vadd.f32 %v20224_v4, %v9544_v57  ;;  %v20226_v37 = vld [vmem:[#allocation20_spill] sm:$0xff] }
 0x592   :  { %10755 = vmatpush.bf16.msrb.mxu3 %v16257_v59  ;;  %v10384_v62 = vadd.f32 %v10383_v60, %v5379_v2  ;;  %v10242_v59 = vadd.f32 %v19906_v5, %v5378_v32  ;;  %v18800_v60 = vld [vmem:[#allocation11 + $0x78] sm:$0xff]  ;;  %v10804_v46 = vmax.f32 %v9810_v9, 0.0 }
 0x593   :  { %11498 = vmatpush.bf16.msrb.mxu0 %v18804_v36  ;;  %v16174_v36 = vld [vmem:[#allocation8 + $0x11c8] sm:$0xf0]  ;;  %v20018_v14 = vpop.f32.mrf.mxu1  ;;  %v10076_v29 = vadd.f32 %v20225_v0, %v10062_v39  ;;  %v18840_v58 = vld [vmem:[#allocation11 + $0x1b8] sm:$0xff] }
 0x594   :  { %11512 = vmatpush.bf16.msrb.mxu1 %v18812_v31  ;;  %v10244_v31 = vadd.f32 %v19914_v10, %v5378_v32  ;;  %v10382_v10 = vadd.f32 %v19976_v25, %v5379_v2  ;;  %v10256_v5 = vadd.f32 %v19908_v63, %v10242_v59  ;;  %v9572_v32 = vadd.f32 %v20226_v37, %v9558_v53  ;;  %v18848_v39 = vld [vmem:[#allocation11 + $0x1f8] sm:$0xff] }
 0x595   :  { %11526 = vmatpush.bf16.msrb.mxu2 %v18820_v8  ;;  %v10425_v8 = vpop.f32.mrf.mxu3  ;;  %v10090_v43 = vadd.f32 %v20227_v23, %v10076_v29  ;;  %v10398_v57 = vadd.f32 %v10397_v22, %v10384_v62  ;;  %v20229_v2 = vld [vmem:[#allocation24_spill] sm:$0xff]  ;;  %v10439_v22 = vpop.f32.mrf.mxu0  ;;  %v20232_v29 = vld [vmem:[#allocation53_spill] sm:$0xff] }
 0x596   :  { %v10258_v28 = vadd.f32 %v19918_v52, %v10244_v31  ;;  %10756 = vmatpush.bf16.msrb.mxu3 %v16217_v18  ;;  %v18801_v52 = vld [vmem:[#allocation11 + $0x80] sm:$0xff]  ;;  %v10805_v18 = vmax.f32 %v9950_v38, 0.0  ;;  %v10396_v30 = vadd.f32 %v19987_v49, %v10382_v10  ;;  %v18799_v38 = vld [vmem:[#allocation11 + $0x70] sm:$0xff]  ;;  %v10796_v10 = vmax.f32 %v20232_v29, 0.0 }
 0x597   :  { %11499 = vmatpush.bf16.msrb.mxu0 %v18803_v48  ;;  %v16177_v48 = vor.u32 %v18549_v47, %v16174_v36  ;;  %v20228_v47 = vld [vmem:[#allocation43_spill] sm:$0xff]  ;;  %v10412_v9 = vadd.f32 %v10411_v35, %v10398_v57  ;;  %v18797_v23 = vld [vmem:[#allocation11 + $0x60] sm:$0xff] }
 0x598   :  { %11513 = vmatpush.bf16.msrb.mxu1 %v18811_v21  ;;  %v18818_v21 = vld [vmem:[#allocation11 + $0x108] sm:$0xff]  ;;  %v10794_v25 = vmax.f32 %v20228_v47, 0.0  ;;  %v10410_v59 = vadd.f32 %v19998_v56, %v10396_v30  ;;  %v18839_v49 = vld [vmem:[#allocation11 + $0x1b0] sm:$0xff]  ;;  %v18837_v57 = vld [vmem:[#allocation11 + $0x1a0] sm:$0xff] }
 0x599   :  { %11527 = vmatpush.bf16.msrb.mxu2 %v18819_v27  ;;  %v10272_v27 = vadd.f32 %v19927_v33, %v10258_v28  ;;  %v20230_v36 = vld [vmem:[#allocation39_spill] sm:$0xff]  ;;  %v10806_v33 = vmax.f32 %v10090_v43, 0.0  ;;  %v10465_v28 = vpop.f32.mrf.mxu2  ;;  %v18836_v30 = vld [vmem:[#allocation11 + $0x198] sm:$0xff] }
 0x59a   :  { %10757 = vmatpush.bf16.msrb.mxu3 %v16177_v48  ;;  %v10795_v63 = vmax.f32 %v20230_v36, 0.0  ;;  %v10814_v31 = vpack.c.bf16 %v10804_v46, %v10794_v25  ;;  %v10426_v48 = vadd.f32 %v10425_v8, %v10412_v9  ;;  %v18847_v35 = vld [vmem:[#allocation11 + $0x1f0] sm:$0xff]  ;;  %v18844_v9 = vld [vmem:[#allocation11 + $0x1d8] sm:$0xff] }
 0x59b   :  { %11500 = vmatpush.bf16.msrb.mxu0 %v18802_v42  ;;  %v9586_v42 = vadd.f32 %v20229_v2, %v9572_v32  ;;  %v10286_v4 = vadd.f32 %v19935_v61, %v10272_v27  ;;  %v10453_v8 = vpop.f32.mrf.mxu1  ;;  %v10816_v46 = vpack.c.bf16 %v10806_v33, %v10796_v10  ;;  %v18838_v61 = vld [vmem:[#allocation11 + $0x1a8] sm:$0xff]  ;;  %v18843_v33 = vld [vmem:[#allocation11 + $0x1d0] sm:$0xff] }
 0x59c   :  { %11514 = vmatpush.bf16.msrb.mxu1 %v18810_v12  ;;  %v10270_v12 = vadd.f32 %v19912_v13, %v10256_v5  ;;  %v10815_v62 = vpack.c.bf16 %v10805_v18, %v10795_v63  ;;  %v20231_v13 = vld [vmem:[#allocation32_spill] sm:$0xff]  ;;  %v10440_v5 = vadd.f32 %v10439_v22, %v10426_v48  ;;  %v18842_v10 = vld [vmem:[#allocation11 + $0x1c8] sm:$0xff] }
 0x59d   :  { %11528 = vmatpush.bf16.msrb.mxu2 %v18818_v21  ;;  %v10479_v53 = vpop.f32.mrf.mxu3  ;;  %10758 = vmatmul.bf16.vlgmr.msrb.gmra.mxu3 %v19574_v44  ;;  %v9600_v0 = vadd.f32 %v20231_v13, %v9586_v42  ;;  %v10424_v21 = vadd.f32 %v20000_v16, %v10410_v59  ;;  %v18846_v44 = vld [vmem:[#allocation11 + $0x1e8] sm:$0xff]  ;;  %v10493_v18 = vpop.f32.mrf.mxu0  ;;  %v20239_v13 = vld [vmem:[#allocation33_spill] sm:$0xff] }
 0x59e   :  { %11480 = vmatpush.bf16.msra.mxu3 %v18800_v60  ;;  %v10284_v56 = vadd.f32 %v19916_v55, %v10270_v12  ;;  %v18798_v60 = vld [vmem:[#allocation11 + $0x68] sm:$0xff]  ;;  %v10454_v43 = vadd.f32 %v10453_v8, %v10440_v5 }
 0x59f   :  { %11501 = vmatpush.bf16.msrb.mxu0 %v18801_v52  ;;  %v10300_v52 = vadd.f32 %v19942_v41, %v10286_v4  ;;  %v10438_v16 = vadd.f32 %v20007_v24, %v10424_v21  ;;  %v20234_v41 = vld [vmem:[#allocation45_spill] sm:$0xff]  ;;  %v20235_v42 = vld [vmem:[#allocation42_spill] sm:$0xff] }
 0x5a0   :  { %11515 = vmatpush.bf16.msrb.mxu1 %v18809_v6  ;;  %v20233_v6 = vld [vmem:[#allocation41_spill] sm:$0xff]  ;;  %v10298_v32 = vadd.f32 %v19930_v34, %v10284_v56 }
 0x5a1   :  { %11529 = vmatpush.bf16.msrb.mxu2 %v18817_v1  ;;  %v9614_v37 = vadd.f32 %v20233_v6, %v9600_v0  ;;  %v10314_v55 = vadd.f32 %v19946_v19, %v10300_v52  ;;  %v10467_v25 = vpop.f32.mrf.mxu2  ;;  %v10452_v24 = vadd.f32 %v20018_v14, %v10438_v16  ;;  %v18796_v19 = vld [vmem:[#allocation11 + $0x58] sm:$0xff]  ;;  %v18795_v14 = vld [vmem:[#allocation11 + $0x50] sm:$0xff]  ;;  %v18833_v52 = vld [vmem:[#allocation11 + $0x180] sm:$0xff] }
 0x5a2   :  { %11502 = vmatmul.bf16.vlgmr.msrb.gmra.mxu0 %v10814_v31  ;;  %11481 = vmatpush.bf16.msra.mxu3 %v18799_v38  ;;  %v10468_v63 = vadd.f32 %v10467_v25, %v10454_v43  ;;  %v18856_v6 = vld [vmem:[#allocation11 + $0x238] sm:$0xff]  ;;  %v18855_v43 = vld [vmem:[#allocation11 + $0x230] sm:$0xff]  ;;  %v18854_v25 = vld [vmem:[#allocation11 + $0x228] sm:$0xff] }
 0x5a3   :  { %11550 = vmatpush.bf16.msra.mxu0 %v18840_v58  ;;  %11516 = vmatmul.bf16.vlgmr.msrb.gmra.mxu1 %v10815_v62  ;;  %v18845_v58 = vld [vmem:[#allocation11 + $0x1e0] sm:$0xff]  ;;  %v9628_v47 = vadd.f32 %v20234_v41, %v9614_v37  ;;  %v10328_v27 = vadd.f32 %v19957_v40, %v10314_v55  ;;  %v10507_v34 = vpop.f32.mrf.mxu1  ;;  %v10466_v31 = vadd.f32 %v10465_v28, %v10452_v24  ;;  %v18835_v62 = vld [vmem:[#allocation11 + $0x190] sm:$0xff] }
 0x5a4   :  { %11564 = vmatpush.bf16.msra.mxu1 %v18848_v39  ;;  %11530 = vmatmul.bf16.vlgmr.msrb.gmra.mxu2 %v10816_v46  ;;  %v10312_v39 = vadd.f32 %v19933_v20, %v10298_v32  ;;  %v20236_v40 = vld [vmem:[#allocation22_spill] sm:$0xff]  ;;  %v20241_v37 = vld [vmem:[#allocation57_spill] sm:$0xff] }
 0x5a5   :  { %v10481_v2 = vpop.f32.mrf.mxu3  ;;  %v9642_v36 = vadd.f32 %v20235_v42, %v9628_v47  ;;  %v10342_v22 = vadd.f32 %v19970_v7, %v10328_v27  ;;  %v10480_v38 = vadd.f32 %v10479_v53, %v10466_v31  ;;  %v10495_v48 = vpop.f32.mrf.mxu0  ;;  %v18794_v7 = vld [vmem:[#allocation11 + $0x48] sm:$0xff]  ;;  %v18841_v32 = vld [vmem:[#allocation11 + $0x1c0] sm:$0xff]  ;;  %11578 = vmatpush.bf16.msra.mxu2 %v18856_v6 }
 0x5a6   :  { %11482 = vmatpush.bf16.msra.mxu3 %v18798_v60  ;;  %v10326_v20 = vadd.f32 %v19939_v17, %v10312_v39  ;;  %v10482_v12 = vadd.f32 %v10481_v2, %v10468_v63  ;;  %v20238_v17 = vld [vmem:[#allocation55_spill] sm:$0xff]  ;;  %v20243_v24 = vld [vmem:[#allocation58_spill] sm:$0xff] }
 0x5a7   :  { %11551 = vmatpush.bf16.msra.mxu0 %v18839_v49  ;;  %v9656_v1 = vadd.f32 %v20236_v40, %v9642_v36  ;;  %v10356_v4 = vadd.f32 %v19984_v54, %v10342_v22  ;;  %v10494_v29 = vadd.f32 %v10493_v18, %v10480_v38  ;;  %v18834_v53 = vld [vmem:[#allocation11 + $0x188] sm:$0xff]  ;;  %v18793_v54 = vld [vmem:[#allocation11 + $0x40] sm:$0xff]  ;;  %v18831_v39 = vld [vmem:[#allocation11 + $0x170] sm:$0xff] }
 0x5a8   :  { %11565 = vmatpush.bf16.msra.mxu1 %v18847_v35  ;;  %v10340_v59 = vadd.f32 %v19944_v15, %v10326_v20  ;;  %v10496_v49 = vadd.f32 %v10495_v48, %v10482_v12  ;;  %v20237_v35 = vperm.slane %v19806_v11, 5  ;;  %v20240_v11 = vld [vmem:[#allocation56_spill] sm:$0xff]  ;;  %v20244_v2 = vld [vmem:[#allocation59_spill] sm:$0xff]  ;;  %v18853_v42 = vld [vmem:[#allocation11 + $0x220] sm:$0xff] }
 0x5a9   :  { %v9670_v0 = vadd.f32 %v20239_v13, %v9656_v1  ;;  %v10370_v15 = vadd.f32 %v19989_v51, %v10356_v4  ;;  %v20242_v51 = vld [vmem:[#allocation26_spill] sm:$0xff]  ;;  %11579 = vmatpush.bf16.msra.mxu2 %v18855_v43  ;;  %v20245_v20 = vld [vmem:[#allocation61_spill] sm:$0xff]  ;;  %v18827_v1 = vld [vmem:[#allocation11 + $0x150] sm:$0xff] }
 0x5aa   :  { %11483 = vmatpush.bf16.msra.mxu3 %v18797_v23  ;;  %v10104_v28 = vadd.f32 %v20238_v17, %v20237_v35  ;;  %v10354_v21 = vadd.f32 %v19960_v45, %v10340_v59  ;;  %v10793_v55 = vmax.f32 %v20242_v51, 0.0  ;;  %v18829_v63 = vld [vmem:[#allocation11 + $0x160] sm:$0xff]  ;;  %v18852_v12 = vld [vmem:[#allocation11 + $0x218] sm:$0xff]  ;;  %v18851_v59 = vld [vmem:[#allocation11 + $0x210] sm:$0xff] }
 0x5ab   :  { %11552 = vmatpush.bf16.msra.mxu0 %v18838_v61  ;;  %v10509_v56 = vpop.f32.mrf.mxu1  ;;  %v10803_v5 = vmax.f32 %v9670_v0, 0.0  ;;  %v10508_v61 = vadd.f32 %v10507_v34, %v10494_v29  ;;  %v10808_v45 = vmax.f32 %v10370_v15, 0.0  ;;  %v10521_v34 = vpop.f32.mrf.mxu2  ;;  %v20069_v22 = vld [vmem:[#allocation10 + $0x8] sm:$0x3]  ;;  %v20246_v38 = vld [vmem:[#allocation62_spill] sm:$0xff]  ;;  %v20247_v35 = vld [vmem:[#allocation63_spill] sm:$0xff] }
 0x5ac   :  { %11566 = vmatpush.bf16.msra.mxu1 %v18846_v44  ;;  %v10510_v8 = vadd.f32 %v10509_v56, %v10496_v49  ;;  %v10118_v60 = vadd.f32 %v20240_v11, %v10104_v28  ;;  %v10368_v46 = vadd.f32 %v19962_v26, %v10354_v21  ;;  %v18832_v44 = vld [vmem:[#allocation11 + $0x178] sm:$0xff]  ;;  %v18850_v4 = vld [vmem:[#allocation11 + $0x208] sm:$0xff]  ;;  %v18849_v15 = vld [vmem:[#allocation11 + $0x200] sm:$0xff] }
 0x5ad   :  { %11580 = vmatpush.bf16.msra.mxu2 %v18854_v25  ;;  %v10535_v36 = vpop.f32.mrf.mxu3  ;;  %v10549_v40 = vpop.f32.mrf.mxu0 }
 0x5ae   :  { %11484 = vmatpush.bf16.msra.mxu3 %v18796_v19  ;;  %v10132_v16 = vadd.f32 %v20241_v37, %v10118_v60  ;;  %v10809_v18 = vmax.f32 %v10510_v8, 0.0  ;;  %v10798_v26 = vmax.f32 %v10368_v46, 0.0  ;;  %v20248_v8 = vld [vmem:[#allocation60_spill] sm:$0xff] }
 0x5af   :  { %11553 = vmatpush.bf16.msra.mxu0 %v18837_v57  ;;  %v10813_v57 = vpack.c.bf16 %v10803_v5, %v10793_v55  ;;  %v10797_v11 = vmax.f32 %v20248_v8, 0.0 }
 0x5b0   :  { %11567 = vmatpush.bf16.msra.mxu1 %v18845_v58  ;;  %v10146_v23 = vadd.f32 %v19878_v3, %v10132_v16  ;;  %v10799_v58 = vmax.f32 %v10508_v61, 0.0  ;;  %v10818_v41 = vpack.c.bf16 %v10808_v45, %v10798_v26  ;;  %v18830_v3 = vld [vmem:[#allocation11 + $0x168] sm:$0xff] }
 0x5b1   :  { %11581 = vmatpush.bf16.msra.mxu2 %v18853_v42  ;;  %v18864_v42 = vld [vmem:[#allocation11 + $0x278] sm:$0xff] }
 0x5b2   :  { %11485 = vmatpush.bf16.msra.mxu3 %v18795_v14  ;;  %v10819_v47 = vpack.c.bf16 %v10809_v18, %v10799_v58  ;;  %v10160_v27 = vadd.f32 %v20243_v24, %v10146_v23 }
 0x5b3   :  { %11554 = vmatpush.bf16.msra.mxu0 %v18836_v30  ;;  %v10523_v14 = vpop.f32.mrf.mxu2  ;;  %v10563_v48 = vpop.f32.mrf.mxu1 }
 0x5b4   :  { %11568 = vmatpush.bf16.msra.mxu1 %v18844_v9  ;;  %v10174_v19 = vadd.f32 %v20244_v2, %v10160_v27  ;;  %v18828_v9 = vld [vmem:[#allocation11 + $0x158] sm:$0xff] }
 0x5b5   :  { %11582 = vmatpush.bf16.msra.mxu2 %v18852_v12  ;;  %v10537_v49 = vpop.f32.mrf.mxu3  ;;  %v10551_v29 = vpop.f32.mrf.mxu0  ;;  %v18860_v12 = vld [vmem:[#allocation11 + $0x258] sm:$0xff] }
 0x5b6   :  { %11486 = vmatpush.bf16.msra.mxu3 %v18794_v7  ;;  %v10188_v30 = vadd.f32 %v19900_v50, %v10174_v19  ;;  %v18826_v50 = vld [vmem:[#allocation11 + $0x148] sm:$0xff] }
 0x5b7   :  { %11555 = vmatpush.bf16.msra.mxu0 %v18835_v62 }
 0x5b8   :  { %11569 = vmatpush.bf16.msra.mxu1 %v18843_v33  ;;  %v10202_v31 = vadd.f32 %v20245_v20, %v10188_v30  ;;  %v5380_v33 = vperm.slane %v20069_v22, 0  ;;  %v18862_v30 = vld [vmem:[#allocation11 + $0x268] sm:$0xff] }
 0x5b9   :  { %11583 = vmatpush.bf16.msra.mxu2 %v18851_v59 }
 0x5ba   :  { %11487 = vmatpush.bf16.msra.mxu3 %v18793_v54  ;;  %v10216_v62 = vadd.f32 %v20246_v38, %v10202_v31  ;;  %v10522_v28 = vadd.f32 %v10521_v34, %v5380_v33  ;;  %v10524_v13 = vadd.f32 %v10523_v14, %v5380_v33  ;;  %v18861_v31 = vld [vmem:[#allocation11 + $0x260] sm:$0xff]  ;;  %v5381_v38 = vperm.slane %v20069_v22, 1  ;;  %v18858_v33 = vld [vmem:[#allocation11 + $0x248] sm:$0xff] }
 0x5bb   :  { %11556 = vmatpush.bf16.msra.mxu0 %v18834_v53  ;;  %v10577_v7 = vpop.f32.mrf.mxu2  ;;  %v18825_v53 = vld [vmem:[#allocation11 + $0x140] sm:$0xff]  ;;  %v10565_v46 = vpop.f32.mrf.mxu1 }
 0x5bc   :  { %11570 = vmatpush.bf16.msra.mxu1 %v18842_v10  ;;  %v10230_v17 = vadd.f32 %v20247_v35, %v10216_v62  ;;  %v10536_v0 = vadd.f32 %v10535_v36, %v10522_v28  ;;  %v10538_v21 = vadd.f32 %v10537_v49, %v10524_v13 }
 0x5bd   :  { %11488 = vmatmul.bf16.vlgmr.msra.gmra.mxu3 %v10813_v57  ;;  %11584 = vmatpush.bf16.msra.mxu2 %v18850_v4 }
 0x5be   :  { %11536 = vmatpush.bf16.msrb.mxu3 %v18832_v44  ;;  %v10807_v10 = vmax.f32 %v10230_v17, 0.0  ;;  %v10550_v60 = vadd.f32 %v10549_v40, %v10536_v0  ;;  %v10552_v5 = vadd.f32 %v10551_v29, %v10538_v21  ;;  %v18859_v40 = vld [vmem:[#allocation11 + $0x250] sm:$0xff] }
 0x5bf   :  { %11557 = vmatpush.bf16.msra.mxu0 %v18833_v52  ;;  %v10605_v52 = vpop.f32.mrf.mxu0 }
 0x5c0   :  { %11571 = vmatpush.bf16.msra.mxu1 %v18841_v32  ;;  %v10591_v56 = vpop.f32.mrf.mxu3  ;;  %v10817_v54 = vpack.c.bf16 %v10807_v10, %v10797_v11  ;;  %v10564_v61 = vadd.f32 %v10563_v48, %v10550_v60  ;;  %v10566_v6 = vadd.f32 %v10565_v46, %v10552_v5 }
 0x5c1   :  { %11585 = vmatpush.bf16.msra.mxu2 %v18849_v15 }
 0x5c2   :  { %11558 = vmatmul.bf16.vlgmr.msra.gmra.mxu0 %v10818_v41  ;;  %11537 = vmatpush.bf16.msrb.mxu3 %v18831_v39  ;;  %v10578_v37 = vadd.f32 %v10577_v7, %v10564_v61 }
 0x5c3   :  { %11572 = vmatmul.bf16.vlgmr.msra.gmra.mxu1 %v10819_v47  ;;  %v10579_v44 = vpop.f32.mrf.mxu2  ;;  %v10619_v16 = vpop.f32.mrf.mxu1 }
 0x5c4   :  { %v10592_v32 = vadd.f32 %v10591_v56, %v10578_v37  ;;  %v10580_v51 = vadd.f32 %v10579_v44, %v10566_v6 }
 0x5c6   :  { %11538 = vmatpush.bf16.msrb.mxu3 %v18830_v3  ;;  %v10606_v23 = vadd.f32 %v10605_v52, %v10592_v32 }
 0x5c7   :  { %v10607_v26 = vpop.f32.mrf.mxu0 }
 0x5c8   :  { %v10593_v45 = vpop.f32.mrf.mxu3  ;;  %v10620_v58 = vadd.f32 %v10619_v16, %v10606_v23 }
 0x5c9   :  { %v10594_v55 = vadd.f32 %v10593_v45, %v10580_v51 }
 0x5ca   :  { %11539 = vmatpush.bf16.msrb.mxu3 %v18829_v63  ;;  %v18863_v63 = vld [vmem:[#allocation11 + $0x270] sm:$0xff] }
 0x5cb   :  { %v10633_v18 = vpop.f32.mrf.mxu2  ;;  %v10608_v43 = vadd.f32 %v10607_v26, %v10594_v55  ;;  %v10621_v39 = vpop.f32.mrf.mxu1 }
 0x5cc   :  { %v10634_v47 = vadd.f32 %v10633_v18, %v10620_v58 }
 0x5cd   :  { %v10622_v41 = vadd.f32 %v10621_v39, %v10608_v43 }
 0x5ce   :  { %11540 = vmatpush.bf16.msrb.mxu3 %v18828_v9 }
 0x5cf   :  { %v10661_v9 = vpop.f32.mrf.mxu0 }
 0x5d0   :  { %v10662_v59 = vadd.f32 %v10661_v9, %v5381_v38 }
 0x5d2   :  { %11541 = vmatpush.bf16.msrb.mxu3 %v18827_v1 }
 0x5d3   :  { %v10635_v25 = vpop.f32.mrf.mxu2  ;;  %v10675_v20 = vpop.f32.mrf.mxu1 }
 0x5d4   :  { %v10636_v27 = vadd.f32 %v10635_v25, %v10622_v41  ;;  %v10676_v17 = vadd.f32 %v10675_v20, %v10662_v59 }
 0x5d6   :  { %11542 = vmatpush.bf16.msrb.mxu3 %v18826_v50  ;;  %v18857_v50 = vld [vmem:[#allocation11 + $0x240] sm:$0xff] }
 0x5d7   :  { %v10663_v14 = vpop.f32.mrf.mxu0 }
 0x5d8   :  { %v10664_v28 = vadd.f32 %v10663_v14, %v5381_v38 }
 0x5da   :  { %11543 = vmatpush.bf16.msrb.mxu3 %v18825_v53 }
 0x5db   :  { %v10677_v1 = vpop.f32.mrf.mxu1  ;;  %v10689_v62 = vpop.f32.mrf.mxu2 }
 0x5dc   :  { %v10690_v4 = vadd.f32 %v10689_v62, %v10676_v17  ;;  %v10678_v0 = vadd.f32 %v10677_v1, %v10664_v28 }
 0x5dd   :  { %11544 = vmatmul.bf16.vlgmr.msrb.gmra.mxu3 %v10817_v54 }
 0x5de   :  { %11592 = vmatpush.bf16.msra.mxu3 %v18864_v42 }
 0x5df   :  { %v10717_v48 = vpop.f32.mrf.mxu0 }
 0x5e0   :  { %v10647_v57 = vpop.f32.mrf.mxu3 }
 0x5e1   :  { %v10648_v24 = vadd.f32 %v10647_v57, %v10634_v47  ;;  %v18881_v47 = vld [vmem:[#allocation13] ss:$0 sm:$0xff] }
 0x5e2   :  { %11593 = vmatpush.bf16.msra.mxu3 %v18863_v63 }
 0x5e3   :  { %v10800_v2 = vmax.f32 %v10648_v24, 0.0  ;;  %v10731_v35 = vpop.f32.mrf.mxu1  ;;  %v10691_v7 = vpop.f32.mrf.mxu2 }
 0x5e4   :  { %v10692_v10 = vadd.f32 %v10691_v7, %v10678_v0 }
 0x5e6   :  { %11594 = vmatpush.bf16.msra.mxu3 %v18862_v30 }
 0x5e7   :  { %v10719_v29 = vpop.f32.mrf.mxu0 }
 0x5e8   :  { %v10649_v34 = vpop.f32.mrf.mxu3 }
 0x5e9   :  { %v10650_v3 = vadd.f32 %v10649_v34, %v10636_v27 }
 0x5ea   :  { %11595 = vmatpush.bf16.msra.mxu3 %v18861_v31 }
 0x5eb   :  { %v10810_v19 = vmax.f32 %v10650_v3, 0.0  ;;  %v10733_v21 = vpop.f32.mrf.mxu1  ;;  %v10745_v56 = vpop.f32.mrf.mxu2 }
 0x5ed   :  { %v10820_v36 = vpack.c.bf16 %v10810_v19, %v10800_v2 }
 0x5ee   :  { %11596 = vmatpush.bf16.msra.mxu3 %v18860_v12 }
 0x5ef   :  { %11586 = vmatmul.bf16.vlgmr.msra.gmra.mxu2 %v10820_v36 }
 0x5f2   :  { %11597 = vmatpush.bf16.msra.mxu3 %v18859_v40 }
 0x5f3   :  { %v10747_v52 = vpop.f32.mrf.mxu2 }
 0x5f6   :  { %11598 = vmatpush.bf16.msra.mxu3 %v18858_v33 }
 0x5fa   :  { %11599 = vmatpush.bf16.msra.mxu3 %v18857_v50 }
 0x5ff   :  { %v10773_v60 = vpop.f32.mrf.mxu0 }
 0x600   :  { %v10703_v49 = vpop.f32.mrf.mxu3  ;;  %v10787_v5 = vpop.f32.mrf.mxu1 }
 0x601   :  { %v10704_v13 = vadd.f32 %v10703_v49, %v10690_v4 }
 0x603   :  { %v10718_v22 = vadd.f32 %v10717_v48, %v10704_v13 }
 0x605   :  { %v10732_v8 = vadd.f32 %v10731_v35, %v10718_v22 }
 0x607   :  { %v10746_v54 = vadd.f32 %v10745_v56, %v10732_v8  ;;  %v10775_v32 = vpop.f32.mrf.mxu0  ;;  %v11475_v58 = vpop.f32.mrf.mxu2 }
 0x608   :  { %v10705_v53 = vpop.f32.mrf.mxu3  ;;  %v10789_v18 = vpop.f32.mrf.mxu1  ;;  %v11476_v24 = vadd.f32 %v18881_v47, %v11475_v58 }
 0x609   :  { %v10706_v15 = vadd.f32 %v10705_v53, %v10692_v10 }
 0x60b   :  { %v10720_v11 = vadd.f32 %v10719_v29, %v10706_v15 }
 0x60d   :  { %v10734_v44 = vadd.f32 %v10733_v21, %v10720_v11 }
 0x60f   :  { %v10748_v37 = vadd.f32 %v10747_v52, %v10734_v44  ;;  %v11477_v41 = vpop.f32.mrf.mxu2 }
 0x610   :  { %v11478_v42 = vadd.f32 %v18881_v47, %v11477_v41 }
 0x61f   :  { %v11503_v25 = vpop.f32.mrf.mxu0 }
 0x620   :  { %v10759_v46 = vpop.f32.mrf.mxu3  ;;  %v11517_v3 = vpop.f32.mrf.mxu1 }
 0x621   :  { %v10760_v61 = vadd.f32 %v10759_v46, %v10746_v54 }
 0x623   :  { %v10774_v6 = vadd.f32 %v10773_v60, %v10760_v61 }
 0x625   :  { %v10788_v51 = vadd.f32 %v10787_v5, %v10774_v6 }
 0x627   :  { %v10801_v26 = vmax.f32 %v10788_v51, 0.0  ;;  %v11531_v2 = vpop.f32.mrf.mxu2  ;;  %v11505_v36 = vpop.f32.mrf.mxu0 }
 0x628   :  { %v10761_v16 = vpop.f32.mrf.mxu3  ;;  %v11519_v20 = vpop.f32.mrf.mxu1 }
 0x629   :  { %v10762_v45 = vadd.f32 %v10761_v16, %v10748_v37 }
 0x62b   :  { %v10776_v55 = vadd.f32 %v10775_v32, %v10762_v45 }
 0x62d   :  { %v10790_v23 = vadd.f32 %v10789_v18, %v10776_v55 }
 0x62f   :  { %v10811_v43 = vmax.f32 %v10790_v23, 0.0  ;;  %v11533_v31 = vpop.f32.mrf.mxu2 }
 0x631   :  { %v10821_v57 = vpack.c.bf16 %v10811_v43, %v10801_v26 }
 0x633   :  { %11600 = vmatmul.bf16.vlgmr.msra.gmra.mxu3 %v10821_v57 }
 0x63f   :  { %v11559_v1 = vpop.f32.mrf.mxu0 }
 0x640   :  { %v11489_v39 = vpop.f32.mrf.mxu3  ;;  %v11573_v59 = vpop.f32.mrf.mxu1 }
 0x641   :  { %v11490_v34 = vadd.f32 %v11489_v39, %v11476_v24 }
 0x643   :  { %v11504_v19 = vadd.f32 %v11503_v25, %v11490_v34 }
 0x645   :  { %v11518_v9 = vadd.f32 %v11517_v3, %v11504_v19 }
 0x647   :  { %v11532_v14 = vadd.f32 %v11531_v2, %v11518_v9  ;;  %v11561_v28 = vpop.f32.mrf.mxu0 }
 0x648   :  { %v11491_v27 = vpop.f32.mrf.mxu3  ;;  %v11575_v0 = vpop.f32.mrf.mxu1 }
 0x649   :  { %v11492_v30 = vadd.f32 %v11491_v27, %v11478_v42 }
 0x64b   :  { %v11506_v12 = vadd.f32 %v11505_v36, %v11492_v30 }
 0x64d   :  { %v11520_v38 = vadd.f32 %v11519_v20, %v11506_v12 }
 0x64f   :  { %v11534_v49 = vadd.f32 %v11533_v31, %v11520_v38 }
 0x660   :  { %v11545_v63 = vpop.f32.mrf.mxu3 }
 0x661   :  { %v11546_v40 = vadd.f32 %v11545_v63, %v11532_v14 }
 0x663   :  { %v11560_v33 = vadd.f32 %v11559_v1, %v11546_v40 }
 0x665   :  { %v11574_v35 = vadd.f32 %v11573_v59, %v11560_v33 }
 0x668   :  { %v11547_v62 = vpop.f32.mrf.mxu3 }
 0x669   :  { %v11548_v50 = vadd.f32 %v11547_v62, %v11534_v49 }
 0x66b   :  { %v11562_v7 = vadd.f32 %v11561_v28, %v11548_v50 }
 0x66d   :  { %v11576_v53 = vadd.f32 %v11575_v0, %v11562_v7 }
 0x672   :  { %v11587_v48 = vpop.f32.mrf.mxu2 }
 0x673   :  { %v11588_v17 = vadd.f32 %v11587_v48, %v11574_v35 }
 0x67a   :  { %v11589_v29 = vpop.f32.mrf.mxu2 }
 0x67b   :  { %v11590_v10 = vadd.f32 %v11589_v29, %v11576_v53 }
 0x6b6   :  { %v11601_v4 = vpop.f32.mrf.mxu3 }
 0x6b7   :  { %v11602_v13 = vadd.f32 %v11601_v4, %v11588_v17 }
 0x6b9   :  { %11606 = vst [vmem:[#allocation14] sm:$0xff] %v11602_v13 }
 0x6be   :  { %v11603_v22 = vpop.f32.mrf.mxu3 }
 0x6bf   :  { %v11604_v21 = vadd.f32 %v11603_v22, %v11590_v10 }
 0x6c1   :  { %11607 = vst [vmem:[#allocation14 + $0x8] sm:$0xff] %v11604_v21 }
 0x6c2   :  { %11620 = dma.vmem_to_hbm [thread:$0]  %s11613_s6, 256, %s11615_s1, [#allocation4], %s19103_s16, %s19103_s16, %s19104_s17  }
 0x6c3   :  { %19087 = dma.done.wait [#allocation4], 256  }
 0x6c4   :  { %19088 = vsyncadd [#allocation4], 4294967040 }
 0x6c5   :  { %11625 = vsyncpa [#allocation3], 1 }
 0x6c6   :  { %11626 = vsyncpa [#allocation6], 1 }
 0x6c7   :  { %11627 = vsyncpa [#allocation9], 1 }
 0x6c8   :  { %11628 = vsyncpa [#allocation12], 1 }
 0x6c9   :  { %11629 = vsyncpa [#allocation4], 1 }

</bundles_post_ra>
